<compile_context>
chip_gen: v5e
topology: v5e:2x2
jax: 0.10.0
libtpu: 0.0.40
codegen_flags: <defaults>
</compile_context>

<pallas_src>
import jax
import jax.numpy as jnp
from jax.experimental import pallas as pl
from jax.experimental.pallas import tpu as pltpu

EPS = 1e-5  # PyTorch InstanceNorm2d default


def _fix_pad_borders(pad_ref, H, W):
    """Write the reflection borders of the (H+2, Wp, C) padded scratch.

    Assumes the interior (rows 1..H, cols 1..W) already holds the image.
    """
    # left / right reflected columns of the interior rows
    pad_ref[1:H + 1, 0:1, :] = pad_ref[1:H + 1, 2:3, :]
    pad_ref[1:H + 1, W + 1:W + 2, :] = pad_ref[1:H + 1, W - 1:W, :]
    # top / bottom reflected rows (full padded width, corners included)
    pad_ref[0:1, :, :] = pad_ref[2:3, :, :]
    pad_ref[H + 1:H + 2, :, :] = pad_ref[H - 1:H, :, :]


def _conv3x3(pad_ref, w_ref, H, W, Wp, C):
    """3x3 'valid' conv over the reflection-padded image held in pad_ref.

    pad_ref : VMEM scratch (H+2, Wp, C), reflection-padded activation (input dtype).
    w_ref   : (3, 3, C, C) HWIO weight ref, already in the matmul compute dtype (bf16).
    Returns a f32 (H*Wp, C) accumulator in the padded flat layout: output pixel (h, w)
    sits at row h*Wp + (w+1); columns outside 1..W are junk and get masked by the caller.
    """
    Hp = H + 2
    L = Hp * Wp
    R = H * Wp                                    # rows that can hold valid outputs
    cdt = w_ref.dtype                             # matmul compute dtype (bf16)
    a_flat = pad_ref[...].reshape(L, C)           # layout-preserving (Wp % 8 == 0)
    acc = None
    for dw in range(3):
        # +-1 column tap shift applied on the *input* slab: a_dw[r] = a_flat[r + dw - 1].
        # The two wrap-around rows only ever feed masked (col 0 / col >= W+1) outputs.
        if dw == 1:
            a_dw = a_flat
        else:
            a_dw = pltpu.roll(a_flat, shift=(1 - dw) % L, axis=0)
        a_dw = a_dw.astype(cdt)                   # bf16 operands -> MXU-native matmuls
        for dh in range(3):
            # Row tap shift dh*Wp is a multiple of 8 sublanes -> aligned slice; only the
            # H*Wp output-producing rows enter the matmul.
            opnd = a_dw[dh * Wp:dh * Wp + R, :]
            y = jnp.dot(opnd, w_ref[dh, dw], preferred_element_type=jnp.float32)
            acc = y if acc is None else acc + y
    return acc


def _masked_instance_norm(acc, mask, inv_count):
    """Affine-free InstanceNorm over the valid pixels of the flat accumulator.

    acc: (R, C) f32; mask: (R, 1) bool selecting the H*W valid rows.
    Single-pass statistics in f32: var = E[x^2] - mean^2 (biased, like PyTorch).
    """
    sel = jnp.where(mask, acc, 0.0)
    s1 = jnp.sum(sel, axis=0, keepdims=True)           # (1, C)
    s2 = jnp.sum(sel * sel, axis=0, keepdims=True)     # (1, C)
    mean = s1 * inv_count
    var = jnp.maximum(s2 * inv_count - mean * mean, 0.0)
    return (acc - mean) * jax.lax.rsqrt(var + EPS)


def resnet_block_kernel(x_ref, w1_ref, w2_ref, o_ref, pad_a, pad_b):
    _, H, W, C = x_ref.shape
    Hp, Wp, _ = pad_a.shape
    R = H * Wp
    inv_count = 1.0 / float(H * W)

    x = x_ref[0]                                        # (H, W, C), input dtype

    # ---- reflection pad #1: zero alignment-junk cols, interior store, border fixes ----
    if Wp > W + 2:
        pad_a[:, W + 2:Wp, :] = jnp.zeros((Hp, Wp - (W + 2), C), pad_a.dtype)
    pad_a[1:H + 1, 1:W + 1, :] = x
    _fix_pad_borders(pad_a, H, W)

    # Column-validity mask for the flat (R, C) accumulator (built once, reused twice).
    jj = jax.lax.broadcasted_iota(jnp.int32, (H, Wp, 1), 1).reshape(R, 1)
    mask = (jj >= 1) & (jj <= W)

    # ---- conv1 -> instance norm -> ReLU  (Dropout(0) == identity) ----
    y = _conv3x3(pad_a, w1_ref, H, W, Wp, C)
    y = _masked_instance_norm(y, mask, inv_count)
    y = jnp.maximum(y, 0.0)

    # ---- reflection pad #2: y is already in padded-row layout, only borders needed ----
    pad_b[1:H + 1, :, :] = y.reshape(H, Wp, C).astype(pad_b.dtype)
    _fix_pad_borders(pad_b, H, W)

    # ---- conv2 -> instance norm ----
    y = _conv3x3(pad_b, w2_ref, H, W, Wp, C)
    y = _masked_instance_norm(y, mask, inv_count)

    # ---- residual add in the padded flat layout (x already resident in pad_a), then a
    #      single unaligned interior extraction for the final store ----
    x_res = pad_a[1:H + 1, :, :].reshape(R, C).astype(jnp.float32)
    out = (x_res + y).reshape(H, Wp, C)[:, 1:W + 1, :]
    o_ref[0] = out.astype(o_ref.dtype)


def resnet_block(x_nhwc, w1, b1, w2, b2, *, matmul_dtype=jnp.bfloat16):
    """x_nhwc: (N, H, W, C); w*: (3, 3, C, C) HWIO; b*: (C,).

    Biases are accepted for API parity with nn.Conv2d(bias=True) but cancel exactly
    under the affine-free InstanceNorm that follows each conv, so they are unused.
    Matmuls run in `matmul_dtype` (bf16 by default); IN stats / residual math is f32.
    """
    del b1, b2
    N, H, W, C = x_nhwc.shape
    assert H >= 2 and W >= 2, "reflection pad of 1 needs H, W >= 2"
    Hp = H + 2
    Wp = ((W + 2 + 7) // 8) * 8              # padded width, sublane aligned
    dtype = x_nhwc.dtype
    cdt = jnp.dtype(matmul_dtype)
    w1 = w1.astype(cdt)
    w2 = w2.astype(cdt)

    # VMEM budget: 2 padded scratches + double-buffered I/O blocks + single-buffered
    # weights + f32 accumulator / slab temporaries, with headroom; capped ~25% below
    # the physical per-core VMEM (v7x ~48 MiB, v5e/v6e ~96 MiB).
    itm = jnp.dtype(dtype).itemsize
    citm = cdt.itemsize
    pad_bytes = 2 * Hp * Wp * C * itm
    io_bytes = 4 * H * W * C * itm                       # in + out, double-buffered
    wt_bytes = 2 * 9 * C * C * citm                      # single-buffered
    tmp_bytes = Hp * Wp * C * (2 * itm + citm) + 3 * H * Wp * C * 4
    est = pad_bytes + io_bytes + wt_bytes + tmp_bytes
    try:
        phys_vmem = int(pltpu.get_tpu_info().vmem_capacity_bytes)
    except Exception:
        phys_vmem = 64 * 1024 * 1024                     # conservative (v7x per-core)
    cap = (phys_vmem * 3) // 4
    vmem_limit = int(min(cap, max(16 * 1024 * 1024, 2 * est)))

    return pl.pallas_call(
        resnet_block_kernel,
        out_shape=jax.ShapeDtypeStruct((N, H, W, C), dtype),
        grid_spec=pltpu.PrefetchScalarGridSpec(
            num_scalar_prefetch=0,
            grid=(N,),
            in_specs=[
                pl.BlockSpec((1, H, W, C), lambda n: (n, 0, 0, 0)),       # x
                pl.BlockSpec((3, 3, C, C), lambda n: (0, 0, 0, 0),        # w1 (constant)
                             pipeline_mode=pl.Buffered(1)),
                pl.BlockSpec((3, 3, C, C), lambda n: (0, 0, 0, 0),        # w2 (constant)
                             pipeline_mode=pl.Buffered(1)),
            ],
            out_specs=pl.BlockSpec((1, H, W, C), lambda n: (n, 0, 0, 0)),
            scratch_shapes=[
                pltpu.VMEM((Hp, Wp, C), dtype),   # padded activation A (holds x for residual)
                pltpu.VMEM((Hp, Wp, C), dtype),   # padded activation B (conv1 output)
            ],
        ),
        compiler_params=pltpu.CompilerParams(
            dimension_semantics=("parallel",),
            vmem_limit_bytes=vmem_limit),
    )(x_nhwc, w1, w2)


def _reference(x_nhwc, w1, b1, w2, b2):
    """Pure-JAX f32 reference (same math, NHWC / HWIO, with conv bias)."""
    def conv(t, w, b):
        tp = jnp.pad(t, ((0, 0), (1, 1), (1, 1), (0, 0)), mode="reflect")
        y = jax.lax.conv_general_dilated(
            tp, w, window_strides=(1, 1), padding="VALID",
            dimension_numbers=("NHWC", "HWIO", "NHWC"))
        return y + b.reshape(1, 1, 1, -1)

    def inorm(t):
        m = jnp.mean(t, axis=(1, 2), keepdims=True)
        v = jnp.mean((t - m) ** 2, axis=(1, 2), keepdims=True)
        return (t - m) * jax.lax.rsqrt(v + EPS)

    y = jnp.maximum(inorm(conv(x_nhwc, w1, b1)), 0.0)
    y = inorm(conv(y, w2, b2))
    return x_nhwc + y


if __name__ == "__main__":
    N, C, H, W = 2, 4, 16, 16        # PyTorch input would be NCHW (2, 4, 16, 16)
    key = jax.random.PRNGKey(0)
    kx, kw1, kb1, kw2, kb2 = jax.random.split(key, 5)

    x_nchw = jax.random.normal(kx, (N, C, H, W), jnp.float32)
    x_nhwc = jnp.transpose(x_nchw, (0, 2, 3, 1))          # NCHW -> NHWC

    # Conv2d(dim, dim, 3, bias=True) parameters, deterministic (HWIO layout).
    w1 = 0.1 * jax.random.normal(kw1, (3, 3, C, C), jnp.float32)
    b1 = 0.1 * jax.random.normal(kb1, (C,), jnp.float32)
    w2 = 0.1 * jax.random.normal(kw2, (3, 3, C, C), jnp.float32)
    b2 = 0.1 * jax.random.normal(kb2, (C,), jnp.float32)

    out = resnet_block(x_nhwc, w1, b1, w2, b2)
    out = jax.block_until_ready(out)

    ref = _reference(x_nhwc, w1, b1, w2, b2)
    assert out.shape == (N, H, W, C)
    max_err = float(jnp.max(jnp.abs(out - ref)))
    mean_err = float(jnp.mean(jnp.abs(out - ref)))
    # bf16 MXU operands -> looser tolerance vs the pure-f32 reference (per review).
    assert max_err < 0.25 and mean_err < 0.03, f"max {max_err} mean {mean_err}"

    print("KERNEL_OK")
</pallas_src>

<mosaic_0001>
module attributes {stable_mosaic.version = 11 : i64} {
  func.func @resnet_block_kernel(%arg0: i32, %arg1: memref<1x16x16x4xf32, #tpu.memory_space<vmem>>, %arg2: memref<3x3x4x4xbf16, #tpu.memory_space<vmem>>, %arg3: memref<3x3x4x4xbf16, #tpu.memory_space<vmem>>, %arg4: memref<1x16x16x4xf32, #tpu.memory_space<vmem>>, %arg5: memref<18x24x4xf32, #tpu.memory_space<vmem>>, %arg6: memref<18x24x4xf32, #tpu.memory_space<vmem>>) attributes {dimension_semantics = [#tpu.dimension_semantics<parallel>], iteration_bounds = array<i64: 2>, scalar_prefetch = 0 : i64, scratch_operands = 2 : i64, tpu.core_type = #tpu.core_type<tc>, window_params = [{transform_indices = @transform_0, window_bounds = array<i64: 1, 16, 16, 4>}, {pipeline_mode = #tpu.pipeline_mode<synchronous>, transform_indices = @transform_1, window_bounds = array<i64: 3, 3, 4, 4>}, {pipeline_mode = #tpu.pipeline_mode<synchronous>, transform_indices = @transform_2, window_bounds = array<i64: 3, 3, 4, 4>}, {transform_indices = @transform_3, window_bounds = array<i64: 1, 16, 16, 4>}]} {
    %c0 = arith.constant 0 : index
    %c0_0 = arith.constant 0 : index
    %c0_1 = arith.constant 0 : index
    %c0_2 = arith.constant 0 : index
    %0 = vector.load %arg1[%c0, %c0_0, %c0_1, %c0_2] : memref<1x16x16x4xf32, #tpu.memory_space<vmem>>, vector<1x16x16x4xf32>
    %1 = vector.shape_cast %0 : vector<1x16x16x4xf32> to vector<16x16x4xf32>
    %cst = arith.constant 0.000000e+00 : f32
    %2 = vector.broadcast %cst : f32 to vector<18x6x4xf32>
    %c0_3 = arith.constant 0 : index
    %c18 = arith.constant 18 : index
    %c0_4 = arith.constant 0 : index
    %3 = vector.load %arg5[%c0_3, %c18, %c0_4] : memref<18x24x4xf32, #tpu.memory_space<vmem>>, vector<18x6x4xf32>
    tpu.vector_store %arg5[%c0_3, %c18, %c0_4], %2 {strides = array<i32>} : memref<18x24x4xf32, #tpu.memory_space<vmem>>, vector<18x6x4xf32>,
    %c1 = arith.constant 1 : index
    %c1_5 = arith.constant 1 : index
    %c0_6 = arith.constant 0 : index
    %4 = vector.load %arg5[%c1, %c1_5, %c0_6] : memref<18x24x4xf32, #tpu.memory_space<vmem>>, vector<16x16x4xf32>
    tpu.vector_store %arg5[%c1, %c1_5, %c0_6], %1 {strides = array<i32>} : memref<18x24x4xf32, #tpu.memory_space<vmem>>, vector<16x16x4xf32>,
    %c1_7 = arith.constant 1 : index
    %c2 = arith.constant 2 : index
    %c0_8 = arith.constant 0 : index
    %5 = vector.load %arg5[%c1_7, %c2, %c0_8] : memref<18x24x4xf32, #tpu.memory_space<vmem>>, vector<16x1x4xf32>
    %c1_9 = arith.constant 1 : index
    %c0_10 = arith.constant 0 : index
    %c0_11 = arith.constant 0 : index
    %6 = vector.load %arg5[%c1_9, %c0_10, %c0_11] : memref<18x24x4xf32, #tpu.memory_space<vmem>>, vector<16x1x4xf32>
    tpu.vector_store %arg5[%c1_9, %c0_10, %c0_11], %5 {strides = array<i32>} : memref<18x24x4xf32, #tpu.memory_space<vmem>>, vector<16x1x4xf32>,
    %c1_12 = arith.constant 1 : index
    %c15 = arith.constant 15 : index
    %c0_13 = arith.constant 0 : index
    %7 = vector.load %arg5[%c1_12, %c15, %c0_13] : memref<18x24x4xf32, #tpu.memory_space<vmem>>, vector<16x1x4xf32>
    %c1_14 = arith.constant 1 : index
    %c17 = arith.constant 17 : index
    %c0_15 = arith.constant 0 : index
    %8 = vector.load %arg5[%c1_14, %c17, %c0_15] : memref<18x24x4xf32, #tpu.memory_space<vmem>>, vector<16x1x4xf32>
    tpu.vector_store %arg5[%c1_14, %c17, %c0_15], %7 {strides = array<i32>} : memref<18x24x4xf32, #tpu.memory_space<vmem>>, vector<16x1x4xf32>,
    %c2_16 = arith.constant 2 : index
    %c0_17 = arith.constant 0 : index
    %c0_18 = arith.constant 0 : index
    %9 = vector.load %arg5[%c2_16, %c0_17, %c0_18] : memref<18x24x4xf32, #tpu.memory_space<vmem>>, vector<1x24x4xf32>
    %c0_19 = arith.constant 0 : index
    %c0_20 = arith.constant 0 : index
    %c0_21 = arith.constant 0 : index
    %10 = vector.load %arg5[%c0_19, %c0_20, %c0_21] : memref<18x24x4xf32, #tpu.memory_space<vmem>>, vector<1x24x4xf32>
    tpu.vector_store %arg5[%c0_19, %c0_20, %c0_21], %9 {strides = array<i32>} : memref<18x24x4xf32, #tpu.memory_space<vmem>>, vector<1x24x4xf32>,
    %c15_22 = arith.constant 15 : index
    %c0_23 = arith.constant 0 : index
    %c0_24 = arith.constant 0 : index
    %11 = vector.load %arg5[%c15_22, %c0_23, %c0_24] : memref<18x24x4xf32, #tpu.memory_space<vmem>>, vector<1x24x4xf32>
    %c17_25 = arith.constant 17 : index
    %c0_26 = arith.constant 0 : index
    %c0_27 = arith.constant 0 : index
    %12 = vector.load %arg5[%c17_25, %c0_26, %c0_27] : memref<18x24x4xf32, #tpu.memory_space<vmem>>, vector<1x24x4xf32>
    tpu.vector_store %arg5[%c17_25, %c0_26, %c0_27], %11 {strides = array<i32>} : memref<18x24x4xf32, #tpu.memory_space<vmem>>, vector<1x24x4xf32>,
    %13 = tpu.iota {dimensions = array<i32: 1>} : vector<16x24x1xi32>
    %14 = vector.shape_cast %13 : vector<16x24x1xi32> to vector<384x1xi32>
    %c1_i32 = arith.constant 1 : i32
    %15 = vector.broadcast %c1_i32 : i32 to vector<384x1xi32>
    %16 = arith.cmpi sge, %14, %15 : vector<384x1xi32>
    %c16_i32 = arith.constant 16 : i32
    %17 = vector.broadcast %c16_i32 : i32 to vector<384x1xi32>
    %18 = arith.cmpi sle, %14, %17 : vector<384x1xi32>
    %19 = arith.andi %16, %18 : vector<384x1xi1>
    %c0_28 = arith.constant 0 : index
    %c0_29 = arith.constant 0 : index
    %c0_30 = arith.constant 0 : index
    %20 = vector.load %arg5[%c0_28, %c0_29, %c0_30] : memref<18x24x4xf32, #tpu.memory_space<vmem>>, vector<18x24x4xf32>
    %21 = vector.shape_cast %20 : vector<18x24x4xf32> to vector<432x4xf32>
    %c1_i32_31 = arith.constant 1 : i32
    %22 = tpu.dynamic_rotate %21 by %c1_i32_31 dim 0 : vector<432x4xf32>, i32 -> vector<432x4xf32>
    %23 = arith.truncf %22 : vector<432x4xf32> to vector<432x4xbf16>
    %24 = vector.extract_strided_slice %23 {offsets = [0, 0], sizes = [384, 4], strides = [1, 1]} : vector<432x4xbf16> to vector<384x4xbf16>
    %c0_32 = arith.constant 0 : index
    %c0_33 = arith.constant 0 : index
    %c0_34 = arith.constant 0 : index
    %c0_35 = arith.constant 0 : index
    %25 = vector.load %arg2[%c0_32, %c0_33, %c0_34, %c0_35] : memref<3x3x4x4xbf16, #tpu.memory_space<vmem>>, vector<1x1x4x4xbf16>
    %26 = vector.shape_cast %25 : vector<1x1x4x4xbf16> to vector<4x4xbf16>
    %cst_36 = arith.constant dense<0.000000e+00> : vector<384x4xf32>
    %27 = tpu.matmul %24, %26, %cst_36 {dimension_numbers = #tpu.dot_dimension_numbers<[1], [0], [0], [1], [0, 0, 1, 1], [], []>} : vector<384x4xbf16>, vector<4x4xbf16>, vector<384x4xf32> -> vector<384x4xf32>
    %28 = vector.extract_strided_slice %23 {offsets = [24, 0], sizes = [384, 4], strides = [1, 1]} : vector<432x4xbf16> to vector<384x4xbf16>
    %c1_37 = arith.constant 1 : index
    %c0_38 = arith.constant 0 : index
    %c0_39 = arith.constant 0 : index
    %c0_40 = arith.constant 0 : index
    %29 = vector.load %arg2[%c1_37, %c0_38, %c0_39, %c0_40] : memref<3x3x4x4xbf16, #tpu.memory_space<vmem>>, vector<1x1x4x4xbf16>
    %30 = vector.shape_cast %29 : vector<1x1x4x4xbf16> to vector<4x4xbf16>
    %cst_41 = arith.constant dense<0.000000e+00> : vector<384x4xf32>
    %31 = tpu.matmul %28, %30, %cst_41 {dimension_numbers = #tpu.dot_dimension_numbers<[1], [0], [0], [1], [0, 0, 1, 1], [], []>} : vector<384x4xbf16>, vector<4x4xbf16>, vector<384x4xf32> -> vector<384x4xf32>
    %32 = arith.addf %27, %31 : vector<384x4xf32>
    %33 = vector.extract_strided_slice %23 {offsets = [48, 0], sizes = [384, 4], strides = [1, 1]} : vector<432x4xbf16> to vector<384x4xbf16>
    %c2_42 = arith.constant 2 : index
    %c0_43 = arith.constant 0 : index
    %c0_44 = arith.constant 0 : index
    %c0_45 = arith.constant 0 : index
    %34 = vector.load %arg2[%c2_42, %c0_43, %c0_44, %c0_45] : memref<3x3x4x4xbf16, #tpu.memory_space<vmem>>, vector<1x1x4x4xbf16>
    %35 = vector.shape_cast %34 : vector<1x1x4x4xbf16> to vector<4x4xbf16>
    %cst_46 = arith.constant dense<0.000000e+00> : vector<384x4xf32>
    %36 = tpu.matmul %33, %35, %cst_46 {dimension_numbers = #tpu.dot_dimension_numbers<[1], [0], [0], [1], [0, 0, 1, 1], [], []>} : vector<384x4xbf16>, vector<4x4xbf16>, vector<384x4xf32> -> vector<384x4xf32>
    %37 = arith.addf %32, %36 : vector<384x4xf32>
    %38 = arith.truncf %21 : vector<432x4xf32> to vector<432x4xbf16>
    %39 = vector.extract_strided_slice %38 {offsets = [0, 0], sizes = [384, 4], strides = [1, 1]} : vector<432x4xbf16> to vector<384x4xbf16>
    %c0_47 = arith.constant 0 : index
    %c1_48 = arith.constant 1 : index
    %c0_49 = arith.constant 0 : index
    %c0_50 = arith.constant 0 : index
    %40 = vector.load %arg2[%c0_47, %c1_48, %c0_49, %c0_50] : memref<3x3x4x4xbf16, #tpu.memory_space<vmem>>, vector<1x1x4x4xbf16>
    %41 = vector.shape_cast %40 : vector<1x1x4x4xbf16> to vector<4x4xbf16>
    %cst_51 = arith.constant dense<0.000000e+00> : vector<384x4xf32>
    %42 = tpu.matmul %39, %41, %cst_51 {dimension_numbers = #tpu.dot_dimension_numbers<[1], [0], [0], [1], [0, 0, 1, 1], [], []>} : vector<384x4xbf16>, vector<4x4xbf16>, vector<384x4xf32> -> vector<384x4xf32>
    %43 = arith.addf %37, %42 : vector<384x4xf32>
    %44 = vector.extract_strided_slice %38 {offsets = [24, 0], sizes = [384, 4], strides = [1, 1]} : vector<432x4xbf16> to vector<384x4xbf16>
    %c1_52 = arith.constant 1 : index
    %c1_53 = arith.constant 1 : index
    %c0_54 = arith.constant 0 : index
    %c0_55 = arith.constant 0 : index
    %45 = vector.load %arg2[%c1_52, %c1_53, %c0_54, %c0_55] : memref<3x3x4x4xbf16, #tpu.memory_space<vmem>>, vector<1x1x4x4xbf16>
    %46 = vector.shape_cast %45 : vector<1x1x4x4xbf16> to vector<4x4xbf16>
    %cst_56 = arith.constant dense<0.000000e+00> : vector<384x4xf32>
    %47 = tpu.matmul %44, %46, %cst_56 {dimension_numbers = #tpu.dot_dimension_numbers<[1], [0], [0], [1], [0, 0, 1, 1], [], []>} : vector<384x4xbf16>, vector<4x4xbf16>, vector<384x4xf32> -> vector<384x4xf32>
    %48 = arith.addf %43, %47 : vector<384x4xf32>
    %49 = vector.extract_strided_slice %38 {offsets = [48, 0], sizes = [384, 4], strides = [1, 1]} : vector<432x4xbf16> to vector<384x4xbf16>
    %c2_57 = arith.constant 2 : index
    %c1_58 = arith.constant 1 : index
    %c0_59 = arith.constant 0 : index
    %c0_60 = arith.constant 0 : index
    %50 = vector.load %arg2[%c2_57, %c1_58, %c0_59, %c0_60] : memref<3x3x4x4xbf16, #tpu.memory_space<vmem>>, vector<1x1x4x4xbf16>
    %51 = vector.shape_cast %50 : vector<1x1x4x4xbf16> to vector<4x4xbf16>
    %cst_61 = arith.constant dense<0.000000e+00> : vector<384x4xf32>
    %52 = tpu.matmul %49, %51, %cst_61 {dimension_numbers = #tpu.dot_dimension_numbers<[1], [0], [0], [1], [0, 0, 1, 1], [], []>} : vector<384x4xbf16>, vector<4x4xbf16>, vector<384x4xf32> -> vector<384x4xf32>
    %53 = arith.addf %48, %52 : vector<384x4xf32>
    %c431_i32 = arith.constant 431 : i32
    %54 = tpu.dynamic_rotate %21 by %c431_i32 dim 0 : vector<432x4xf32>, i32 -> vector<432x4xf32>
    %55 = arith.truncf %54 : vector<432x4xf32> to vector<432x4xbf16>
    %56 = vector.extract_strided_slice %55 {offsets = [0, 0], sizes = [384, 4], strides = [1, 1]} : vector<432x4xbf16> to vector<384x4xbf16>
    %c0_62 = arith.constant 0 : index
    %c2_63 = arith.constant 2 : index
    %c0_64 = arith.constant 0 : index
    %c0_65 = arith.constant 0 : index
    %57 = vector.load %arg2[%c0_62, %c2_63, %c0_64, %c0_65] : memref<3x3x4x4xbf16, #tpu.memory_space<vmem>>, vector<1x1x4x4xbf16>
    %58 = vector.shape_cast %57 : vector<1x1x4x4xbf16> to vector<4x4xbf16>
    %cst_66 = arith.constant dense<0.000000e+00> : vector<384x4xf32>
    %59 = tpu.matmul %56, %58, %cst_66 {dimension_numbers = #tpu.dot_dimension_numbers<[1], [0], [0], [1], [0, 0, 1, 1], [], []>} : vector<384x4xbf16>, vector<4x4xbf16>, vector<384x4xf32> -> vector<384x4xf32>
    %60 = arith.addf %53, %59 : vector<384x4xf32>
    %61 = vector.extract_strided_slice %55 {offsets = [24, 0], sizes = [384, 4], strides = [1, 1]} : vector<432x4xbf16> to vector<384x4xbf16>
    %c1_67 = arith.constant 1 : index
    %c2_68 = arith.constant 2 : index
    %c0_69 = arith.constant 0 : index
    %c0_70 = arith.constant 0 : index
    %62 = vector.load %arg2[%c1_67, %c2_68, %c0_69, %c0_70] : memref<3x3x4x4xbf16, #tpu.memory_space<vmem>>, vector<1x1x4x4xbf16>
    %63 = vector.shape_cast %62 : vector<1x1x4x4xbf16> to vector<4x4xbf16>
    %cst_71 = arith.constant dense<0.000000e+00> : vector<384x4xf32>
    %64 = tpu.matmul %61, %63, %cst_71 {dimension_numbers = #tpu.dot_dimension_numbers<[1], [0], [0], [1], [0, 0, 1, 1], [], []>} : vector<384x4xbf16>, vector<4x4xbf16>, vector<384x4xf32> -> vector<384x4xf32>
    %65 = arith.addf %60, %64 : vector<384x4xf32>
    %66 = vector.extract_strided_slice %55 {offsets = [48, 0], sizes = [384, 4], strides = [1, 1]} : vector<432x4xbf16> to vector<384x4xbf16>
    %c2_72 = arith.constant 2 : index
    %c2_73 = arith.constant 2 : index
    %c0_74 = arith.constant 0 : index
    %c0_75 = arith.constant 0 : index
    %67 = vector.load %arg2[%c2_72, %c2_73, %c0_74, %c0_75] : memref<3x3x4x4xbf16, #tpu.memory_space<vmem>>, vector<1x1x4x4xbf16>
    %68 = vector.shape_cast %67 : vector<1x1x4x4xbf16> to vector<4x4xbf16>
    %cst_76 = arith.constant dense<0.000000e+00> : vector<384x4xf32>
    %69 = tpu.matmul %66, %68, %cst_76 {dimension_numbers = #tpu.dot_dimension_numbers<[1], [0], [0], [1], [0, 0, 1, 1], [], []>} : vector<384x4xbf16>, vector<4x4xbf16>, vector<384x4xf32> -> vector<384x4xf32>
    %70 = arith.addf %65, %69 : vector<384x4xf32>
    %cst_77 = arith.constant 0.000000e+00 : f32
    %71 = vector.shape_cast %19 : vector<384x1xi1> to vector<384x1xi1>
    %72 = vector.broadcast %71 : vector<384x1xi1> to vector<384x4xi1>
    %73 = vector.broadcast %cst_77 : f32 to vector<384x4xf32>
    %74 = arith.select %72, %70, %73 : vector<384x4xi1>, vector<384x4xf32>
    %cst_78 = arith.constant dense<0.000000e+00> : vector<4xf32>
    %75 = vector.multi_reduction <add>, %74, %cst_78 [0] : vector<384x4xf32> to vector<4xf32>
    %76 = vector.shape_cast %75 : vector<4xf32> to vector<1x4xf32>
    %77 = arith.mulf %74, %74 : vector<384x4xf32>
    %cst_79 = arith.constant dense<0.000000e+00> : vector<4xf32>
    %78 = vector.multi_reduction <add>, %77, %cst_79 [0] : vector<384x4xf32> to vector<4xf32>
    %79 = vector.shape_cast %78 : vector<4xf32> to vector<1x4xf32>
    %cst_80 = arith.constant 3.906250e-03 : f32
    %80 = vector.broadcast %cst_80 : f32 to vector<1x4xf32>
    %81 = arith.mulf %76, %80 : vector<1x4xf32>
    %cst_81 = arith.constant 3.906250e-03 : f32
    %82 = vector.broadcast %cst_81 : f32 to vector<1x4xf32>
    %83 = arith.mulf %79, %82 : vector<1x4xf32>
    %84 = arith.mulf %81, %81 : vector<1x4xf32>
    %85 = arith.subf %83, %84 : vector<1x4xf32>
    %cst_82 = arith.constant 0.000000e+00 : f32
    %86 = vector.broadcast %cst_82 : f32 to vector<1x4xf32>
    %87 = arith.maximumf %85, %86 : vector<1x4xf32>
    %88 = vector.broadcast %81 : vector<1x4xf32> to vector<384x4xf32>
    %89 = arith.subf %70, %88 : vector<384x4xf32>
    %cst_83 = arith.constant 9.99999974E-6 : f32
    %90 = vector.broadcast %cst_83 : f32 to vector<1x4xf32>
    %91 = arith.addf %87, %90 : vector<1x4xf32>
    %92 = math.rsqrt %91 : vector<1x4xf32>
    %93 = vector.broadcast %92 : vector<1x4xf32> to vector<384x4xf32>
    %94 = arith.mulf %89, %93 : vector<384x4xf32>
    %cst_84 = arith.constant 0.000000e+00 : f32
    %95 = vector.broadcast %cst_84 : f32 to vector<384x4xf32>
    %96 = arith.maximumf %94, %95 : vector<384x4xf32>
    %97 = vector.shape_cast %96 : vector<384x4xf32> to vector<16x24x4xf32>
    %c1_85 = arith.constant 1 : index
    %c0_86 = arith.constant 0 : index
    %c0_87 = arith.constant 0 : index
    %98 = vector.load %arg6[%c1_85, %c0_86, %c0_87] : memref<18x24x4xf32, #tpu.memory_space<vmem>>, vector<16x24x4xf32>
    tpu.vector_store %arg6[%c1_85, %c0_86, %c0_87], %97 {strides = array<i32>} : memref<18x24x4xf32, #tpu.memory_space<vmem>>, vector<16x24x4xf32>,
    %c1_88 = arith.constant 1 : index
    %c2_89 = arith.constant 2 : index
    %c0_90 = arith.constant 0 : index
    %99 = vector.load %arg6[%c1_88, %c2_89, %c0_90] : memref<18x24x4xf32, #tpu.memory_space<vmem>>, vector<16x1x4xf32>
    %c1_91 = arith.constant 1 : index
    %c0_92 = arith.constant 0 : index
    %c0_93 = arith.constant 0 : index
    %100 = vector.load %arg6[%c1_91, %c0_92, %c0_93] : memref<18x24x4xf32, #tpu.memory_space<vmem>>, vector<16x1x4xf32>
    tpu.vector_store %arg6[%c1_91, %c0_92, %c0_93], %99 {strides = array<i32>} : memref<18x24x4xf32, #tpu.memory_space<vmem>>, vector<16x1x4xf32>,
    %c1_94 = arith.constant 1 : index
    %c15_95 = arith.constant 15 : index
    %c0_96 = arith.constant 0 : index
    %101 = vector.load %arg6[%c1_94, %c15_95, %c0_96] : memref<18x24x4xf32, #tpu.memory_space<vmem>>, vector<16x1x4xf32>
    %c1_97 = arith.constant 1 : index
    %c17_98 = arith.constant 17 : index
    %c0_99 = arith.constant 0 : index
    %102 = vector.load %arg6[%c1_97, %c17_98, %c0_99] : memref<18x24x4xf32, #tpu.memory_space<vmem>>, vector<16x1x4xf32>
    tpu.vector_store %arg6[%c1_97, %c17_98, %c0_99], %101 {strides = array<i32>} : memref<18x24x4xf32, #tpu.memory_space<vmem>>, vector<16x1x4xf32>,
    %c2_100 = arith.constant 2 : index
    %c0_101 = arith.constant 0 : index
    %c0_102 = arith.constant 0 : index
    %103 = vector.load %arg6[%c2_100, %c0_101, %c0_102] : memref<18x24x4xf32, #tpu.memory_space<vmem>>, vector<1x24x4xf32>
    %c0_103 = arith.constant 0 : index
    %c0_104 = arith.constant 0 : index
    %c0_105 = arith.constant 0 : index
    %104 = vector.load %arg6[%c0_103, %c0_104, %c0_105] : memref<18x24x4xf32, #tpu.memory_space<vmem>>, vector<1x24x4xf32>
    tpu.vector_store %arg6[%c0_103, %c0_104, %c0_105], %103 {strides = array<i32>} : memref<18x24x4xf32, #tpu.memory_space<vmem>>, vector<1x24x4xf32>,
    %c15_106 = arith.constant 15 : index
    %c0_107 = arith.constant 0 : index
    %c0_108 = arith.constant 0 : index
    %105 = vector.load %arg6[%c15_106, %c0_107, %c0_108] : memref<18x24x4xf32, #tpu.memory_space<vmem>>, vector<1x24x4xf32>
    %c17_109 = arith.constant 17 : index
    %c0_110 = arith.constant 0 : index
    %c0_111 = arith.constant 0 : index
    %106 = vector.load %arg6[%c17_109, %c0_110, %c0_111] : memref<18x24x4xf32, #tpu.memory_space<vmem>>, vector<1x24x4xf32>
    tpu.vector_store %arg6[%c17_109, %c0_110, %c0_111], %105 {strides = array<i32>} : memref<18x24x4xf32, #tpu.memory_space<vmem>>, vector<1x24x4xf32>,
    %c0_112 = arith.constant 0 : index
    %c0_113 = arith.constant 0 : index
    %c0_114 = arith.constant 0 : index
    %107 = vector.load %arg6[%c0_112, %c0_113, %c0_114] : memref<18x24x4xf32, #tpu.memory_space<vmem>>, vector<18x24x4xf32>
    %108 = vector.shape_cast %107 : vector<18x24x4xf32> to vector<432x4xf32>
    %c1_i32_115 = arith.constant 1 : i32
    %109 = tpu.dynamic_rotate %108 by %c1_i32_115 dim 0 : vector<432x4xf32>, i32 -> vector<432x4xf32>
    %110 = arith.truncf %109 : vector<432x4xf32> to vector<432x4xbf16>
    %111 = vector.extract_strided_slice %110 {offsets = [0, 0], sizes = [384, 4], strides = [1, 1]} : vector<432x4xbf16> to vector<384x4xbf16>
    %c0_116 = arith.constant 0 : index
    %c0_117 = arith.constant 0 : index
    %c0_118 = arith.constant 0 : index
    %c0_119 = arith.constant 0 : index
    %112 = vector.load %arg3[%c0_116, %c0_117, %c0_118, %c0_119] : memref<3x3x4x4xbf16, #tpu.memory_space<vmem>>, vector<1x1x4x4xbf16>
    %113 = vector.shape_cast %112 : vector<1x1x4x4xbf16> to vector<4x4xbf16>
    %cst_120 = arith.constant dense<0.000000e+00> : vector<384x4xf32>
    %114 = tpu.matmul %111, %113, %cst_120 {dimension_numbers = #tpu.dot_dimension_numbers<[1], [0], [0], [1], [0, 0, 1, 1], [], []>} : vector<384x4xbf16>, vector<4x4xbf16>, vector<384x4xf32> -> vector<384x4xf32>
    %115 = vector.extract_strided_slice %110 {offsets = [24, 0], sizes = [384, 4], strides = [1, 1]} : vector<432x4xbf16> to vector<384x4xbf16>
    %c1_121 = arith.constant 1 : index
    %c0_122 = arith.constant 0 : index
    %c0_123 = arith.constant 0 : index
    %c0_124 = arith.constant 0 : index
    %116 = vector.load %arg3[%c1_121, %c0_122, %c0_123, %c0_124] : memref<3x3x4x4xbf16, #tpu.memory_space<vmem>>, vector<1x1x4x4xbf16>
    %117 = vector.shape_cast %116 : vector<1x1x4x4xbf16> to vector<4x4xbf16>
    %cst_125 = arith.constant dense<0.000000e+00> : vector<384x4xf32>
    %118 = tpu.matmul %115, %117, %cst_125 {dimension_numbers = #tpu.dot_dimension_numbers<[1], [0], [0], [1], [0, 0, 1, 1], [], []>} : vector<384x4xbf16>, vector<4x4xbf16>, vector<384x4xf32> -> vector<384x4xf32>
    %119 = arith.addf %114, %118 : vector<384x4xf32>
    %120 = vector.extract_strided_slice %110 {offsets = [48, 0], sizes = [384, 4], strides = [1, 1]} : vector<432x4xbf16> to vector<384x4xbf16>
    %c2_126 = arith.constant 2 : index
    %c0_127 = arith.constant 0 : index
    %c0_128 = arith.constant 0 : index
    %c0_129 = arith.constant 0 : index
    %121 = vector.load %arg3[%c2_126, %c0_127, %c0_128, %c0_129] : memref<3x3x4x4xbf16, #tpu.memory_space<vmem>>, vector<1x1x4x4xbf16>
    %122 = vector.shape_cast %121 : vector<1x1x4x4xbf16> to vector<4x4xbf16>
    %cst_130 = arith.constant dense<0.000000e+00> : vector<384x4xf32>
    %123 = tpu.matmul %120, %122, %cst_130 {dimension_numbers = #tpu.dot_dimension_numbers<[1], [0], [0], [1], [0, 0, 1, 1], [], []>} : vector<384x4xbf16>, vector<4x4xbf16>, vector<384x4xf32> -> vector<384x4xf32>
    %124 = arith.addf %119, %123 : vector<384x4xf32>
    %125 = arith.truncf %108 : vector<432x4xf32> to vector<432x4xbf16>
    %126 = vector.extract_strided_slice %125 {offsets = [0, 0], sizes = [384, 4], strides = [1, 1]} : vector<432x4xbf16> to vector<384x4xbf16>
    %c0_131 = arith.constant 0 : index
    %c1_132 = arith.constant 1 : index
    %c0_133 = arith.constant 0 : index
    %c0_134 = arith.constant 0 : index
    %127 = vector.load %arg3[%c0_131, %c1_132, %c0_133, %c0_134] : memref<3x3x4x4xbf16, #tpu.memory_space<vmem>>, vector<1x1x4x4xbf16>
    %128 = vector.shape_cast %127 : vector<1x1x4x4xbf16> to vector<4x4xbf16>
    %cst_135 = arith.constant dense<0.000000e+00> : vector<384x4xf32>
    %129 = tpu.matmul %126, %128, %cst_135 {dimension_numbers = #tpu.dot_dimension_numbers<[1], [0], [0], [1], [0, 0, 1, 1], [], []>} : vector<384x4xbf16>, vector<4x4xbf16>, vector<384x4xf32> -> vector<384x4xf32>
    %130 = arith.addf %124, %129 : vector<384x4xf32>
    %131 = vector.extract_strided_slice %125 {offsets = [24, 0], sizes = [384, 4], strides = [1, 1]} : vector<432x4xbf16> to vector<384x4xbf16>
    %c1_136 = arith.constant 1 : index
    %c1_137 = arith.constant 1 : index
    %c0_138 = arith.constant 0 : index
    %c0_139 = arith.constant 0 : index
    %132 = vector.load %arg3[%c1_136, %c1_137, %c0_138, %c0_139] : memref<3x3x4x4xbf16, #tpu.memory_space<vmem>>, vector<1x1x4x4xbf16>
    %133 = vector.shape_cast %132 : vector<1x1x4x4xbf16> to vector<4x4xbf16>
    %cst_140 = arith.constant dense<0.000000e+00> : vector<384x4xf32>
    %134 = tpu.matmul %131, %133, %cst_140 {dimension_numbers = #tpu.dot_dimension_numbers<[1], [0], [0], [1], [0, 0, 1, 1], [], []>} : vector<384x4xbf16>, vector<4x4xbf16>, vector<384x4xf32> -> vector<384x4xf32>
    %135 = arith.addf %130, %134 : vector<384x4xf32>
    %136 = vector.extract_strided_slice %125 {offsets = [48, 0], sizes = [384, 4], strides = [1, 1]} : vector<432x4xbf16> to vector<384x4xbf16>
    %c2_141 = arith.constant 2 : index
    %c1_142 = arith.constant 1 : index
    %c0_143 = arith.constant 0 : index
    %c0_144 = arith.constant 0 : index
    %137 = vector.load %arg3[%c2_141, %c1_142, %c0_143, %c0_144] : memref<3x3x4x4xbf16, #tpu.memory_space<vmem>>, vector<1x1x4x4xbf16>
    %138 = vector.shape_cast %137 : vector<1x1x4x4xbf16> to vector<4x4xbf16>
    %cst_145 = arith.constant dense<0.000000e+00> : vector<384x4xf32>
    %139 = tpu.matmul %136, %138, %cst_145 {dimension_numbers = #tpu.dot_dimension_numbers<[1], [0], [0], [1], [0, 0, 1, 1], [], []>} : vector<384x4xbf16>, vector<4x4xbf16>, vector<384x4xf32> -> vector<384x4xf32>
    %140 = arith.addf %135, %139 : vector<384x4xf32>
    %c431_i32_146 = arith.constant 431 : i32
    %141 = tpu.dynamic_rotate %108 by %c431_i32_146 dim 0 : vector<432x4xf32>, i32 -> vector<432x4xf32>
    %142 = arith.truncf %141 : vector<432x4xf32> to vector<432x4xbf16>
    %143 = vector.extract_strided_slice %142 {offsets = [0, 0], sizes = [384, 4], strides = [1, 1]} : vector<432x4xbf16> to vector<384x4xbf16>
    %c0_147 = arith.constant 0 : index
    %c2_148 = arith.constant 2 : index
    %c0_149 = arith.constant 0 : index
    %c0_150 = arith.constant 0 : index
    %144 = vector.load %arg3[%c0_147, %c2_148, %c0_149, %c0_150] : memref<3x3x4x4xbf16, #tpu.memory_space<vmem>>, vector<1x1x4x4xbf16>
    %145 = vector.shape_cast %144 : vector<1x1x4x4xbf16> to vector<4x4xbf16>
    %cst_151 = arith.constant dense<0.000000e+00> : vector<384x4xf32>
    %146 = tpu.matmul %143, %145, %cst_151 {dimension_numbers = #tpu.dot_dimension_numbers<[1], [0], [0], [1], [0, 0, 1, 1], [], []>} : vector<384x4xbf16>, vector<4x4xbf16>, vector<384x4xf32> -> vector<384x4xf32>
    %147 = arith.addf %140, %146 : vector<384x4xf32>
    %148 = vector.extract_strided_slice %142 {offsets = [24, 0], sizes = [384, 4], strides = [1, 1]} : vector<432x4xbf16> to vector<384x4xbf16>
    %c1_152 = arith.constant 1 : index
    %c2_153 = arith.constant 2 : index
    %c0_154 = arith.constant 0 : index
    %c0_155 = arith.constant 0 : index
    %149 = vector.load %arg3[%c1_152, %c2_153, %c0_154, %c0_155] : memref<3x3x4x4xbf16, #tpu.memory_space<vmem>>, vector<1x1x4x4xbf16>
    %150 = vector.shape_cast %149 : vector<1x1x4x4xbf16> to vector<4x4xbf16>
    %cst_156 = arith.constant dense<0.000000e+00> : vector<384x4xf32>
    %151 = tpu.matmul %148, %150, %cst_156 {dimension_numbers = #tpu.dot_dimension_numbers<[1], [0], [0], [1], [0, 0, 1, 1], [], []>} : vector<384x4xbf16>, vector<4x4xbf16>, vector<384x4xf32> -> vector<384x4xf32>
    %152 = arith.addf %147, %151 : vector<384x4xf32>
    %153 = vector.extract_strided_slice %142 {offsets = [48, 0], sizes = [384, 4], strides = [1, 1]} : vector<432x4xbf16> to vector<384x4xbf16>
    %c2_157 = arith.constant 2 : index
    %c2_158 = arith.constant 2 : index
    %c0_159 = arith.constant 0 : index
    %c0_160 = arith.constant 0 : index
    %154 = vector.load %arg3[%c2_157, %c2_158, %c0_159, %c0_160] : memref<3x3x4x4xbf16, #tpu.memory_space<vmem>>, vector<1x1x4x4xbf16>
    %155 = vector.shape_cast %154 : vector<1x1x4x4xbf16> to vector<4x4xbf16>
    %cst_161 = arith.constant dense<0.000000e+00> : vector<384x4xf32>
    %156 = tpu.matmul %153, %155, %cst_161 {dimension_numbers = #tpu.dot_dimension_numbers<[1], [0], [0], [1], [0, 0, 1, 1], [], []>} : vector<384x4xbf16>, vector<4x4xbf16>, vector<384x4xf32> -> vector<384x4xf32>
    %157 = arith.addf %152, %156 : vector<384x4xf32>
    %cst_162 = arith.constant 0.000000e+00 : f32
    %158 = vector.shape_cast %19 : vector<384x1xi1> to vector<384x1xi1>
    %159 = vector.broadcast %158 : vector<384x1xi1> to vector<384x4xi1>
    %160 = vector.broadcast %cst_162 : f32 to vector<384x4xf32>
    %161 = arith.select %159, %157, %160 : vector<384x4xi1>, vector<384x4xf32>
    %cst_163 = arith.constant dense<0.000000e+00> : vector<4xf32>
    %162 = vector.multi_reduction <add>, %161, %cst_163 [0] : vector<384x4xf32> to vector<4xf32>
    %163 = vector.shape_cast %162 : vector<4xf32> to vector<1x4xf32>
    %164 = arith.mulf %161, %161 : vector<384x4xf32>
    %cst_164 = arith.constant dense<0.000000e+00> : vector<4xf32>
    %165 = vector.multi_reduction <add>, %164, %cst_164 [0] : vector<384x4xf32> to vector<4xf32>
    %166 = vector.shape_cast %165 : vector<4xf32> to vector<1x4xf32>
    %cst_165 = arith.constant 3.906250e-03 : f32
    %167 = vector.broadcast %cst_165 : f32 to vector<1x4xf32>
    %168 = arith.mulf %163, %167 : vector<1x4xf32>
    %cst_166 = arith.constant 3.906250e-03 : f32
    %169 = vector.broadcast %cst_166 : f32 to vector<1x4xf32>
    %170 = arith.mulf %166, %169 : vector<1x4xf32>
    %171 = arith.mulf %168, %168 : vector<1x4xf32>
    %172 = arith.subf %170, %171 : vector<1x4xf32>
    %cst_167 = arith.constant 0.000000e+00 : f32
    %173 = vector.broadcast %cst_167 : f32 to vector<1x4xf32>
    %174 = arith.maximumf %172, %173 : vector<1x4xf32>
    %175 = vector.broadcast %168 : vector<1x4xf32> to vector<384x4xf32>
    %176 = arith.subf %157, %175 : vector<384x4xf32>
    %cst_168 = arith.constant 9.99999974E-6 : f32
    %177 = vector.broadcast %cst_168 : f32 to vector<1x4xf32>
    %178 = arith.addf %174, %177 : vector<1x4xf32>
    %179 = math.rsqrt %178 : vector<1x4xf32>
    %180 = vector.broadcast %179 : vector<1x4xf32> to vector<384x4xf32>
    %181 = arith.mulf %176, %180 : vector<384x4xf32>
    %c1_169 = arith.constant 1 : index
    %c0_170 = arith.constant 0 : index
    %c0_171 = arith.constant 0 : index
    %182 = vector.load %arg5[%c1_169, %c0_170, %c0_171] : memref<18x24x4xf32, #tpu.memory_space<vmem>>, vector<16x24x4xf32>
    %183 = vector.shape_cast %182 : vector<16x24x4xf32> to vector<384x4xf32>
    %184 = arith.addf %183, %181 : vector<384x4xf32>
    %185 = vector.shape_cast %184 : vector<384x4xf32> to vector<16x24x4xf32>
    %186 = vector.extract_strided_slice %185 {offsets = [0, 1, 0], sizes = [16, 16, 4], strides = [1, 1, 1]} : vector<16x24x4xf32> to vector<16x16x4xf32>
    %c0_172 = arith.constant 0 : index
    %c0_173 = arith.constant 0 : index
    %c0_174 = arith.constant 0 : index
    %c0_175 = arith.constant 0 : index
    %187 = vector.load %arg4[%c0_172, %c0_173, %c0_174, %c0_175] : memref<1x16x16x4xf32, #tpu.memory_space<vmem>>, vector<1x16x16x4xf32>
    %188 = vector.shape_cast %187 : vector<1x16x16x4xf32> to vector<16x16x4xf32>
    %189 = vector.shape_cast %186 : vector<16x16x4xf32> to vector<1x16x16x4xf32>
    tpu.vector_store %arg4[%c0_172, %c0_173, %c0_174, %c0_175], %189 {strides = array<i32>} : memref<1x16x16x4xf32, #tpu.memory_space<vmem>>, vector<1x16x16x4xf32>,
    return
  }
  func.func @transform_0(%arg0: i32) -> (i32, i32, i32, i32) {
    %c0_i32 = arith.constant 0 : i32
    %c0_i32_0 = arith.constant 0 : i32
    %c0_i32_1 = arith.constant 0 : i32
    %c0_i32_2 = arith.constant 0 : i32
    return %arg0, %c0_i32, %c0_i32_0, %c0_i32_1 : i32, i32, i32, i32
  }
  func.func @transform_1(%arg0: i32) -> (i32, i32, i32, i32) {
    %c0_i32 = arith.constant 0 : i32
    %c0_i32_0 = arith.constant 0 : i32
    %c0_i32_1 = arith.constant 0 : i32
    %c0_i32_2 = arith.constant 0 : i32
    %c0_i32_3 = arith.constant 0 : i32
    return %c0_i32, %c0_i32_0, %c0_i32_1, %c0_i32_2 : i32, i32, i32, i32
  }
  func.func @transform_2(%arg0: i32) -> (i32, i32, i32, i32) {
    %c0_i32 = arith.constant 0 : i32
    %c0_i32_0 = arith.constant 0 : i32
    %c0_i32_1 = arith.constant 0 : i32
    %c0_i32_2 = arith.constant 0 : i32
    %c0_i32_3 = arith.constant 0 : i32
    return %c0_i32, %c0_i32_0, %c0_i32_1, %c0_i32_2 : i32, i32, i32, i32
  }
  func.func @transform_3(%arg0: i32) -> (i32, i32, i32, i32) {
    %c0_i32 = arith.constant 0 : i32
    %c0_i32_0 = arith.constant 0 : i32
    %c0_i32_1 = arith.constant 0 : i32
    %c0_i32_2 = arith.constant 0 : i32
    return %arg0, %c0_i32, %c0_i32_0, %c0_i32_1 : i32, i32, i32, i32
  }
}

</mosaic_0001>

<bundles_post_ra>
// kernel: tpu_custom_call.1
= control target key start
LH: loop header
LB: loop body
LE: loop exit
PB: predicated region body
PF: predicated region fallthrough
CT: control target
= control target key end

     0   :  { %s8047_s12 = smov 0   ;;  %s13195_s0 = inlined_call_operand.vmem [shape: f32[2,16,16,4], index: 0, kind: input, shape index: {}]   ;;  %s13196_s1 = inlined_call_operand.vmem [shape: bf16[3,3,4,4], index: 1, kind: input, shape index: {}]   ;;  %s13197_s2 = inlined_call_operand.vmem [shape: bf16[3,3,4,4], index: 2, kind: input, shape index: {}]   ;;  %s13198_s3 = inlined_call_operand.vmem [shape: f32[2,16,16,4], index: 3, kind: output, shape index: {}]  }
   0x1 LB: > { %s7373_s13 = sadd.s32 4294967295, %s8024_s12   ;;  %p7377_p0 = scmp.ge.s32.totalorder %s8024_s12, 1  ;;  %s8024_s12 = sphi %s8047_s12, %s13_s12  }
   0x2   : > { %p137_p1 = scmp.lt.s32.totalorder %s8024_s12, 3 }
   0x4   : > { %p138_p2 = pnand %p7377_p0, %p137_p1 }
   0x6   : > { %141 = sbr.rel (%p138_p2) target bundleno = 2694 (0xa86), region = 32 }
   0xb   : > { %v7382_v0 = vld [vmem:[%s13196_s1 + $0x6] sm:$0x3]  ;;  %vm762_vm0 = vcmask 1041408   ;;  %v567_v1 = vld [vmem:[%s13196_s1] sm:$0x3]  ;;  %p161_p3 = scmp.lt.s32.totalorder %s7373_s13, 1  ;;  %v337_v9 = vlaneseq }
   0xc   : > { %v764_v2 = vsel %vm762_vm0, %v7382_v0, 0  ;;  %v998_v3 = vsel %vm762_vm0, %v567_v1, 0  ;;  %vm204_vm1 = vcmask 29696   ;;  %v8026_v4 = vmov 0.0   ;;  %v7431_v13 = vld [vmem:[%s13196_s1 + $0xc] sm:$0x3] }
   0xd   : > { %7834 = vmatpush.bf16.msra.mxu2 %v764_v2  ;;  %7835 = vmatpush.bf16.msra.mxu3 %v998_v3  ;;  %s14000_s13 = smov (!%p161_p3, %s7373_s13), 1  ;;  %213 = vst.msk [vmem:[#allocation2 + $0xd2] sm:$0x3f] %vm204_vm1, %v8026_v4  ;;  %vm224_vm2 = vcmask 31744   ;;  %vm273_vm3 = vcmask 24576   ;;  %v8092_v11 = vshrl.u32 %v337_v9, 7 }
   0xe   : > { %205 = vst.msk [vmem:[#allocation2 + $0x12] sm:$0x3f] %vm204_vm1, %v8026_v4  ;;  %773 = vmatpush.bf16.msra.mxu0 %v764_v2  ;;  %1007 = vmatpush.bf16.msra.mxu1 %v998_v3  ;;  %s7832_s18 = sshll.u32 %s14000_s13, 8  ;;  %v7456_v14 = vld [vmem:[%s13196_s1 + $0x2] sm:$0x3]  ;;  %v1150_v15 = vsel %vm762_vm0, %v7431_v13, 0 }
   0xf   : > { %206 = vst.msk [vmem:[#allocation2 + $0x2a] sm:$0x3f] %vm204_vm1, %v8026_v4  ;;  %s8074_s21 = scalar_lea.vmem %s13195_s0, %s7832_s18  ;;  %v1578_v16 = vsel %vm762_vm0, %v7456_v14, 0  ;;  %vm458_vm4 = vcmp.lt.s32.totalorder %v8092_v11, 1  ;;  %v7481_v39 = vld [vmem:[%s13196_s1 + $0x8] sm:$0x3]  ;;  %s13032_s5 = scalar_lea.vmem %s13198_s3, %s7832_s18 }
  0x10   : > { %207 = vst.msk [vmem:[#allocation2 + $0x42] sm:$0x3f] %vm204_vm1, %v8026_v4  ;;  %v187_v5 = vld [vmem:[%s8074_s21 + $0x78] sm:$0xff]  ;;  %v188_v6 = vld [vmem:[%s8074_s21 + $0x80] sm:$0xff]  ;;  %v189_v7 = vld [vmem:[%s8074_s21 + $0x88] sm:$0xff]  ;;  %v1862_v41 = vsel %vm762_vm0, %v7481_v39, 0 }
  0x11   : > { %208 = vst.msk [vmem:[#allocation2 + $0x5a] sm:$0x3f] %vm204_vm1, %v8026_v4  ;;  %1159 = vmatpush.bf16.msrb.mxu2 %v1150_v15  ;;  %1587 = vmatpush.bf16.msrb.mxu3 %v1578_v16  ;;  %v185_v19 = vld [vmem:[%s8074_s21 + $0x68] sm:$0xff]  ;;  %v186_v22 = vld [vmem:[%s8074_s21 + $0x70] sm:$0xff]  ;;  %v172_v24 = vld [vmem:[%s8074_s21] sm:$0xff]  ;;  %vm2295_vm5 = vcmp.lt.s32.totalorder %v8092_v11, 7 }
  0x12   : > { %240 = vst.msk [vmem:[#allocation2 + $0xc9] sm:$0xff] %vm224_vm2, %v187_v5  ;;  %v173_v25 = vld [vmem:[%s8074_s21 + $0x8] sm:$0xff]  ;;  %v175_v28 = vld [vmem:[%s8074_s21 + $0x18] sm:$0xff]  ;;  %v174_v31 = vld [vmem:[%s8074_s21 + $0x10] sm:$0xff]  ;;  %1871 = vmatpush.bf16.msrb.mxu0 %v1862_v41  ;;  %vm341_vm6 = vcmp.ge.s32.totalorder %v8092_v11, 1  ;;  %vm7269_vm14 = vcmask 31745  }
  0x13   : > { %241 = vst.msk [vmem:[#allocation2 + $0xd9] sm:$0xff] %vm224_vm2, %v188_v6  ;;  %v201_v32 = vld [vmem:[%s8074_s21 + $0xe8] sm:$0xff]  ;;  %v190_v35 = vld [vmem:[%s8074_s21 + $0x90] sm:$0xff]  ;;  %v191_v52 = vld [vmem:[%s8074_s21 + $0x98] sm:$0xff] }
  0x14   : > { %242 = vst.msk [vmem:[#allocation2 + $0xe1] sm:$0xff] %vm224_vm2, %v189_v7  ;;  %v192_v6 = vld [vmem:[%s8074_s21 + $0xa0] sm:$0xff] }
  0x15   : > { %209 = vst.msk [vmem:[#allocation2 + $0x72] sm:$0x3f] %vm204_vm1, %v8026_v4 }
  0x16   : > { %210 = vst.msk [vmem:[#allocation2 + $0x8a] sm:$0x3f] %vm204_vm1, %v8026_v4 }
  0x17   : > { %211 = vst.msk [vmem:[#allocation2 + $0xa2] sm:$0x3f] %vm204_vm1, %v8026_v4 }
  0x18   : > { %212 = vst.msk [vmem:[#allocation2 + $0xba] sm:$0x3f] %vm204_vm1, %v8026_v4 }
  0x19   : > { %v297_v8 = vld [vmem:[#allocation2 + $0xcf] sm:$0x1]  ;;  %214 = vst.msk [vmem:[#allocation2 + $0xea] sm:$0x3f] %vm204_vm1, %v8026_v4 }
  0x1a   : > { %v265_v10 = vld [vmem:[#allocation2 + $0xda] sm:$0x1]  ;;  %313 = vst.msk [vmem:[#allocation2 + $0xd1] sm:$0x1] %vm273_vm3, %v297_v8 }
  0x1b   : > { %282 = vst.msk [vmem:[#allocation2 + $0xd8] sm:$0x1] %vm273_vm3, %v265_v10  ;;  %v8094_v12 = vld [vmem:[#allocation2 + $0xe0] sm:$0xff] }
  0x1c   : > { %215 = vst.msk [vmem:[#allocation2 + $0x102] sm:$0x3f] %vm204_vm1, %v8026_v4  ;;  %v432_v18 = vrot.slane %v8094_v12, 7  ;;  %v298_v37 = vld [vmem:[#allocation2 + $0xe7] sm:$0x1] }
  0x1d   : > { %13357 = vst [vmem:[#allocation4_spill] sm:$0xff] %v8092_v11 }
  0x1e   : > { %216 = vst.msk [vmem:[#allocation2 + $0x11a] sm:$0x3f] %vm204_vm1, %v8026_v4 }
  0x1f   : > { %217 = vst.msk [vmem:[#allocation2 + $0x132] sm:$0x3f] %vm204_vm1, %v8026_v4 }
  0x20   : > { %218 = vst.msk [vmem:[#allocation2 + $0x14a] sm:$0x3f] %vm204_vm1, %v8026_v4 }
  0x21   : > { %219 = vst.msk [vmem:[#allocation2 + $0x162] sm:$0x3f] %vm204_vm1, %v8026_v4  ;;  %v8108_v17 = vld [vmem:[#allocation2 + $0xd0] sm:$0xff] }
  0x22   : > { %220 = vst.msk [vmem:[#allocation2 + $0x17a] sm:$0x3f] %vm204_vm1, %v8026_v4  ;;  %v377_v20 = vld [vmem:[#allocation2 + $0xd8] sm:$0xff]  ;;  %v430_v21 = vrot.slane %v8108_v17, 7 }
  0x23   : > { %221 = vst.msk [vmem:[#allocation2 + $0x192] sm:$0x3f] %vm204_vm1, %v8026_v4  ;;  %v431_v23 = vrot.slane %v377_v20, 7 }
  0x24   : > { %222 = vst.msk [vmem:[#allocation2 + $0x1aa] sm:$0x3f] %vm204_vm1, %v8026_v4 }
  0x25   : > { %238 = vst.msk [vmem:[#allocation2 + $0xb1] sm:$0xff] %vm224_vm2, %v185_v19  ;;  %v484_v26 = vsel %vm458_vm4, %v431_v23, %v432_v18  ;;  %v485_v27 = vsel %vm458_vm4, %v430_v21, %v431_v23 }
  0x26   : > { %239 = vst.msk [vmem:[#allocation2 + $0xc1] sm:$0xff] %vm224_vm2, %v186_v22  ;;  %v540_v29 = vpack.c.bf16 %v485_v27, %v485_v27  ;;  %v541_v30 = vpack.c.bf16 %v484_v26, %v484_v26 }
  0x27   : > { %225 = vst.msk [vmem:[#allocation2 + $0x19] sm:$0xff] %vm224_vm2, %v172_v24 }
  0x28   : > { %226 = vst.msk [vmem:[#allocation2 + $0x21] sm:$0xff] %vm224_vm2, %v173_v25  ;;  %v8135_v33 = vunpack.c.l.b16 %v540_v29  ;;  %v8137_v34 = vunpack.c.l.b16 %v541_v30 }
  0x29   : > { %228 = vst.msk [vmem:[#allocation2 + $0x39] sm:$0xff] %vm224_vm2, %v175_v28 }
  0x2a   : > { %227 = vst.msk [vmem:[#allocation2 + $0x31] sm:$0xff] %vm224_vm2, %v174_v31  ;;  %v678_v36 = vpack.c.b16 %v8137_v34, %v8135_v33  ;;  %v193_v31 = vld [vmem:[%s8074_s21 + $0xa8] sm:$0xff] }
  0x2b   : > { %254 = vst.msk [vmem:[#allocation2 + $0x171] sm:$0xff] %vm224_vm2, %v201_v32  ;;  %v176_v32 = vld [vmem:[%s8074_s21 + $0x20] sm:$0xff] }
  0x2c   : > { %v296_v38 = vld [vmem:[#allocation2 + $0xb7] sm:$0x1]  ;;  %243 = vst.msk [vmem:[#allocation2 + $0xf1] sm:$0xff] %vm224_vm2, %v190_v35  ;;  %7395 = vmatmul.msk.bf16.vlgmr.msra.gmra.mxu2 %vm224_vm2, %v678_v36 }
  0x2d   : > { %v264_v40 = vld [vmem:[#allocation2 + $0xc2] sm:$0x1]  ;;  %312 = vst.msk [vmem:[#allocation2 + $0xb9] sm:$0x1] %vm273_vm3, %v296_v38  ;;  %v375_v44 = vld [vmem:[#allocation2 + $0xc8] sm:$0xff] }
  0x2e   : > { %281 = vst.msk [vmem:[#allocation2 + $0xc0] sm:$0x1] %vm273_vm3, %v264_v40  ;;  %v257_v42 = vld [vmem:[#allocation2 + $0x1a] sm:$0x1]  ;;  %v429_v51 = vrot.slane %v375_v44, 7 }
  0x2f   : > { %274 = vst.msk [vmem:[#allocation2 + $0x18] sm:$0x1] %vm273_vm3, %v257_v42  ;;  %v290_v49 = vld [vmem:[#allocation2 + $0x27] sm:$0x1] }
  0x30   : > { %v291_v43 = vld [vmem:[#allocation2 + $0x3f] sm:$0x1]  ;;  %314 = vst.msk [vmem:[#allocation2 + $0xe9] sm:$0x1] %vm273_vm3, %v298_v37  ;;  %v8169_v57 = vld [vmem:[#allocation2 + $0x20] sm:$0xff]  ;;  %v486_v19 = vsel %vm458_vm4, %v429_v51, %v430_v21 }
  0x31   : > { %307 = vst.msk [vmem:[#allocation2 + $0x41] sm:$0x1] %vm273_vm3, %v291_v43  ;;  %v258_v45 = vld [vmem:[#allocation2 + $0x32] sm:$0x1]  ;;  %v8156_v46 = vld [vmem:[#allocation2 + $0x38] sm:$0xff]  ;;  %v408_v2 = vrot.slane %v8169_v57, 7  ;;  %v539_v30 = vpack.c.bf16 %v486_v19, %v486_v19 }
  0x32   : > { %13358 = vst [vmem:[#allocation5_spill] sm:$0xff] %v8156_v46  ;;  %v304_v47 = vld [vmem:[#allocation2 + $0x177] sm:$0x1] }
  0x33   : > { %275 = vst.msk [vmem:[#allocation2 + $0x30] sm:$0x1] %vm273_vm3, %v258_v45  ;;  %v266_v48 = vld [vmem:[#allocation2 + $0xf2] sm:$0x1] }
  0x34   : > { %320 = vst.msk [vmem:[#allocation2 + $0x179] sm:$0x1] %vm273_vm3, %v304_v47  ;;  %v8160_v50 = vld [vmem:[#allocation2 + $0xb8] sm:$0xff] }
  0x35   : > { %327 = vst.msk [vmem:[#allocation2 + $0x8] sm:$0xff] %vm224_vm2, %v8156_v46  ;;  %v374_v53 = vld [vmem:[#allocation2 + $0xc0] sm:$0xff]  ;;  %v13200_v54 = vrot.slane %v8160_v50, 7 }
  0x36   : > { %283 = vst.msk [vmem:[#allocation2 + $0xf0] sm:$0x1] %vm273_vm3, %v266_v48  ;;  %v428_v55 = vrot.slane %v374_v53, 7  ;;  %v8167_v56 = vld [vmem:[#allocation2 + $0x18] sm:$0xff] }
  0x37   : > { %306 = vst.msk [vmem:[#allocation2 + $0x29] sm:$0x1] %vm273_vm3, %v290_v49  ;;  %v379_v58 = vld [vmem:[#allocation2 + $0xe8] sm:$0xff]  ;;  %v407_v1 = vrot.slane %v8167_v56, 7  ;;  %v8258_v49 = vunpack.c.l.b16 %v539_v30 }
  0x38   : > { %244 = vst.msk [vmem:[#allocation2 + $0xf9] sm:$0xff] %vm224_vm2, %v191_v52  ;;  %v487_v59 = vsel %vm458_vm4, %v428_v55, %v429_v51  ;;  %v488_v60 = vsel %vm458_vm4, %v13200_v54, %v428_v55  ;;  %v8179_v61 = vld [vmem:[#allocation2 + $0x40] sm:$0xff]  ;;  %v433_v62 = vrot.slane %v379_v58, 7 }
  0x39   : > { %13359 = vst [vmem:[#allocation6_spill] sm:$0xff] %v8179_v61  ;;  %v537_v63 = vpack.c.bf16 %v488_v60, %v488_v60  ;;  %v538_v0 = vpack.c.bf16 %v487_v59, %v487_v59  ;;  %v508_v12 = vsel %vm458_vm4, %v407_v1, %v408_v2 }
  0x3a   : > { %328 = vst.msk [vmem:[#allocation2 + $0x10] sm:$0xff] %vm224_vm2, %v8179_v61  ;;  %v8185_v3 = vld [vmem:[#allocation2 + $0x30] sm:$0xff]  ;;  %v483_v5 = vsel %vm458_vm4, %v432_v18, %v433_v62  ;;  %v517_v22 = vpack.c.bf16 %v508_v12, %v508_v12 }
  0x3b   : > { %13360 = vst [vmem:[#allocation7_spill] sm:$0xff] %v8185_v3  ;;  %v8189_v4 = vld [vmem:[#allocation2 + $0x178] sm:$0xff]  ;;  %v8196_v7 = vunpack.c.l.b16 %v537_v63  ;;  %v8198_v8 = vunpack.c.l.b16 %v538_v0  ;;  %v542_v10 = vpack.c.bf16 %v483_v5, %v483_v5  ;;  %v410_v51 = vrot.slane %v8185_v3, 7 }
  0x3c   : > { %326 = vst.msk [vmem:[#allocation2] sm:$0xff] %vm224_vm2, %v8185_v3  ;;  %v8211_v14 = vld [vmem:[#allocation2 + $0x8] sm:$0xff]  ;;  %v8241_v40 = vunpack.c.l.b16 %v517_v22 }
  0x3d   : > { %13361 = vst [vmem:[#allocation8_spill] sm:$0xff] %v8189_v4  ;;  %v380_v9 = vld [vmem:[#allocation2 + $0xf0] sm:$0xff]  ;;  %v8205_v13 = vpack.c.b16 %v8198_v8, %v8196_v7  ;;  %v405_v23 = vrot.slane %v8211_v14, 7  ;;  %v8225_v25 = vunpack.c.l.b16 %v542_v10  ;;  %v8273_v10 = vpack.c.b16 %v8135_v33, %v8258_v49 }
  0x3e   : > { %336 = vst.msk [vmem:[#allocation2 + $0x1a8] sm:$0xff] %vm224_vm2, %v8189_v4  ;;  %v434_v15 = vrot.slane %v380_v9, 7  ;;  %v8247_v43 = vld [vmem:[#allocation2 + $0x28] sm:$0xff]  ;;  %v194_v9 = vld [vmem:[%s8074_s21 + $0xb0] sm:$0xff] }
  0x3f   : > { %245 = vst.msk [vmem:[#allocation2 + $0x109] sm:$0xff] %vm224_vm2, %v192_v6  ;;  %v299_v16 = vld [vmem:[#allocation2 + $0xff] sm:$0x1]  ;;  %7419 = vmatmul.msk.bf16.vlgmr.msra.gmra.mxu3 %vm224_vm2, %v8205_v13  ;;  %v409_v55 = vrot.slane %v8247_v43, 7  ;;  %v177_v6 = vld [vmem:[%s8074_s21 + $0x28] sm:$0xff] }
  0x40   : > { %v482_v18 = vsel %vm458_vm4, %v433_v62, %v434_v15  ;;  %315 = vst.msk [vmem:[#allocation2 + $0x101] sm:$0x1] %vm273_vm3, %v299_v16  ;;  %v381_v26 = vld [vmem:[#allocation2 + $0xf8] sm:$0xff] }
  0x41   : > { %v8222_v20 = vld [vmem:[#allocation2 + $0x10] sm:$0xff]  ;;  %v543_v24 = vpack.c.bf16 %v482_v18, %v482_v18  ;;  %v435_v37 = vrot.slane %v381_v26, 7  ;;  %246 = vst.msk [vmem:[#allocation2 + $0x111] sm:$0xff] %vm224_vm2, %v193_v31  ;;  %v506_v12 = vsel %vm458_vm4, %v409_v55, %v410_v51 }
  0x42   : > { %v406_v27 = vrot.slane %v8222_v20, 7  ;;  %229 = vst.msk [vmem:[#allocation2 + $0x49] sm:$0xff] %vm224_vm2, %v176_v32  ;;  %v519_v19 = vpack.c.bf16 %v506_v12, %v506_v12  ;;  %v178_v32 = vld [vmem:[%s8074_s21 + $0x30] sm:$0xff] }
  0x43   : > { %v8228_v28 = vld [vmem:[#allocation2] sm:$0xff]  ;;  %v8233_v21 = vunpack.c.l.b16 %v543_v24  ;;  %v481_v59 = vsel %vm458_vm4, %v434_v15, %v435_v37  ;;  %13363 = vst [vmem:[#allocation10_spill] sm:$0xff] %v8273_v10  ;;  %v507_v15 = vsel %vm458_vm4, %v408_v2, %v409_v55 }
  0x44   : > { %v404_v29 = vrot.slane %v8228_v28, 7  ;;  %v509_v35 = vsel %vm458_vm4, %v406_v27, %v407_v1  ;;  %v544_v1 = vpack.c.bf16 %v481_v59, %v481_v59  ;;  %230 = vst.msk [vmem:[#allocation2 + $0x51] sm:$0xff] %vm224_vm2, %v177_v6  ;;  %v510_v33 = vsel %vm458_vm4, %v405_v23, %v406_v27 }
  0x45   : > { %v8230_v17 = vld [vmem:[#allocation2 + $0x1a8] sm:$0xff]  ;;  %v516_v39 = vpack.c.bf16 %v509_v35, %v509_v35  ;;  %v679_v42 = vpack.c.b16 %v8233_v21, %v8225_v25  ;;  %247 = vst.msk [vmem:[#allocation2 + $0x121] sm:$0xff] %vm224_vm2, %v194_v9  ;;  %v518_v18 = vpack.c.bf16 %v507_v15, %v507_v15  ;;  %v515_v2 = vpack.c.bf16 %v510_v33, %v510_v33  ;;  %v179_v15 = vld [vmem:[%s8074_s21 + $0x38] sm:$0xff] }
  0x46   : > { %13362 = vst [vmem:[#allocation9_spill] sm:$0xff] %v8230_v17  ;;  %v13199_v36 = vrot.slane %v8230_v17, 7  ;;  %v267_v38 = vld [vmem:[#allocation2 + $0x10a] sm:$0x1]  ;;  %v511_v41 = vsel %vm458_vm4, %v404_v29, %v405_v23  ;;  %v8287_v22 = vunpack.c.l.b16 %v544_v1  ;;  %v8295_v31 = vunpack.c.l.b16 %v519_v19  ;;  %v203_v17 = vld [vmem:[%s8074_s21 + $0xf8] sm:$0xff] }
  0x47   : > { %284 = vst.msk [vmem:[#allocation2 + $0x108] sm:$0x1] %vm273_vm3, %v267_v38  ;;  %v514_v45 = vpack.c.bf16 %v511_v41, %v511_v41  ;;  %v8255_v47 = vunpack.c.l.b16 %v516_v39  ;;  %7396 = vmatmul.msk.bf16.gmra.mxu2 %vm224_vm2, %v679_v42  ;;  %v382_v52 = vld [vmem:[#allocation2 + $0x100] sm:$0xff]  ;;  %v8293_v30 = vunpack.c.l.b16 %v518_v18  ;;  %v900_v39 = vunpack.c.l.b16 %v515_v2 }
  0x48   : > { %v512_v44 = vsel %vm458_vm4, %v13199_v36, %v404_v29  ;;  %v436_v58 = vrot.slane %v382_v52, 7  ;;  %v384_v29 = vld [vmem:[#allocation2 + $0x110] sm:$0xff]  ;;  %231 = vst.msk [vmem:[#allocation2 + $0x61] sm:$0xff] %vm224_vm2, %v178_v32  ;;  %v411_v42 = vrot.slane %v8156_v46, 7 }
  0x49   : > { %v513_v48 = vpack.c.bf16 %v512_v44, %v512_v44  ;;  %v899_v53 = vunpack.c.l.b16 %v514_v45  ;;  %v666_v60 = vpack.c.b16 %v8241_v40, %v8255_v47  ;;  %v259_v16 = vld [vmem:[#allocation2 + $0x4a] sm:$0x1]  ;;  %v300_v27 = vld [vmem:[#allocation2 + $0x117] sm:$0x1]  ;;  %v667_v41 = vpack.c.b16 %v8295_v31, %v8293_v30  ;;  %232 = vst.msk [vmem:[#allocation2 + $0x69] sm:$0xff] %vm224_vm2, %v179_v15 }
  0x4a   : > { %v480_v63 = vsel %vm458_vm4, %v435_v37, %v436_v58  ;;  %276 = vst.msk [vmem:[#allocation2 + $0x48] sm:$0x1] %vm273_vm3, %v259_v16  ;;  %v438_v37 = vrot.slane %v384_v29, 7  ;;  %v412_v44 = vrot.slane %v8179_v61, 7  ;;  %v902_v52 = vpack.c.b16 %v8255_v47, %v900_v39 }
  0x4b   : > { %v898_v62 = vunpack.c.l.b16 %v513_v48  ;;  %7383 = vmatmul.msk.bf16.vlgmr.msra.gmra.mxu0 %vm224_vm2, %v666_v60  ;;  %v545_v5 = vpack.c.bf16 %v480_v63, %v480_v63  ;;  %316 = vst.msk [vmem:[#allocation2 + $0x119] sm:$0x1] %vm273_vm3, %v300_v27  ;;  %v292_v59 = vld [vmem:[#allocation2 + $0x57] sm:$0x1]  ;;  %v195_v60 = vld [vmem:[%s8074_s21 + $0xb8] sm:$0xff] }
  0x4c   : > { %v268_v38 = vld [vmem:[#allocation2 + $0x122] sm:$0x1]  ;;  %v504_v63 = vsel %vm458_vm4, %v411_v42, %v412_v44  ;;  %308 = vst.msk [vmem:[#allocation2 + $0x59] sm:$0x1] %vm273_vm3, %v292_v59  ;;  %v8341_v2 = vld [vmem:[#allocation2 + $0x50] sm:$0xff] }
  0x4d   : > { %v901_v0 = vpack.c.b16 %v899_v53, %v898_v62  ;;  %v8289_v24 = vunpack.c.l.b16 %v545_v5  ;;  %285 = vst.msk [vmem:[#allocation2 + $0x120] sm:$0x1] %vm273_vm3, %v268_v38  ;;  %v8317_v62 = vpack.c.b16 %v8225_v25, %v8137_v34  ;;  %v521_v1 = vpack.c.bf16 %v504_v63, %v504_v63  ;;  %v180_v63 = vld [vmem:[%s8074_s21 + $0x40] sm:$0xff] }
  0x4e   : > { %v383_v26 = vld [vmem:[#allocation2 + $0x108] sm:$0xff]  ;;  %248 = vst.msk [vmem:[#allocation2 + $0x129] sm:$0xff] %vm224_vm2, %v195_v60 }
  0x4f   : > { %7407 = vmatmul.msk.bf16.vlgmr.msra.gmra.mxu1 %vm224_vm2, %v901_v0  ;;  %7420 = vmatmul.msk.bf16.gmra.mxu3 %vm224_vm2, %v8273_v10  ;;  %v680_v23 = vpack.c.b16 %v8289_v24, %v8287_v22  ;;  %v437_v35 = vrot.slane %v383_v26, 7  ;;  %13364 = vst [vmem:[#allocation11_spill] sm:$0xff] %v8317_v62  ;;  %v505_v0 = vsel %vm458_vm4, %v410_v51, %v411_v42  ;;  %v260_v47 = vld [vmem:[#allocation2 + $0x62] sm:$0x1]  ;;  %v8333_v9 = vunpack.c.l.b16 %v521_v1  ;;  %v197_v60 = vld [vmem:[%s8074_s21 + $0xc8] sm:$0xff] }
  0x50   : > { %277 = vst.msk [vmem:[#allocation2 + $0x60] sm:$0x1] %vm273_vm3, %v260_v47  ;;  %v196_v42 = vld [vmem:[%s8074_s21 + $0xc0] sm:$0xff] }
  0x51   : > { %v478_v45 = vsel %vm458_vm4, %v437_v35, %v438_v37  ;;  %v479_v48 = vsel %vm458_vm4, %v436_v58, %v437_v35  ;;  %v520_v58 = vpack.c.bf16 %v505_v0, %v505_v0  ;;  %v8339_v19 = vld [vmem:[#allocation2 + $0x48] sm:$0xff]  ;;  %v903_v35 = vpack.c.b16 %v8293_v30, %v8241_v40  ;;  %249 = vst.msk [vmem:[#allocation2 + $0x139] sm:$0xff] %vm224_vm2, %v196_v42 }
  0x52   : > { %v546_v53 = vpack.c.bf16 %v479_v48, %v479_v48  ;;  %v547_v55 = vpack.c.bf16 %v478_v45, %v478_v45  ;;  %v385_v51 = vld [vmem:[#allocation2 + $0x118] sm:$0xff]  ;;  %v413_v29 = vrot.slane %v8339_v19, 7  ;;  %v8358_v45 = vpack.c.b16 %v8287_v22, %v8233_v21  ;;  %250 = vst.msk [vmem:[#allocation2 + $0x141] sm:$0xff] %vm224_vm2, %v197_v60 }
  0x53   : > { %v622_v6 = vunpack.c.l.b16 %v520_v58  ;;  %v439_v16 = vrot.slane %v385_v51, 7  ;;  %v8380_v1 = vld [vmem:[#allocation2 + $0x58] sm:$0xff]  ;;  %233 = vst.msk [vmem:[#allocation2 + $0x79] sm:$0xff] %vm224_vm2, %v180_v63  ;;  %v8425_v63 = vld [vmem:[#allocation2 + $0x68] sm:$0xff] }
  0x54   : > { %v8327_v34 = vunpack.c.l.b16 %v546_v53  ;;  %v8329_v25 = vunpack.c.l.b16 %v547_v55  ;;  %v386_v5 = vld [vmem:[#allocation2 + $0x120] sm:$0xff]  ;;  %13365 = vst [vmem:[#allocation12_spill] sm:$0xff] %v8358_v45 }
  0x55   : > { %v440_v33 = vrot.slane %v386_v5, 7  ;;  %v301_v18 = vld [vmem:[#allocation2 + $0x12f] sm:$0x1]  ;;  %v668_v26 = vpack.c.b16 %v8333_v9, %v622_v6  ;;  %v477_v32 = vsel %vm458_vm4, %v438_v37, %v439_v16  ;;  %v503_v37 = vsel %vm458_vm4, %v412_v44, %v413_v29  ;;  %256 = vst.msk [vmem:[#allocation2 + $0x189] sm:$0xff] %vm224_vm2, %v203_v17 }
  0x56   : > { %v681_v12 = vpack.c.b16 %v8329_v25, %v8327_v34  ;;  %317 = vst.msk [vmem:[#allocation2 + $0x131] sm:$0x1] %vm273_vm3, %v301_v18  ;;  %v548_v38 = vpack.c.bf16 %v477_v32, %v477_v32  ;;  %v522_v40 = vpack.c.bf16 %v503_v37, %v503_v37  ;;  %v387_v22 = vld [vmem:[#allocation2 + $0x128] sm:$0xff] }
  0x57   : > { %7397 = vmatmul.msk.bf16.gmra.mxu2 %vm224_vm2, %v680_v23  ;;  %v414_v23 = vrot.slane %v8341_v2, 7  ;;  %v476_v27 = vsel %vm458_vm4, %v439_v16, %v440_v33  ;;  %v441_v0 = vrot.slane %v387_v22, 7  ;;  %v8382_v51 = vld [vmem:[#allocation2 + $0x60] sm:$0xff]  ;;  %v181_v32 = vld [vmem:[%s8074_s21 + $0x48] sm:$0xff]  ;;  %v182_v22 = vld [vmem:[%s8074_s21 + $0x50] sm:$0xff] }
  0x58   : > { %v549_v39 = vpack.c.bf16 %v476_v27, %v476_v27  ;;  %v624_v55 = vunpack.c.l.b16 %v522_v40  ;;  %v269_v58 = vld [vmem:[#allocation2 + $0x13a] sm:$0x1]  ;;  %v416_v15 = vrot.slane %v8382_v51, 7  ;;  %234 = vst.msk [vmem:[#allocation2 + $0x81] sm:$0xff] %vm224_vm2, %v181_v32 }
  0x59   : > { %v502_v48 = vsel %vm458_vm4, %v413_v29, %v414_v23  ;;  %286 = vst.msk [vmem:[#allocation2 + $0x138] sm:$0x1] %vm273_vm3, %v269_v58  ;;  %v475_v18 = vsel %vm458_vm4, %v440_v33, %v441_v0  ;;  %v390_v42 = vld [vmem:[#allocation2 + $0x140] sm:$0xff] }
  0x5a   : > { %v523_v30 = vpack.c.bf16 %v502_v48, %v502_v48  ;;  %v8369_v21 = vunpack.c.l.b16 %v549_v39  ;;  %v550_v29 = vpack.c.bf16 %v475_v18, %v475_v18  ;;  %235 = vst.msk [vmem:[#allocation2 + $0x91] sm:$0xff] %vm224_vm2, %v182_v22 }
  0x5b   : > { %7384 = vmatmul.msk.bf16.gmra.mxu0 %vm224_vm2, %v667_v41  ;;  %v293_v41 = vld [vmem:[#allocation2 + $0x6f] sm:$0x1] }
  0x5c   : > { %309 = vst.msk [vmem:[#allocation2 + $0x71] sm:$0x1] %vm273_vm3, %v293_v41  ;;  %v8373_v59 = vunpack.c.l.b16 %v523_v30  ;;  %v302_v30 = vld [vmem:[#allocation2 + $0x147] sm:$0x1] }
  0x5d   : > { %v388_v53 = vld [vmem:[#allocation2 + $0x130] sm:$0xff]  ;;  %318 = vst.msk [vmem:[#allocation2 + $0x149] sm:$0x1] %vm273_vm3, %v302_v30  ;;  %v183_v30 = vld [vmem:[%s8074_s21 + $0x58] sm:$0xff] }
  0x5e   : > { %v442_v47 = vrot.slane %v388_v53, 7  ;;  %v669_v5 = vpack.c.b16 %v8373_v59, %v624_v55  ;;  %236 = vst.msk [vmem:[#allocation2 + $0x99] sm:$0xff] %vm224_vm2, %v183_v30 }
  0x5f   : > { %7408 = vmatmul.msk.bf16.gmra.mxu1 %vm224_vm2, %v902_v52  ;;  %7421 = vmatmul.msk.bf16.gmra.mxu3 %vm224_vm2, %v8317_v62  ;;  %v8367_v52 = vunpack.c.l.b16 %v548_v38  ;;  %v8402_v38 = vpack.c.b16 %v8327_v34, %v8289_v24  ;;  %v8413_v34 = vunpack.c.l.b16 %v550_v29  ;;  %v8440_v29 = vpack.c.b16 %v624_v55, %v8333_v9 }
  0x60   : > { %v474_v16 = vsel %vm458_vm4, %v441_v0, %v442_v47 }
  0x61   : > { %v682_v44 = vpack.c.b16 %v8369_v21, %v8367_v52  ;;  %v551_v27 = vpack.c.bf16 %v474_v16, %v474_v16  ;;  %13366 = vst [vmem:[#allocation13_spill] sm:$0xff] %v8402_v38  ;;  %v262_v9 = vld [vmem:[#allocation2 + $0x92] sm:$0x1] }
  0x62   : > { %279 = vst.msk [vmem:[#allocation2 + $0x90] sm:$0x1] %vm273_vm3, %v262_v9 }
  0x63   : > { %v8415_v33 = vunpack.c.l.b16 %v551_v27  ;;  %v8427_v0 = vld [vmem:[#allocation2 + $0x70] sm:$0xff] }
  0x65   : > { %v683_v40 = vpack.c.b16 %v8415_v33, %v8413_v34  ;;  %v295_v9 = vld [vmem:[#allocation2 + $0x9f] sm:$0x1] }
  0x66   : > { %311 = vst.msk [vmem:[#allocation2 + $0xa1] sm:$0x1] %vm273_vm3, %v295_v9 }
  0x67   : > { %7398 = vmatmul.msk.bf16.gmra.mxu2 %vm224_vm2, %v681_v12  ;;  %v415_v12 = vrot.slane %v8380_v1, 7 }
  0x69   : > { %v500_v39 = vsel %vm458_vm4, %v415_v12, %v416_v15  ;;  %v501_v41 = vsel %vm458_vm4, %v414_v23, %v415_v12  ;;  %v389_v23 = vld [vmem:[#allocation2 + $0x138] sm:$0xff]  ;;  %v418_v12 = vrot.slane %v8427_v0, 7 }
  0x6a   : > { %v525_v24 = vpack.c.bf16 %v500_v39, %v500_v39  ;;  %v443_v53 = vrot.slane %v389_v23, 7  ;;  %v199_v39 = vld [vmem:[%s8074_s21 + $0xd8] sm:$0xff] }
  0x6b   : > { %7385 = vmatmul.msk.bf16.gmra.mxu0 %vm224_vm2, %v668_v26  ;;  %v8395_v26 = vpack.c.b16 %v622_v6, %v8295_v31  ;;  %v261_v31 = vld [vmem:[#allocation2 + $0x7a] sm:$0x1]  ;;  %v524_v6 = vpack.c.bf16 %v501_v41, %v501_v41  ;;  %v8446_v41 = vpack.c.b16 %v8367_v52, %v8329_v25  ;;  %252 = vst.msk [vmem:[#allocation2 + $0x159] sm:$0xff] %vm224_vm2, %v199_v39 }
  0x6c   : > { %278 = vst.msk [vmem:[#allocation2 + $0x78] sm:$0x1] %vm273_vm3, %v261_v31  ;;  %v8419_v37 = vunpack.c.l.b16 %v525_v24  ;;  %v473_v18 = vsel %vm458_vm4, %v442_v47, %v443_v53 }
  0x6d   : > { %v626_v48 = vunpack.c.l.b16 %v524_v6  ;;  %v552_v27 = vpack.c.bf16 %v473_v18, %v473_v18  ;;  %13367 = vst [vmem:[#allocation14_spill] sm:$0xff] %v8446_v41 }
  0x6f   : > { %7409 = vmatmul.msk.bf16.gmra.mxu1 %vm224_vm2, %v903_v35  ;;  %7422 = vmatmul.msk.bf16.gmra.mxu3 %vm224_vm2, %v8358_v45  ;;  %v198_v35 = vld [vmem:[%s8074_s21 + $0xd0] sm:$0xff]  ;;  %v670_v58 = vpack.c.b16 %v8419_v37, %v626_v48  ;;  %v8457_v52 = vunpack.c.l.b16 %v552_v27  ;;  %v8483_v39 = vpack.c.b16 %v626_v48, %v8373_v59 }
  0x70   : > { %251 = vst.msk [vmem:[#allocation2 + $0x151] sm:$0xff] %vm224_vm2, %v198_v35  ;;  %v294_v35 = vld [vmem:[#allocation2 + $0x87] sm:$0x1] }
  0x71   : > { %310 = vst.msk [vmem:[#allocation2 + $0x89] sm:$0x1] %vm273_vm3, %v294_v35 }
  0x77   : > { %7399 = vmatmul.msk.bf16.gmra.mxu2 %vm224_vm2, %v682_v44  ;;  %v444_v44 = vrot.slane %v390_v42, 7  ;;  %v270_v60 = vld [vmem:[#allocation2 + $0x152] sm:$0x1] }
  0x78   : > { %287 = vst.msk [vmem:[#allocation2 + $0x150] sm:$0x1] %vm273_vm3, %v270_v60  ;;  %v303_v60 = vld [vmem:[#allocation2 + $0x15f] sm:$0x1] }
  0x79   : > { %v472_v16 = vsel %vm458_vm4, %v443_v53, %v444_v44  ;;  %319 = vst.msk [vmem:[#allocation2 + $0x161] sm:$0x1] %vm273_vm3, %v303_v60  ;;  %v184_v60 = vld [vmem:[%s8074_s21 + $0x60] sm:$0xff] }
  0x7a   : > { %v553_v32 = vpack.c.bf16 %v472_v16, %v472_v16  ;;  %237 = vst.msk [vmem:[#allocation2 + $0xa9] sm:$0xff] %vm224_vm2, %v184_v60  ;;  %v202_v60 = vld [vmem:[%s8074_s21 + $0xf0] sm:$0xff] }
  0x7b   : > { %7386 = vmatmul.msk.bf16.gmra.mxu0 %vm224_vm2, %v669_v5  ;;  %v417_v5 = vrot.slane %v8425_v63, 7  ;;  %255 = vst.msk [vmem:[#allocation2 + $0x181] sm:$0xff] %vm224_vm2, %v202_v60 }
  0x7c   : > { %v8459_v47 = vunpack.c.l.b16 %v553_v32 }
  0x7d   : > { %v498_v31 = vsel %vm458_vm4, %v417_v5, %v418_v12  ;;  %v499_v6 = vsel %vm458_vm4, %v416_v15, %v417_v5  ;;  %v391_v15 = vld [vmem:[#allocation2 + $0x148] sm:$0xff]  ;;  %v8471_v5 = vld [vmem:[#allocation2 + $0x80] sm:$0xff] }
  0x7e   : > { %v526_v55 = vpack.c.bf16 %v499_v6, %v499_v6  ;;  %v527_v25 = vpack.c.bf16 %v498_v31, %v498_v31  ;;  %v445_v22 = vrot.slane %v391_v15, 7  ;;  %v420_v27 = vrot.slane %v8471_v5, 7 }
  0x7f   : > { %7410 = vmatmul.msk.bf16.gmra.mxu1 %vm224_vm2, %v8395_v26  ;;  %7423 = vmatmul.msk.bf16.gmra.mxu3 %vm224_vm2, %v8402_v38  ;;  %v392_v24 = vld [vmem:[#allocation2 + $0x150] sm:$0xff] }
  0x80   : > { %v628_v23 = vunpack.c.l.b16 %v526_v55  ;;  %v8463_v42 = vunpack.c.l.b16 %v527_v25  ;;  %v446_v53 = vrot.slane %v392_v24, 7  ;;  %v471_v35 = vsel %vm458_vm4, %v444_v44, %v445_v22  ;;  %v200_v55 = vld [vmem:[%s8074_s21 + $0xe0] sm:$0xff] }
  0x81   : > { %v554_v31 = vpack.c.bf16 %v471_v35, %v471_v35  ;;  %v8489_v25 = vpack.c.b16 %v8413_v34, %v8369_v21  ;;  %253 = vst.msk [vmem:[#allocation2 + $0x169] sm:$0xff] %vm224_vm2, %v200_v55  ;;  %v393_v21 = vld [vmem:[#allocation2 + $0x158] sm:$0xff]  ;;  %v394_v34 = vld [vmem:[#allocation2 + $0x160] sm:$0xff]  ;;  %v8508_v35 = vld [vmem:[#allocation2 + $0x88] sm:$0xff] }
  0x82   : > { %v671_v16 = vpack.c.b16 %v8463_v42, %v628_v23  ;;  %v470_v32 = vsel %vm458_vm4, %v445_v22, %v446_v53  ;;  %v421_v9 = vrot.slane %v8508_v35, 7 }
  0x83   : > { %v555_v6 = vpack.c.bf16 %v470_v32, %v470_v32  ;;  %13368 = vst [vmem:[#allocation15_spill] sm:$0xff] %v8489_v25  ;;  %v656_v24 = vunpack.c.l.b16 %v554_v31  ;;  %v8510_v31 = vld [vmem:[#allocation2 + $0x90] sm:$0xff] }
  0x84   : > { %v422_v55 = vrot.slane %v8510_v31, 7  ;;  %v495_v36 = vsel %vm458_vm4, %v420_v27, %v421_v9 }
  0x87   : > { %7400 = vmatmul.msk.bf16.gmra.mxu2 %vm224_vm2, %v683_v40  ;;  %v684_v40 = vpack.c.b16 %v8459_v47, %v8457_v52 }
  0x88   : > { %v271_v32 = vld [vmem:[#allocation2 + $0x16a] sm:$0x1] }
  0x89   : > { %288 = vst.msk [vmem:[#allocation2 + $0x168] sm:$0x1] %vm273_vm3, %v271_v32  ;;  %v494_v32 = vsel %vm458_vm4, %v421_v9, %v422_v55 }
  0x8b   : > { %7387 = vmatmul.msk.bf16.gmra.mxu0 %vm224_vm2, %v670_v58  ;;  %v8469_v58 = vld [vmem:[#allocation2 + $0x78] sm:$0xff] }
  0x8c   : > { %v419_v18 = vrot.slane %v8469_v58, 7 }
  0x8e   : > { %v496_v15 = vsel %vm458_vm4, %v419_v18, %v420_v27  ;;  %v497_v44 = vsel %vm458_vm4, %v418_v12, %v419_v18  ;;  %v448_v18 = vrot.slane %v394_v34, 7  ;;  %v263_v34 = vld [vmem:[#allocation2 + $0xaa] sm:$0x1] }
  0x8f   : > { %7411 = vmatmul.msk.bf16.gmra.mxu1 %vm224_vm2, %v8440_v29  ;;  %7424 = vmatmul.msk.bf16.gmra.mxu3 %vm224_vm2, %v8446_v41  ;;  %v528_v59 = vpack.c.bf16 %v497_v44, %v497_v44  ;;  %v529_v48 = vpack.c.bf16 %v496_v15, %v496_v15  ;;  %280 = vst.msk [vmem:[#allocation2 + $0xa8] sm:$0x1] %vm273_vm3, %v263_v34  ;;  %v8548_v34 = vld [vmem:[#allocation2 + $0x98] sm:$0xff] }
  0x91   : > { %v630_v30 = vunpack.c.l.b16 %v528_v59  ;;  %v8503_v22 = vunpack.c.l.b16 %v529_v48  ;;  %v8522_v59 = vpack.c.b16 %v628_v23, %v8419_v37  ;;  %v530_v37 = vpack.c.bf16 %v495_v36, %v495_v36  ;;  %v272_v36 = vld [vmem:[#allocation2 + $0x182] sm:$0x1] }
  0x92   : > { %v531_v23 = vpack.c.bf16 %v494_v32, %v494_v32  ;;  %289 = vst.msk [vmem:[#allocation2 + $0x180] sm:$0x1] %vm273_vm3, %v272_v36  ;;  %v423_v32 = vrot.slane %v8548_v34, 7 }
  0x94   : > { %v8544_v27 = vunpack.c.l.b16 %v531_v23 }
  0x97   : > { %7401 = vmatmul.msk.bf16.gmra.mxu2 %vm224_vm2, %v684_v40  ;;  %v8499_v40 = vunpack.c.l.b16 %v555_v6  ;;  %v672_v6 = vpack.c.b16 %v8503_v22, %v630_v30 }
  0x99   : > { %v685_v12 = vpack.c.b16 %v8499_v40, %v656_v24 }
  0x9b   : > { %7388 = vmatmul.msk.bf16.gmra.mxu0 %vm224_vm2, %v671_v16  ;;  %v447_v16 = vrot.slane %v393_v21, 7 }
  0x9d   : > { %v468_v15 = vsel %vm458_vm4, %v447_v16, %v448_v18  ;;  %v469_v44 = vsel %vm458_vm4, %v446_v53, %v447_v16 }
  0x9e   : > { %v556_v48 = vpack.c.bf16 %v469_v44, %v469_v44  ;;  %v557_v21 = vpack.c.bf16 %v468_v15, %v468_v15 }
  0x9f   : > { %7412 = vmatmul.msk.bf16.gmra.mxu1 %vm224_vm2, %v8483_v39  ;;  %7425 = vmatmul.msk.bf16.gmra.mxu3 %vm224_vm2, %v8489_v25  ;;  %v493_v25 = vsel %vm458_vm4, %v422_v55, %v423_v32  ;;  %v305_v55 = vld [vmem:[#allocation2 + $0x18f] sm:$0x1] }
  0xa0   : > { %v8538_v53 = vunpack.c.l.b16 %v556_v48  ;;  %v8540_v16 = vunpack.c.l.b16 %v557_v21  ;;  %v8550_v48 = vld [vmem:[#allocation2 + $0xa0] sm:$0xff]  ;;  %321 = vst.msk [vmem:[#allocation2 + $0x191] sm:$0x1] %vm273_vm3, %v305_v55 }
  0xa2   : > { %v686_v9 = vpack.c.b16 %v8540_v16, %v8538_v53  ;;  %v8612_v10 = vpack.c.b16 %v8538_v53, %v8499_v40  ;;  %v399_v40 = vld [vmem:[#allocation2 + $0x188] sm:$0xff] }
  0xa4   : > { %13373 = vst [vmem:[#allocation20_spill] sm:$0xff] %v8612_v10 }
  0xa7   : > { %7402 = vmatmul.msk.bf16.gmra.mxu2 %vm224_vm2, %v685_v12  ;;  %v8528_v12 = vpack.c.b16 %v8457_v52, %v8415_v33  ;;  %v395_v33 = vld [vmem:[#allocation2 + $0x168] sm:$0xff]  ;;  %v396_v52 = vld [vmem:[#allocation2 + $0x170] sm:$0xff] }
  0xa8   : > { %v449_v15 = vrot.slane %v395_v33, 7  ;;  %v450_v44 = vrot.slane %v396_v52, 7  ;;  %v8562_v52 = vpack.c.b16 %v630_v30, %v8463_v42  ;;  %v532_v42 = vpack.c.bf16 %v493_v25, %v493_v25  ;;  %v8626_v53 = vld [vmem:[#allocation2 + $0x190] sm:$0xff] }
  0xa9   : > { %13369 = vst [vmem:[#allocation16_spill] sm:$0xff] %v8528_v12  ;;  %v451_v25 = vrot.slane %v8189_v4, 7 }
  0xaa   : > { %v466_v23 = vsel %vm458_vm4, %v449_v15, %v450_v44  ;;  %v467_v33 = vsel %vm458_vm4, %v448_v18, %v449_v15 }
  0xab   : > { %7389 = vmatmul.msk.bf16.gmra.mxu0 %vm224_vm2, %v672_v6  ;;  %v632_v6 = vunpack.c.l.b16 %v530_v37  ;;  %v424_v37 = vrot.slane %v8550_v48, 7  ;;  %v558_v36 = vpack.c.bf16 %v467_v33, %v467_v33  ;;  %v559_v54 = vpack.c.bf16 %v466_v23, %v466_v23 }
  0xac   : > { %v634_v23 = vunpack.c.l.b16 %v532_v42 }
  0xad   : > { %v673_v60 = vpack.c.b16 %v8544_v27, %v632_v6  ;;  %v8576_v18 = vunpack.c.l.b16 %v558_v36  ;;  %v8578_v15 = vunpack.c.l.b16 %v559_v54  ;;  %v8590_v54 = vld [vmem:[#allocation2 + $0xa8] sm:$0xff]  ;;  %v8592_v36 = vld [vmem:[#allocation2 + $0xb0] sm:$0xff] }
  0xae   : > { %v426_v41 = vrot.slane %v8592_v36, 7 }
  0xaf   : > { %7413 = vmatmul.msk.bf16.gmra.mxu1 %vm224_vm2, %v8522_v59  ;;  %7426 = vmatmul.msk.bf16.gmra.mxu3 %vm224_vm2, %v8528_v12  ;;  %v835_v21 = vpop.f32.mrf.mxu2  ;;  %v492_v12 = vsel %vm458_vm4, %v423_v32, %v424_v37  ;;  %v687_v17 = vpack.c.b16 %v8578_v15, %v8576_v18 }
  0xb0   : > { %v533_v30 = vpack.c.bf16 %v492_v12, %v492_v12 }
  0xb2   : > { %v8582_v33 = vunpack.c.l.b16 %v533_v30  ;;  %v425_v30 = vrot.slane %v8590_v54, 7 }
  0xb7   : > { %7403 = vmatmul.msk.bf16.gmra.mxu2 %vm224_vm2, %v686_v9  ;;  %v8567_v9 = vpack.c.b16 %v656_v24, %v8459_v47  ;;  %v837_v47 = vpop.f32.mrf.mxu2  ;;  %v398_v24 = vld [vmem:[#allocation2 + $0x180] sm:$0xff] }
  0xb8   : > { %v452_v12 = vrot.slane %v398_v24, 7  ;;  %v465_v24 = vsel %vm458_vm4, %v450_v44, %v451_v25  ;;  %v490_v44 = vsel %vm458_vm4, %v425_v30, %v426_v41 }
  0xb9   : > { %13370 = vst [vmem:[#allocation17_spill] sm:$0xff] %v8567_v9  ;;  %v560_v38 = vpack.c.bf16 %v465_v24, %v465_v24 }
  0xbb   : > { %7390 = vmatmul.msk.bf16.gmra.mxu0 %vm224_vm2, %v673_v60 }
  0xbf   : > { %7414 = vmatmul.msk.bf16.gmra.mxu1 %vm224_vm2, %v8562_v52  ;;  %7427 = vmatmul.msk.bf16.gmra.mxu3 %vm224_vm2, %v8567_v9  ;;  %v674_v9 = vpack.c.b16 %v8582_v33, %v634_v23 }
  0xc2   : > { %v1069_v60 = vpop.f32.mrf.mxu3 }
  0xc3   : > { %v8586_v32 = vadd.f32 %v1069_v60, %v835_v21  ;;  %v464_v21 = vsel %vm458_vm4, %v451_v25, %v452_v12  ;;  %v8603_v60 = vpack.c.b16 %v632_v6, %v8503_v22  ;;  %v491_v22 = vsel %vm458_vm4, %v424_v37, %v425_v30 }
  0xc4   : > { %v561_v45 = vpack.c.bf16 %v464_v21, %v464_v21  ;;  %v534_v6 = vpack.c.bf16 %v491_v22, %v491_v22  ;;  %v8620_v25 = vunpack.c.l.b16 %v560_v38  ;;  %v13214_v22 = vrot.slane %v8626_v53, 7 }
  0xc5   : > { %13371 = vst [vmem:[#allocation18_spill] sm:$0xff] %v8586_v32 }
  0xc6   : > { %v636_v30 = vunpack.c.l.b16 %v534_v6 }
  0xc7   : > { %7404 = vmatmul.msk.bf16.gmra.mxu2 %vm224_vm2, %v687_v17 }
  0xc8   : > { %v775_v42 = vpop.f32.mrf.mxu0 }
  0xca   : > { %v840_v4 = vpop.f32.mrf.mxu2  ;;  %v1071_v17 = vpop.f32.mrf.mxu3 }
  0xcb   : > { %7391 = vmatmul.msk.bf16.gmra.mxu0 %vm224_vm2, %v674_v9  ;;  %v8608_v62 = vadd.f32 %v1071_v17, %v837_v47  ;;  %v535_v9 = vpack.c.bf16 %v490_v44, %v490_v44  ;;  %v453_v44 = vrot.slane %v399_v40, 7 }
  0xcc   : > { %v1009_v55 = vpop.f32.mrf.mxu1 }
  0xcd   : > { %v8605_v32 = vadd.f32 %v1009_v55, %v775_v42  ;;  %13372 = vst [vmem:[#allocation19_spill] sm:$0xff] %v8608_v62  ;;  %v8622_v42 = vunpack.c.l.b16 %v561_v45  ;;  %v8630_v17 = vunpack.c.l.b16 %v535_v9  ;;  %v462_v6 = vsel %vm458_vm4, %v453_v44, %v13214_v22 }
  0xce   : > { %v463_v9 = vsel %vm458_vm4, %v452_v12, %v453_v44  ;;  %v8655_v22 = vpack.c.b16 %v8576_v18, %v8540_v16  ;;  %v13376_v12 = vrot.slane %v8160_v50, 7 }
  0xcf   : > { %7415 = vmatmul.msk.bf16.gmra.mxu1 %vm224_vm2, %v8603_v60  ;;  %13374 = vst [vmem:[#allocation21_spill] sm:$0xff] %v8622_v42  ;;  %7428 = vmatmul.msk.bf16.gmra.mxu3 %vm224_vm2, %v8612_v10  ;;  %v688_v38 = vpack.c.b16 %v8622_v42, %v8620_v25  ;;  %v675_v62 = vpack.c.b16 %v8630_v17, %v636_v30 }
  0xd0   : > { %v777_v47 = vpop.f32.mrf.mxu0 }
  0xd2   : > { %v842_v24 = vpop.f32.mrf.mxu2  ;;  %v1074_v37 = vpop.f32.mrf.mxu3 }
  0xd3   : > { %v8634_v45 = vadd.f32 %v1074_v37, %v840_v4 }
  0xd4   : > { %v1011_v21 = vpop.f32.mrf.mxu1 }
  0xd5   : > { %v8628_v55 = vadd.f32 %v1011_v21, %v777_v47  ;;  %13375 = vst [vmem:[#allocation22_spill] sm:$0xff] %v8634_v45  ;;  %v8646_v47 = vpack.c.b16 %v634_v23, %v8544_v27  ;;  %v563_v45 = vpack.c.bf16 %v462_v6, %v462_v6  ;;  %v489_v27 = vsel %vm458_vm4, %v426_v41, %v13376_v12 }
  0xd7   : > { %7405 = vmatmul.msk.bf16.gmra.mxu2 %vm224_vm2, %v688_v38  ;;  %v562_v38 = vpack.c.bf16 %v463_v9, %v463_v9  ;;  %v7531_v9 = vld [vmem:[%s13196_s1 + $0x4] sm:$0x3] }
  0xd8   : > { %v780_v10 = vpop.f32.mrf.mxu0 }
  0xd9   : > { %v8663_v23 = vunpack.c.l.b16 %v562_v38 }
  0xda   : > { %v845_v40 = vpop.f32.mrf.mxu2  ;;  %v1076_v37 = vpop.f32.mrf.mxu3 }
  0xdb   : > { %7392 = vmatmul.msk.bf16.gmra.mxu0 %vm224_vm2, %v675_v62  ;;  %v8651_v42 = vadd.f32 %v1076_v37, %v842_v24  ;;  %v8665_v62 = vunpack.c.l.b16 %v563_v45  ;;  %v7556_v45 = vld [vmem:[%s13196_s1 + $0xa] sm:$0x3]  ;;  %v2599_v37 = vsel %vm762_vm0, %v7531_v9, 0 }
  0xdc   : > { %v1014_v4 = vpop.f32.mrf.mxu1  ;;  %v2883_v38 = vsel %vm762_vm0, %v7556_v45, 0  ;;  %2608 = vmatpush.bf16.msra.mxu2 %v2599_v37 }
  0xdd   : > { %v8648_v21 = vadd.f32 %v1014_v4, %v780_v10  ;;  %v536_v10 = vpack.c.bf16 %v489_v27, %v489_v27  ;;  %13377 = vst [vmem:[#allocation23_spill] sm:$0xff] %v8665_v62  ;;  %v689_v41 = vpack.c.b16 %v8665_v62, %v8663_v23  ;;  %2892 = vmatpush.bf16.msra.mxu3 %v2883_v38 }
  0xdf   : > { %7416 = vmatmul.msk.bf16.gmra.mxu1 %vm224_vm2, %v8646_v47  ;;  %7429 = vmatmul.msk.bf16.gmra.mxu3 %vm224_vm2, %v8655_v22  ;;  %v638_v6 = vunpack.c.l.b16 %v536_v10  ;;  %v8686_v10 = vpack.c.b16 %v636_v30, %v8582_v33  ;;  %v8701_v33 = vpack.c.b16 %v8620_v25, %v8578_v15  ;;  %v1329_v25 = vpack.c.bf16 %v8228_v28, %v8228_v28 }
  0xe0   : > { %v782_v44 = vpop.f32.mrf.mxu0 }
  0xe1   : > { %v676_v12 = vpack.c.b16 %v8196_v7, %v638_v6  ;;  %v7581_v7 = vld [vmem:[%s13196_s1 + $0x10] sm:$0x3] }
  0xe2   : > { %v847_v16 = vpop.f32.mrf.mxu2  ;;  %v1079_v50 = vpop.f32.mrf.mxu3  ;;  %v3083_v9 = vsel %vm762_vm0, %v7581_v7, 0 }
  0xe3   : > { %v8679_v4 = vadd.f32 %v1079_v50, %v845_v40  ;;  %v7506_v50 = vld [vmem:[%s13196_s1 + $0xe] sm:$0x3]  ;;  %3092 = vmatpush.bf16.msra.mxu0 %v3083_v9 }
  0xe4   : > { %v1016_v24 = vpop.f32.mrf.mxu1  ;;  %v2062_v30 = vsel %vm762_vm0, %v7506_v50, 0  ;;  %v1433_v50 = vunpack.c.l.b16 %v1329_v25 }
  0xe5   : > { %v8669_v18 = vadd.f32 %v1016_v24, %v782_v44  ;;  %2071 = vmatpush.bf16.msrb.mxu1 %v2062_v30  ;;  %v8722_v30 = vpack.c.b16 %v638_v6, %v8630_v17  ;;  %v1335_v17 = vpack.c.bf16 %v8185_v3, %v8185_v3  ;;  %v1336_v6 = vpack.c.bf16 %v8156_v46, %v8156_v46 }
  0xe7   : > { %7406 = vmatmul.msk.bf16.gmra.mxu2 %vm224_vm2, %v689_v41 }
  0xe8   : > { %v785_v27 = vpop.f32.mrf.mxu0 }
  0xea   : > { %v850_v24 = vpop.f32.mrf.mxu2  ;;  %v1081_v40 = vpop.f32.mrf.mxu3 }
  0xeb   : > { %7393 = vmatmul.msk.bf16.gmra.mxu0 %vm224_vm2, %v676_v12  ;;  %v8697_v41 = vadd.f32 %v1081_v40, %v847_v16 }
  0xec   : > { %v1019_v44 = vpop.f32.mrf.mxu1 }
  0xed   : > { %v8688_v62 = vadd.f32 %v1019_v44, %v785_v27  ;;  %v1330_v27 = vpack.c.bf16 %v8211_v14, %v8211_v14  ;;  %v677_v44 = vpack.c.b16 %v8258_v49, %v8198_v8  ;;  %v1332_v8 = vpack.c.bf16 %v8167_v56, %v8167_v56 }
  0xee   : > { %v1333_v49 = vpack.c.bf16 %v8169_v57, %v8169_v57  ;;  %v1331_v57 = vpack.c.bf16 %v8222_v20, %v8222_v20  ;;  %v1334_v20 = vpack.c.bf16 %v8247_v43, %v8247_v43 }
  0xef   : > { %7417 = vmatmul.msk.bf16.gmra.mxu1 %vm224_vm2, %v8686_v10  ;;  %7430 = vmatmul.msk.bf16.gmra.mxu3 %vm224_vm2, %v8701_v33  ;;  %v1434_v7 = vunpack.c.l.b16 %v1330_v27 }
  0xf0   : > { %v787_v45 = vpop.f32.mrf.mxu0 }
  0xf2   : > { %v852_v16 = vpop.f32.mrf.mxu2  ;;  %v1084_v12 = vpop.f32.mrf.mxu3 }
  0xf3   : > { %v8711_v15 = vadd.f32 %v1084_v12, %v850_v24 }
  0xf4   : > { %v1021_v37 = vpop.f32.mrf.mxu1 }
  0xf5   : > { %v8709_v38 = vadd.f32 %v1021_v37, %v787_v45  ;;  %v1481_v37 = vpack.c.b16 %v1434_v7, %v1433_v50  ;;  %v1439_v50 = vunpack.c.l.b16 %v1335_v17  ;;  %v1440_v7 = vunpack.c.l.b16 %v1336_v6 }
  0xf7   : > { %7432 = vmatmul.msk.bf16.vlgmr.msrb.gmra.mxu2 %vm224_vm2, %v8395_v26  ;;  %v1484_v46 = vpack.c.b16 %v1440_v7, %v1439_v50 }
  0xf8   : > { %v790_v40 = vpop.f32.mrf.mxu0 }
  0xfa   : > { %v855_v9 = vpop.f32.mrf.mxu2  ;;  %v1086_v28 = vpop.f32.mrf.mxu3 }
  0xfb   : > { %7394 = vmatmul.msk.bf16.gmra.mxu0 %vm224_vm2, %v677_v44  ;;  %v8727_v14 = vadd.f32 %v1086_v28, %v852_v16  ;;  %v1436_v44 = vunpack.c.l.b16 %v1332_v8 }
  0xfc   : > { %v1024_v24 = vpop.f32.mrf.mxu1 }
  0xfd   : > { %v8724_v45 = vadd.f32 %v1024_v24, %v790_v40  ;;  %v1437_v40 = vunpack.c.l.b16 %v1333_v49 }
  0xff   : > { %7418 = vmatmul.msk.bf16.gmra.mxu1 %vm224_vm2, %v8722_v30  ;;  %7457 = vmatmul.msk.bf16.vlgmr.msrb.gmra.mxu3 %vm224_vm2, %v1481_v37  ;;  %v1765_v24 = vpack.c.b16 %v1437_v40, %v1436_v44  ;;  %v1435_v37 = vunpack.c.l.b16 %v1331_v57 }
 0x100   : > { %v792_v26 = vpop.f32.mrf.mxu0 }
 0x101   : > { %v1482_v49 = vpack.c.b16 %v1436_v44, %v1435_v37  ;;  %v1438_v44 = vunpack.c.l.b16 %v1334_v20 }
 0x102   : > { %v857_v12 = vpop.f32.mrf.mxu2  ;;  %v1089_v27 = vpop.f32.mrf.mxu3 }
 0x103   : > { %v8742_v56 = vadd.f32 %v1089_v27, %v855_v9  ;;  %v1766_v43 = vpack.c.b16 %v1439_v50, %v1438_v44  ;;  %v1483_v20 = vpack.c.b16 %v1438_v44, %v1437_v40  ;;  %v1340_v50 = vpack.c.bf16 %v8380_v1, %v8380_v1 }
 0x104   : > { %v1026_v16 = vpop.f32.mrf.mxu1 }
 0x105   : > { %v8740_v25 = vadd.f32 %v1026_v16, %v792_v26  ;;  %13378 = vst [vmem:[#allocation24_spill] sm:$0xff] %v8742_v56  ;;  %v1444_v40 = vunpack.c.l.b16 %v1340_v50 }
 0x107   : > { %7433 = vmatmul.msk.bf16.gmra.mxu2 %vm224_vm2, %v8440_v29  ;;  %v1337_v29 = vpack.c.bf16 %v8179_v61, %v8179_v61 }
 0x108   : > { %v795_v28 = vpop.f32.mrf.mxu0 }
 0x10a   : > { %v860_v26 = vpop.f32.mrf.mxu2  ;;  %v1091_v9 = vpop.f32.mrf.mxu3 }
 0x10b   : > { %7482 = vmatmul.msk.bf16.vlgmr.msrb.gmra.mxu0 %vm224_vm2, %v1765_v24  ;;  %v8751_v8 = vadd.f32 %v1091_v9, %v857_v12 }
 0x10c   : > { %v1029_v3 = vpop.f32.mrf.mxu1 }
 0x10d   : > { %v8748_v16 = vadd.f32 %v1029_v3, %v795_v28  ;;  %13379 = vst [vmem:[#allocation25_spill] sm:$0xff] %v8751_v8  ;;  %v1338_v3 = vpack.c.bf16 %v8339_v19, %v8339_v19  ;;  %v1441_v28 = vunpack.c.l.b16 %v1337_v29 }
 0x10f   : > { %7507 = vmatmul.msk.bf16.vlgmr.msrb.gmra.mxu1 %vm224_vm2, %v1484_v46  ;;  %7458 = vmatmul.msk.bf16.gmra.mxu3 %vm224_vm2, %v1482_v49  ;;  %v1442_v37 = vunpack.c.l.b16 %v1338_v3  ;;  %v1767_v44 = vpack.c.b16 %v1441_v28, %v1440_v7  ;;  %v1341_v7 = vpack.c.bf16 %v8382_v51, %v8382_v51 }
 0x110   : > { %v797_v17 = vpop.f32.mrf.mxu0 }
 0x111   : > { %v1485_v49 = vpack.c.b16 %v1442_v37, %v1441_v28 }
 0x112   : > { %v862_v27 = vpop.f32.mrf.mxu2  ;;  %v1094_v12 = vpop.f32.mrf.mxu3 }
 0x113   : > { %v8763_v24 = vadd.f32 %v1094_v12, %v860_v26 }
 0x114   : > { %v1031_v6 = vpop.f32.mrf.mxu1 }
 0x115   : > { %v8761_v57 = vadd.f32 %v1031_v6, %v797_v17 }
 0x117   : > { %7434 = vmatmul.msk.bf16.gmra.mxu2 %vm224_vm2, %v8483_v39  ;;  %v1339_v39 = vpack.c.bf16 %v8341_v2, %v8341_v2 }
 0x118   : > { %v800_v9 = vpop.f32.mrf.mxu0 }
 0x11a   : > { %v865_v56 = vpop.f32.mrf.mxu2  ;;  %v1096_v19 = vpop.f32.mrf.mxu3 }
 0x11b   : > { %7483 = vmatmul.msk.bf16.gmra.mxu0 %vm224_vm2, %v1766_v43  ;;  %v8770_v17 = vadd.f32 %v1096_v19, %v862_v27  ;;  %v1443_v27 = vunpack.c.l.b16 %v1339_v39 }
 0x11c   : > { %v1034_v8 = vpop.f32.mrf.mxu1 }
 0x11d   : > { %v8767_v61 = vadd.f32 %v1034_v8, %v800_v9  ;;  %v1486_v9 = vpack.c.b16 %v1444_v40, %v1443_v27 }
 0x11f   : > { %7508 = vmatmul.msk.bf16.gmra.mxu1 %vm224_vm2, %v1485_v49  ;;  %7459 = vmatmul.msk.bf16.gmra.mxu3 %vm224_vm2, %v1483_v20 }
 0x120   : > { %v802_v26 = vpop.f32.mrf.mxu0 }
 0x122   : > { %v867_v8 = vpop.f32.mrf.mxu2  ;;  %v1099_v6 = vpop.f32.mrf.mxu3 }
 0x123   : > { %v8780_v12 = vadd.f32 %v1099_v6, %v865_v56 }
 0x124   : > { %v1036_v29 = vpop.f32.mrf.mxu1 }
 0x125   : > { %v8778_v3 = vadd.f32 %v1036_v29, %v802_v26 }
 0x127   : > { %7435 = vmatmul.msk.bf16.gmra.mxu2 %vm224_vm2, %v8522_v59  ;;  %v1342_v59 = vpack.c.bf16 %v8425_v63, %v8425_v63 }
 0x128   : > { %v805_v43 = vpop.f32.mrf.mxu0 }
 0x12a   : > { %v870_v2 = vpop.f32.mrf.mxu2  ;;  %v1101_v1 = vpop.f32.mrf.mxu3 }
 0x12b   : > { %7484 = vmatmul.msk.bf16.gmra.mxu0 %vm224_vm2, %v1767_v44  ;;  %v8787_v26 = vadd.f32 %v1101_v1, %v867_v8  ;;  %v1445_v8 = vunpack.c.l.b16 %v1341_v7  ;;  %v1446_v44 = vunpack.c.l.b16 %v1342_v59 }
 0x12c   : > { %v1039_v19 = vpop.f32.mrf.mxu1 }
 0x12d   : > { %v8784_v20 = vadd.f32 %v1039_v19, %v805_v43  ;;  %13380 = vst [vmem:[#allocation26_spill] sm:$0xff] %v8787_v26  ;;  %v1768_v43 = vpack.c.b16 %v1443_v27, %v1442_v37  ;;  %v1487_v19 = vpack.c.b16 %v1446_v44, %v1445_v8  ;;  %v1343_v37 = vpack.c.bf16 %v8427_v0, %v8427_v0 }
 0x12f   : > { %7509 = vmatmul.msk.bf16.gmra.mxu1 %vm224_vm2, %v1486_v9  ;;  %7460 = vmatmul.msk.bf16.gmra.mxu3 %vm224_vm2, %v1484_v46 }
 0x130   : > { %v807_v56 = vpop.f32.mrf.mxu0 }
 0x132   : > { %v872_v39 = vpop.f32.mrf.mxu2  ;;  %v1104_v29 = vpop.f32.mrf.mxu3 }
 0x133   : > { %v8797_v6 = vadd.f32 %v1104_v29, %v870_v2 }
 0x134   : > { %v1041_v28 = vpop.f32.mrf.mxu1 }
 0x135   : > { %v8795_v50 = vadd.f32 %v1041_v28, %v807_v56 }
 0x137   : > { %7436 = vmatmul.msk.bf16.gmra.mxu2 %vm224_vm2, %v8562_v52  ;;  %v1344_v52 = vpack.c.bf16 %v8469_v58, %v8469_v58 }
 0x138   : > { %v810_v46 = vpop.f32.mrf.mxu0 }
 0x13a   : > { %v875_v51 = vpop.f32.mrf.mxu2  ;;  %v1106_v63 = vpop.f32.mrf.mxu3 }
 0x13b   : > { %7485 = vmatmul.msk.bf16.gmra.mxu0 %vm224_vm2, %v1768_v43  ;;  %v8804_v56 = vadd.f32 %v1106_v63, %v872_v39  ;;  %v1447_v39 = vunpack.c.l.b16 %v1343_v37  ;;  %v1448_v43 = vunpack.c.l.b16 %v1344_v52 }
 0x13c   : > { %v1044_v1 = vpop.f32.mrf.mxu1 }
 0x13d   : > { %v8801_v26 = vadd.f32 %v1044_v1, %v810_v46  ;;  %13381 = vst [vmem:[#allocation27_spill] sm:$0xff] %v8804_v56  ;;  %v1769_v46 = vpack.c.b16 %v1445_v8, %v1444_v40  ;;  %v1488_v1 = vpack.c.b16 %v1448_v43, %v1447_v39  ;;  %v1345_v40 = vpack.c.bf16 %v8471_v5, %v8471_v5 }
 0x13f   : > { %7510 = vmatmul.msk.bf16.gmra.mxu1 %vm224_vm2, %v1487_v19  ;;  %7461 = vmatmul.msk.bf16.gmra.mxu3 %vm224_vm2, %v1485_v49 }
 0x140   : > { %v812_v2 = vpop.f32.mrf.mxu0 }
 0x142   : > { %v877_v7 = vpop.f32.mrf.mxu2  ;;  %v1109_v28 = vpop.f32.mrf.mxu3 }
 0x143   : > { %v8814_v29 = vadd.f32 %v1109_v28, %v875_v51 }
 0x144   : > { %v1046_v27 = vpop.f32.mrf.mxu1 }
 0x145   : > { %v8812_v59 = vadd.f32 %v1046_v27, %v812_v2 }
 0x147   : > { %7437 = vmatmul.msk.bf16.gmra.mxu2 %vm224_vm2, %v8603_v60  ;;  %v1346_v60 = vpack.c.bf16 %v8508_v35, %v8508_v35 }
 0x148   : > { %v815_v49 = vpop.f32.mrf.mxu0 }
 0x14a   : > { %v880_v0 = vpop.f32.mrf.mxu2  ;;  %v1111_v58 = vpop.f32.mrf.mxu3 }
 0x14b   : > { %7486 = vmatmul.msk.bf16.gmra.mxu0 %vm224_vm2, %v1769_v46  ;;  %v8821_v2 = vadd.f32 %v1111_v58, %v877_v7  ;;  %v1449_v7 = vunpack.c.l.b16 %v1345_v40  ;;  %v1450_v46 = vunpack.c.l.b16 %v1346_v60 }
 0x14c   : > { %v1049_v63 = vpop.f32.mrf.mxu1 }
 0x14d   : > { %v8818_v56 = vadd.f32 %v1049_v63, %v815_v49  ;;  %13382 = vst [vmem:[#allocation28_spill] sm:$0xff] %v8821_v2  ;;  %v1770_v49 = vpack.c.b16 %v1447_v39, %v1446_v44  ;;  %v1489_v63 = vpack.c.b16 %v1450_v46, %v1449_v7  ;;  %v1347_v44 = vpack.c.bf16 %v8510_v31, %v8510_v31 }
 0x14f   : > { %7511 = vmatmul.msk.bf16.gmra.mxu1 %vm224_vm2, %v1488_v1  ;;  %7462 = vmatmul.msk.bf16.gmra.mxu3 %vm224_vm2, %v1486_v9 }
 0x150   : > { %v817_v51 = vpop.f32.mrf.mxu0 }
 0x152   : > { %v882_v37 = vpop.f32.mrf.mxu2  ;;  %v1114_v27 = vpop.f32.mrf.mxu3 }
 0x153   : > { %v8831_v28 = vadd.f32 %v1114_v27, %v880_v0 }
 0x154   : > { %v1051_v8 = vpop.f32.mrf.mxu1 }
 0x155   : > { %v8829_v52 = vadd.f32 %v1051_v8, %v817_v51 }
 0x157   : > { %7438 = vmatmul.msk.bf16.gmra.mxu2 %vm224_vm2, %v8646_v47  ;;  %v1348_v47 = vpack.c.bf16 %v8548_v34, %v8548_v34 }
 0x158   : > { %v820_v9 = vpop.f32.mrf.mxu0 }
 0x15a   : > { %v885_v5 = vpop.f32.mrf.mxu2  ;;  %v1116_v35 = vpop.f32.mrf.mxu3 }
 0x15b   : > { %7487 = vmatmul.msk.bf16.gmra.mxu0 %vm224_vm2, %v1770_v49  ;;  %v8838_v51 = vadd.f32 %v1116_v35, %v882_v37  ;;  %v1451_v37 = vunpack.c.l.b16 %v1347_v44  ;;  %v1452_v49 = vunpack.c.l.b16 %v1348_v47 }
 0x15c   : > { %v1054_v58 = vpop.f32.mrf.mxu1 }
 0x15d   : > { %v8835_v2 = vadd.f32 %v1054_v58, %v820_v9  ;;  %13383 = vst [vmem:[#allocation29_spill] sm:$0xff] %v8838_v51  ;;  %v1771_v9 = vpack.c.b16 %v1449_v7, %v1448_v43  ;;  %v1490_v58 = vpack.c.b16 %v1452_v49, %v1451_v37  ;;  %v1349_v43 = vpack.c.bf16 %v8550_v48, %v8550_v48 }
 0x15f   : > { %7512 = vmatmul.msk.bf16.gmra.mxu1 %vm224_vm2, %v1489_v63  ;;  %7463 = vmatmul.msk.bf16.gmra.mxu3 %vm224_vm2, %v1487_v19 }
 0x160   : > { %v822_v0 = vpop.f32.mrf.mxu0 }
 0x162   : > { %v887_v40 = vpop.f32.mrf.mxu2  ;;  %v1119_v8 = vpop.f32.mrf.mxu3 }
 0x163   : > { %v8848_v27 = vadd.f32 %v1119_v8, %v885_v5 }
 0x164   : > { %v1056_v39 = vpop.f32.mrf.mxu1 }
 0x165   : > { %v8846_v60 = vadd.f32 %v1056_v39, %v822_v0 }
 0x167   : > { %7439 = vmatmul.msk.bf16.gmra.mxu2 %vm224_vm2, %v8686_v10  ;;  %v1350_v10 = vpack.c.bf16 %v8590_v54, %v8590_v54 }
 0x168   : > { %v825_v19 = vpop.f32.mrf.mxu0 }
 0x16a   : > { %v890_v31 = vpop.f32.mrf.mxu2  ;;  %v1121_v34 = vpop.f32.mrf.mxu3 }
 0x16b   : > { %7488 = vmatmul.msk.bf16.gmra.mxu0 %vm224_vm2, %v1771_v9  ;;  %v8855_v0 = vadd.f32 %v1121_v34, %v887_v40  ;;  %v1453_v40 = vunpack.c.l.b16 %v1349_v43  ;;  %v1454_v9 = vunpack.c.l.b16 %v1350_v10 }
 0x16c   : > { %v1059_v35 = vpop.f32.mrf.mxu1 }
 0x16d   : > { %v8852_v51 = vadd.f32 %v1059_v35, %v825_v19  ;;  %13384 = vst [vmem:[#allocation30_spill] sm:$0xff] %v8855_v0  ;;  %v1772_v19 = vpack.c.b16 %v1451_v37, %v1450_v46  ;;  %v8869_v35 = vpack.c.b16 %v1454_v9, %v1453_v40  ;;  %v7849_v37 = vld [vmem:[#allocation2 + $0xb8] sm:$0xff] }
 0x16e   : > { %v1352_v43 = vpack.c.bf16 %v7849_v37, %v7849_v37 }
 0x16f   : > { %7513 = vmatmul.msk.bf16.gmra.mxu1 %vm224_vm2, %v1490_v58  ;;  %7464 = vmatmul.msk.bf16.gmra.mxu3 %vm224_vm2, %v1488_v1 }
 0x170   : > { %v827_v5 = vpop.f32.mrf.mxu0 }
 0x172   : > { %v892_v44 = vpop.f32.mrf.mxu2  ;;  %v1124_v39 = vpop.f32.mrf.mxu3 }
 0x173   : > { %v8865_v8 = vadd.f32 %v1124_v39, %v890_v31 }
 0x174   : > { %v1061_v7 = vpop.f32.mrf.mxu1 }
 0x175   : > { %v8863_v47 = vadd.f32 %v1061_v7, %v827_v5 }
 0x177   : > { %7440 = vmatmul.msk.bf16.gmra.mxu2 %vm224_vm2, %v8722_v30  ;;  %v1351_v30 = vpack.c.bf16 %v8592_v36, %v8592_v36 }
 0x178   : > { %v830_v1 = vpop.f32.mrf.mxu0 }
 0x17a   : > { %v1161_v34 = vpop.f32.mrf.mxu2  ;;  %v1126_v54 = vpop.f32.mrf.mxu3 }
 0x17b   : > { %7489 = vmatmul.msk.bf16.gmra.mxu0 %vm224_vm2, %v1772_v19  ;;  %v1281_v5 = vadd.f32 %v1161_v34, %v8605_v32  ;;  %v8875_v31 = vadd.f32 %v1126_v54, %v892_v44  ;;  %v1773_v34 = vpack.c.b16 %v1453_v40, %v1452_v49  ;;  %v7850_v40 = vld [vmem:[#allocation2 + $0xc0] sm:$0xff] }
 0x17c   : > { %v1064_v48 = vpop.f32.mrf.mxu1 }
 0x17d   : > { %v8871_v0 = vadd.f32 %v1064_v48, %v830_v1  ;;  %13385 = vst [vmem:[#allocation31_spill] sm:$0xff] %v8875_v31  ;;  %v1455_v1 = vunpack.c.l.b16 %v1351_v30  ;;  %v8885_v48 = vunpack.c.l.b16 %v1352_v43  ;;  %v1353_v43 = vpack.c.bf16 %v7850_v40, %v7850_v40 }
 0x17f   : > { %7514 = vmatmul.msk.bf16.gmra.mxu1 %vm224_vm2, %v8869_v35  ;;  %7465 = vmatmul.msk.bf16.gmra.mxu3 %vm224_vm2, %v1489_v63  ;;  %v8890_v36 = vpack.c.b16 %v8885_v48, %v1455_v1 }
 0x180   : > { %v832_v46 = vpop.f32.mrf.mxu0 }
 0x182   : > { %v1163_v7 = vpop.f32.mrf.mxu2  ;;  %v1589_v19 = vpop.f32.mrf.mxu3 }
 0x183   : > { %v1282_v32 = vadd.f32 %v1163_v7, %v8628_v55  ;;  %v1709_v44 = vadd.f32 %v1589_v19, %v1281_v5 }
 0x184   : > { %v1066_v10 = vpop.f32.mrf.mxu1 }
 0x185   : > { %v8882_v39 = vadd.f32 %v1066_v10, %v832_v46  ;;  %v7851_v10 = vld [vmem:[#allocation2 + $0xc8] sm:$0xff] }
 0x186   : > { %v1354_v7 = vpack.c.bf16 %v7851_v10, %v7851_v10 }
 0x187   : > { %7441 = vmatmul.msk.bf16.gmra.mxu2 %vm224_vm2, %v8205_v13 }
 0x188   : > { %v1873_v63 = vpop.f32.mrf.mxu0 }
 0x189   : > { %v1993_v54 = vadd.f32 %v1873_v63, %v1709_v44 }
 0x18a   : > { %v1166_v31 = vpop.f32.mrf.mxu2  ;;  %v1591_v55 = vpop.f32.mrf.mxu3 }
 0x18b   : > { %7490 = vmatmul.msk.bf16.gmra.mxu0 %vm224_vm2, %v1773_v34  ;;  %v1283_v5 = vadd.f32 %v1166_v31, %v8648_v21  ;;  %v1710_v30 = vadd.f32 %v1591_v55, %v1282_v32  ;;  %v1457_v31 = vunpack.c.l.b16 %v1353_v43  ;;  %v8902_v32 = vunpack.c.l.b16 %v1354_v7  ;;  %v13386_v55 = vld [vmem:[#allocation10_spill] sm:$0xff] }
 0x18c   : > { %v2073_v37 = vpop.f32.mrf.mxu1  ;;  %v7852_v7 = vld [vmem:[#allocation2 + $0xd0] sm:$0xff] }
 0x18d   : > { %v8893_v46 = vadd.f32 %v2073_v37, %v1993_v54  ;;  %v1774_v37 = vpack.c.b16 %v1455_v1, %v1454_v9 }
 0x18f   : > { %7515 = vmatmul.msk.bf16.gmra.mxu1 %vm224_vm2, %v8890_v36  ;;  %7466 = vmatmul.msk.bf16.gmra.mxu3 %vm224_vm2, %v1490_v58 }
 0x190   : > { %v1875_v49 = vpop.f32.mrf.mxu0 }
 0x191   : > { %v1994_v13 = vadd.f32 %v1875_v49, %v1710_v30  ;;  %v8907_v49 = vpack.c.b16 %v8902_v32, %v1457_v31 }
 0x192   : > { %v1168_v44 = vpop.f32.mrf.mxu2  ;;  %v1594_v63 = vpop.f32.mrf.mxu3 }
 0x193   : > { %v1284_v54 = vadd.f32 %v1168_v44, %v8669_v18  ;;  %v1711_v21 = vadd.f32 %v1594_v63, %v1283_v5  ;;  %v7853_v44 = vld [vmem:[#allocation2 + $0xd8] sm:$0xff] }
 0x194   : > { %v2075_v19 = vpop.f32.mrf.mxu1  ;;  %v1356_v63 = vpack.c.bf16 %v7853_v44, %v7853_v44 }
 0x195   : > { %v8899_v34 = vadd.f32 %v2075_v19, %v1994_v13  ;;  %v1355_v19 = vpack.c.bf16 %v7852_v7, %v7852_v7 }
 0x197   : > { %7442 = vmatmul.msk.bf16.gmra.mxu2 %vm224_vm2, %v13386_v55 }
 0x198   : > { %v1878_v58 = vpop.f32.mrf.mxu0 }
 0x199   : > { %v1995_v30 = vadd.f32 %v1878_v58, %v1711_v21 }
 0x19a   : > { %v1171_v10 = vpop.f32.mrf.mxu2  ;;  %v1596_v18 = vpop.f32.mrf.mxu3 }
 0x19b   : > { %7491 = vmatmul.msk.bf16.gmra.mxu0 %vm224_vm2, %v1774_v37  ;;  %v1285_v5 = vadd.f32 %v1171_v10, %v8688_v62  ;;  %v1712_v43 = vadd.f32 %v1596_v18, %v1284_v54  ;;  %v1775_v10 = vpack.c.b16 %v1457_v31, %v8885_v48  ;;  %v13387_v18 = vld [vmem:[#allocation11_spill] sm:$0xff] }
 0x19c   : > { %v2078_v40 = vpop.f32.mrf.mxu1 }
 0x19d   : > { %v8910_v13 = vadd.f32 %v2078_v40, %v1995_v30  ;;  %v1459_v30 = vunpack.c.l.b16 %v1355_v19  ;;  %v8920_v40 = vunpack.c.l.b16 %v1356_v63  ;;  %v7854_v63 = vld [vmem:[#allocation2 + $0xe0] sm:$0xff] }
 0x19f   : > { %7516 = vmatmul.msk.bf16.gmra.mxu1 %vm224_vm2, %v8907_v49  ;;  %7467 = vmatmul.msk.bf16.gmra.mxu3 %vm224_vm2, %v8869_v35 }
 0x1a0   : > { %v1880_v9 = vpop.f32.mrf.mxu0 }
 0x1a1   : > { %v1996_v1 = vadd.f32 %v1880_v9, %v1712_v43  ;;  %v8926_v9 = vpack.c.b16 %v8920_v40, %v1459_v30 }
 0x1a2   : > { %v1173_v37 = vpop.f32.mrf.mxu2  ;;  %v1599_v58 = vpop.f32.mrf.mxu3 }
 0x1a3   : > { %v1286_v62 = vadd.f32 %v1173_v37, %v8709_v38  ;;  %v1713_v54 = vadd.f32 %v1599_v58, %v1285_v5  ;;  %v7855_v37 = vld [vmem:[#allocation2 + $0xe8] sm:$0xff] }
 0x1a4   : > { %v2080_v21 = vpop.f32.mrf.mxu1  ;;  %v1358_v58 = vpack.c.bf16 %v7855_v37, %v7855_v37 }
 0x1a5   : > { %v8917_v55 = vadd.f32 %v2080_v21, %v1996_v1  ;;  %v1357_v21 = vpack.c.bf16 %v7854_v63, %v7854_v63 }
 0x1a7   : > { %7443 = vmatmul.msk.bf16.gmra.mxu2 %vm224_vm2, %v13387_v18 }
 0x1a8   : > { %v1883_v35 = vpop.f32.mrf.mxu0 }
 0x1a9   : > { %v1997_v43 = vadd.f32 %v1883_v35, %v1713_v54 }
 0x1aa   : > { %v1176_v1 = vpop.f32.mrf.mxu2  ;;  %v1601_v38 = vpop.f32.mrf.mxu3 }
 0x1ab   : > { %7492 = vmatmul.msk.bf16.gmra.mxu0 %vm224_vm2, %v1775_v10  ;;  %v1287_v5 = vadd.f32 %v1176_v1, %v8724_v45  ;;  %v1714_v19 = vadd.f32 %v1601_v38, %v1286_v62  ;;  %v1776_v1 = vpack.c.b16 %v1459_v30, %v8902_v32  ;;  %v13388_v38 = vld [vmem:[#allocation12_spill] sm:$0xff] }
 0x1ac   : > { %v2083_v7 = vpop.f32.mrf.mxu1 }
 0x1ad   : > { %v8929_v44 = vadd.f32 %v2083_v7, %v1997_v43  ;;  %v1461_v43 = vunpack.c.l.b16 %v1357_v21  ;;  %v8939_v7 = vunpack.c.l.b16 %v1358_v58  ;;  %v7856_v58 = vld [vmem:[#allocation2 + $0xf0] sm:$0xff] }
 0x1af   : > { %7517 = vmatmul.msk.bf16.gmra.mxu1 %vm224_vm2, %v8926_v9  ;;  %7468 = vmatmul.msk.bf16.gmra.mxu3 %vm224_vm2, %v8890_v36 }
 0x1b0   : > { %v1885_v48 = vpop.f32.mrf.mxu0 }
 0x1b1   : > { %v1998_v31 = vadd.f32 %v1885_v48, %v1714_v19  ;;  %v8945_v48 = vpack.c.b16 %v8939_v7, %v1461_v43 }
 0x1b2   : > { %v1178_v10 = vpop.f32.mrf.mxu2  ;;  %v1604_v35 = vpop.f32.mrf.mxu3 }
 0x1b3   : > { %v1288_v45 = vadd.f32 %v1178_v10, %v8740_v25  ;;  %v1715_v62 = vadd.f32 %v1604_v35, %v1287_v5  ;;  %v7857_v10 = vld [vmem:[#allocation2 + $0xf8] sm:$0xff] }
 0x1b4   : > { %v2085_v54 = vpop.f32.mrf.mxu1  ;;  %v1360_v35 = vpack.c.bf16 %v7857_v10, %v7857_v10 }
 0x1b5   : > { %v8936_v18 = vadd.f32 %v2085_v54, %v1998_v31  ;;  %v1359_v54 = vpack.c.bf16 %v7856_v58, %v7856_v58 }
 0x1b7   : > { %7444 = vmatmul.msk.bf16.gmra.mxu2 %vm224_vm2, %v13388_v38 }
 0x1b8   : > { %v1888_v36 = vpop.f32.mrf.mxu0 }
 0x1b9   : > { %v1999_v19 = vadd.f32 %v1888_v36, %v1715_v62 }
 0x1ba   : > { %v1181_v31 = vpop.f32.mrf.mxu2  ;;  %v1606_v25 = vpop.f32.mrf.mxu3 }
 0x1bb   : > { %7493 = vmatmul.msk.bf16.gmra.mxu0 %vm224_vm2, %v1776_v1  ;;  %v1289_v5 = vadd.f32 %v1181_v31, %v8748_v16  ;;  %v1716_v21 = vadd.f32 %v1606_v25, %v1288_v45  ;;  %v1777_v31 = vpack.c.b16 %v1461_v43, %v8920_v40  ;;  %v13389_v25 = vld [vmem:[#allocation13_spill] sm:$0xff] }
 0x1bc   : > { %v2088_v63 = vpop.f32.mrf.mxu1 }
 0x1bd   : > { %v8948_v37 = vadd.f32 %v2088_v63, %v1999_v19  ;;  %v1463_v19 = vunpack.c.l.b16 %v1359_v54  ;;  %v8958_v63 = vunpack.c.l.b16 %v1360_v35  ;;  %v7858_v35 = vld [vmem:[#allocation2 + $0x100] sm:$0xff] }
 0x1bf   : > { %7518 = vmatmul.msk.bf16.gmra.mxu1 %vm224_vm2, %v8945_v48  ;;  %7469 = vmatmul.msk.bf16.gmra.mxu3 %vm224_vm2, %v8907_v49 }
 0x1c0   : > { %v1890_v32 = vpop.f32.mrf.mxu0 }
 0x1c1   : > { %v2000_v30 = vadd.f32 %v1890_v32, %v1716_v21  ;;  %v8964_v32 = vpack.c.b16 %v8958_v63, %v1463_v19 }
 0x1c2   : > { %v1183_v1 = vpop.f32.mrf.mxu2  ;;  %v1609_v36 = vpop.f32.mrf.mxu3 }
 0x1c3   : > { %v1290_v16 = vadd.f32 %v1183_v1, %v8761_v57  ;;  %v1717_v45 = vadd.f32 %v1609_v36, %v1289_v5  ;;  %v7859_v1 = vld [vmem:[#allocation2 + $0x108] sm:$0xff] }
 0x1c4   : > { %v2090_v62 = vpop.f32.mrf.mxu1  ;;  %v1362_v36 = vpack.c.bf16 %v7859_v1, %v7859_v1 }
 0x1c5   : > { %v8955_v38 = vadd.f32 %v2090_v62, %v2000_v30  ;;  %v1361_v62 = vpack.c.bf16 %v7858_v35, %v7858_v35 }
 0x1c7   : > { %7445 = vmatmul.msk.bf16.gmra.mxu2 %vm224_vm2, %v13389_v25 }
 0x1c8   : > { %v1893_v49 = vpop.f32.mrf.mxu0 }
 0x1c9   : > { %v2001_v21 = vadd.f32 %v1893_v49, %v1717_v45 }
 0x1ca   : > { %v1186_v30 = vpop.f32.mrf.mxu2  ;;  %v1611_v57 = vpop.f32.mrf.mxu3 }
 0x1cb   : > { %7494 = vmatmul.msk.bf16.gmra.mxu0 %vm224_vm2, %v1777_v31  ;;  %v1291_v5 = vadd.f32 %v1186_v30, %v8767_v61  ;;  %v1718_v54 = vadd.f32 %v1611_v57, %v1290_v16  ;;  %v1778_v30 = vpack.c.b16 %v1463_v19, %v8939_v7  ;;  %v13390_v57 = vld [vmem:[#allocation14_spill] sm:$0xff] }
 0x1cc   : > { %v2093_v58 = vpop.f32.mrf.mxu1 }
 0x1cd   : > { %v8967_v10 = vadd.f32 %v2093_v58, %v2001_v21  ;;  %v1465_v21 = vunpack.c.l.b16 %v1361_v62  ;;  %v8977_v58 = vunpack.c.l.b16 %v1362_v36  ;;  %v7860_v36 = vld [vmem:[#allocation2 + $0x110] sm:$0xff] }
 0x1cf   : > { %7519 = vmatmul.msk.bf16.gmra.mxu1 %vm224_vm2, %v8964_v32  ;;  %7470 = vmatmul.msk.bf16.gmra.mxu3 %vm224_vm2, %v8926_v9 }
 0x1d0   : > { %v1895_v40 = vpop.f32.mrf.mxu0 }
 0x1d1   : > { %v2002_v43 = vadd.f32 %v1895_v40, %v1718_v54  ;;  %v8983_v40 = vpack.c.b16 %v8977_v58, %v1465_v21 }
 0x1d2   : > { %v1188_v31 = vpop.f32.mrf.mxu2  ;;  %v1614_v49 = vpop.f32.mrf.mxu3 }
 0x1d3   : > { %v1292_v61 = vadd.f32 %v1188_v31, %v8778_v3  ;;  %v1719_v16 = vadd.f32 %v1614_v49, %v1291_v5  ;;  %v7861_v31 = vld [vmem:[#allocation2 + $0x118] sm:$0xff] }
 0x1d4   : > { %v2095_v45 = vpop.f32.mrf.mxu1  ;;  %v1364_v49 = vpack.c.bf16 %v7861_v31, %v7861_v31 }
 0x1d5   : > { %v8974_v25 = vadd.f32 %v2095_v45, %v2002_v43  ;;  %v1363_v45 = vpack.c.bf16 %v7860_v36, %v7860_v36 }
 0x1d7   : > { %7446 = vmatmul.msk.bf16.gmra.mxu2 %vm224_vm2, %v13390_v57 }
 0x1d8   : > { %v1898_v9 = vpop.f32.mrf.mxu0 }
 0x1d9   : > { %v2003_v54 = vadd.f32 %v1898_v9, %v1719_v16 }
 0x1da   : > { %v1191_v43 = vpop.f32.mrf.mxu2  ;;  %v1616_v3 = vpop.f32.mrf.mxu3 }
 0x1db   : > { %7495 = vmatmul.msk.bf16.gmra.mxu0 %vm224_vm2, %v1778_v30  ;;  %v1293_v5 = vadd.f32 %v1191_v43, %v8784_v20  ;;  %v1720_v62 = vadd.f32 %v1616_v3, %v1292_v61  ;;  %v1779_v43 = vpack.c.b16 %v1465_v21, %v8958_v63  ;;  %v13391_v3 = vld [vmem:[#allocation15_spill] sm:$0xff] }
 0x1dc   : > { %v2098_v35 = vpop.f32.mrf.mxu1 }
 0x1dd   : > { %v8986_v1 = vadd.f32 %v2098_v35, %v2003_v54  ;;  %v1467_v54 = vunpack.c.l.b16 %v1363_v45  ;;  %v8996_v35 = vunpack.c.l.b16 %v1364_v49  ;;  %v7862_v49 = vld [vmem:[#allocation2 + $0x120] sm:$0xff] }
 0x1df   : > { %7520 = vmatmul.msk.bf16.gmra.mxu1 %vm224_vm2, %v8983_v40  ;;  %7471 = vmatmul.msk.bf16.gmra.mxu3 %vm224_vm2, %v8945_v48 }
 0x1e0   : > { %v1900_v7 = vpop.f32.mrf.mxu0 }
 0x1e1   : > { %v2004_v19 = vadd.f32 %v1900_v7, %v1720_v62  ;;  %v9002_v7 = vpack.c.b16 %v8996_v35, %v1467_v54 }
 0x1e2   : > { %v1193_v30 = vpop.f32.mrf.mxu2  ;;  %v1619_v9 = vpop.f32.mrf.mxu3 }
 0x1e3   : > { %v1294_v20 = vadd.f32 %v1193_v30, %v8795_v50  ;;  %v1721_v61 = vadd.f32 %v1619_v9, %v1293_v5  ;;  %v7863_v30 = vld [vmem:[#allocation2 + $0x128] sm:$0xff] }
 0x1e4   : > { %v2100_v16 = vpop.f32.mrf.mxu1  ;;  %v1366_v9 = vpack.c.bf16 %v7863_v30, %v7863_v30 }
 0x1e5   : > { %v8993_v57 = vadd.f32 %v2100_v16, %v2004_v19  ;;  %v1365_v16 = vpack.c.bf16 %v7862_v49, %v7862_v49 }
 0x1e7   : > { %7447 = vmatmul.msk.bf16.gmra.mxu2 %vm224_vm2, %v13391_v3 }
 0x1e8   : > { %v1903_v48 = vpop.f32.mrf.mxu0 }
 0x1e9   : > { %v2005_v62 = vadd.f32 %v1903_v48, %v1721_v61 }
 0x1ea   : > { %v1196_v19 = vpop.f32.mrf.mxu2  ;;  %v1621_v50 = vpop.f32.mrf.mxu3 }
 0x1eb   : > { %7496 = vmatmul.msk.bf16.gmra.mxu0 %vm224_vm2, %v1779_v43  ;;  %v1295_v5 = vadd.f32 %v1196_v19, %v8801_v26  ;;  %v1722_v45 = vadd.f32 %v1621_v50, %v1294_v20  ;;  %v1780_v19 = vpack.c.b16 %v1467_v54, %v8977_v58  ;;  %v13392_v50 = vld [vmem:[#allocation16_spill] sm:$0xff] }
 0x1ec   : > { %v2103_v36 = vpop.f32.mrf.mxu1 }
 0x1ed   : > { %v9005_v31 = vadd.f32 %v2103_v36, %v2005_v62  ;;  %v1469_v62 = vunpack.c.l.b16 %v1365_v16  ;;  %v9015_v36 = vunpack.c.l.b16 %v1366_v9  ;;  %v7864_v9 = vld [vmem:[#allocation2 + $0x130] sm:$0xff] }
 0x1ef   : > { %7521 = vmatmul.msk.bf16.gmra.mxu1 %vm224_vm2, %v9002_v7  ;;  %7472 = vmatmul.msk.bf16.gmra.mxu3 %vm224_vm2, %v8964_v32 }
 0x1f0   : > { %v1905_v63 = vpop.f32.mrf.mxu0 }
 0x1f1   : > { %v2006_v21 = vadd.f32 %v1905_v63, %v1722_v45  ;;  %v9021_v63 = vpack.c.b16 %v9015_v36, %v1469_v62 }
 0x1f2   : > { %v1198_v43 = vpop.f32.mrf.mxu2  ;;  %v1624_v48 = vpop.f32.mrf.mxu3 }
 0x1f3   : > { %v1296_v26 = vadd.f32 %v1198_v43, %v8812_v59  ;;  %v1723_v20 = vadd.f32 %v1624_v48, %v1295_v5  ;;  %v7865_v43 = vld [vmem:[#allocation2 + $0x138] sm:$0xff] }
 0x1f4   : > { %v2105_v61 = vpop.f32.mrf.mxu1  ;;  %v1368_v48 = vpack.c.bf16 %v7865_v43, %v7865_v43 }
 0x1f5   : > { %v9012_v3 = vadd.f32 %v2105_v61, %v2006_v21  ;;  %v1367_v61 = vpack.c.bf16 %v7864_v9, %v7864_v9 }
 0x1f7   : > { %7448 = vmatmul.msk.bf16.gmra.mxu2 %vm224_vm2, %v13392_v50 }
 0x1f8   : > { %v1908_v32 = vpop.f32.mrf.mxu0 }
 0x1f9   : > { %v2007_v45 = vadd.f32 %v1908_v32, %v1723_v20 }
 0x1fa   : > { %v1201_v21 = vpop.f32.mrf.mxu2  ;;  %v1626_v59 = vpop.f32.mrf.mxu3 }
 0x1fb   : > { %7497 = vmatmul.msk.bf16.gmra.mxu0 %vm224_vm2, %v1780_v19  ;;  %v1297_v5 = vadd.f32 %v1201_v21, %v8818_v56  ;;  %v1724_v16 = vadd.f32 %v1626_v59, %v1296_v26  ;;  %v1781_v21 = vpack.c.b16 %v1469_v62, %v8996_v35  ;;  %v13393_v59 = vld [vmem:[#allocation17_spill] sm:$0xff] }
 0x1fc   : > { %v2108_v49 = vpop.f32.mrf.mxu1 }
 0x1fd   : > { %v9024_v30 = vadd.f32 %v2108_v49, %v2007_v45  ;;  %v1471_v45 = vunpack.c.l.b16 %v1367_v61  ;;  %v9034_v49 = vunpack.c.l.b16 %v1368_v48  ;;  %v7866_v48 = vld [vmem:[#allocation2 + $0x140] sm:$0xff] }
 0x1ff   : > { %7522 = vmatmul.msk.bf16.gmra.mxu1 %vm224_vm2, %v9021_v63  ;;  %7473 = vmatmul.msk.bf16.gmra.mxu3 %vm224_vm2, %v8983_v40 }
 0x200   : > { %v1910_v58 = vpop.f32.mrf.mxu0 }
 0x201   : > { %v2008_v54 = vadd.f32 %v1910_v58, %v1724_v16  ;;  %v9040_v58 = vpack.c.b16 %v9034_v49, %v1471_v45 }
 0x202   : > { %v1203_v19 = vpop.f32.mrf.mxu2  ;;  %v1629_v32 = vpop.f32.mrf.mxu3 }
 0x203   : > { %v1298_v56 = vadd.f32 %v1203_v19, %v8829_v52  ;;  %v1725_v26 = vadd.f32 %v1629_v32, %v1297_v5  ;;  %v7867_v19 = vld [vmem:[#allocation2 + $0x148] sm:$0xff] }
 0x204   : > { %v2110_v20 = vpop.f32.mrf.mxu1  ;;  %v1370_v32 = vpack.c.bf16 %v7867_v19, %v7867_v19 }
 0x205   : > { %v9031_v50 = vadd.f32 %v2110_v20, %v2008_v54  ;;  %v1369_v20 = vpack.c.bf16 %v7866_v48, %v7866_v48 }
 0x207   : > { %7449 = vmatmul.msk.bf16.gmra.mxu2 %vm224_vm2, %v13393_v59 }
 0x208   : > { %v1913_v40 = vpop.f32.mrf.mxu0 }
 0x209   : > { %v2009_v16 = vadd.f32 %v1913_v40, %v1725_v26 }
 0x20a   : > { %v1206_v54 = vpop.f32.mrf.mxu2  ;;  %v1631_v52 = vpop.f32.mrf.mxu3 }
 0x20b   : > { %7498 = vmatmul.msk.bf16.gmra.mxu0 %vm224_vm2, %v1781_v21  ;;  %v1299_v5 = vadd.f32 %v1206_v54, %v8835_v2  ;;  %v1726_v61 = vadd.f32 %v1631_v52, %v1298_v56  ;;  %v1782_v54 = vpack.c.b16 %v1471_v45, %v9015_v36  ;;  %v13394_v52 = vld [vmem:[#allocation20_spill] sm:$0xff] }
 0x20c   : > { %v2113_v9 = vpop.f32.mrf.mxu1 }
 0x20d   : > { %v9043_v43 = vadd.f32 %v2113_v9, %v2009_v16  ;;  %v1473_v16 = vunpack.c.l.b16 %v1369_v20  ;;  %v9053_v9 = vunpack.c.l.b16 %v1370_v32  ;;  %v7868_v32 = vld [vmem:[#allocation2 + $0x150] sm:$0xff] }
 0x20f   : > { %7523 = vmatmul.msk.bf16.gmra.mxu1 %vm224_vm2, %v9040_v58  ;;  %7474 = vmatmul.msk.bf16.gmra.mxu3 %vm224_vm2, %v9002_v7 }
 0x210   : > { %v1915_v35 = vpop.f32.mrf.mxu0 }
 0x211   : > { %v2010_v62 = vadd.f32 %v1915_v35, %v1726_v61  ;;  %v9059_v35 = vpack.c.b16 %v9053_v9, %v1473_v16 }
 0x212   : > { %v1208_v21 = vpop.f32.mrf.mxu2  ;;  %v1634_v40 = vpop.f32.mrf.mxu3 }
 0x213   : > { %v1300_v2 = vadd.f32 %v1208_v21, %v8846_v60  ;;  %v1727_v56 = vadd.f32 %v1634_v40, %v1299_v5  ;;  %v7869_v21 = vld [vmem:[#allocation2 + $0x158] sm:$0xff] }
 0x214   : > { %v2115_v26 = vpop.f32.mrf.mxu1  ;;  %v1372_v40 = vpack.c.bf16 %v7869_v21, %v7869_v21 }
 0x215   : > { %v9050_v59 = vadd.f32 %v2115_v26, %v2010_v62  ;;  %v1371_v26 = vpack.c.bf16 %v7868_v32, %v7868_v32 }
 0x217   : > { %7450 = vmatmul.msk.bf16.gmra.mxu2 %vm224_vm2, %v13394_v52 }
 0x218   : > { %v1918_v7 = vpop.f32.mrf.mxu0 }
 0x219   : > { %v2011_v61 = vadd.f32 %v1918_v7, %v1727_v56 }
 0x21a   : > { %v1211_v62 = vpop.f32.mrf.mxu2  ;;  %v1636_v60 = vpop.f32.mrf.mxu3 }
 0x21b   : > { %7499 = vmatmul.msk.bf16.gmra.mxu0 %vm224_vm2, %v1782_v54  ;;  %v1301_v5 = vadd.f32 %v1211_v62, %v8852_v51  ;;  %v1728_v20 = vadd.f32 %v1636_v60, %v1300_v2  ;;  %v1783_v62 = vpack.c.b16 %v1473_v16, %v9034_v49  ;;  %v7870_v16 = vld [vmem:[#allocation2 + $0x160] sm:$0xff] }
 0x21c   : > { %v2118_v48 = vpop.f32.mrf.mxu1  ;;  %v1373_v21 = vpack.c.bf16 %v7870_v16, %v7870_v16  ;;  %v13395_v16 = vld [vmem:[#allocation18_spill] sm:$0xff] }
 0x21d   : > { %v9062_v19 = vadd.f32 %v2118_v48, %v2011_v61  ;;  %v1475_v61 = vunpack.c.l.b16 %v1371_v26  ;;  %v9072_v48 = vunpack.c.l.b16 %v1372_v40  ;;  %v7871_v40 = vld [vmem:[#allocation2 + $0x168] sm:$0xff] }
 0x21f   : > { %7524 = vmatmul.msk.bf16.gmra.mxu1 %vm224_vm2, %v9059_v35  ;;  %7475 = vmatmul.msk.bf16.gmra.mxu3 %vm224_vm2, %v9021_v63 }
 0x220   : > { %v1920_v36 = vpop.f32.mrf.mxu0 }
 0x221   : > { %v2012_v45 = vadd.f32 %v1920_v36, %v1728_v20  ;;  %v9078_v20 = vpack.c.b16 %v9072_v48, %v1475_v61 }
 0x222   : > { %v1213_v54 = vpop.f32.mrf.mxu2  ;;  %v1639_v7 = vpop.f32.mrf.mxu3 }
 0x223   : > { %v1302_v51 = vadd.f32 %v1213_v54, %v8863_v47  ;;  %v1729_v2 = vadd.f32 %v1639_v7, %v1301_v5 }
 0x224   : > { %v2120_v56 = vpop.f32.mrf.mxu1 }
 0x225   : > { %v9069_v52 = vadd.f32 %v2120_v56, %v2012_v45  ;;  %v1374_v56 = vpack.c.bf16 %v7871_v40, %v7871_v40 }
 0x227   : > { %7451 = vmatmul.msk.bf16.gmra.mxu2 %vm224_vm2, %v8655_v22 }
 0x228   : > { %v1923_v63 = vpop.f32.mrf.mxu0 }
 0x229   : > { %v2013_v60 = vadd.f32 %v1923_v63, %v1729_v2 }
 0x22a   : > { %v1216_v45 = vpop.f32.mrf.mxu2  ;;  %v1641_v47 = vpop.f32.mrf.mxu3 }
 0x22b   : > { %7500 = vmatmul.msk.bf16.gmra.mxu0 %vm224_vm2, %v1783_v62  ;;  %v1303_v5 = vadd.f32 %v1216_v45, %v8871_v0  ;;  %v1730_v26 = vadd.f32 %v1641_v47, %v1302_v51  ;;  %v330_v51 = vld [vmem:[#allocation2 + $0x168] sm:$0xff] }
 0x22c   : > { %v2123_v36 = vpop.f32.mrf.mxu1  ;;  %334 = vst.msk [vmem:[#allocation2 + $0x198] sm:$0xff] %vm224_vm2, %v330_v51 }
 0x22d   : > { %v9081_v32 = vadd.f32 %v2123_v36, %v2013_v60  ;;  %v1477_v60 = vunpack.c.l.b16 %v1373_v21  ;;  %v9092_v36 = vunpack.c.l.b16 %v1374_v56 }
 0x22f   : > { %7525 = vmatmul.msk.bf16.gmra.mxu1 %vm224_vm2, %v9078_v20  ;;  %7476 = vmatmul.msk.bf16.gmra.mxu3 %vm224_vm2, %v9040_v58  ;;  %v1784_v58 = vpack.c.b16 %v1475_v61, %v9053_v9  ;;  %v7872_v61 = vld [vmem:[#allocation2 + $0x170] sm:$0xff] }
 0x230   : > { %v1925_v49 = vpop.f32.mrf.mxu0  ;;  %v1375_v56 = vpack.c.bf16 %v7872_v61, %v7872_v61  ;;  %v1785_v61 = vpack.c.b16 %v1477_v60, %v9072_v48  ;;  %v13402_v48 = vld [vmem:[#allocation22_spill] sm:$0xff] }
 0x231   : > { %v2014_v22 = vadd.f32 %v1925_v49, %v1730_v26  ;;  %v9098_v26 = vpack.c.b16 %v9092_v36, %v1477_v60 }
 0x232   : > { %v1218_v7 = vpop.f32.mrf.mxu2  ;;  %v1644_v62 = vpop.f32.mrf.mxu3 }
 0x233   : > { %v1304_v0 = vadd.f32 %v1218_v7, %v8882_v39  ;;  %v1731_v63 = vadd.f32 %v1644_v62, %v1303_v5  ;;  %v9110_v62 = vld [vmem:[#allocation2 + $0x198] sm:$0xff] }
 0x234   : > { %v2125_v54 = vpop.f32.mrf.mxu1 }
 0x235   : > { %v9088_v2 = vadd.f32 %v2125_v54, %v2014_v22  ;;  %v13396_v54 = vld [vmem:[#allocation8_spill] sm:$0xff] }
 0x236   : > { %v1376_v7 = vpack.c.bf16 %v13396_v54, %v13396_v54 }
 0x237   : > { %7452 = vmatmul.msk.bf16.gmra.mxu2 %vm224_vm2, %v8701_v33 }
 0x238   : > { %v1928_v45 = vpop.f32.mrf.mxu0 }
 0x239   : > { %v2015_v47 = vadd.f32 %v1928_v45, %v1731_v63  ;;  %v13398_v45 = vld [vmem:[#allocation19_spill] sm:$0xff] }
 0x23a   : > { %v1221_v22 = vpop.f32.mrf.mxu2  ;;  %v1646_v5 = vpop.f32.mrf.mxu3 }
 0x23b   : > { %7501 = vmatmul.msk.bf16.gmra.mxu0 %vm224_vm2, %v1784_v58  ;;  %v1305_v21 = vadd.f32 %v1221_v22, %v13395_v16  ;;  %v1732_v40 = vadd.f32 %v1646_v5, %v1304_v0  ;;  %v331_v5 = vld [vmem:[#allocation2 + $0x170] sm:$0xff]  ;;  %v455_v16 = vrot.slane %v9110_v62, 7 }
 0x23c   : > { %v2128_v49 = vpop.f32.mrf.mxu1  ;;  %335 = vst.msk [vmem:[#allocation2 + $0x1a0] sm:$0xff] %vm224_vm2, %v331_v5 }
 0x23d   : > { %v9101_v39 = vadd.f32 %v2128_v49, %v2015_v47  ;;  %v13399_v49 = vld [vmem:[#allocation21_spill] sm:$0xff] }
 0x23e   : > { %v1137_v22 = vpack.c.b16 %v8663_v23, %v13399_v49 }
 0x23f   : > { %7526 = vmatmul.msk.bf16.gmra.mxu1 %vm224_vm2, %v9098_v26  ;;  %7477 = vmatmul.msk.bf16.gmra.mxu3 %vm224_vm2, %v9059_v35 }
 0x240   : > { %v1930_v9 = vpop.f32.mrf.mxu0 }
 0x241   : > { %v2016_v33 = vadd.f32 %v1930_v9, %v1732_v40  ;;  %v1479_v40 = vunpack.c.l.b16 %v1375_v56  ;;  %v9119_v9 = vunpack.c.l.b16 %v1376_v7 }
 0x242   : > { %v1223_v63 = vpop.f32.mrf.mxu2  ;;  %v1649_v0 = vpop.f32.mrf.mxu3 }
 0x243   : > { %v1306_v47 = vadd.f32 %v1223_v63, %v13398_v45  ;;  %v1733_v35 = vadd.f32 %v1649_v0, %v1305_v21  ;;  %v9128_v21 = vpack.c.b16 %v9119_v9, %v1479_v40 }
 0x244   : > { %v2130_v51 = vpop.f32.mrf.mxu1 }
 0x245   : > { %v9112_v58 = vadd.f32 %v2130_v51, %v2016_v33  ;;  %v13400_v51 = vrot.slane %v8626_v53, 7 }
 0x247   : > { %13397 = vst [vmem:[#allocation10_spill] sm:$0xff] %v9112_v58  ;;  %7453 = vmatmul.msk.bf16.gmra.mxu2 %vm224_vm2, %v1137_v22  ;;  %v461_v63 = vsel %vm458_vm4, %v13400_v51, %v455_v16 }
 0x248   : > { %v1933_v33 = vpop.f32.mrf.mxu0  ;;  %v564_v49 = vpack.c.bf16 %v461_v63, %v461_v63 }
 0x249   : > { %v2017_v23 = vadd.f32 %v1933_v33, %v1733_v35  ;;  %v7873_v33 = vld [vmem:[#allocation2 + $0x180] sm:$0xff] }
 0x24a   : > { %v1226_v45 = vpop.f32.mrf.mxu2  ;;  %v1651_v7 = vpop.f32.mrf.mxu3  ;;  %v1134_v53 = vunpack.c.l.b16 %v564_v49  ;;  %v1377_v51 = vpack.c.bf16 %v7873_v33, %v7873_v33 }
 0x24b   : > { %7502 = vmatmul.msk.bf16.gmra.mxu0 %vm224_vm2, %v1785_v61  ;;  %v1307_v60 = vadd.f32 %v1226_v45, %v13402_v48  ;;  %v1734_v22 = vadd.f32 %v1651_v7, %v1306_v47  ;;  %v7874_v61 = vld [vmem:[#allocation2 + $0x188] sm:$0xff]  ;;  %v13405_v7 = vld [vmem:[#allocation23_spill] sm:$0xff] }
 0x24c   : > { %v2133_v0 = vpop.f32.mrf.mxu1  ;;  %v1138_v48 = vpack.c.b16 %v1134_v53, %v13405_v7 }
 0x24d   : > { %v9131_v56 = vadd.f32 %v2133_v0, %v2017_v23  ;;  %v1378_v23 = vpack.c.bf16 %v7874_v61, %v7874_v61  ;;  %v9140_v0 = vld [vmem:[#allocation2 + $0x1a0] sm:$0xff]  ;;  %v13406_v61 = vld [vmem:[#allocation9_spill] sm:$0xff] }
 0x24e   : > { %v456_v54 = vrot.slane %v9140_v0, 7 }
 0x24f   : > { %13401 = vst [vmem:[#allocation11_spill] sm:$0xff] %v9131_v56  ;;  %7527 = vmatmul.msk.bf16.gmra.mxu1 %vm224_vm2, %v9128_v21  ;;  %7478 = vmatmul.msk.bf16.gmra.mxu3 %vm224_vm2, %v9078_v20  ;;  %v1762_v20 = vunpack.c.l.b16 %v1377_v51 }
 0x250   : > { %v1935_v5 = vpop.f32.mrf.mxu0 }
 0x251   : > { %v9138_v35 = vadd.f32 %v1935_v5, %v1734_v22  ;;  %v9147_v22 = vunpack.c.l.b16 %v1378_v23  ;;  %v1786_v5 = vpack.c.b16 %v1479_v40, %v9092_v36 }
 0x252   : > { %v1228_v63 = vpop.f32.mrf.mxu2  ;;  %v1654_v47 = vpop.f32.mrf.mxu3 }
 0x253   : > { %13403 = vst [vmem:[#allocation12_spill] sm:$0xff] %v9138_v35  ;;  %v1308_v45 = vadd.f32 %v1228_v63, %v8651_v42  ;;  %v1735_v49 = vadd.f32 %v1654_v47, %v1307_v60  ;;  %v13407_v35 = vrot.slane %v13406_v61, 7  ;;  %v460_v42 = vsel %vm458_vm4, %v455_v16, %v456_v54 }
 0x254   : > { %v9142_v56 = vpop.f32.mrf.mxu1  ;;  %v2049_v60 = vpack.c.b16 %v9147_v22, %v1762_v20  ;;  %v565_v47 = vpack.c.bf16 %v460_v42, %v460_v42 }
 0x255   : > { %13404 = vst [vmem:[#allocation13_spill] sm:$0xff] %v9142_v56  ;;  %v459_v56 = vsel %vm458_vm4, %v456_v54, %v13407_v35 }
 0x256   : > { %v566_v7 = vpack.c.bf16 %v459_v56, %v459_v56  ;;  %v1135_v35 = vunpack.c.l.b16 %v565_v47 }
 0x257   : > { %7454 = vmatmul.msk.bf16.gmra.mxu2 %vm224_vm2, %v1138_v48 }
 0x258   : > { %v1938_v33 = vpop.f32.mrf.mxu0  ;;  %v1136_v61 = vunpack.c.l.b16 %v566_v7 }
 0x259   : > { %v2019_v53 = vadd.f32 %v1938_v33, %v1735_v49  ;;  %v7875_v49 = vld [vmem:[#allocation2 + $0x190] sm:$0xff]  ;;  %v1380_v33 = vpack.c.bf16 %v9110_v62, %v9110_v62 }
 0x25a   : > { %v1231_v51 = vpop.f32.mrf.mxu2  ;;  %v1656_v36 = vpop.f32.mrf.mxu3  ;;  %v1139_v42 = vpack.c.b16 %v1136_v61, %v1135_v35 }
 0x25b   : > { %7503 = vmatmul.msk.bf16.gmra.mxu0 %vm224_vm2, %v1786_v5  ;;  %v1309_v40 = vadd.f32 %v1231_v51, %v8679_v4  ;;  %v1736_v48 = vadd.f32 %v1656_v36, %v1308_v45  ;;  %v1379_v5 = vpack.c.bf16 %v7875_v49, %v7875_v49  ;;  %v9175_v51 = vld [vmem:[#allocation2] sm:$0xff]  ;;  %v7878_v36 = vld [vmem:[#allocation2 + $0x8] sm:$0xff]  ;;  %v2046_v62 = vunpack.c.l.b16 %v1380_v33 }
 0x25c   : > { %v2138_v63 = vpop.f32.mrf.mxu1  ;;  %13411 = vst [vmem:[#allocation17_spill] sm:$0xff] %v9175_v51  ;;  %v2242_v47 = vrot.slane %v7878_v36, 1  ;;  %v7879_v36 = vld [vmem:[#allocation2 + $0x18] sm:$0xff] }
 0x25d   : > { %v9159_v23 = vadd.f32 %v2138_v63, %v2019_v53 }
 0x25f   : > { %13408 = vst [vmem:[#allocation14_spill] sm:$0xff] %v9159_v23  ;;  %7528 = vmatmul.msk.bf16.gmra.mxu1 %vm224_vm2, %v2049_v60  ;;  %7479 = vmatmul.msk.bf16.gmra.mxu3 %vm224_vm2, %v9098_v26  ;;  %v9172_v60 = vld [vmem:[#allocation2 + $0x10] sm:$0xff]  ;;  %v13223_v26 = vrot.slane %v9175_v51, 1  ;;  %v7881_v23 = vld [vmem:[#allocation2 + $0x28] sm:$0xff] }
 0x260   : > { %v1940_v54 = vpop.f32.mrf.mxu0  ;;  %v2243_v63 = vrot.slane %v9172_v60, 1 }
 0x261   : > { %v9165_v16 = vadd.f32 %v1940_v54, %v1736_v48  ;;  %v1764_v48 = vunpack.c.l.b16 %v1379_v5  ;;  %v1787_v54 = vpack.c.b16 %v1762_v20, %v9119_v9  ;;  %v2348_v61 = vsel %vm2295_vm5, %v13223_v26, %v2242_v47 }
 0x262   : > { %v1233_v4 = vpop.f32.mrf.mxu2  ;;  %v1659_v56 = vpop.f32.mrf.mxu3  ;;  %v2347_v35 = vsel %vm2295_vm5, %v2242_v47, %v2243_v63  ;;  %v2246_v47 = vrot.slane %v7881_v23, 1 }
 0x263   : > { %13409 = vst [vmem:[#allocation15_spill] sm:$0xff] %v9165_v16  ;;  %v1310_v45 = vadd.f32 %v1233_v4, %v8697_v41  ;;  %v1737_v7 = vadd.f32 %v1659_v56, %v1309_v40  ;;  %v2050_v4 = vpack.c.b16 %v2046_v62, %v1764_v48  ;;  %v2350_v56 = vpack.c.bf16 %v2348_v61, %v2348_v61  ;;  %v7880_v16 = vld [vmem:[#allocation2 + $0x20] sm:$0xff] }
 0x264   : > { %v9169_v53 = vpop.f32.mrf.mxu1  ;;  %v2245_v51 = vrot.slane %v7880_v16, 1  ;;  %v1788_v26 = vpack.c.b16 %v1764_v48, %v9147_v22  ;;  %v13418_v48 = vld [vmem:[#allocation24_spill] sm:$0xff] }
 0x265   : > { %13410 = vst [vmem:[#allocation16_spill] sm:$0xff] %v9169_v53  ;;  %v2244_v53 = vrot.slane %v7879_v36, 1 }
 0x266   : > { %v2344_v16 = vsel %vm2295_vm5, %v2245_v51, %v2246_v47 }
 0x267   : > { %7455 = vmatmul.msk.bf16.gmra.mxu2 %vm224_vm2, %v1139_v42  ;;  %v2351_v42 = vpack.c.bf16 %v2347_v35, %v2347_v35  ;;  %v2345_v23 = vsel %vm2295_vm5, %v2244_v53, %v2245_v51  ;;  %v13417_v51 = vld [vmem:[#allocation6_spill] sm:$0xff] }
 0x268   : > { %v1943_v41 = vpop.f32.mrf.mxu0 }
 0x269   : > { %v2021_v49 = vadd.f32 %v1943_v41, %v1737_v7  ;;  %v2454_v7 = vunpack.c.l.b16 %v2350_v56  ;;  %v2455_v62 = vunpack.c.l.b16 %v2351_v42 }
 0x26a   : > { %v1236_v5 = vpop.f32.mrf.mxu2  ;;  %v1661_v9 = vpop.f32.mrf.mxu3 }
 0x26b   : > { %7504 = vmatmul.msk.bf16.gmra.mxu0 %vm224_vm2, %v1787_v54  ;;  %v1311_v20 = vadd.f32 %v1236_v5, %v8711_v15  ;;  %v1738_v60 = vadd.f32 %v1661_v9, %v1310_v45  ;;  %v1381_v15 = vpack.c.bf16 %v9140_v0, %v9140_v0  ;;  %v7882_v45 = vld [vmem:[#allocation2 + $0x1a8] sm:$0xff]  ;;  %v2353_v9 = vpack.c.bf16 %v2345_v23, %v2345_v23 }
 0x26c   : > { %v2143_v40 = vpop.f32.mrf.mxu1  ;;  %v1382_v35 = vpack.c.bf16 %v7882_v45, %v7882_v45  ;;  %v2354_v0 = vpack.c.bf16 %v2344_v16, %v2344_v16 }
 0x26d   : > { %v9188_v33 = vadd.f32 %v2143_v40, %v2021_v49  ;;  %v2047_v56 = vunpack.c.l.b16 %v1381_v15 }
 0x26e   : > { %v2048_v42 = vunpack.c.l.b16 %v1382_v35  ;;  %v9210_v58 = vunpack.c.l.b16 %v2354_v0 }
 0x26f   : > { %13412 = vst [vmem:[#allocation20_spill] sm:$0xff] %v9188_v33  ;;  %7529 = vmatmul.msk.bf16.gmra.mxu1 %vm224_vm2, %v2050_v4  ;;  %7480 = vmatmul.msk.bf16.gmra.mxu3 %vm224_vm2, %v9128_v21  ;;  %v2502_v21 = vpack.c.b16 %v2455_v62, %v2454_v7  ;;  %v2457_v33 = vunpack.c.l.b16 %v2353_v9 }
 0x270   : > { %v1945_v41 = vpop.f32.mrf.mxu0  ;;  %v2051_v7 = vpack.c.b16 %v2048_v42, %v2047_v56 }
 0x271   : > { %v9196_v54 = vadd.f32 %v1945_v41, %v1738_v60  ;;  %v13415_v60 = vld [vmem:[#allocation7_spill] sm:$0xff]  ;;  %v13416_v41 = vld [vmem:[#allocation5_spill] sm:$0xff] }
 0x272   : > { %v1238_v49 = vpop.f32.mrf.mxu2  ;;  %v1664_v4 = vpop.f32.mrf.mxu3  ;;  %v2247_v36 = vrot.slane %v13415_v60, 1  ;;  %v2248_v45 = vrot.slane %v13416_v41, 1 }
 0x273   : > { %13413 = vst [vmem:[#allocation18_spill] sm:$0xff] %v9196_v54  ;;  %v1312_v40 = vadd.f32 %v1238_v49, %v8727_v14  ;;  %v1739_v5 = vadd.f32 %v1664_v4, %v1311_v20  ;;  %v2346_v14 = vsel %vm2295_vm5, %v2243_v63, %v2244_v53  ;;  %v2786_v4 = vpack.c.b16 %v9210_v58, %v2457_v33 }
 0x274   : > { %v9202_v61 = vpop.f32.mrf.mxu1  ;;  %v2352_v23 = vpack.c.bf16 %v2346_v14, %v2346_v14  ;;  %v2342_v53 = vsel %vm2295_vm5, %v2247_v36, %v2248_v45 }
 0x275   : > { %13414 = vst [vmem:[#allocation19_spill] sm:$0xff] %v9202_v61  ;;  %v2249_v61 = vrot.slane %v13417_v51, 1  ;;  %v2356_v63 = vpack.c.bf16 %v2342_v53, %v2342_v53 }
 0x277   : > { %7532 = vmatmul.msk.bf16.vlgmr.msra.gmra.mxu2 %vm224_vm2, %v2502_v21  ;;  %v2341_v21 = vsel %vm2295_vm5, %v2248_v45, %v2249_v61  ;;  %v2460_v14 = vunpack.c.l.b16 %v2356_v63  ;;  %v13419_v45 = vld [vmem:[#allocation25_spill] sm:$0xff] }
 0x278   : > { %v1948_v54 = vpop.f32.mrf.mxu0 }
 0x279   : > { %v2023_v20 = vadd.f32 %v1948_v54, %v1739_v5  ;;  %v2357_v54 = vpack.c.bf16 %v2341_v21, %v2341_v21 }
 0x27a   : > { %v1241_v15 = vpop.f32.mrf.mxu2  ;;  %v1666_v22 = vpop.f32.mrf.mxu3 }
 0x27b   : > { %7505 = vmatmul.msk.bf16.gmra.mxu0 %vm224_vm2, %v1788_v26  ;;  %v1313_v16 = vadd.f32 %v1241_v15, %v13418_v48  ;;  %v1740_v49 = vadd.f32 %v1666_v22, %v1312_v40  ;;  %v2456_v26 = vunpack.c.l.b16 %v2352_v23  ;;  %v2343_v40 = vsel %vm2295_vm5, %v2246_v47, %v2247_v36  ;;  %v7884_v47 = vld [vmem:[#allocation2 + $0x50] sm:$0xff] }
 0x27c   : > { %v2148_v62 = vpop.f32.mrf.mxu1  ;;  %v2355_v22 = vpack.c.bf16 %v2343_v40, %v2343_v40  ;;  %v2251_v36 = vrot.slane %v7884_v47, 1 }
 0x27d   : > { %v9215_v35 = vadd.f32 %v2148_v62, %v2023_v20  ;;  %v2461_v20 = vunpack.c.l.b16 %v2357_v54 }
 0x27f   : > { %7530 = vmatmul.msk.bf16.gmra.mxu1 %vm224_vm2, %v2051_v7  ;;  %7557 = vmatmul.msk.bf16.vlgmr.msra.gmra.mxu3 %vm224_vm2, %v2786_v4  ;;  %v2503_v7 = vpack.c.b16 %v2457_v33, %v2456_v26  ;;  %v9232_v48 = vpack.c.b16 %v2461_v20, %v2460_v14  ;;  %v7883_v4 = vld [vmem:[#allocation2 + $0x48] sm:$0xff] }
 0x280   : > { %v1950_v5 = vpop.f32.mrf.mxu0  ;;  %v2250_v21 = vrot.slane %v7883_v4, 1 }
 0x281   : > { %v9225_v9 = vadd.f32 %v1950_v5, %v1740_v49  ;;  %v2459_v49 = vunpack.c.l.b16 %v2355_v22 }
 0x282   : > { %v1243_v56 = vpop.f32.mrf.mxu2  ;;  %v1669_v42 = vpop.f32.mrf.mxu3  ;;  %v2339_v40 = vsel %vm2295_vm5, %v2250_v21, %v2251_v36 }
 0x283   : > { %v1314_v62 = vadd.f32 %v1243_v56, %v13419_v45  ;;  %v1741_v15 = vadd.f32 %v1669_v42, %v1313_v16  ;;  %v2787_v26 = vpack.c.b16 %v2460_v14, %v2459_v49  ;;  %v2340_v56 = vsel %vm2295_vm5, %v2249_v61, %v2250_v21  ;;  %v7885_v21 = vld [vmem:[#allocation2 + $0x58] sm:$0xff] }
 0x284   : > { %v9229_v0 = vpop.f32.mrf.mxu1  ;;  %v2358_v42 = vpack.c.bf16 %v2340_v56, %v2340_v56  ;;  %v2359_v45 = vpack.c.bf16 %v2339_v40, %v2339_v40 }
 0x287   : > { %7533 = vmatmul.msk.bf16.gmra.mxu2 %vm224_vm2, %v2503_v7 }
 0x288   : > { %v1953_v23 = vpop.f32.mrf.mxu0 }
 0x289   : > { %v2025_v53 = vadd.f32 %v1953_v23, %v1741_v15 }
 0x28a   : > { %v1246_v51 = vpop.f32.mrf.mxu2  ;;  %v1671_v33 = vpop.f32.mrf.mxu3 }
 0x28b   : > { %7582 = vmatmul.msk.bf16.vlgmr.msra.gmra.mxu0 %vm224_vm2, %v9232_v48  ;;  %v1315_v16 = vadd.f32 %v1246_v51, %v8763_v24  ;;  %v1742_v54 = vadd.f32 %v1671_v33, %v1314_v62  ;;  %v2462_v24 = vunpack.c.l.b16 %v2358_v42  ;;  %v2463_v51 = vunpack.c.l.b16 %v2359_v45  ;;  %v7886_v33 = vld [vmem:[#allocation2 + $0x60] sm:$0xff] }
 0x28c   : > { %v2153_v5 = vpop.f32.mrf.mxu1  ;;  %v2504_v62 = vpack.c.b16 %v2459_v49, %v9210_v58 }
 0x28d   : > { %v9237_v63 = vadd.f32 %v2153_v5, %v2025_v53  ;;  %v2506_v53 = vpack.c.b16 %v2463_v51, %v2462_v24  ;;  %v2252_v5 = vrot.slane %v7885_v21, 1  ;;  %v2788_v49 = vpack.c.b16 %v2462_v24, %v2461_v20  ;;  %v13421_v20 = vld [vmem:[#allocation26_spill] sm:$0xff] }
 0x28f   : > { %7558 = vmatmul.msk.bf16.gmra.mxu3 %vm224_vm2, %v2787_v26 }
 0x290   : > { %v1955_v7 = vpop.f32.mrf.mxu0 }
 0x291   : > { %v9245_v15 = vadd.f32 %v1955_v7, %v1742_v54  ;;  %v2253_v54 = vrot.slane %v7886_v33, 1  ;;  %v2338_v7 = vsel %vm2295_vm5, %v2251_v36, %v2252_v5 }
 0x292   : > { %v1248_v23 = vpop.f32.mrf.mxu2  ;;  %v1674_v4 = vpop.f32.mrf.mxu3 }
 0x293   : > { %v1316_v14 = vadd.f32 %v1248_v23, %v8770_v17  ;;  %v1743_v47 = vadd.f32 %v1674_v4, %v1315_v16  ;;  %v2337_v16 = vsel %vm2295_vm5, %v2252_v5, %v2253_v54  ;;  %v2360_v23 = vpack.c.bf16 %v2338_v7, %v2338_v7  ;;  %v7887_v5 = vld [vmem:[#allocation2 + $0x68] sm:$0xff] }
 0x294   : > { %v9247_v22 = vpop.f32.mrf.mxu1  ;;  %v2361_v4 = vpack.c.bf16 %v2337_v16, %v2337_v16 }
 0x297   : > { %7534 = vmatmul.msk.bf16.gmra.mxu2 %vm224_vm2, %v2504_v62 }
 0x298   : > { %v1958_v61 = vpop.f32.mrf.mxu0 }
 0x299   : > { %v2027_v26 = vadd.f32 %v1958_v61, %v1743_v47 }
 0x29a   : > { %v1251_v56 = vpop.f32.mrf.mxu2  ;;  %v1676_v45 = vpop.f32.mrf.mxu3 }
 0x29b   : > { %7583 = vmatmul.msk.bf16.gmra.mxu0 %vm224_vm2, %v2506_v53  ;;  %v1317_v17 = vadd.f32 %v1251_v56, %v8780_v12  ;;  %v1744_v58 = vadd.f32 %v1676_v45, %v1316_v14  ;;  %v2464_v12 = vunpack.c.l.b16 %v2360_v23  ;;  %v2465_v14 = vunpack.c.l.b16 %v2361_v4  ;;  %v7888_v45 = vld [vmem:[#allocation2 + $0x70] sm:$0xff] }
 0x29c   : > { %v2158_v40 = vpop.f32.mrf.mxu1  ;;  %v2254_v56 = vrot.slane %v7887_v5, 1 }
 0x29d   : > { %v9253_v42 = vadd.f32 %v2158_v40, %v2027_v26  ;;  %v2507_v40 = vpack.c.b16 %v2465_v14, %v2464_v12 }
 0x29f   : > { %7559 = vmatmul.msk.bf16.gmra.mxu3 %vm224_vm2, %v2788_v49  ;;  %v2255_v49 = vrot.slane %v7888_v45, 1 }
 0x2a0   : > { %v1960_v62 = vpop.f32.mrf.mxu0 }
 0x2a1   : > { %v9261_v47 = vadd.f32 %v1960_v62, %v1744_v58 }
 0x2a2   : > { %v1253_v21 = vpop.f32.mrf.mxu2  ;;  %v1679_v33 = vpop.f32.mrf.mxu3 }
 0x2a3   : > { %v1318_v24 = vadd.f32 %v1253_v21, %v13421_v20  ;;  %v1745_v26 = vadd.f32 %v1679_v33, %v1317_v17  ;;  %v2789_v21 = vpack.c.b16 %v2464_v12, %v2463_v51  ;;  %v2336_v33 = vsel %vm2295_vm5, %v2253_v54, %v2254_v56 }
 0x2a4   : > { %v9263_v61 = vpop.f32.mrf.mxu1  ;;  %v2362_v20 = vpack.c.bf16 %v2336_v33, %v2336_v33 }
 0x2a5   : > { %13420 = vst [vmem:[#allocation21_spill] sm:$0xff] %v9263_v61 }
 0x2a7   : > { %7535 = vmatmul.msk.bf16.gmra.mxu2 %vm224_vm2, %v9232_v48  ;;  %v2335_v48 = vsel %vm2295_vm5, %v2254_v56, %v2255_v49  ;;  %v7890_v56 = vld [vmem:[#allocation2 + $0x80] sm:$0xff] }
 0x2a8   : > { %v1963_v36 = vpop.f32.mrf.mxu0  ;;  %v2363_v5 = vpack.c.bf16 %v2335_v48, %v2335_v48  ;;  %v2257_v48 = vrot.slane %v7890_v56, 1 }
 0x2a9   : > { %v2029_v58 = vadd.f32 %v1963_v36, %v1745_v26 }
 0x2aa   : > { %v1256_v7 = vpop.f32.mrf.mxu2  ;;  %v1681_v23 = vpop.f32.mrf.mxu3  ;;  %v2467_v41 = vunpack.c.l.b16 %v2363_v5 }
 0x2ab   : > { %7584 = vmatmul.msk.bf16.gmra.mxu0 %vm224_vm2, %v2507_v40  ;;  %v1319_v4 = vadd.f32 %v1256_v7, %v8797_v6  ;;  %v1746_v17 = vadd.f32 %v1681_v23, %v1318_v24  ;;  %v13423_v6 = vld [vmem:[#allocation27_spill] sm:$0xff] }
 0x2ac   : > { %v2163_v16 = vpop.f32.mrf.mxu1  ;;  %v7889_v23 = vld [vmem:[#allocation2 + $0x78] sm:$0xff] }
 0x2ad   : > { %v9269_v62 = vadd.f32 %v2163_v16, %v2029_v58  ;;  %v2466_v16 = vunpack.c.l.b16 %v2362_v20  ;;  %v2256_v54 = vrot.slane %v7889_v23, 1 }
 0x2af   : > { %7560 = vmatmul.msk.bf16.gmra.mxu3 %vm224_vm2, %v2789_v21  ;;  %v2508_v12 = vpack.c.b16 %v2467_v41, %v2466_v16 }
 0x2b0   : > { %v1965_v26 = vpop.f32.mrf.mxu0 }
 0x2b1   : > { %v9277_v36 = vadd.f32 %v1965_v26, %v1746_v17  ;;  %v2790_v26 = vpack.c.b16 %v2466_v16, %v2465_v14 }
 0x2b2   : > { %v1258_v45 = vpop.f32.mrf.mxu2  ;;  %v1684_v58 = vpop.f32.mrf.mxu3 }
 0x2b3   : > { %13422 = vst [vmem:[#allocation22_spill] sm:$0xff] %v9277_v36  ;;  %v1320_v24 = vadd.f32 %v1258_v45, %v13423_v6  ;;  %v1747_v51 = vadd.f32 %v1684_v58, %v1319_v4  ;;  %v2333_v4 = vsel %vm2295_vm5, %v2256_v54, %v2257_v48 }
 0x2b4   : > { %v2365_v58 = vpack.c.bf16 %v2333_v4, %v2333_v4 }
 0x2b6   : > { %v2469_v60 = vunpack.c.l.b16 %v2365_v58 }
 0x2b7   : > { %7536 = vmatmul.msk.bf16.gmra.mxu2 %vm224_vm2, %v2506_v53  ;;  %v2334_v53 = vsel %vm2295_vm5, %v2255_v49, %v2256_v54  ;;  %v7892_v54 = vld [vmem:[#allocation2 + $0x90] sm:$0xff] }
 0x2b8   : > { %v1968_v7 = vpop.f32.mrf.mxu0  ;;  %v2364_v45 = vpack.c.bf16 %v2334_v53, %v2334_v53  ;;  %v2259_v4 = vrot.slane %v7892_v54, 1 }
 0x2b9   : > { %v9281_v33 = vadd.f32 %v1968_v7, %v1747_v51 }
 0x2ba   : > { %v1261_v21 = vpop.f32.mrf.mxu2  ;;  %v1686_v17 = vpop.f32.mrf.mxu3  ;;  %v2468_v56 = vunpack.c.l.b16 %v2364_v45 }
 0x2bb   : > { %13424 = vst [vmem:[#allocation23_spill] sm:$0xff] %v9281_v33  ;;  %7585 = vmatmul.msk.bf16.gmra.mxu0 %vm224_vm2, %v2508_v12  ;;  %v1321_v20 = vadd.f32 %v1261_v21, %v8814_v29  ;;  %v1748_v5 = vadd.f32 %v1686_v17, %v1320_v24  ;;  %v13426_v29 = vld [vmem:[#allocation28_spill] sm:$0xff]  ;;  %v7891_v17 = vld [vmem:[#allocation2 + $0x88] sm:$0xff] }
 0x2bc   : > { %v2509_v16 = vpack.c.b16 %v2469_v60, %v2468_v56  ;;  %v2258_v49 = vrot.slane %v7891_v17, 1 }
 0x2bf   : > { %7561 = vmatmul.msk.bf16.gmra.mxu3 %vm224_vm2, %v2790_v26 }
 0x2c0   : > { %v1970_v6 = vpop.f32.mrf.mxu0 }
 0x2c1   : > { %v9290_v51 = vadd.f32 %v1970_v6, %v1748_v5  ;;  %v2791_v6 = vpack.c.b16 %v2468_v56, %v2467_v41 }
 0x2c2   : > { %v1263_v7 = vpop.f32.mrf.mxu2  ;;  %v1689_v23 = vpop.f32.mrf.mxu3 }
 0x2c3   : > { %13425 = vst [vmem:[#allocation9_spill] sm:$0xff] %v9290_v51  ;;  %v1322_v24 = vadd.f32 %v1263_v7, %v13426_v29  ;;  %v1749_v14 = vadd.f32 %v1689_v23, %v1321_v20  ;;  %v2331_v20 = vsel %vm2295_vm5, %v2258_v49, %v2259_v4 }
 0x2c4   : > { %v2367_v23 = vpack.c.bf16 %v2331_v20, %v2331_v20 }
 0x2c7   : > { %7537 = vmatmul.msk.bf16.gmra.mxu2 %vm224_vm2, %v2507_v40  ;;  %v2332_v40 = vsel %vm2295_vm5, %v2257_v48, %v2258_v49  ;;  %v7894_v49 = vld [vmem:[#allocation2 + $0xa0] sm:$0xff] }
 0x2c8   : > { %v1973_v21 = vpop.f32.mrf.mxu0  ;;  %v2366_v7 = vpack.c.bf16 %v2332_v40, %v2332_v40  ;;  %v2261_v20 = vrot.slane %v7894_v49, 1 }
 0x2c9   : > { %v9294_v53 = vadd.f32 %v1973_v21, %v1749_v14 }
 0x2ca   : > { %v1266_v26 = vpop.f32.mrf.mxu2  ;;  %v1691_v5 = vpop.f32.mrf.mxu3  ;;  %v2470_v54 = vunpack.c.l.b16 %v2366_v7 }
 0x2cb   : > { %13427 = vst [vmem:[#allocation24_spill] sm:$0xff] %v9294_v53  ;;  %7586 = vmatmul.msk.bf16.gmra.mxu0 %vm224_vm2, %v2509_v16  ;;  %v1323_v45 = vadd.f32 %v1266_v26, %v8831_v28  ;;  %v1750_v58 = vadd.f32 %v1691_v5, %v1322_v24  ;;  %v2471_v53 = vunpack.c.l.b16 %v2367_v23  ;;  %v13429_v28 = vld [vmem:[#allocation29_spill] sm:$0xff]  ;;  %v7893_v5 = vld [vmem:[#allocation2 + $0x98] sm:$0xff] }
 0x2cc   : > { %v2260_v48 = vrot.slane %v7893_v5, 1 }
 0x2cd   : > { %v2510_v56 = vpack.c.b16 %v2471_v53, %v2470_v54 }
 0x2cf   : > { %7562 = vmatmul.msk.bf16.gmra.mxu3 %vm224_vm2, %v2791_v6 }
 0x2d0   : > { %v1975_v29 = vpop.f32.mrf.mxu0 }
 0x2d1   : > { %v9303_v14 = vadd.f32 %v1975_v29, %v1750_v58  ;;  %v2792_v29 = vpack.c.b16 %v2470_v54, %v2469_v60 }
 0x2d2   : > { %v1268_v21 = vpop.f32.mrf.mxu2  ;;  %v1694_v17 = vpop.f32.mrf.mxu3 }
 0x2d3   : > { %13428 = vst [vmem:[#allocation25_spill] sm:$0xff] %v9303_v14  ;;  %v1324_v24 = vadd.f32 %v1268_v21, %v13429_v28  ;;  %v1751_v41 = vadd.f32 %v1694_v17, %v1323_v45  ;;  %v2329_v45 = vsel %vm2295_vm5, %v2260_v48, %v2261_v20  ;;  %v7925_v14 = vld [vmem:[#allocation2 + $0x1a0] sm:$0xff] }
 0x2d4   : > { %v2369_v17 = vpack.c.bf16 %v2329_v45, %v2329_v45 }
 0x2d7   : > { %7538 = vmatmul.msk.bf16.gmra.mxu2 %vm224_vm2, %v2508_v12  ;;  %v2330_v12 = vsel %vm2295_vm5, %v2259_v4, %v2260_v48  ;;  %v7896_v48 = vld [vmem:[#allocation2 + $0xb0] sm:$0xff] }
 0x2d8   : > { %v1978_v26 = vpop.f32.mrf.mxu0  ;;  %v2368_v21 = vpack.c.bf16 %v2330_v12, %v2330_v12  ;;  %v2263_v45 = vrot.slane %v7896_v48, 1 }
 0x2d9   : > { %v9307_v40 = vadd.f32 %v1978_v26, %v1751_v41 }
 0x2da   : > { %v1271_v6 = vpop.f32.mrf.mxu2  ;;  %v1696_v58 = vpop.f32.mrf.mxu3  ;;  %v2472_v49 = vunpack.c.l.b16 %v2368_v21 }
 0x2db   : > { %13430 = vst [vmem:[#allocation26_spill] sm:$0xff] %v9307_v40  ;;  %7587 = vmatmul.msk.bf16.gmra.mxu0 %vm224_vm2, %v2510_v56  ;;  %v1325_v7 = vadd.f32 %v1271_v6, %v8848_v27  ;;  %v1752_v23 = vadd.f32 %v1696_v58, %v1324_v24  ;;  %v2473_v40 = vunpack.c.l.b16 %v2369_v17  ;;  %v13432_v27 = vld [vmem:[#allocation30_spill] sm:$0xff]  ;;  %v7895_v58 = vld [vmem:[#allocation2 + $0xa8] sm:$0xff] }
 0x2dc   : > { %v2262_v4 = vrot.slane %v7895_v58, 1 }
 0x2dd   : > { %v2511_v54 = vpack.c.b16 %v2473_v40, %v2472_v49 }
 0x2df   : > { %7563 = vmatmul.msk.bf16.gmra.mxu3 %vm224_vm2, %v2792_v29 }
 0x2e0   : > { %v1980_v28 = vpop.f32.mrf.mxu0 }
 0x2e1   : > { %v9316_v41 = vadd.f32 %v1980_v28, %v1752_v23  ;;  %v2793_v28 = vpack.c.b16 %v2472_v49, %v2471_v53 }
 0x2e2   : > { %v1273_v26 = vpop.f32.mrf.mxu2  ;;  %v1699_v5 = vpop.f32.mrf.mxu3 }
 0x2e3   : > { %13431 = vst [vmem:[#allocation27_spill] sm:$0xff] %v9316_v41  ;;  %v1326_v24 = vadd.f32 %v1273_v26, %v13432_v27  ;;  %v1753_v60 = vadd.f32 %v1699_v5, %v1325_v7  ;;  %v2327_v7 = vsel %vm2295_vm5, %v2262_v4, %v2263_v45 }
 0x2e4   : > { %v2371_v5 = vpack.c.bf16 %v2327_v7, %v2327_v7 }
 0x2e7   : > { %7539 = vmatmul.msk.bf16.gmra.mxu2 %vm224_vm2, %v2509_v16  ;;  %v2328_v16 = vsel %vm2295_vm5, %v2261_v20, %v2262_v4  ;;  %v7898_v4 = vld [vmem:[#allocation2 + $0xc0] sm:$0xff] }
 0x2e8   : > { %v1983_v6 = vpop.f32.mrf.mxu0  ;;  %v2370_v26 = vpack.c.bf16 %v2328_v16, %v2328_v16  ;;  %v2265_v7 = vrot.slane %v7898_v4, 1 }
 0x2e9   : > { %v9320_v12 = vadd.f32 %v1983_v6, %v1753_v60 }
 0x2ea   : > { %v1276_v29 = vpop.f32.mrf.mxu2  ;;  %v1701_v23 = vpop.f32.mrf.mxu3  ;;  %v2474_v48 = vunpack.c.l.b16 %v2370_v26 }
 0x2eb   : > { %13433 = vst [vmem:[#allocation28_spill] sm:$0xff] %v9320_v12  ;;  %7588 = vmatmul.msk.bf16.gmra.mxu0 %vm224_vm2, %v2511_v54  ;;  %v1327_v21 = vadd.f32 %v1276_v29, %v8865_v8  ;;  %v1754_v17 = vadd.f32 %v1701_v23, %v1326_v24  ;;  %v2475_v12 = vunpack.c.l.b16 %v2371_v5  ;;  %v13435_v8 = vld [vmem:[#allocation31_spill] sm:$0xff] }
 0x2ec   : > { %v7897_v23 = vld [vmem:[#allocation2 + $0xb8] sm:$0xff] }
 0x2ed   : > { %v2512_v49 = vpack.c.b16 %v2475_v12, %v2474_v48  ;;  %v2264_v20 = vrot.slane %v7897_v23, 1 }
 0x2ef   : > { %7564 = vmatmul.msk.bf16.gmra.mxu3 %vm224_vm2, %v2793_v28 }
 0x2f0   : > { %v1985_v27 = vpop.f32.mrf.mxu0 }
 0x2f1   : > { %v9329_v60 = vadd.f32 %v1985_v27, %v1754_v17  ;;  %v2794_v27 = vpack.c.b16 %v2474_v48, %v2473_v40 }
 0x2f2   : > { %v1278_v6 = vpop.f32.mrf.mxu2  ;;  %v1704_v58 = vpop.f32.mrf.mxu3 }
 0x2f3   : > { %13434 = vst [vmem:[#allocation29_spill] sm:$0xff] %v9329_v60  ;;  %v1328_v24 = vadd.f32 %v1278_v6, %v13435_v8  ;;  %v1755_v53 = vadd.f32 %v1704_v58, %v1327_v21  ;;  %v2325_v21 = vsel %vm2295_vm5, %v2264_v20, %v2265_v7 }
 0x2f4   : > { %v2373_v58 = vpack.c.bf16 %v2325_v21, %v2325_v21 }
 0x2f7   : > { %7540 = vmatmul.msk.bf16.gmra.mxu2 %vm224_vm2, %v2510_v56  ;;  %v2326_v56 = vsel %vm2295_vm5, %v2263_v45, %v2264_v20  ;;  %v7900_v20 = vld [vmem:[#allocation2 + $0xd0] sm:$0xff] }
 0x2f8   : > { %v1988_v29 = vpop.f32.mrf.mxu0  ;;  %v2372_v6 = vpack.c.bf16 %v2326_v56, %v2326_v56 }
 0x2f9   : > { %v9333_v16 = vadd.f32 %v1988_v29, %v1755_v53 }
 0x2fa   : > { %v2610_v28 = vpop.f32.mrf.mxu2  ;;  %v1706_v17 = vpop.f32.mrf.mxu3  ;;  %v2476_v4 = vunpack.c.l.b16 %v2372_v6 }
 0x2fb   : > { %13436 = vst [vmem:[#allocation30_spill] sm:$0xff] %v9333_v16  ;;  %7589 = vmatmul.msk.bf16.gmra.mxu0 %vm224_vm2, %v2512_v49  ;;  %v2730_v26 = vadd.f32 %v2610_v28, %v8893_v46  ;;  %v1756_v5 = vadd.f32 %v1706_v17, %v1328_v24  ;;  %v2477_v16 = vunpack.c.l.b16 %v2373_v58  ;;  %v7899_v28 = vld [vmem:[#allocation2 + $0xc8] sm:$0xff]  ;;  %v2267_v17 = vrot.slane %v7900_v20, 1 }
 0x2fc   : > { %v2266_v45 = vrot.slane %v7899_v28, 1  ;;  %v2795_v58 = vpack.c.b16 %v2476_v4, %v2475_v12 }
 0x2fd   : > { %v2513_v48 = vpack.c.b16 %v2477_v16, %v2476_v4 }
 0x2ff   : > { %7565 = vmatmul.msk.bf16.gmra.mxu3 %vm224_vm2, %v2794_v27 }
 0x300   : > { %v1990_v8 = vpop.f32.mrf.mxu0 }
 0x301   : > { %v9342_v53 = vadd.f32 %v1990_v8, %v1756_v5 }
 0x302   : > { %v2612_v29 = vpop.f32.mrf.mxu2  ;;  %v2894_v23 = vpop.f32.mrf.mxu3 }
 0x303   : > { %13437 = vst [vmem:[#allocation31_spill] sm:$0xff] %v9342_v53  ;;  %v2731_v46 = vadd.f32 %v2612_v29, %v8899_v34  ;;  %v3014_v40 = vadd.f32 %v2894_v23, %v2730_v26  ;;  %v2323_v34 = vsel %vm2295_vm5, %v2266_v45, %v2267_v17 }
 0x304   : > { %v2375_v8 = vpack.c.bf16 %v2323_v34, %v2323_v34 }
 0x306   : > { %v2479_v20 = vunpack.c.l.b16 %v2375_v8 }
 0x307   : > { %7541 = vmatmul.msk.bf16.gmra.mxu2 %vm224_vm2, %v2511_v54  ;;  %v2324_v54 = vsel %vm2295_vm5, %v2265_v7, %v2266_v45  ;;  %v7902_v45 = vld [vmem:[#allocation2 + $0xe0] sm:$0xff] }
 0x308   : > { %v3094_v24 = vpop.f32.mrf.mxu0  ;;  %v2374_v26 = vpack.c.bf16 %v2324_v54, %v2324_v54 }
 0x309   : > { %v9346_v21 = vadd.f32 %v3094_v24, %v3014_v40 }
 0x30a   : > { %v2615_v27 = vpop.f32.mrf.mxu2  ;;  %v2896_v5 = vpop.f32.mrf.mxu3  ;;  %v2478_v28 = vunpack.c.l.b16 %v2374_v26 }
 0x30b   : > { %13438 = vst [vmem:[#allocation32_spill] sm:$0xff] %v9346_v21  ;;  %7590 = vmatmul.msk.bf16.gmra.mxu0 %vm224_vm2, %v2513_v48  ;;  %v2732_v56 = vadd.f32 %v2615_v27, %v8910_v13  ;;  %v3015_v6 = vadd.f32 %v2896_v5, %v2731_v46  ;;  %v7901_v27 = vld [vmem:[#allocation2 + $0xd8] sm:$0xff]  ;;  %v2269_v5 = vrot.slane %v7902_v45, 1 }
 0x30c   : > { %v2514_v4 = vpack.c.b16 %v2479_v20, %v2478_v28  ;;  %v2268_v7 = vrot.slane %v7901_v27, 1  ;;  %v2796_v8 = vpack.c.b16 %v2478_v28, %v2477_v16 }
 0x30f   : > { %7566 = vmatmul.msk.bf16.gmra.mxu3 %vm224_vm2, %v2795_v58 }
 0x310   : > { %v3096_v29 = vpop.f32.mrf.mxu0 }
 0x311   : > { %v9355_v23 = vadd.f32 %v3096_v29, %v3015_v6 }
 0x312   : > { %v2617_v40 = vpop.f32.mrf.mxu2  ;;  %v2899_v24 = vpop.f32.mrf.mxu3 }
 0x313   : > { %13439 = vst [vmem:[#allocation33_spill] sm:$0xff] %v9355_v23  ;;  %v2733_v13 = vadd.f32 %v2617_v40, %v8917_v55  ;;  %v3016_v12 = vadd.f32 %v2899_v24, %v2732_v56  ;;  %v2321_v55 = vsel %vm2295_vm5, %v2268_v7, %v2269_v5 }
 0x314   : > { %v2377_v29 = vpack.c.bf16 %v2321_v55, %v2321_v55 }
 0x316   : > { %v2481_v45 = vunpack.c.l.b16 %v2377_v29 }
 0x317   : > { %7542 = vmatmul.msk.bf16.gmra.mxu2 %vm224_vm2, %v2512_v49  ;;  %v2322_v49 = vsel %vm2295_vm5, %v2267_v17, %v2268_v7  ;;  %v7904_v7 = vld [vmem:[#allocation2 + $0xf0] sm:$0xff] }
 0x318   : > { %v3099_v46 = vpop.f32.mrf.mxu0  ;;  %v2376_v56 = vpack.c.bf16 %v2322_v49, %v2322_v49 }
 0x319   : > { %v9359_v34 = vadd.f32 %v3099_v46, %v3016_v12 }
 0x31a   : > { %v2620_v58 = vpop.f32.mrf.mxu2  ;;  %v2901_v6 = vpop.f32.mrf.mxu3  ;;  %v2480_v27 = vunpack.c.l.b16 %v2376_v56 }
 0x31b   : > { %13440 = vst [vmem:[#allocation34_spill] sm:$0xff] %v9359_v34  ;;  %7591 = vmatmul.msk.bf16.gmra.mxu0 %vm224_vm2, %v2514_v4  ;;  %v2734_v54 = vadd.f32 %v2620_v58, %v8929_v44  ;;  %v3017_v26 = vadd.f32 %v2901_v6, %v2733_v13  ;;  %v7903_v58 = vld [vmem:[#allocation2 + $0xe8] sm:$0xff]  ;;  %v2271_v6 = vrot.slane %v7904_v7, 1 }
 0x31c   : > { %v2515_v28 = vpack.c.b16 %v2481_v45, %v2480_v27  ;;  %v2270_v17 = vrot.slane %v7903_v58, 1  ;;  %v2797_v29 = vpack.c.b16 %v2480_v27, %v2479_v20 }
 0x31f   : > { %7567 = vmatmul.msk.bf16.gmra.mxu3 %vm224_vm2, %v2796_v8 }
 0x320   : > { %v3101_v40 = vpop.f32.mrf.mxu0 }
 0x321   : > { %v9368_v24 = vadd.f32 %v3101_v40, %v3017_v26 }
 0x322   : > { %v2622_v12 = vpop.f32.mrf.mxu2  ;;  %v2904_v46 = vpop.f32.mrf.mxu3 }
 0x323   : > { %13441 = vst [vmem:[#allocation35_spill] sm:$0xff] %v9368_v24  ;;  %v2735_v44 = vadd.f32 %v2622_v12, %v8936_v18  ;;  %v3018_v16 = vadd.f32 %v2904_v46, %v2734_v54  ;;  %v2319_v18 = vsel %vm2295_vm5, %v2270_v17, %v2271_v6 }
 0x324   : > { %v2379_v40 = vpack.c.bf16 %v2319_v18, %v2319_v18 }
 0x326   : > { %v2483_v7 = vunpack.c.l.b16 %v2379_v40 }
 0x327   : > { %7543 = vmatmul.msk.bf16.gmra.mxu2 %vm224_vm2, %v2513_v48  ;;  %v2320_v48 = vsel %vm2295_vm5, %v2269_v5, %v2270_v17  ;;  %v7606_v5 = vld [vmem:[%s13197_s2 + $0x6] sm:$0x3]  ;;  %v7905_v17 = vld [vmem:[#allocation2 + $0xf8] sm:$0xff] }
 0x328   : > { %v3104_v13 = vpop.f32.mrf.mxu0  ;;  %v2378_v54 = vpack.c.bf16 %v2320_v48, %v2320_v48 }
 0x329   : > { %v9372_v55 = vadd.f32 %v3104_v13, %v3018_v16 }
 0x32a   : > { %v2625_v8 = vpop.f32.mrf.mxu2  ;;  %v2906_v26 = vpop.f32.mrf.mxu3  ;;  %v2482_v58 = vunpack.c.l.b16 %v2378_v54 }
 0x32b   : > { %13442 = vst [vmem:[#allocation36_spill] sm:$0xff] %v9372_v55  ;;  %7592 = vmatmul.msk.bf16.gmra.mxu0 %vm224_vm2, %v2515_v28  ;;  %v2736_v49 = vadd.f32 %v2625_v8, %v8948_v37  ;;  %v3019_v56 = vadd.f32 %v2906_v26, %v2735_v44  ;;  %v2272_v8 = vrot.slane %v7905_v17, 1  ;;  %v7906_v26 = vld [vmem:[#allocation2 + $0x100] sm:$0xff] }
 0x32c   : > { %v2516_v27 = vpack.c.b16 %v2483_v7, %v2482_v58  ;;  %v2798_v54 = vpack.c.b16 %v2482_v58, %v2481_v45 }
 0x32f   : > { %7568 = vmatmul.msk.bf16.gmra.mxu3 %vm224_vm2, %v2797_v29  ;;  %v4266_v29 = vsel %vm762_vm0, %v7606_v5, 0 }
 0x330   : > { %v3106_v12 = vpop.f32.mrf.mxu0  ;;  %4275 = vmatpush.bf16.msra.mxu1 %v4266_v29 }
 0x331   : > { %v9381_v46 = vadd.f32 %v3106_v12, %v3019_v56  ;;  %v2273_v56 = vrot.slane %v7906_v26, 1  ;;  %v2318_v12 = vsel %vm2295_vm5, %v2271_v6, %v2272_v8 }
 0x332   : > { %v2627_v16 = vpop.f32.mrf.mxu2  ;;  %v2909_v13 = vpop.f32.mrf.mxu3 }
 0x333   : > { %13443 = vst [vmem:[#allocation37_spill] sm:$0xff] %v9381_v46  ;;  %v2737_v37 = vadd.f32 %v2627_v16, %v8955_v38  ;;  %v3020_v20 = vadd.f32 %v2909_v13, %v2736_v49  ;;  %v2317_v40 = vsel %vm2295_vm5, %v2272_v8, %v2273_v56  ;;  %v2380_v16 = vpack.c.bf16 %v2318_v12, %v2318_v12  ;;  %v7908_v8 = vld [vmem:[#allocation2 + $0x110] sm:$0xff] }
 0x334   : > { %v2381_v13 = vpack.c.bf16 %v2317_v40, %v2317_v40 }
 0x335   : > { %v2484_v26 = vunpack.c.l.b16 %v2380_v16 }
 0x336   : > { %v2485_v29 = vunpack.c.l.b16 %v2381_v13 }
 0x337   : > { %7544 = vmatmul.msk.bf16.gmra.mxu2 %vm224_vm2, %v2514_v4  ;;  %v2799_v13 = vpack.c.b16 %v2484_v26, %v2483_v7 }
 0x338   : > { %v3109_v44 = vpop.f32.mrf.mxu0  ;;  %v2517_v58 = vpack.c.b16 %v2485_v29, %v2484_v26 }
 0x339   : > { %v9389_v18 = vadd.f32 %v3109_v44, %v3020_v20 }
 0x33a   : > { %v2630_v48 = vpop.f32.mrf.mxu2  ;;  %v2911_v38 = vpop.f32.mrf.mxu3 }
 0x33b   : > { %13444 = vst [vmem:[#allocation38_spill] sm:$0xff] %v9389_v18  ;;  %7593 = vmatmul.msk.bf16.gmra.mxu0 %vm224_vm2, %v2516_v27  ;;  %v2738_v4 = vadd.f32 %v2630_v48, %v8967_v10  ;;  %v3021_v49 = vadd.f32 %v2911_v38, %v2737_v37  ;;  %v7907_v48 = vld [vmem:[#allocation2 + $0x108] sm:$0xff]  ;;  %v2275_v38 = vrot.slane %v7908_v8, 1 }
 0x33c   : > { %v2274_v6 = vrot.slane %v7907_v48, 1 }
 0x33f   : > { %7569 = vmatmul.msk.bf16.gmra.mxu3 %vm224_vm2, %v2798_v54 }
 0x340   : > { %v3111_v5 = vpop.f32.mrf.mxu0 }
 0x341   : > { %v9398_v20 = vadd.f32 %v3111_v5, %v3021_v49 }
 0x342   : > { %v2632_v44 = vpop.f32.mrf.mxu2  ;;  %v2914_v17 = vpop.f32.mrf.mxu3 }
 0x343   : > { %v2739_v10 = vadd.f32 %v2632_v44, %v8974_v25  ;;  %v3022_v45 = vadd.f32 %v2914_v17, %v2738_v4  ;;  %v2315_v25 = vsel %vm2295_vm5, %v2274_v6, %v2275_v38 }
 0x344   : > { %v2383_v5 = vpack.c.bf16 %v2315_v25, %v2315_v25 }
 0x346   : > { %v2487_v8 = vunpack.c.l.b16 %v2383_v5 }
 0x347   : > { %7545 = vmatmul.msk.bf16.gmra.mxu2 %vm224_vm2, %v2515_v28  ;;  %v2316_v28 = vsel %vm2295_vm5, %v2273_v56, %v2274_v6  ;;  %v7910_v6 = vld [vmem:[#allocation2 + $0x120] sm:$0xff] }
 0x348   : > { %v3114_v37 = vpop.f32.mrf.mxu0  ;;  %v2382_v4 = vpack.c.bf16 %v2316_v28, %v2316_v28 }
 0x349   : > { %v9402_v40 = vadd.f32 %v3114_v37, %v3022_v45 }
 0x34a   : > { %v2635_v54 = vpop.f32.mrf.mxu2  ;;  %v2916_v49 = vpop.f32.mrf.mxu3  ;;  %v2486_v48 = vunpack.c.l.b16 %v2382_v4 }
 0x34b   : > { %13445 = vst [vmem:[#allocation39_spill] sm:$0xff] %v9402_v40  ;;  %7594 = vmatmul.msk.bf16.gmra.mxu0 %vm224_vm2, %v2517_v58  ;;  %v2740_v12 = vadd.f32 %v2635_v54, %v8986_v1  ;;  %v3023_v16 = vadd.f32 %v2916_v49, %v2739_v10  ;;  %v7909_v54 = vld [vmem:[#allocation2 + $0x118] sm:$0xff]  ;;  %v2277_v49 = vrot.slane %v7910_v6, 1 }
 0x34c   : > { %v2518_v26 = vpack.c.b16 %v2487_v8, %v2486_v48  ;;  %v2276_v56 = vrot.slane %v7909_v54, 1  ;;  %v2800_v5 = vpack.c.b16 %v2486_v48, %v2485_v29 }
 0x34f   : > { %7570 = vmatmul.msk.bf16.gmra.mxu3 %vm224_vm2, %v2799_v13 }
 0x350   : > { %v3116_v44 = vpop.f32.mrf.mxu0 }
 0x351   : > { %v9411_v17 = vadd.f32 %v3116_v44, %v3023_v16 }
 0x352   : > { %v2637_v45 = vpop.f32.mrf.mxu2  ;;  %v2919_v37 = vpop.f32.mrf.mxu3 }
 0x353   : > { %v2741_v1 = vadd.f32 %v2637_v45, %v8993_v57  ;;  %v3024_v7 = vadd.f32 %v2919_v37, %v2740_v12  ;;  %v2313_v57 = vsel %vm2295_vm5, %v2276_v56, %v2277_v49 }
 0x354   : > { %v2385_v44 = vpack.c.bf16 %v2313_v57, %v2313_v57 }
 0x356   : > { %v2489_v6 = vunpack.c.l.b16 %v2385_v44 }
 0x357   : > { %7546 = vmatmul.msk.bf16.gmra.mxu2 %vm224_vm2, %v2516_v27  ;;  %v2314_v27 = vsel %vm2295_vm5, %v2275_v38, %v2276_v56  ;;  %v7912_v56 = vld [vmem:[#allocation2 + $0x130] sm:$0xff] }
 0x358   : > { %v3119_v10 = vpop.f32.mrf.mxu0  ;;  %v2384_v12 = vpack.c.bf16 %v2314_v27, %v2314_v27 }
 0x359   : > { %v9415_v25 = vadd.f32 %v3119_v10, %v3024_v7 }
 0x35a   : > { %v2640_v13 = vpop.f32.mrf.mxu2  ;;  %v2921_v16 = vpop.f32.mrf.mxu3  ;;  %v2488_v54 = vunpack.c.l.b16 %v2384_v12 }
 0x35b   : > { %13446 = vst [vmem:[#allocation40_spill] sm:$0xff] %v9415_v25  ;;  %7595 = vmatmul.msk.bf16.gmra.mxu0 %vm224_vm2, %v2518_v26  ;;  %v2742_v28 = vadd.f32 %v2640_v13, %v9005_v31  ;;  %v3025_v4 = vadd.f32 %v2921_v16, %v2741_v1  ;;  %v7911_v13 = vld [vmem:[#allocation2 + $0x128] sm:$0xff]  ;;  %v2279_v16 = vrot.slane %v7912_v56, 1 }
 0x35c   : > { %v2519_v48 = vpack.c.b16 %v2489_v6, %v2488_v54  ;;  %v2278_v38 = vrot.slane %v7911_v13, 1  ;;  %v2801_v44 = vpack.c.b16 %v2488_v54, %v2487_v8 }
 0x35f   : > { %7571 = vmatmul.msk.bf16.gmra.mxu3 %vm224_vm2, %v2800_v5 }
 0x360   : > { %v3121_v45 = vpop.f32.mrf.mxu0 }
 0x361   : > { %v9424_v37 = vadd.f32 %v3121_v45, %v3025_v4 }
 0x362   : > { %v2642_v7 = vpop.f32.mrf.mxu2  ;;  %v2924_v10 = vpop.f32.mrf.mxu3 }
 0x363   : > { %13447 = vst [vmem:[#allocation41_spill] sm:$0xff] %v9424_v37  ;;  %v2743_v31 = vadd.f32 %v2642_v7, %v9012_v3  ;;  %v3026_v29 = vadd.f32 %v2924_v10, %v2742_v28  ;;  %v2311_v3 = vsel %vm2295_vm5, %v2278_v38, %v2279_v16 }
 0x364   : > { %v2387_v45 = vpack.c.bf16 %v2311_v3, %v2311_v3 }
 0x366   : > { %v2491_v56 = vunpack.c.l.b16 %v2387_v45 }
 0x367   : > { %7547 = vmatmul.msk.bf16.gmra.mxu2 %vm224_vm2, %v2517_v58  ;;  %v2312_v58 = vsel %vm2295_vm5, %v2277_v49, %v2278_v38  ;;  %v7914_v38 = vld [vmem:[#allocation2 + $0x140] sm:$0xff] }
 0x368   : > { %v3124_v1 = vpop.f32.mrf.mxu0  ;;  %v2386_v28 = vpack.c.bf16 %v2312_v58, %v2312_v58 }
 0x369   : > { %v9428_v57 = vadd.f32 %v3124_v1, %v3026_v29 }
 0x36a   : > { %v2645_v5 = vpop.f32.mrf.mxu2  ;;  %v2926_v4 = vpop.f32.mrf.mxu3  ;;  %v2490_v13 = vunpack.c.l.b16 %v2386_v28 }
 0x36b   : > { %13448 = vst [vmem:[#allocation42_spill] sm:$0xff] %v9428_v57  ;;  %7596 = vmatmul.msk.bf16.gmra.mxu0 %vm224_vm2, %v2519_v48  ;;  %v2744_v27 = vadd.f32 %v2645_v5, %v9024_v30  ;;  %v3027_v12 = vadd.f32 %v2926_v4, %v2743_v31  ;;  %v7913_v5 = vld [vmem:[#allocation2 + $0x138] sm:$0xff]  ;;  %v2281_v4 = vrot.slane %v7914_v38, 1 }
 0x36c   : > { %v2520_v54 = vpack.c.b16 %v2491_v56, %v2490_v13  ;;  %v2280_v49 = vrot.slane %v7913_v5, 1  ;;  %v2802_v45 = vpack.c.b16 %v2490_v13, %v2489_v6 }
 0x36f   : > { %7572 = vmatmul.msk.bf16.gmra.mxu3 %vm224_vm2, %v2801_v44 }
 0x370   : > { %v3126_v7 = vpop.f32.mrf.mxu0 }
 0x371   : > { %v9437_v10 = vadd.f32 %v3126_v7, %v3027_v12 }
 0x372   : > { %v2647_v29 = vpop.f32.mrf.mxu2  ;;  %v2929_v1 = vpop.f32.mrf.mxu3 }
 0x373   : > { %13449 = vst [vmem:[#allocation43_spill] sm:$0xff] %v9437_v10  ;;  %v2745_v30 = vadd.f32 %v2647_v29, %v9031_v50  ;;  %v3028_v8 = vadd.f32 %v2929_v1, %v2744_v27  ;;  %v2309_v50 = vsel %vm2295_vm5, %v2280_v49, %v2281_v4 }
 0x374   : > { %v2389_v7 = vpack.c.bf16 %v2309_v50, %v2309_v50 }
 0x376   : > { %v2493_v38 = vunpack.c.l.b16 %v2389_v7 }
 0x377   : > { %7548 = vmatmul.msk.bf16.gmra.mxu2 %vm224_vm2, %v2518_v26  ;;  %v2310_v26 = vsel %vm2295_vm5, %v2279_v16, %v2280_v49  ;;  %v7916_v49 = vld [vmem:[#allocation2 + $0x150] sm:$0xff] }
 0x378   : > { %v3129_v31 = vpop.f32.mrf.mxu0  ;;  %v2388_v27 = vpack.c.bf16 %v2310_v26, %v2310_v26 }
 0x379   : > { %v9441_v3 = vadd.f32 %v3129_v31, %v3028_v8 }
 0x37a   : > { %v2650_v44 = vpop.f32.mrf.mxu2  ;;  %v2931_v12 = vpop.f32.mrf.mxu3  ;;  %v2492_v5 = vunpack.c.l.b16 %v2388_v27 }
 0x37b   : > { %13450 = vst [vmem:[#allocation44_spill] sm:$0xff] %v9441_v3  ;;  %7597 = vmatmul.msk.bf16.gmra.mxu0 %vm224_vm2, %v2520_v54  ;;  %v2746_v58 = vadd.f32 %v2650_v44, %v9043_v43  ;;  %v3029_v28 = vadd.f32 %v2931_v12, %v2745_v30  ;;  %v7915_v44 = vld [vmem:[#allocation2 + $0x148] sm:$0xff]  ;;  %v2283_v12 = vrot.slane %v7916_v49, 1 }
 0x37c   : > { %v2521_v13 = vpack.c.b16 %v2493_v38, %v2492_v5  ;;  %v2282_v16 = vrot.slane %v7915_v44, 1  ;;  %v2803_v7 = vpack.c.b16 %v2492_v5, %v2491_v56 }
 0x37f   : > { %7573 = vmatmul.msk.bf16.gmra.mxu3 %vm224_vm2, %v2802_v45 }
 0x380   : > { %v3131_v29 = vpop.f32.mrf.mxu0 }
 0x381   : > { %v9450_v1 = vadd.f32 %v3131_v29, %v3029_v28 }
 0x382   : > { %v2652_v8 = vpop.f32.mrf.mxu2  ;;  %v2934_v31 = vpop.f32.mrf.mxu3 }
 0x383   : > { %13451 = vst [vmem:[#allocation45_spill] sm:$0xff] %v9450_v1  ;;  %v2747_v43 = vadd.f32 %v2652_v8, %v9050_v59  ;;  %v3030_v6 = vadd.f32 %v2934_v31, %v2746_v58  ;;  %v2307_v59 = vsel %vm2295_vm5, %v2282_v16, %v2283_v12 }
 0x384   : > { %v2391_v29 = vpack.c.bf16 %v2307_v59, %v2307_v59 }
 0x386   : > { %v2495_v49 = vunpack.c.l.b16 %v2391_v29 }
 0x387   : > { %7549 = vmatmul.msk.bf16.gmra.mxu2 %vm224_vm2, %v2519_v48  ;;  %v2308_v48 = vsel %vm2295_vm5, %v2281_v4, %v2282_v16  ;;  %v7918_v16 = vld [vmem:[#allocation2 + $0x160] sm:$0xff] }
 0x388   : > { %v3134_v30 = vpop.f32.mrf.mxu0  ;;  %v2390_v58 = vpack.c.bf16 %v2308_v48, %v2308_v48 }
 0x389   : > { %v9454_v50 = vadd.f32 %v3134_v30, %v3030_v6 }
 0x38a   : > { %v2655_v45 = vpop.f32.mrf.mxu2  ;;  %v2936_v28 = vpop.f32.mrf.mxu3  ;;  %v2494_v44 = vunpack.c.l.b16 %v2390_v58 }
 0x38b   : > { %13452 = vst [vmem:[#allocation46_spill] sm:$0xff] %v9454_v50  ;;  %7598 = vmatmul.msk.bf16.gmra.mxu0 %vm224_vm2, %v2521_v13  ;;  %v2748_v26 = vadd.f32 %v2655_v45, %v9062_v19  ;;  %v3031_v27 = vadd.f32 %v2936_v28, %v2747_v43  ;;  %v7917_v45 = vld [vmem:[#allocation2 + $0x158] sm:$0xff]  ;;  %v2285_v28 = vrot.slane %v7918_v16, 1 }
 0x38c   : > { %v2522_v5 = vpack.c.b16 %v2495_v49, %v2494_v44  ;;  %v2284_v4 = vrot.slane %v7917_v45, 1  ;;  %v2804_v29 = vpack.c.b16 %v2494_v44, %v2493_v38 }
 0x38f   : > { %7574 = vmatmul.msk.bf16.gmra.mxu3 %vm224_vm2, %v2803_v7 }
 0x390   : > { %v3136_v8 = vpop.f32.mrf.mxu0 }
 0x391   : > { %v9463_v31 = vadd.f32 %v3136_v8, %v3031_v27 }
 0x392   : > { %v2657_v6 = vpop.f32.mrf.mxu2  ;;  %v2939_v30 = vpop.f32.mrf.mxu3 }
 0x393   : > { %13453 = vst [vmem:[#allocation47_spill] sm:$0xff] %v9463_v31  ;;  %v2749_v19 = vadd.f32 %v2657_v6, %v9069_v52  ;;  %v3032_v56 = vadd.f32 %v2939_v30, %v2748_v26  ;;  %v2305_v52 = vsel %vm2295_vm5, %v2284_v4, %v2285_v28 }
 0x394   : > { %v2393_v8 = vpack.c.bf16 %v2305_v52, %v2305_v52 }
 0x396   : > { %v2497_v16 = vunpack.c.l.b16 %v2393_v8 }
 0x397   : > { %7550 = vmatmul.msk.bf16.gmra.mxu2 %vm224_vm2, %v2520_v54  ;;  %v2306_v54 = vsel %vm2295_vm5, %v2283_v12, %v2284_v4  ;;  %v7920_v4 = vld [vmem:[#allocation2 + $0x170] sm:$0xff] }
 0x398   : > { %v3139_v43 = vpop.f32.mrf.mxu0  ;;  %v2392_v26 = vpack.c.bf16 %v2306_v54, %v2306_v54 }
 0x399   : > { %v9467_v59 = vadd.f32 %v3139_v43, %v3032_v56 }
 0x39a   : > { %v2660_v7 = vpop.f32.mrf.mxu2  ;;  %v2941_v27 = vpop.f32.mrf.mxu3  ;;  %v2496_v45 = vunpack.c.l.b16 %v2392_v26 }
 0x39b   : > { %13454 = vst [vmem:[#allocation48_spill] sm:$0xff] %v9467_v59  ;;  %7599 = vmatmul.msk.bf16.gmra.mxu0 %vm224_vm2, %v2522_v5  ;;  %v2750_v48 = vadd.f32 %v2660_v7, %v9081_v32  ;;  %v3033_v58 = vadd.f32 %v2941_v27, %v2749_v19  ;;  %v7919_v7 = vld [vmem:[#allocation2 + $0x168] sm:$0xff]  ;;  %v2287_v27 = vrot.slane %v7920_v4, 1 }
 0x39c   : > { %v2523_v44 = vpack.c.b16 %v2497_v16, %v2496_v45  ;;  %v2286_v12 = vrot.slane %v7919_v7, 1  ;;  %v2805_v8 = vpack.c.b16 %v2496_v45, %v2495_v49 }
 0x39f   : > { %7575 = vmatmul.msk.bf16.gmra.mxu3 %vm224_vm2, %v2804_v29 }
 0x3a0   : > { %v3141_v6 = vpop.f32.mrf.mxu0 }
 0x3a1   : > { %v9476_v30 = vadd.f32 %v3141_v6, %v3033_v58 }
 0x3a2   : > { %v2662_v56 = vpop.f32.mrf.mxu2  ;;  %v2944_v43 = vpop.f32.mrf.mxu3 }
 0x3a3   : > { %v2751_v32 = vadd.f32 %v2662_v56, %v9088_v2  ;;  %v3034_v38 = vadd.f32 %v2944_v43, %v2750_v48  ;;  %v2303_v2 = vsel %vm2295_vm5, %v2286_v12, %v2287_v27 }
 0x3a4   : > { %v2395_v6 = vpack.c.bf16 %v2303_v2, %v2303_v2 }
 0x3a6   : > { %v2499_v4 = vunpack.c.l.b16 %v2395_v6 }
 0x3a7   : > { %7551 = vmatmul.msk.bf16.gmra.mxu2 %vm224_vm2, %v2521_v13  ;;  %v2304_v13 = vsel %vm2295_vm5, %v2285_v28, %v2286_v12  ;;  %v7921_v12 = vld [vmem:[#allocation2 + $0x180] sm:$0xff] }
 0x3a8   : > { %v3144_v19 = vpop.f32.mrf.mxu0  ;;  %v2394_v48 = vpack.c.bf16 %v2304_v13, %v2304_v13  ;;  %v2289_v2 = vrot.slane %v7921_v12, 1 }
 0x3a9   : > { %v9480_v52 = vadd.f32 %v3144_v19, %v3034_v38 }
 0x3aa   : > { %v2665_v29 = vpop.f32.mrf.mxu2  ;;  %v2946_v58 = vpop.f32.mrf.mxu3  ;;  %v2498_v7 = vunpack.c.l.b16 %v2394_v48 }
 0x3ab   : > { %13455 = vst [vmem:[#allocation49_spill] sm:$0xff] %v9480_v52  ;;  %7600 = vmatmul.msk.bf16.gmra.mxu0 %vm224_vm2, %v2523_v44  ;;  %v2752_v54 = vadd.f32 %v2665_v29, %v9101_v39  ;;  %v3035_v26 = vadd.f32 %v2946_v58, %v2751_v32  ;;  %v13456_v39 = vld [vmem:[#allocation10_spill] sm:$0xff]  ;;  %v13457_v58 = vld [vmem:[#allocation8_spill] sm:$0xff] }
 0x3ac   : > { %v2524_v45 = vpack.c.b16 %v2499_v4, %v2498_v7  ;;  %v2288_v28 = vrot.slane %v13457_v58, 1  ;;  %v2806_v53 = vpack.c.b16 %v2498_v7, %v2497_v16 }
 0x3af   : > { %7576 = vmatmul.msk.bf16.gmra.mxu3 %vm224_vm2, %v2805_v8 }
 0x3b0   : > { %v3146_v56 = vpop.f32.mrf.mxu0 }
 0x3b1   : > { %v9489_v43 = vadd.f32 %v3146_v56, %v3035_v26  ;;  %v13458_v56 = vld [vmem:[#allocation11_spill] sm:$0xff] }
 0x3b2   : > { %v2667_v38 = vpop.f32.mrf.mxu2  ;;  %v2949_v19 = vpop.f32.mrf.mxu3 }
 0x3b3   : > { %v2753_v32 = vadd.f32 %v2667_v38, %v13456_v39  ;;  %v3036_v49 = vadd.f32 %v2949_v19, %v2752_v54  ;;  %v2301_v54 = vsel %vm2295_vm5, %v2288_v28, %v2289_v2 }
 0x3b4   : > { %v2397_v19 = vpack.c.bf16 %v2301_v54, %v2301_v54 }
 0x3b7   : > { %7552 = vmatmul.msk.bf16.gmra.mxu2 %vm224_vm2, %v2522_v5  ;;  %v2302_v5 = vsel %vm2295_vm5, %v2287_v27, %v2288_v28  ;;  %v7923_v27 = vld [vmem:[#allocation2 + $0x190] sm:$0xff] }
 0x3b8   : > { %v3149_v29 = vpop.f32.mrf.mxu0  ;;  %v2396_v38 = vpack.c.bf16 %v2302_v5, %v2302_v5  ;;  %v2291_v28 = vrot.slane %v7923_v27, 1 }
 0x3b9   : > { %v9494_v13 = vadd.f32 %v3149_v29, %v3036_v49 }
 0x3ba   : > { %v2670_v8 = vpop.f32.mrf.mxu2  ;;  %v2951_v26 = vpop.f32.mrf.mxu3  ;;  %v2500_v58 = vunpack.c.l.b16 %v2396_v38 }
 0x3bb   : > { %7601 = vmatmul.msk.bf16.gmra.mxu0 %vm224_vm2, %v2524_v45  ;;  %v2754_v48 = vadd.f32 %v2670_v8, %v13458_v56  ;;  %v3037_v6 = vadd.f32 %v2951_v26, %v2753_v32  ;;  %v2501_v8 = vunpack.c.l.b16 %v2397_v19  ;;  %v7922_v26 = vld [vmem:[#allocation2 + $0x188] sm:$0xff] }
 0x3bc   : > { %v2290_v56 = vrot.slane %v7922_v26, 1  ;;  %v2807_v38 = vpack.c.b16 %v2500_v58, %v2499_v4 }
 0x3bd   : > { %v2525_v16 = vpack.c.b16 %v2501_v8, %v2500_v58  ;;  %v7924_v58 = vld [vmem:[#allocation2 + $0x198] sm:$0xff] }
 0x3bf   : > { %7577 = vmatmul.msk.bf16.gmra.mxu3 %vm224_vm2, %v2806_v53 }
 0x3c0   : > { %v3151_v39 = vpop.f32.mrf.mxu0 }
 0x3c1   : > { %v9503_v49 = vadd.f32 %v3151_v39, %v3037_v6  ;;  %v13459_v6 = vld [vmem:[#allocation14_spill] sm:$0xff] }
 0x3c2   : > { %v9505_v29 = vpop.f32.mrf.mxu2  ;;  %v2954_v12 = vpop.f32.mrf.mxu3 }
 0x3c3   : > { %v3038_v32 = vadd.f32 %v2954_v12, %v2754_v48  ;;  %v2299_v48 = vsel %vm2295_vm5, %v2290_v56, %v2291_v28 }
 0x3c4   : > { %v2399_v12 = vpack.c.bf16 %v2299_v48, %v2299_v48 }
 0x3c6   : > { %v2784_v60 = vunpack.c.l.b16 %v2399_v12 }
 0x3c7   : > { %7553 = vmatmul.msk.bf16.gmra.mxu2 %vm224_vm2, %v2523_v44  ;;  %v2300_v44 = vsel %vm2295_vm5, %v2289_v2, %v2290_v56  ;;  %v2293_v2 = vrot.slane %v7925_v14, 1 }
 0x3c8   : > { %v3154_v7 = vpop.f32.mrf.mxu0  ;;  %v2398_v19 = vpack.c.bf16 %v2300_v44, %v2300_v44  ;;  %v13460_v44 = vld [vmem:[#allocation20_spill] sm:$0xff] }
 0x3c9   : > { %v9508_v54 = vadd.f32 %v3154_v7, %v3038_v32 }
 0x3ca   : > { %v2675_v5 = vpop.f32.mrf.mxu2  ;;  %v9511_v53 = vpop.f32.mrf.mxu3  ;;  %v2783_v27 = vunpack.c.l.b16 %v2398_v19 }
 0x3cb   : > { %7602 = vmatmul.msk.bf16.gmra.mxu0 %vm224_vm2, %v2525_v16  ;;  %v2756_v39 = vadd.f32 %v2675_v5, %v13459_v6  ;;  %v2292_v6 = vrot.slane %v7924_v58, 1 }
 0x3cc   : > { %v3070_v5 = vpack.c.b16 %v2784_v60, %v2783_v27  ;;  %v2808_v19 = vpack.c.b16 %v2783_v27, %v2501_v8  ;;  %v7926_v27 = vld [vmem:[#allocation2 + $0x1a8] sm:$0xff] }
 0x3cf   : > { %7578 = vmatmul.msk.bf16.gmra.mxu3 %vm224_vm2, %v2807_v38 }
 0x3d0   : > { %v9518_v26 = vpop.f32.mrf.mxu0 }
 0x3d2   : > { %v9521_v32 = vpop.f32.mrf.mxu2  ;;  %v2959_v7 = vpop.f32.mrf.mxu3 }
 0x3d3   : > { %v3040_v41 = vadd.f32 %v2959_v7, %v2756_v39  ;;  %v2297_v39 = vsel %vm2295_vm5, %v2292_v6, %v2293_v2 }
 0x3d4   : > { %v2401_v7 = vpack.c.bf16 %v2297_v39, %v2297_v39 }
 0x3d7   : > { %7554 = vmatmul.msk.bf16.gmra.mxu2 %vm224_vm2, %v2524_v45  ;;  %v2298_v45 = vsel %vm2295_vm5, %v2291_v28, %v2292_v6 }
 0x3d8   : > { %v3159_v4 = vpop.f32.mrf.mxu0  ;;  %v2400_v12 = vpack.c.bf16 %v2298_v45, %v2298_v45 }
 0x3d9   : > { %v9524_v56 = vadd.f32 %v3159_v4, %v3040_v41  ;;  %v3067_v4 = vunpack.c.l.b16 %v2401_v7 }
 0x3da   : > { %v2680_v48 = vpop.f32.mrf.mxu2  ;;  %v9527_v38 = vpop.f32.mrf.mxu3 }
 0x3db   : > { %7603 = vmatmul.msk.bf16.gmra.mxu0 %vm224_vm2, %v3070_v5  ;;  %v2758_v51 = vadd.f32 %v2680_v48, %v13460_v44  ;;  %v2785_v5 = vunpack.c.l.b16 %v2400_v12  ;;  %v2294_v44 = vrot.slane %v7926_v27, 1 }
 0x3dd   : > { %v3071_v48 = vpack.c.b16 %v3067_v4, %v2785_v5  ;;  %v2809_v39 = vpack.c.b16 %v2785_v5, %v2784_v60  ;;  %v2296_v45 = vsel %vm2295_vm5, %v2293_v2, %v2294_v44 }
 0x3de   : > { %v2402_v7 = vpack.c.bf16 %v2296_v45, %v2296_v45 }
 0x3df   : > { %7579 = vmatmul.msk.bf16.gmra.mxu3 %vm224_vm2, %v2808_v19 }
 0x3e0   : > { %v9534_v58 = vpop.f32.mrf.mxu0 }
 0x3e2   : > { %v9537_v14 = vpop.f32.mrf.mxu2  ;;  %v2964_v41 = vpop.f32.mrf.mxu3 }
 0x3e3   : > { %v3042_v33 = vadd.f32 %v2964_v41, %v2758_v51  ;;  %v13462_v51 = vld [vmem:[#allocation17_spill] sm:$0xff] }
 0x3e4   : > { %v13463_v12 = vrot.slane %v13462_v51, 1 }
 0x3e7   : > { %7555 = vmatmul.msk.bf16.gmra.mxu2 %vm224_vm2, %v2525_v16  ;;  %v2349_v16 = vsel %vm2295_vm5, %v2294_v44, %v13463_v12 }
 0x3e8   : > { %v3164_v8 = vpop.f32.mrf.mxu0  ;;  %v2403_v41 = vpack.c.bf16 %v2349_v16, %v2349_v16 }
 0x3e9   : > { %v9540_v36 = vadd.f32 %v3164_v8, %v3042_v33  ;;  %v3068_v8 = vunpack.c.l.b16 %v2402_v7  ;;  %v9568_v7 = vadd.s32 16, %v8092_v11 }
 0x3ea   : > { %v2685_v28 = vpop.f32.mrf.mxu2  ;;  %v9543_v6 = vpop.f32.mrf.mxu3 }
 0x3eb   : > { %13461 = vst [vmem:[#allocation10_spill] sm:$0xff] %v9540_v36  ;;  %7604 = vmatmul.msk.bf16.gmra.mxu0 %vm224_vm2, %v3071_v48  ;;  %v2760_v19 = vadd.f32 %v2685_v28, %v9215_v35  ;;  %v3069_v35 = vunpack.c.l.b16 %v2403_v41  ;;  %vm346_vm7 = vcmp.le.s32.totalorder %v9568_v7, 16 }
 0x3ec   : > { %13466 = vst [vmem:[#allocation20_spill] sm:$0xff] %v9568_v7 }
 0x3ed   : > { %v3072_v5 = vpack.c.b16 %v3069_v35, %v3068_v8  ;;  %v3268_v35 = vsel %vm341_vm6, %v9346_v21, 0.0 }
 0x3ef   : > { %7580 = vmatmul.msk.bf16.gmra.mxu3 %vm224_vm2, %v2809_v39 }
 0x3f0   : > { %v9552_v33 = vpop.f32.mrf.mxu0 }
 0x3f2   : > { %v9555_v4 = vpop.f32.mrf.mxu2  ;;  %v2969_v48 = vpop.f32.mrf.mxu3 }
 0x3f3   : > { %v3044_v60 = vadd.f32 %v2969_v48, %v2760_v19 }
 0x3f8   : > { %v3169_v27 = vpop.f32.mrf.mxu0 }
 0x3f9   : > { %v9557_v2 = vadd.f32 %v3169_v27, %v3044_v60  ;;  %v3270_v60 = vsel %vm346_vm7, %v9359_v34, 0.0  ;;  %v9585_v27 = vpop.f32.mrf.mxu1 }
 0x3fa   : > { %v2690_v28 = vpop.f32.mrf.mxu2  ;;  %v9560_v44 = vpop.f32.mrf.mxu3  ;;  %13469 = vst [vmem:[#allocation51_spill] sm:$0xff] %v9585_v27  ;;  %v3273_v27 = vsel %vm346_vm7, %v9381_v46, 0.0 }
 0x3fb   : > { %13464 = vst [vmem:[#allocation11_spill] sm:$0xff] %v9557_v2  ;;  %7605 = vmatmul.msk.bf16.gmra.mxu0 %vm224_vm2, %v3072_v5  ;;  %v2762_v45 = vadd.f32 %v2690_v28, %v9237_v63  ;;  %v3418_v5 = vmul.f32 %v9355_v23, %v9355_v23  ;;  %v3271_v28 = vsel %vm341_vm6, %v9368_v24, 0.0 }
 0x3fc   : > { %v3420_v34 = vmul.f32 %v3271_v28, %v3271_v28  ;;  %v3321_v2 = vsel %vm224_vm2, %v3271_v28, 0.0 }
 0x3fe   : > { %v3470_v46 = vsel %vm224_vm2, %v3420_v34, 0.0  ;;  %v3276_v34 = vsel %vm346_vm7, %v9402_v40, 0.0  ;;  %v3329_v40 = vsel %vm224_vm2, %v9398_v20, 0.0 }
 0x400   : > { %v9563_v51 = vpop.f32.mrf.mxu0 }
 0x401   : > { %13465 = vst [vmem:[#allocation14_spill] sm:$0xff] %v9563_v51  ;;  %v3319_v51 = vsel %vm224_vm2, %v3270_v60, 0.0 }
 0x402   : > { %v9565_v39 = vpop.f32.mrf.mxu2  ;;  %v2974_v12 = vpop.f32.mrf.mxu3 }
 0x403   : > { %v3046_v16 = vadd.f32 %v2974_v12, %v2762_v45  ;;  %v3419_v12 = vmul.f32 %v3270_v60, %v3270_v60  ;;  %v3323_v60 = vsel %vm224_vm2, %v9372_v55, 0.0 }
 0x408   : > { %v3174_v19 = vpop.f32.mrf.mxu0 }
 0x409   : > { %v9570_v41 = vadd.f32 %v3174_v19, %v3046_v16  ;;  %v3317_v19 = vsel %vm224_vm2, %v9355_v23, 0.0  ;;  %v3421_v23 = vmul.f32 %v9372_v55, %v9372_v55 }
 0x40a   : > { %v2695_v48 = vpop.f32.mrf.mxu2  ;;  %v9574_v8 = vpop.f32.mrf.mxu3 }
 0x40b   : > { %13467 = vst [vmem:[#allocation17_spill] sm:$0xff] %v9570_v41  ;;  %v2764_v63 = vadd.f32 %v2695_v48, %v9253_v42  ;;  %v3417_v42 = vmul.f32 %v3268_v35, %v3268_v35  ;;  %v3466_v48 = vsel %vm224_vm2, %v3418_v5, 0.0  ;;  %v3316_v41 = vsel %vm224_vm2, %v3268_v35, 0.0 }
 0x40c   : > { %13468 = vst [vmem:[#allocation50_spill] sm:$0xff] %v9574_v8  ;;  %v3318_v8 = vadd.f32 %v3317_v19, %v3316_v41  ;;  %v3274_v35 = vsel %vm341_vm6, %v9389_v18, 0.0 }
 0x40d   : > { %v3423_v61 = vmul.f32 %v3274_v35, %v3274_v35 }
 0x410   : > { %v9590_v45 = vpop.f32.mrf.mxu0 }
 0x411   : > { %13470 = vst [vmem:[#allocation52_spill] sm:$0xff] %v9590_v45  ;;  %v3465_v45 = vsel %vm224_vm2, %v3417_v42, 0.0 }
 0x412   : > { %v9592_v16 = vpop.f32.mrf.mxu2  ;;  %v2979_v21 = vpop.f32.mrf.mxu3  ;;  %v3467_v5 = vadd.f32 %v3466_v48, %v3465_v45 }
 0x413   : > { %13471 = vst [vmem:[#allocation53_spill] sm:$0xff] %v9592_v16  ;;  %v3048_v24 = vadd.f32 %v2979_v21, %v2764_v63  ;;  %v3468_v16 = vsel %vm224_vm2, %v3419_v12, 0.0  ;;  %v3422_v21 = vmul.f32 %v3273_v27, %v3273_v27  ;;  %v3320_v63 = vadd.f32 %v3319_v51, %v3318_v8  ;;  %v9616_v45 = vpop.f32.mrf.mxu1 }
 0x414   : > { %v3469_v42 = vadd.f32 %v3468_v16, %v3467_v5  ;;  %v3472_v12 = vsel %vm224_vm2, %v3421_v23, 0.0  ;;  %v3325_v51 = vsel %vm224_vm2, %v3273_v27, 0.0  ;;  %v3424_v16 = vmul.f32 %v9398_v20, %v9398_v20 }
 0x415   : > { %v3322_v19 = vadd.f32 %v3321_v2, %v3320_v63  ;;  %v3474_v8 = vsel %vm224_vm2, %v3422_v21, 0.0  ;;  %v3327_v2 = vsel %vm224_vm2, %v3274_v35, 0.0  ;;  %v3476_v63 = vsel %vm224_vm2, %v3423_v61, 0.0 }
 0x416   : > { %v3471_v48 = vadd.f32 %v3470_v46, %v3469_v42  ;;  %v3277_v46 = vsel %vm341_vm6, %v9411_v17, 0.0  ;;  %v3425_v27 = vmul.f32 %v3276_v34, %v3276_v34  ;;  %v3478_v18 = vsel %vm224_vm2, %v3424_v16, 0.0 }
 0x417   : > { %v3426_v55 = vmul.f32 %v3277_v46, %v3277_v46  ;;  %v3331_v35 = vsel %vm224_vm2, %v3276_v34, 0.0 }
 0x418   : > { %v3179_v36 = vpop.f32.mrf.mxu0  ;;  %v3473_v5 = vadd.f32 %v3472_v12, %v3471_v48  ;;  %v3279_v12 = vsel %vm346_vm7, %v9424_v37, 0.0  ;;  %v3480_v61 = vsel %vm224_vm2, %v3425_v27, 0.0  ;;  %v3427_v48 = vmul.f32 %v9415_v25, %v9415_v25 }
 0x419   : > { %v9614_v41 = vadd.f32 %v3179_v36, %v3048_v24  ;;  %v3324_v24 = vadd.f32 %v3323_v60, %v3322_v19 }
 0x41a   : > { %v2700_v28 = vpop.f32.mrf.mxu2  ;;  %v9625_v23 = vpop.f32.mrf.mxu3  ;;  %v3475_v21 = vadd.f32 %v3474_v8, %v3473_v5  ;;  %v3280_v8 = vsel %vm341_vm6, %v9428_v57, 0.0  ;;  %v3482_v5 = vsel %vm224_vm2, %v3426_v55, 0.0  ;;  %v3337_v55 = vsel %vm224_vm2, %v3279_v12, 0.0 }
 0x41b   : > { %v2766_v36 = vadd.f32 %v2700_v28, %v9269_v62  ;;  %v3326_v42 = vadd.f32 %v3325_v51, %v3324_v24  ;;  %v3333_v24 = vsel %vm224_vm2, %v3277_v46, 0.0  ;;  %v9652_v34 = vpop.f32.mrf.mxu1  ;;  %v3282_v46 = vsel %vm346_vm7, %v9441_v3, 0.0 }
 0x41c   : > { %v3477_v60 = vadd.f32 %v3476_v63, %v3475_v21 }
 0x41d   : > { %v3328_v62 = vadd.f32 %v3327_v2, %v3326_v42  ;;  %v3428_v2 = vmul.f32 %v3279_v12, %v3279_v12 }
 0x41e   : > { %v3479_v51 = vadd.f32 %v3478_v18, %v3477_v60  ;;  %v3335_v18 = vsel %vm224_vm2, %v9415_v25, 0.0  ;;  %v13475_v25 = vld [vmem:[#allocation16_spill] sm:$0xff] }
 0x41f   : > { %v3330_v28 = vadd.f32 %v3329_v40, %v3328_v62  ;;  %v3484_v40 = vsel %vm224_vm2, %v3427_v48, 0.0  ;;  %v3429_v62 = vmul.f32 %v3280_v8, %v3280_v8  ;;  %v3486_v37 = vsel %vm224_vm2, %v3428_v2, 0.0 }
 0x420   : > { %v9639_v19 = vpop.f32.mrf.mxu0  ;;  %v3481_v42 = vadd.f32 %v3480_v61, %v3479_v51  ;;  %v3283_v48 = vsel %vm341_vm6, %v9450_v1, 0.0  ;;  %v3339_v51 = vsel %vm224_vm2, %v3280_v8, 0.0  ;;  %v3285_v8 = vsel %vm346_vm7, %v9463_v31, 0.0 }
 0x421   : > { %v3332_v27 = vadd.f32 %v3331_v35, %v3330_v28  ;;  %v3430_v35 = vmul.f32 %v9437_v10, %v9437_v10 }
 0x422   : > { %v9648_v16 = vpop.f32.mrf.mxu2  ;;  %v2984_v63 = vpop.f32.mrf.mxu3  ;;  %v3483_v57 = vadd.f32 %v3482_v5, %v3481_v42  ;;  %v3431_v5 = vmul.f32 %v3282_v46, %v3282_v46  ;;  %v3341_v42 = vsel %vm224_vm2, %v9437_v10, 0.0  ;;  %v13474_v10 = vld [vmem:[#allocation15_spill] sm:$0xff] }
 0x423   : > { %v3050_v21 = vadd.f32 %v2984_v63, %v2766_v36  ;;  %v3334_v60 = vadd.f32 %v3333_v24, %v3332_v27  ;;  %v3488_v24 = vsel %vm224_vm2, %v3429_v62, 0.0  ;;  %v3433_v62 = vmul.f32 %v9454_v50, %v9454_v50 }
 0x424   : > { %v3485_v61 = vadd.f32 %v3484_v40, %v3483_v57  ;;  %v3490_v57 = vsel %vm224_vm2, %v3430_v35, 0.0 }
 0x425   : > { %v3336_v36 = vadd.f32 %v3335_v18, %v3334_v60  ;;  %v3432_v18 = vmul.f32 %v3283_v48, %v3283_v48 }
 0x426   : > { %v3487_v27 = vadd.f32 %v3486_v37, %v3485_v61  ;;  %v3492_v37 = vsel %vm224_vm2, %v3431_v5, 0.0  ;;  %v3286_v61 = vsel %vm341_vm6, %v9467_v59, 0.0 }
 0x427   : > { %v3338_v12 = vadd.f32 %v3337_v55, %v3336_v36  ;;  %v9685_v55 = vpop.f32.mrf.mxu1 }
 0x428   : > { %v3184_v28 = vpop.f32.mrf.mxu0  ;;  %v3489_v1 = vadd.f32 %v3488_v24, %v3487_v27  ;;  %v3434_v24 = vmul.f32 %v3285_v8, %v3285_v8 }
 0x429   : > { %v9669_v63 = vadd.f32 %v3184_v28, %v3050_v21  ;;  %v3340_v60 = vadd.f32 %v3339_v51, %v3338_v12  ;;  %v3343_v21 = vsel %vm224_vm2, %v3282_v46, 0.0  ;;  %v3345_v28 = vsel %vm224_vm2, %v3283_v48, 0.0  ;;  %v13472_v12 = vld [vmem:[#allocation12_spill] sm:$0xff]  ;;  %v13473_v46 = vld [vmem:[#allocation13_spill] sm:$0xff] }
 0x42a   : > { %v9671_v2 = vpop.f32.mrf.mxu2  ;;  %v9676_v40 = vpop.f32.mrf.mxu3  ;;  %v3491_v35 = vadd.f32 %v3490_v57, %v3489_v1  ;;  %v3494_v51 = vsel %vm224_vm2, %v3432_v18, 0.0  ;;  %v2218_v27 = vadd.f32 %v13473_v46, %v13472_v12  ;;  %v3347_v1 = vsel %vm224_vm2, %v9454_v50, 0.0  ;;  %v13476_v46 = vld [vmem:[#allocation18_spill] sm:$0xff] }
 0x42b   : > { %v3342_v36 = vadd.f32 %v3341_v42, %v3340_v60  ;;  %v2220_v42 = vadd.f32 %v13475_v25, %v13474_v10  ;;  %v3496_v57 = vsel %vm224_vm2, %v3433_v62, 0.0  ;;  %v3435_v60 = vmul.f32 %v3286_v61, %v3286_v61 }
 0x42c   : > { %v3493_v31 = vadd.f32 %v3492_v37, %v3491_v35  ;;  %v3349_v18 = vsel %vm224_vm2, %v3285_v8, 0.0  ;;  %v3436_v25 = vmul.f32 %v9476_v30, %v9476_v30  ;;  %v2755_v10 = vadd.f32 %v9505_v29, %v2218_v27 }
 0x42d   : > { %v3344_v5 = vadd.f32 %v3343_v21, %v3342_v36  ;;  %v3288_v21 = vsel %vm346_vm7, %v9480_v52, 0.0  ;;  %v3498_v36 = vsel %vm224_vm2, %v3434_v24, 0.0  ;;  %v2757_v62 = vadd.f32 %v9521_v32, %v2220_v42 }
 0x42e   : > { %v3495_v59 = vadd.f32 %v3494_v51, %v3493_v31  ;;  %v3289_v8 = vsel %vm341_vm6, %v9489_v43, 0.0  ;;  %v3351_v51 = vsel %vm224_vm2, %v3286_v61, 0.0  ;;  %v3500_v12 = vsel %vm224_vm2, %v3435_v60, 0.0 }
 0x42f   : > { %v3346_v48 = vadd.f32 %v3345_v28, %v3344_v5  ;;  %v3437_v24 = vmul.f32 %v3288_v21, %v3288_v21  ;;  %v13477_v5 = vld [vmem:[#allocation19_spill] sm:$0xff]  ;;  %v3353_v32 = vsel %vm224_vm2, %v9476_v30, 0.0  ;;  %v3502_v27 = vsel %vm224_vm2, %v3436_v25, 0.0 }
 0x430   : > { %v9694_v3 = vpop.f32.mrf.mxu0  ;;  %v3497_v28 = vadd.f32 %v3496_v57, %v3495_v59  ;;  %v2222_v52 = vadd.f32 %v13477_v5, %v13476_v46  ;;  %v3438_v59 = vmul.f32 %v3289_v8, %v3289_v8  ;;  %v3039_v42 = vadd.f32 %v9511_v53, %v2755_v10  ;;  %v9726_v57 = vpop.f32.mrf.mxu1 }
 0x431   : > { %v3348_v31 = vadd.f32 %v3347_v1, %v3346_v48  ;;  %v3041_v1 = vadd.f32 %v9527_v38, %v2757_v62  ;;  %v3291_v48 = vsel %vm346_vm7, %v9503_v49, 0.0  ;;  %v3504_v25 = vsel %vm224_vm2, %v3437_v24, 0.0 }
 0x432   : > { %v9705_v37 = vpop.f32.mrf.mxu2  ;;  %v9712_v35 = vpop.f32.mrf.mxu3  ;;  %v3499_v29 = vadd.f32 %v3498_v36, %v3497_v28  ;;  %v3439_v53 = vmul.f32 %v9494_v13, %v9494_v13  ;;  %v3292_v62 = vsel %vm341_vm6, %v9508_v54, 0.0  ;;  %v3359_v5 = vsel %vm224_vm2, %v9494_v13, 0.0 }
 0x433   : > { %v3350_v50 = vadd.f32 %v3349_v18, %v3348_v31  ;;  %v2759_v18 = vadd.f32 %v9537_v14, %v2222_v52  ;;  %v3355_v31 = vsel %vm224_vm2, %v3288_v21, 0.0  ;;  %v3506_v52 = vsel %vm224_vm2, %v3438_v59, 0.0 }
 0x434   : > { %v3501_v60 = vadd.f32 %v3500_v12, %v3499_v29  ;;  %v3440_v14 = vmul.f32 %v3291_v48, %v3291_v48  ;;  %v9746_v21 = vadd.f32 %v9518_v26, %v3039_v42  ;;  %v3508_v29 = vsel %vm224_vm2, %v3439_v53, 0.0 }
 0x435   : > { %v3352_v61 = vadd.f32 %v3351_v51, %v3350_v50  ;;  %v3357_v50 = vsel %vm224_vm2, %v3289_v8, 0.0  ;;  %v9749_v51 = vadd.f32 %v9534_v58, %v3041_v1  ;;  %v3043_v8 = vadd.f32 %v9543_v6, %v2759_v18 }
 0x436   : > { %v3503_v10 = vadd.f32 %v3502_v27, %v3501_v60  ;;  %v2224_v27 = vadd.f32 %v9229_v0, %v9225_v9  ;;  %v3294_v58 = vsel %vm346_vm7, %v9524_v56, 0.0  ;;  %v3361_v42 = vsel %vm224_vm2, %v3291_v48, 0.0 }
 0x437   : > { %v3354_v38 = vadd.f32 %v3353_v32, %v3352_v61  ;;  %v3441_v32 = vmul.f32 %v3292_v62, %v3292_v62  ;;  %v3510_v1 = vsel %vm224_vm2, %v3440_v14, 0.0  ;;  %v3442_v6 = vmul.f32 %v9746_v21, %v9746_v21 }
 0x438   : > { %v9732_v36 = vpop.f32.mrf.mxu0  ;;  %v3505_v46 = vadd.f32 %v3504_v25, %v3503_v10  ;;  %v3295_v61 = vsel %vm341_vm6, %v9749_v51, 0.0  ;;  %v9770_v9 = vadd.f32 %v9552_v33, %v3043_v8  ;;  %v2761_v0 = vadd.f32 %v9555_v4, %v2224_v27  ;;  %v9779_v10 = vpop.f32.mrf.mxu1 }
 0x439   : > { %v3356_v24 = vadd.f32 %v3355_v31, %v3354_v38  ;;  %v2226_v48 = vadd.f32 %v9247_v22, %v9245_v15  ;;  %v3363_v25 = vsel %vm224_vm2, %v3292_v62, 0.0  ;;  %v3512_v53 = vsel %vm224_vm2, %v3441_v32, 0.0 }
 0x43a   : > { %v9742_v28 = vpop.f32.mrf.mxu2  ;;  %v9751_v12 = vpop.f32.mrf.mxu3  ;;  %v3507_v59 = vadd.f32 %v3506_v52, %v3505_v46  ;;  %13478 = vst [vmem:[#allocation12_spill] sm:$0xff] %v9770_v9  ;;  %v3443_v38 = vmul.f32 %v3294_v58, %v3294_v58  ;;  %v3444_v14 = vmul.f32 %v3295_v61, %v3295_v61  ;;  %v3365_v33 = vsel %vm224_vm2, %v9746_v21, 0.0 }
 0x43b   : > { %v3358_v26 = vadd.f32 %v3357_v50, %v3356_v24  ;;  %v3514_v4 = vsel %vm224_vm2, %v3442_v6, 0.0  ;;  %v2763_v46 = vadd.f32 %v9565_v39, %v2226_v48  ;;  %v3297_v8 = vsel %vm346_vm7, %v9770_v9, 0.0  ;;  %v13481_v48 = vld [vmem:[#allocation11_spill] sm:$0xff] }
 0x43c   : > { %v3509_v18 = vadd.f32 %v3508_v29, %v3507_v59  ;;  %v13479_v29 = vld [vmem:[#allocation21_spill] sm:$0xff]  ;;  %v3367_v27 = vsel %vm224_vm2, %v3294_v58, 0.0  ;;  %v13480_v59 = vld [vmem:[#allocation10_spill] sm:$0xff]  ;;  %v3369_v6 = vsel %vm224_vm2, %v3295_v61, 0.0  ;;  %v13486_v61 = vld [vmem:[#allocation51_spill] sm:$0xff] }
 0x43d   : > { %v3360_v60 = vadd.f32 %v3359_v5, %v3358_v26  ;;  %v3045_v5 = vadd.f32 %v9560_v44, %v2761_v0  ;;  %v2228_v32 = vadd.f32 %v13479_v29, %v9261_v47  ;;  %v3516_v26 = vsel %vm224_vm2, %v3443_v38, 0.0  ;;  %v13482_v0 = vld [vmem:[#allocation50_spill] sm:$0xff]  ;;  %v13487_v29 = vld [vmem:[#allocation23_spill] sm:$0xff] }
 0x43e   : > { %v3511_v52 = vadd.f32 %v3510_v1, %v3509_v18  ;;  %v3445_v39 = vmul.f32 %v13480_v59, %v13480_v59  ;;  %v3446_v18 = vmul.f32 %v3297_v8, %v3297_v8  ;;  %v3298_v44 = vsel %vm341_vm6, %v13481_v48, 0.0 }
 0x43f   : > { %v3362_v50 = vadd.f32 %v3361_v42, %v3360_v60  ;;  %v3518_v60 = vsel %vm224_vm2, %v3444_v14, 0.0  ;;  %v3047_v47 = vadd.f32 %v13482_v0, %v2763_v46  ;;  %v3371_v14 = vsel %vm224_vm2, %v13480_v59, 0.0 }
 0x440   : > { %v9773_v31 = vpop.f32.mrf.mxu0  ;;  %v3513_v62 = vadd.f32 %v3512_v53, %v3511_v52  ;;  %v2231_v46 = vadd.f32 %v9616_v45, %v13487_v29  ;;  %v2180_v48 = vpop.f32.mrf.mxu1 }
 0x441   : > { %v3364_v22 = vadd.f32 %v3363_v25, %v3362_v50  ;;  %v13483_v25 = vld [vmem:[#allocation53_spill] sm:$0xff]  ;;  %v13484_v50 = vld [vmem:[#allocation14_spill] sm:$0xff] }
 0x442   : > { %v9781_v24 = vpop.f32.mrf.mxu2  ;;  %v9787_v15 = vpop.f32.mrf.mxu3  ;;  %v3515_v1 = vadd.f32 %v3514_v4, %v3513_v62  ;;  %v2765_v58 = vadd.f32 %v13483_v25, %v2228_v32  ;;  %v9807_v52 = vadd.f32 %v13484_v50, %v3045_v5  ;;  %v13485_v4 = vld [vmem:[#allocation22_spill] sm:$0xff]  ;;  %v3520_v62 = vsel %vm224_vm2, %v3445_v39, 0.0 }
 0x443   : > { %v3366_v42 = vadd.f32 %v3365_v33, %v3364_v22  ;;  %v2230_v22 = vadd.f32 %v13486_v61, %v13485_v4  ;;  %v3373_v5 = vsel %vm224_vm2, %v3297_v8, 0.0  ;;  %v13489_v61 = vld [vmem:[#allocation9_spill] sm:$0xff] }
 0x444   : > { %v3517_v38 = vadd.f32 %v3516_v26, %v3515_v1  ;;  %v13488_v1 = vld [vmem:[#allocation52_spill] sm:$0xff]  ;;  %v3049_v50 = vadd.f32 %v9625_v23, %v2765_v58  ;;  %v2232_v39 = vadd.f32 %v9652_v34, %v13489_v61  ;;  %v2768_v23 = vadd.f32 %v9671_v2, %v2231_v46 }
 0x445   : > { %v3368_v53 = vadd.f32 %v3367_v27, %v3366_v42  ;;  %v3447_v27 = vmul.f32 %v3298_v44, %v3298_v44  ;;  %v3522_v42 = vsel %vm224_vm2, %v3446_v18, 0.0  ;;  %v9821_v25 = vadd.f32 %v13488_v1, %v3047_v47 }
 0x446   : > { %v3519_v32 = vadd.f32 %v3518_v60, %v3517_v38  ;;  %v13490_v60 = vld [vmem:[#allocation24_spill] sm:$0xff]  ;;  %v3375_v18 = vsel %vm224_vm2, %v3298_v44, 0.0  ;;  %v9843_v44 = vadd.f32 %v9639_v19, %v3049_v50  ;;  %v2769_v29 = vadd.f32 %v9705_v37, %v2232_v39 }
 0x447   : > { %v3370_v0 = vadd.f32 %v3369_v6, %v3368_v53  ;;  %v3448_v6 = vmul.f32 %v9807_v52, %v9807_v52  ;;  %v2233_v8 = vadd.f32 %v9685_v55, %v13490_v60  ;;  %v13491_v53 = vld [vmem:[#allocation17_spill] sm:$0xff]  ;;  %v3524_v34 = vsel %vm224_vm2, %v3447_v27, 0.0 }
 0x448   : > { %v9809_v33 = vpop.f32.mrf.mxu0  ;;  %v3521_v45 = vadd.f32 %v3520_v62, %v3519_v32  ;;  %v3300_v47 = vsel %vm346_vm7, %v13491_v53, 0.0  ;;  %v3377_v62 = vsel %vm224_vm2, %v9807_v52, 0.0  ;;  %v3301_v55 = vsel %vm341_vm6, %v9821_v25, 0.0 }
 0x449   : > { %v3372_v9 = vadd.f32 %v3371_v14, %v3370_v0  ;;  %v2767_v14 = vadd.f32 %v9648_v16, %v2230_v22  ;;  %v13492_v0 = vld [vmem:[#allocation25_spill] sm:$0xff]  ;;  %v3526_v46 = vsel %vm224_vm2, %v3448_v6, 0.0  ;;  %v3449_v32 = vmul.f32 %v3300_v47, %v3300_v47  ;;  %v13493_v22 = vld [vmem:[#allocation26_spill] sm:$0xff] }
 0x44a   : > { %v2715_v26 = vpop.f32.mrf.mxu2  ;;  %v2996_v4 = vpop.f32.mrf.mxu3  ;;  %v3523_v38 = vadd.f32 %v3522_v42, %v3521_v45  ;;  %v2234_v2 = vadd.f32 %v9726_v57, %v13492_v0  ;;  %v2235_v27 = vadd.f32 %v9779_v10, %v13493_v22  ;;  %v3052_v61 = vadd.f32 %v9712_v35, %v2768_v23 }
 0x44b   : > { %v3374_v58 = vadd.f32 %v3373_v5, %v3372_v9  ;;  %v13494_v5 = vld [vmem:[#allocation27_spill] sm:$0xff]  ;;  %v3379_v50 = vsel %vm224_vm2, %v3300_v47, 0.0  ;;  %v3450_v37 = vmul.f32 %v3301_v55, %v3301_v55  ;;  %v3051_v39 = vadd.f32 %v9676_v40, %v2767_v14 }
 0x44c   : > { %v2236_v42 = vadd.f32 %v2180_v48, %v13494_v5  ;;  %v3525_v1 = vadd.f32 %v3524_v34, %v3523_v38  ;;  %v3303_v6 = vsel %vm346_vm7, %v9843_v44, 0.0  ;;  %v3053_v60 = vadd.f32 %v9751_v12, %v2769_v29 }
 0x44d   : > { %v3376_v9 = vadd.f32 %v3375_v18, %v3374_v58  ;;  %v2771_v10 = vadd.f32 %v9781_v24, %v2234_v2  ;;  %v3528_v18 = vsel %vm224_vm2, %v3449_v32, 0.0  ;;  %v3381_v35 = vsel %vm224_vm2, %v3301_v55, 0.0  ;;  %v2183_v24 = vpop.f32.mrf.mxu1 }
 0x44e   : > { %v3527_v45 = vadd.f32 %v3526_v46, %v3525_v1  ;;  %v3451_v47 = vmul.f32 %v9614_v41, %v9614_v41  ;;  %v2770_v40 = vadd.f32 %v9742_v28, %v2233_v8  ;;  %v3304_v58 = vsel %vm341_vm6, %v9669_v63, 0.0 }
 0x44f   : > { %v3378_v19 = vadd.f32 %v3377_v62, %v3376_v9  ;;  %v9869_v38 = vadd.f32 %v9732_v36, %v3052_v61  ;;  %v2772_v12 = vadd.f32 %v2715_v26, %v2235_v27  ;;  %v3530_v34 = vsel %vm224_vm2, %v3450_v37, 0.0 }
 0x450   : > { %v3196_v16 = vpop.f32.mrf.mxu0  ;;  %v3383_v14 = vsel %vm224_vm2, %v9614_v41, 0.0  ;;  %v3452_v62 = vmul.f32 %v3303_v6, %v3303_v6  ;;  %v9875_v55 = vadd.f32 %v9694_v3, %v3051_v39  ;;  %v3529_v28 = vadd.f32 %v3528_v18, %v3527_v45 }
 0x451   : > { %v3380_v23 = vadd.f32 %v3379_v50, %v3378_v19  ;;  %v9878_v29 = vadd.f32 %v9773_v31, %v3053_v60  ;;  %v3055_v0 = vadd.f32 %v2996_v4, %v2771_v10  ;;  %v3532_v36 = vsel %vm224_vm2, %v3451_v47, 0.0 }
 0x452   : > { %v2717_v57 = vpop.f32.mrf.mxu2  ;;  %v2999_v48 = vpop.f32.mrf.mxu3  ;;  %v3385_v26 = vsel %vm224_vm2, %v3303_v6, 0.0  ;;  %v3453_v2 = vmul.f32 %v3304_v58, %v3304_v58  ;;  %v3054_v9 = vadd.f32 %v9787_v15, %v2770_v40  ;;  %v3531_v32 = vadd.f32 %v3530_v34, %v3529_v28  ;;  %v13495_v40 = vld [vmem:[#allocation28_spill] sm:$0xff] }
 0x453   : > { %v3382_v8 = vadd.f32 %v3381_v35, %v3380_v23  ;;  %v3306_v3 = vsel %vm346_vm7, %v9869_v38, 0.0  ;;  %v3056_v27 = vadd.f32 %v2999_v48, %v2772_v12  ;;  %v3534_v5 = vsel %vm224_vm2, %v3452_v62, 0.0 }
 0x454   : > { %v3387_v31 = vsel %vm224_vm2, %v3304_v58, 0.0  ;;  %v3454_v4 = vmul.f32 %v9875_v55, %v9875_v55  ;;  %v2773_v1 = vadd.f32 %v2717_v57, %v2236_v42  ;;  %v3533_v19 = vadd.f32 %v3532_v36, %v3531_v32 }
 0x455   : > { %v3384_v22 = vadd.f32 %v3383_v14, %v3382_v8  ;;  %v3307_v15 = vsel %vm341_vm6, %v9878_v29, 0.0  ;;  %v9893_v37 = vadd.f32 %v3196_v16, %v3055_v0  ;;  %v3536_v45 = vsel %vm224_vm2, %v3453_v2, 0.0 }
 0x456   : > { %v3389_v6 = vsel %vm224_vm2, %v9875_v55, 0.0  ;;  %v3455_v60 = vmul.f32 %v3306_v3, %v3306_v3  ;;  %v9899_v10 = vadd.f32 %v9809_v33, %v3054_v9  ;;  %v3535_v42 = vadd.f32 %v3534_v5, %v3533_v19  ;;  %v2185_v33 = vpop.f32.mrf.mxu1 }
 0x457   : > { %v3386_v50 = vadd.f32 %v3385_v26, %v3384_v22  ;;  %v3538_v18 = vsel %vm224_vm2, %v3454_v4, 0.0  ;;  %v3391_v35 = vsel %vm224_vm2, %v3306_v3, 0.0  ;;  %v3456_v16 = vmul.f32 %v3307_v15, %v3307_v15 }
 0x458   : > { %v3199_v46 = vpop.f32.mrf.mxu0  ;;  %v2237_v23 = vadd.f32 %v2183_v24, %v13495_v40  ;;  %v3537_v58 = vadd.f32 %v3536_v45, %v3535_v42  ;;  %v3309_v34 = vsel %vm346_vm7, %v9893_v37, 0.0  ;;  %v3540_v14 = vsel %vm224_vm2, %v3455_v60, 0.0 }
 0x459   : > { %v3388_v57 = vadd.f32 %v3387_v31, %v3386_v50  ;;  %v9901_v48 = vadd.f32 %v3199_v46, %v3056_v27  ;;  %v3393_v62 = vsel %vm224_vm2, %v3307_v15, 0.0  ;;  %v3457_v28 = vmul.f32 %v9899_v10, %v9899_v10 }
 0x45a   : > { %v2720_v61 = vpop.f32.mrf.mxu2  ;;  %v3001_v39 = vpop.f32.mrf.mxu3  ;;  %v3539_v36 = vadd.f32 %v3538_v18, %v3537_v58  ;;  %v3542_v2 = vsel %vm224_vm2, %v3456_v16, 0.0  ;;  %v3395_v9 = vsel %vm224_vm2, %v9899_v10, 0.0  ;;  %v3458_v46 = vmul.f32 %v3309_v34, %v3309_v34 }
 0x45b   : > { %v3057_v47 = vadd.f32 %v3001_v39, %v2773_v1  ;;  %v3390_v12 = vadd.f32 %v3389_v6, %v3388_v57  ;;  %v3310_v24 = vsel %vm341_vm6, %v9901_v48, 0.0  ;;  %v2774_v26 = vadd.f32 %v2720_v61, %v2237_v23  ;;  %v13496_v6 = vld [vmem:[#allocation29_spill] sm:$0xff] }
 0x45c   : > { %v3541_v3 = vadd.f32 %v3540_v14, %v3539_v36  ;;  %v3544_v31 = vsel %vm224_vm2, %v3457_v28, 0.0  ;;  %v3397_v4 = vsel %vm224_vm2, %v3309_v34, 0.0  ;;  %v3459_v1 = vmul.f32 %v3310_v24, %v3310_v24 }
 0x45d   : > { %v3392_v0 = vadd.f32 %v3391_v35, %v3390_v12  ;;  %v3546_v15 = vsel %vm224_vm2, %v3458_v46, 0.0  ;;  %v3399_v39 = vsel %vm224_vm2, %v3310_v24, 0.0  ;;  %v2238_v60 = vadd.f32 %v2185_v33, %v13496_v6  ;;  %v13497_v46 = vld [vmem:[#allocation30_spill] sm:$0xff] }
 0x45e   : > { %v3543_v19 = vadd.f32 %v3542_v2, %v3541_v3  ;;  %v3548_v18 = vsel %vm224_vm2, %v3459_v1, 0.0  ;;  %v2188_v12 = vpop.f32.mrf.mxu1 }
 0x45f   : > { %v3394_v27 = vadd.f32 %v3393_v62, %v3392_v0 }
 0x460   : > { %v3201_v8 = vpop.f32.mrf.mxu0  ;;  %v3545_v42 = vadd.f32 %v3544_v31, %v3543_v19 }
 0x461   : > { %v9919_v32 = vadd.f32 %v3201_v8, %v3057_v47  ;;  %v3396_v50 = vadd.f32 %v3395_v9, %v3394_v27 }
 0x462   : > { %v2722_v22 = vpop.f32.mrf.mxu2  ;;  %v3004_v5 = vpop.f32.mrf.mxu3  ;;  %v3547_v47 = vadd.f32 %v3546_v15, %v3545_v42 }
 0x463   : > { %v3058_v61 = vadd.f32 %v3004_v5, %v2774_v26  ;;  %v3460_v45 = vmul.f32 %v9919_v32, %v9919_v32  ;;  %v3398_v57 = vadd.f32 %v3397_v4, %v3396_v50  ;;  %v3401_v35 = vsel %vm224_vm2, %v9919_v32, 0.0 }
 0x464   : > { %v2775_v58 = vadd.f32 %v2722_v22, %v2238_v60  ;;  %v3549_v14 = vadd.f32 %v3548_v18, %v3547_v47  ;;  %v2239_v22 = vadd.f32 %v2188_v12, %v13497_v46  ;;  %v13499_v60 = vld [vmem:[#allocation31_spill] sm:$0xff] }
 0x465   : > { %v3400_v40 = vadd.f32 %v3399_v39, %v3398_v57  ;;  %v3550_v34 = vsel %vm224_vm2, %v3460_v45, 0.0 }
 0x466   : > { %v3551_v26 = vadd.f32 %v3550_v34, %v3549_v14  ;;  %v2190_v19 = vpop.f32.mrf.mxu1 }
 0x467   : > { %v3402_v62 = vadd.f32 %v3401_v35, %v3400_v40  ;;  %v2240_v42 = vadd.f32 %v2190_v19, %v13499_v60 }
 0x468   : > { %v3204_v16 = vpop.f32.mrf.mxu0 }
 0x469   : > { %v9931_v23 = vadd.f32 %v3204_v16, %v3058_v61 }
 0x46a   : > { %v3006_v28 = vpop.f32.mrf.mxu3  ;;  %v2725_v36 = vpop.f32.mrf.mxu2 }
 0x46b   : > { %v3312_v33 = vsel %vm346_vm7, %v9931_v23, 0.0  ;;  %v3059_v2 = vadd.f32 %v3006_v28, %v2775_v58  ;;  %v2776_v31 = vadd.f32 %v2725_v36, %v2239_v22 }
 0x46c   : > { %v3403_v8 = vsel %vm224_vm2, %v3312_v33, 0.0  ;;  %v3461_v0 = vmul.f32 %v3312_v33, %v3312_v33 }
 0x46d   : > { %v3404_v24 = vadd.f32 %v3403_v8, %v3402_v62 }
 0x46e   : > { %v3552_v9 = vsel %vm224_vm2, %v3461_v0, 0.0 }
 0x46f   : > { %v3553_v3 = vadd.f32 %v3552_v9, %v3551_v26 }
 0x470   : > { %v3206_v27 = vpop.f32.mrf.mxu0 }
 0x471   : > { %v9940_v5 = vadd.f32 %v3206_v27, %v3059_v2 }
 0x472   : > { %v3009_v1 = vpop.f32.mrf.mxu3  ;;  %v2727_v6 = vpop.f32.mrf.mxu2 }
 0x473   : > { %13498 = vst [vmem:[#allocation13_spill] sm:$0xff] %v9940_v5  ;;  %v3313_v4 = vsel %vm341_vm6, %v9940_v5, 0.0  ;;  %v3060_v39 = vadd.f32 %v3009_v1, %v2776_v31  ;;  %v2777_v16 = vadd.f32 %v2727_v6, %v2240_v42 }
 0x474   : > { %v3405_v50 = vsel %vm224_vm2, %v3313_v4, 0.0  ;;  %v3462_v61 = vmul.f32 %v3313_v4, %v3313_v4 }
 0x475   : > { %v3406_v15 = vadd.f32 %v3405_v50, %v3404_v24 }
 0x476   : > { %v3554_v45 = vsel %vm224_vm2, %v3462_v61, 0.0 }
 0x477   : > { %v3555_v57 = vadd.f32 %v3554_v45, %v3553_v3 }
 0x478   : > { %v3209_v18 = vpop.f32.mrf.mxu0 }
 0x479   : > { %v9948_v35 = vadd.f32 %v3209_v18, %v3060_v39 }
 0x47a   : > { %v3011_v12 = vpop.f32.mrf.mxu3 }
 0x47b   : > { %v3407_v47 = vsel %vm224_vm2, %v9948_v35, 0.0  ;;  %v3463_v40 = vmul.f32 %v9948_v35, %v9948_v35  ;;  %v3061_v14 = vadd.f32 %v3011_v12, %v2777_v16 }
 0x47c   : > { %v3408_v58 = vadd.f32 %v3407_v47, %v3406_v15  ;;  %v4070_v47 = vld [vmem:[%s13197_s2] sm:$0x3] }
 0x47d   : > { %v3556_v34 = vsel %vm224_vm2, %v3463_v40, 0.0  ;;  %v7655_v40 = vld [vmem:[%s13197_s2 + $0xc] sm:$0x3] }
 0x47e   : > { %v3557_v33 = vadd.f32 %v3556_v34, %v3555_v57  ;;  %v13501_v34 = vld [vmem:[#allocation33_spill] sm:$0xff] }
 0x480   : > { %v3211_v62 = vpop.f32.mrf.mxu0 }
 0x481   : > { %v9955_v28 = vadd.f32 %v3211_v62, %v3061_v14 }
 0x483   : > { %v3315_v8 = vsel %vm346_vm7, %v9955_v28, 0.0 }
 0x484   : > { %v3409_v0 = vsel %vm224_vm2, %v3315_v8, 0.0  ;;  %v3464_v36 = vmul.f32 %v3315_v8, %v3315_v8  ;;  %v13503_v8 = vld [vmem:[#allocation35_spill] sm:$0xff] }
 0x485   : > { %v3410_v24 = vadd.f32 %v3409_v0, %v3408_v58  ;;  %v13500_v58 = vld [vmem:[#allocation32_spill] sm:$0xff] }
 0x486   : > { %v3558_v26 = vsel %vm224_vm2, %v3464_v36, 0.0 }
 0x487   : > { %v3411_v2 = vrot.slane %v3410_v24, 4  ;;  %v3559_v9 = vadd.f32 %v3558_v26, %v3557_v33  ;;  %v13502_v33 = vld [vmem:[#allocation34_spill] sm:$0xff] }
 0x489   : > { %v3412_v46 = vadd.f32 %v3411_v2, %v3410_v24  ;;  %v3560_v22 = vrot.slane %v3559_v9, 4  ;;  %v4500_v2 = vsel %vm762_vm0, %v4070_v47, 0  ;;  %v13519_v24 = vld [vmem:[#allocation11_spill] sm:$0xff] }
 0x48a   : > { %4509 = vmatpush.bf16.msrb.mxu2 %v4500_v2 }
 0x48b   : > { %v3413_v3 = vrot.slane %v3412_v46, 2  ;;  %v3561_v27 = vadd.f32 %v3560_v22, %v3559_v9 }
 0x48d   : > { %v3414_v31 = vadd.f32 %v3413_v3, %v3412_v46  ;;  %v3562_v4 = vrot.slane %v3561_v27, 2  ;;  %v13504_v46 = vld [vmem:[#allocation36_spill] sm:$0xff]  ;;  %v13505_v3 = vld [vmem:[#allocation37_spill] sm:$0xff] }
 0x48f   : > { %v3415_v1 = vrot.slane %v3414_v31, 1  ;;  %v3563_v19 = vadd.f32 %v3562_v4, %v3561_v27 }
 0x491   : > { %v3416_v50 = vadd.f32 %v3415_v1, %v3414_v31  ;;  %v3564_v61 = vrot.slane %v3563_v19, 1  ;;  %v13506_v31 = vld [vmem:[#allocation38_spill] sm:$0xff]  ;;  %v4652_v1 = vsel %vm762_vm0, %v7655_v40, 0 }
 0x492   : > { %4661 = vmatpush.bf16.msrb.mxu3 %v4652_v1  ;;  %v13515_v1 = vld [vmem:[#allocation47_spill] sm:$0xff] }
 0x493   : > { %v3565_v15 = vadd.f32 %v3564_v61, %v3563_v19  ;;  %v9962_v39 = vmul.f32 0.00390625, %v3416_v50  ;;  %v13507_v61 = vld [vmem:[#allocation39_spill] sm:$0xff] }
 0x495   : > { %v3567_v45 = vmul.f32 0.00390625, %v3565_v15  ;;  %v3568_v6 = vmul.f32 %v9962_v39, %v9962_v39  ;;  %v3617_v60 = vsub.f32 %v9948_v35, %v9962_v39  ;;  %v3618_v42 = vsub.f32 %v9955_v28, %v9962_v39 }
 0x496   : > { %v3571_v12 = vsub.f32 %v13500_v58, %v9962_v39  ;;  %v3572_v14 = vsub.f32 %v13501_v34, %v9962_v39  ;;  %v3573_v62 = vsub.f32 %v13502_v33, %v9962_v39  ;;  %v3574_v0 = vsub.f32 %v13503_v8, %v9962_v39  ;;  %v13510_v58 = vld [vmem:[#allocation42_spill] sm:$0xff]  ;;  %v13511_v34 = vld [vmem:[#allocation43_spill] sm:$0xff]  ;;  %v13512_v8 = vld [vmem:[#allocation44_spill] sm:$0xff] }
 0x497   : > { %v3569_v57 = vsub.f32 %v3567_v45, %v3568_v6  ;;  %v3575_v22 = vsub.f32 %v13504_v46, %v9962_v39  ;;  %v3576_v27 = vsub.f32 %v13505_v3, %v9962_v39  ;;  %v3577_v4 = vsub.f32 %v13506_v31, %v9962_v39  ;;  %v13508_v6 = vld [vmem:[#allocation40_spill] sm:$0xff]  ;;  %v13513_v46 = vld [vmem:[#allocation45_spill] sm:$0xff]  ;;  %v13514_v3 = vld [vmem:[#allocation46_spill] sm:$0xff] }
 0x498   : > { %v3578_v50 = vsub.f32 %v9398_v20, %v9962_v39  ;;  %v3579_v15 = vsub.f32 %v13507_v61, %v9962_v39  ;;  %v3580_v45 = vsub.f32 %v9411_v17, %v9962_v39  ;;  %v3583_v40 = vsub.f32 %v13510_v58, %v9962_v39 }
 0x499   : > { %v3570_v18 = vmax.f32 %v3569_v57, 0.0  ;;  %v3581_v57 = vsub.f32 %v13508_v6, %v9962_v39  ;;  %v3584_v33 = vsub.f32 %v13511_v34, %v9962_v39  ;;  %v3585_v2 = vsub.f32 %v13512_v8, %v9962_v39  ;;  %v13516_v6 = vld [vmem:[#allocation48_spill] sm:$0xff] }
 0x49a   : > { %v3586_v17 = vsub.f32 %v13513_v46, %v9962_v39  ;;  %v3587_v31 = vsub.f32 %v13514_v3, %v9962_v39  ;;  %v3588_v61 = vsub.f32 %v13515_v1, %v9962_v39  ;;  %v3590_v58 = vsub.f32 %v9476_v30, %v9962_v39 }
 0x49b   : > { %v3619_v16 = vadd.f32 1e-05, %v3570_v18  ;;  %v13509_v18 = vld [vmem:[#allocation41_spill] sm:$0xff]  ;;  %v3592_v8 = vsub.f32 %v9489_v43, %v9962_v39  ;;  %v3593_v46 = vsub.f32 %v9494_v13, %v9962_v39  ;;  %v3594_v3 = vsub.f32 %v9503_v49, %v9962_v39  ;;  %v13518_v49 = vld [vmem:[#allocation12_spill] sm:$0xff] }
 0x49c   : > { %v3582_v47 = vsub.f32 %v13509_v18, %v9962_v39  ;;  %v3589_v18 = vsub.f32 %v13516_v6, %v9962_v39  ;;  %v3595_v1 = vsub.f32 %v9508_v54, %v9962_v39  ;;  %v3596_v30 = vsub.f32 %v9746_v21, %v9962_v39 }
 0x49d   : > { %7845 = vrsqrt.f32 %v3619_v16  ;;  %vm3626_vm8 = vweird.f32 %v3619_v16  ;;  %v3597_v6 = vsub.f32 %v9524_v56, %v9962_v39  ;;  %v3598_v43 = vsub.f32 %v9749_v51, %v9962_v39 }
 0x49e   : > { %v3599_v13 = vsub.f32 %v13480_v59, %v9962_v39  ;;  %v3601_v54 = vsub.f32 %v13519_v24, %v9962_v39  ;;  %v3602_v21 = vsub.f32 %v9807_v52, %v9962_v39  ;;  %v3603_v56 = vsub.f32 %v13491_v53, %v9962_v39 }
 0x49f   : > { %v3604_v36 = vsub.f32 %v9821_v25, %v9962_v39  ;;  %v3605_v51 = vsub.f32 %v9614_v41, %v9962_v39  ;;  %v3606_v59 = vsub.f32 %v9843_v44, %v9962_v39  ;;  %v3607_v24 = vsub.f32 %v9669_v63, %v9962_v39 }
 0x4a0   : > { %v3608_v52 = vsub.f32 %v9875_v55, %v9962_v39  ;;  %v3609_v53 = vsub.f32 %v9869_v38, %v9962_v39  ;;  %v3610_v25 = vsub.f32 %v9878_v29, %v9962_v39  ;;  %v3611_v41 = vsub.f32 %v9899_v10, %v9962_v39 }
 0x4a1   : > { %v3612_v44 = vsub.f32 %v9893_v37, %v9962_v39 }
 0x4a3   : > { %v7846_v9 = vpop.eup %7845 }
 0x4a4   : > { %v3621_v19 = vmul.f32 %v7846_v9, %v3619_v16  ;;  %vm3627_vm9 = vweird.f32 %v7846_v9  ;;  %v3613_v16 = vsub.f32 %v9901_v48, %v9962_v39 }
 0x4a5   : > { %vm3628_vm10 = vmor %vm3626_vm8, %vm3627_vm9 }
 0x4a6   : > { %v3622_v20 = vmul.f32 %v7846_v9, %v3621_v19  ;;  %v13517_v19 = vld [vmem:[#allocation49_spill] sm:$0xff] }
 0x4a7   : > { %v3591_v34 = vsub.f32 %v13517_v19, %v9962_v39  ;;  %v3600_v19 = vsub.f32 %v13518_v49, %v9962_v39 }
 0x4a8   : > { %v3623_v26 = vmul.f32 0.5, %v3622_v20 }
 0x4aa   : > { %v3624_v20 = vsub.f32 1.5, %v3623_v26 }
 0x4ac   : > { %v3625_v26 = vmul.f32 %v7846_v9, %v3624_v20 }
 0x4ae   : > { %v3629_v20 = vsel %vm3628_vm10, %v7846_v9, %v3625_v26 }
 0x4af   : > { %v3676_v63 = vmul.f32 %v3629_v20, %v3617_v60  ;;  %v3677_v38 = vmul.f32 %v3629_v20, %v3618_v42  ;;  %v10077_v55 = vmul.f32 %v3629_v20, %v3571_v12  ;;  %v3631_v29 = vmul.f32 %v3629_v20, %v3572_v14 }
 0x4b0   : > { %v3632_v9 = vmul.f32 %v3629_v20, %v3573_v62  ;;  %v3633_v49 = vmul.f32 %v3629_v20, %v3574_v0  ;;  %v3634_v10 = vmul.f32 %v3629_v20, %v3575_v22  ;;  %v3635_v26 = vmul.f32 %v3629_v20, %v3576_v27 }
 0x4b1   : > { %v3724_v7 = vmax.f32 %v3676_v63, 0.0  ;;  %v3725_v37 = vmax.f32 %v3677_v38, 0.0  ;;  %v3636_v11 = vmul.f32 %v3629_v20, %v3577_v4  ;;  %v10079_v5 = vmul.f32 %v3629_v20, %v3578_v50 }
 0x4b2   : > { %v10081_v48 = vmul.f32 %v3629_v20, %v3579_v15  ;;  %v10083_v35 = vmul.f32 %v3629_v20, %v3580_v45  ;;  %v10085_v60 = vmul.f32 %v3629_v20, %v3581_v57  ;;  %v10087_v28 = vmul.f32 %v3629_v20, %v3582_v47 }
 0x4b3   : > { %3773 = vst.msk [vmem:[#allocation3 + $0x188] sm:$0xff] %vm224_vm2, %v3724_v7  ;;  %v10090_v42 = vmul.f32 %v3629_v20, %v3583_v40  ;;  %v10092_v12 = vmul.f32 %v3629_v20, %v3584_v33  ;;  %v10094_v14 = vmul.f32 %v3629_v20, %v3585_v2  ;;  %v10096_v62 = vmul.f32 %v3629_v20, %v3586_v17 }
 0x4b4   : > { %3774 = vst.msk [vmem:[#allocation3 + $0x190] sm:$0xff] %vm224_vm2, %v3725_v37  ;;  %v10099_v0 = vmul.f32 %v3629_v20, %v3587_v31  ;;  %v10101_v22 = vmul.f32 %v3629_v20, %v3588_v61  ;;  %v10103_v27 = vmul.f32 %v3629_v20, %v3589_v18  ;;  %v10105_v4 = vmul.f32 %v3629_v20, %v3590_v58 }
 0x4b5   : > { %v10107_v50 = vmul.f32 %v3629_v20, %v3591_v34  ;;  %v10109_v7 = vmul.f32 %v3629_v20, %v3592_v8  ;;  %v10111_v15 = vmul.f32 %v3629_v20, %v3593_v46  ;;  %v10113_v45 = vmul.f32 %v3629_v20, %v3594_v3 }
 0x4b6   : > { %v10115_v57 = vmul.f32 %v3629_v20, %v3595_v1  ;;  %v10117_v47 = vmul.f32 %v3629_v20, %v3596_v30  ;;  %v10119_v40 = vmul.f32 %v3629_v20, %v3597_v6  ;;  %v10121_v33 = vmul.f32 %v3629_v20, %v3598_v43 }
 0x4b7   : > { %v10123_v2 = vmul.f32 %v3629_v20, %v3599_v13  ;;  %v10125_v17 = vmul.f32 %v3629_v20, %v3600_v19  ;;  %v10127_v31 = vmul.f32 %v3629_v20, %v3601_v54  ;;  %v10129_v61 = vmul.f32 %v3629_v20, %v3602_v21 }
 0x4b8   : > { %v10131_v18 = vmul.f32 %v3629_v20, %v3603_v56  ;;  %v10133_v58 = vmul.f32 %v3629_v20, %v3604_v36  ;;  %v10135_v34 = vmul.f32 %v3629_v20, %v3605_v51  ;;  %v10137_v8 = vmul.f32 %v3629_v20, %v3606_v59  ;;  %v13522_v51 = vld [vmem:[#allocation13_spill] sm:$0xff] }
 0x4b9   : > { %v10139_v46 = vmul.f32 %v3629_v20, %v3607_v24  ;;  %v10141_v3 = vmul.f32 %v3629_v20, %v3608_v52  ;;  %v10143_v1 = vmul.f32 %v3629_v20, %v3609_v53  ;;  %v10145_v30 = vmul.f32 %v3629_v20, %v3610_v25 }
 0x4ba   : > { %v3822_v6 = vld [vmem:[#allocation3 + $0x18f] sm:$0x1]  ;;  %v10147_v43 = vmul.f32 %v3629_v20, %v3611_v41  ;;  %v10149_v13 = vmul.f32 %v3629_v20, %v3612_v44  ;;  %v10151_v19 = vmul.f32 %v3629_v20, %v3613_v16  ;;  %v13520_v36 = vsub.f32 %v9919_v32, %v9962_v39 }
 0x4bb   : > { %3838 = vst.msk [vmem:[#allocation3 + $0x191] sm:$0x1] %vm273_vm3, %v3822_v6  ;;  %v13521_v21 = vsub.f32 %v9931_v23, %v9962_v39  ;;  %v13523_v59 = vsub.f32 %v13522_v51, %v9962_v39  ;;  %v3679_v52 = vmax.f32 %v3631_v29, 0.0  ;;  %v3680_v53 = vmax.f32 %v3632_v9, 0.0 }
 0x4bc   : > { %v10156_v54 = vmul.f32 %v3629_v20, %v13520_v36  ;;  %v3681_v25 = vmax.f32 %v3633_v49, 0.0  ;;  %v3682_v41 = vmax.f32 %v3634_v10, 0.0  ;;  %v3678_v32 = vmax.f32 %v10077_v55, 0.0 }
 0x4bd   : > { %v10162_v56 = vmul.f32 %v3629_v20, %v13521_v21  ;;  %v10167_v24 = vmul.f32 %v3629_v20, %v13523_v59  ;;  %3728 = vst.msk [vmem:[#allocation3 + $0x20] sm:$0xff] %vm224_vm2, %v3679_v52  ;;  %v3683_v44 = vmax.f32 %v3635_v26, 0.0  ;;  %v3684_v16 = vmax.f32 %v3636_v11, 0.0 }
 0x4be   : > { %3729 = vst.msk [vmem:[#allocation3 + $0x28] sm:$0xff] %vm224_vm2, %v3680_v53  ;;  %v3685_v23 = vmax.f32 %v10079_v5, 0.0  ;;  %v3686_v20 = vmax.f32 %v10081_v48, 0.0  ;;  %v3687_v63 = vmax.f32 %v10083_v35, 0.0  ;;  %v3688_v38 = vmax.f32 %v10085_v60, 0.0 }
 0x4bf   : > { %3730 = vst.msk [vmem:[#allocation3 + $0x30] sm:$0xff] %vm224_vm2, %v3681_v25  ;;  %v3689_v55 = vmax.f32 %v10087_v28, 0.0  ;;  %v3690_v29 = vmax.f32 %v10090_v42, 0.0  ;;  %v3691_v5 = vmax.f32 %v10092_v12, 0.0  ;;  %v3692_v9 = vmax.f32 %v10094_v14, 0.0 }
 0x4c0   : > { %3731 = vst.msk [vmem:[#allocation3 + $0x38] sm:$0xff] %vm224_vm2, %v3682_v41  ;;  %v3693_v49 = vmax.f32 %v10096_v62, 0.0  ;;  %v3694_v37 = vmax.f32 %v10099_v0, 0.0  ;;  %v3695_v35 = vmax.f32 %v10101_v22, 0.0  ;;  %v7680_v28 = vld [vmem:[%s13197_s2 + $0x2] sm:$0x3] }
 0x4c1   : > { %3727 = vst.msk [vmem:[#allocation3 + $0x18] sm:$0xff] %vm224_vm2, %v3678_v32  ;;  %v3696_v42 = vmax.f32 %v10103_v27, 0.0  ;;  %v5080_v62 = vsel %vm762_vm0, %v7680_v28, 0  ;;  %v3697_v0 = vmax.f32 %v10105_v4, 0.0  ;;  %v3698_v22 = vmax.f32 %v10107_v50, 0.0 }
 0x4c2   : > { %3732 = vst.msk [vmem:[#allocation3 + $0x40] sm:$0xff] %vm224_vm2, %v3683_v44  ;;  %5089 = vmatpush.bf16.msrb.mxu0 %v5080_v62  ;;  %v3699_v21 = vmax.f32 %v10109_v7, 0.0  ;;  %v3700_v50 = vmax.f32 %v10111_v15, 0.0  ;;  %v3701_v59 = vmax.f32 %v10113_v45, 0.0  ;;  %v3702_v25 = vmax.f32 %v10115_v57, 0.0 }
 0x4c3   : > { %3733 = vst.msk [vmem:[#allocation3 + $0x48] sm:$0xff] %vm224_vm2, %v3684_v16  ;;  %v3703_v7 = vmax.f32 %v10117_v47, 0.0  ;;  %v3704_v15 = vmax.f32 %v10119_v40, 0.0  ;;  %v3705_v45 = vmax.f32 %v10121_v33, 0.0  ;;  %v3706_v57 = vmax.f32 %v10123_v2, 0.0 }
 0x4c4   : > { %v3807_v39 = vld [vmem:[#allocation3 + $0x27] sm:$0x1]  ;;  %3734 = vst.msk [vmem:[#allocation3 + $0x50] sm:$0xff] %vm224_vm2, %v3685_v23  ;;  %v3707_v47 = vmax.f32 %v10125_v17, 0.0  ;;  %v3708_v32 = vmax.f32 %v10127_v31, 0.0  ;;  %v3709_v40 = vmax.f32 %v10129_v61, 0.0 }
 0x4c5   : > { %3823 = vst.msk [vmem:[#allocation3 + $0x29] sm:$0x1] %vm273_vm3, %v3807_v39  ;;  %v3710_v33 = vmax.f32 %v10131_v18, 0.0  ;;  %v3711_v2 = vmax.f32 %v10133_v58, 0.0  ;;  %v3712_v17 = vmax.f32 %v10135_v34, 0.0  ;;  %v3713_v31 = vmax.f32 %v10137_v8, 0.0 }
 0x4c6   : > { %v3776_v11 = vld [vmem:[#allocation3 + $0x32] sm:$0x1]  ;;  %3735 = vst.msk [vmem:[#allocation3 + $0x58] sm:$0xff] %vm224_vm2, %v3686_v20  ;;  %v3714_v61 = vmax.f32 %v10139_v46, 0.0  ;;  %v3715_v18 = vmax.f32 %v10141_v3, 0.0  ;;  %v3716_v58 = vmax.f32 %v10143_v1, 0.0 }
 0x4c7   : > { %3792 = vst.msk [vmem:[#allocation3 + $0x30] sm:$0x1] %vm273_vm3, %v3776_v11  ;;  %v10194_v26 = vld [vmem:[#allocation3 + $0x38] sm:$0xff]  ;;  %v3717_v34 = vmax.f32 %v10145_v30, 0.0  ;;  %v3718_v8 = vmax.f32 %v10147_v43, 0.0  ;;  %v3719_v46 = vmax.f32 %v10149_v13, 0.0 }
 0x4c8   : > { %3736 = vst.msk [vmem:[#allocation3 + $0x60] sm:$0xff] %vm224_vm2, %v3687_v63  ;;  %v3915_v14 = vrot.slane %v10194_v26, 7  ;;  %v3720_v3 = vmax.f32 %v10151_v19, 0.0  ;;  %v3721_v1 = vmax.f32 %v10156_v54, 0.0  ;;  %v3722_v30 = vmax.f32 %v10162_v56, 0.0  ;;  %v10295_v16 = vld [vmem:[#allocation3 + $0x20] sm:$0xff] }
 0x4c9   : > { %3737 = vst.msk [vmem:[#allocation3 + $0x68] sm:$0xff] %vm224_vm2, %v3688_v38  ;;  %v3723_v43 = vmax.f32 %v10167_v24, 0.0  ;;  %v3808_v13 = vld [vmem:[#allocation3 + $0x3f] sm:$0x1]  ;;  %v3775_v19 = vld [vmem:[#allocation3 + $0x1a] sm:$0x1] }
 0x4ca   : > { %13524 = vst [vmem:[#allocation15_spill] sm:$0xff] %v10194_v26  ;;  %v3777_v54 = vld [vmem:[#allocation3 + $0x4a] sm:$0x1]  ;;  %v3912_v11 = vrot.slane %v10295_v16, 7 }
 0x4cb   : > { %3738 = vst.msk [vmem:[#allocation3 + $0x70] sm:$0xff] %vm224_vm2, %v3689_v55 }
 0x4cc   : > { %v10192_v10 = vld [vmem:[#allocation3 + $0x28] sm:$0xff]  ;;  %3739 = vst.msk [vmem:[#allocation3 + $0x78] sm:$0xff] %vm224_vm2, %v3690_v29 }
 0x4cd   : > { %v3913_v48 = vrot.slane %v10192_v10, 7  ;;  %3740 = vst.msk [vmem:[#allocation3 + $0x80] sm:$0xff] %vm224_vm2, %v3691_v5 }
 0x4ce   : > { %v10201_v60 = vld [vmem:[#allocation3 + $0x30] sm:$0xff]  ;;  %3741 = vst.msk [vmem:[#allocation3 + $0x88] sm:$0xff] %vm224_vm2, %v3692_v9 }
 0x4cf   : > { %13525 = vst [vmem:[#allocation16_spill] sm:$0xff] %v10201_v60  ;;  %v3914_v12 = vrot.slane %v10201_v60, 7  ;;  %v3778_v56 = vld [vmem:[#allocation3 + $0x62] sm:$0x1] }
 0x4d0   : > { %3742 = vst.msk [vmem:[#allocation3 + $0x90] sm:$0xff] %vm224_vm2, %v3693_v49 }
 0x4d1   : > { %v4008_v27 = vsel %vm458_vm4, %v3914_v12, %v3915_v14  ;;  %v4009_v36 = vsel %vm458_vm4, %v3913_v48, %v3914_v12  ;;  %3743 = vst.msk [vmem:[#allocation3 + $0x98] sm:$0xff] %vm224_vm2, %v3694_v37  ;;  %v4010_v37 = vsel %vm458_vm4, %v3912_v11, %v3913_v48 }
 0x4d2   : > { %v4022_v4 = vpack.c.bf16 %v4009_v36, %v4009_v36  ;;  %v4023_v51 = vpack.c.bf16 %v4008_v27, %v4008_v27  ;;  %3744 = vst.msk [vmem:[#allocation3 + $0xa0] sm:$0xff] %vm224_vm2, %v3695_v35  ;;  %v4835_v35 = vpack.c.bf16 %v10295_v16, %v10295_v16 }
 0x4d3   : > { %3745 = vst.msk [vmem:[#allocation3 + $0xa8] sm:$0xff] %vm224_vm2, %v3696_v42  ;;  %v3779_v24 = vld [vmem:[#allocation3 + $0x7a] sm:$0x1] }
 0x4d4   : > { %v10229_v52 = vunpack.c.l.b16 %v4022_v4  ;;  %v10231_v53 = vunpack.c.l.b16 %v4023_v51  ;;  %3746 = vst.msk [vmem:[#allocation3 + $0xb0] sm:$0xff] %vm224_vm2, %v3697_v0 }
 0x4d5   : > { %3747 = vst.msk [vmem:[#allocation3 + $0xb8] sm:$0xff] %vm224_vm2, %v3698_v22 }
 0x4d6   : > { %v10239_v41 = vpack.c.b16 %v10231_v53, %v10229_v52  ;;  %3748 = vst.msk [vmem:[#allocation3 + $0xc0] sm:$0xff] %vm224_vm2, %v3699_v21 }
 0x4d7   : > { %3749 = vst.msk [vmem:[#allocation3 + $0xc8] sm:$0xff] %vm224_vm2, %v3700_v50  ;;  %v3780_v44 = vld [vmem:[#allocation3 + $0x92] sm:$0x1]  ;;  %v4021_v50 = vpack.c.bf16 %v4010_v37, %v4010_v37 }
 0x4d8   : > { %7656 = vmatmul.msk.bf16.vlgmr.msrb.gmra.mxu3 %vm224_vm2, %v10239_v41  ;;  %3750 = vst.msk [vmem:[#allocation3 + $0xd0] sm:$0xff] %vm224_vm2, %v3701_v59 }
 0x4d9   : > { %3751 = vst.msk [vmem:[#allocation3 + $0xd8] sm:$0xff] %vm224_vm2, %v3702_v25  ;;  %v10339_v25 = vunpack.c.l.b16 %v4835_v35 }
 0x4da   : > { %3752 = vst.msk [vmem:[#allocation3 + $0xe0] sm:$0xff] %vm224_vm2, %v3703_v7  ;;  %v3781_v23 = vld [vmem:[#allocation3 + $0xaa] sm:$0x1] }
 0x4db   : > { %3753 = vst.msk [vmem:[#allocation3 + $0xe8] sm:$0xff] %vm224_vm2, %v3704_v15 }
 0x4dc   : > { %3754 = vst.msk [vmem:[#allocation3 + $0xf0] sm:$0xff] %vm224_vm2, %v3705_v45 }
 0x4dd   : > { %3755 = vst.msk [vmem:[#allocation3 + $0xf8] sm:$0xff] %vm224_vm2, %v3706_v57  ;;  %v3782_v39 = vld [vmem:[#allocation3 + $0xc2] sm:$0x1]  ;;  %v10344_v57 = vunpack.c.l.b16 %v4021_v50 }
 0x4de   : > { %3756 = vst.msk [vmem:[#allocation3 + $0x100] sm:$0xff] %vm224_vm2, %v3707_v47  ;;  %v3809_v47 = vld [vmem:[#allocation3 + $0x57] sm:$0x1] }
 0x4df   : > { %3757 = vst.msk [vmem:[#allocation3 + $0x108] sm:$0xff] %vm224_vm2, %v3708_v32 }
 0x4e0   : > { %3758 = vst.msk [vmem:[#allocation3 + $0x110] sm:$0xff] %vm224_vm2, %v3709_v40  ;;  %v3783_v20 = vld [vmem:[#allocation3 + $0xda] sm:$0x1] }
 0x4e1   : > { %3759 = vst.msk [vmem:[#allocation3 + $0x118] sm:$0xff] %vm224_vm2, %v3710_v33 }
 0x4e2   : > { %3760 = vst.msk [vmem:[#allocation3 + $0x120] sm:$0xff] %vm224_vm2, %v3711_v2  ;;  %v3810_v2 = vld [vmem:[#allocation3 + $0x6f] sm:$0x1] }
 0x4e3   : > { %3761 = vst.msk [vmem:[#allocation3 + $0x128] sm:$0xff] %vm224_vm2, %v3712_v17  ;;  %v3784_v38 = vld [vmem:[#allocation3 + $0xf2] sm:$0x1]  ;;  %v4170_v17 = vpack.c.b16 %v10229_v52, %v10344_v57  ;;  %v4838_v52 = vpack.c.bf16 %v10194_v26, %v10194_v26 }
 0x4e4   : > { %3762 = vst.msk [vmem:[#allocation3 + $0x130] sm:$0xff] %vm224_vm2, %v3713_v31  ;;  %v3811_v31 = vld [vmem:[#allocation3 + $0x87] sm:$0x1] }
 0x4e5   : > { %3763 = vst.msk [vmem:[#allocation3 + $0x138] sm:$0xff] %vm224_vm2, %v3714_v61 }
 0x4e6   : > { %3764 = vst.msk [vmem:[#allocation3 + $0x140] sm:$0xff] %vm224_vm2, %v3715_v18  ;;  %v3785_v5 = vld [vmem:[#allocation3 + $0x10a] sm:$0x1]  ;;  %v3812_v18 = vld [vmem:[#allocation3 + $0x9f] sm:$0x1] }
 0x4e7   : > { %3765 = vst.msk [vmem:[#allocation3 + $0x148] sm:$0xff] %vm224_vm2, %v3716_v58  ;;  %v3813_v58 = vld [vmem:[#allocation3 + $0xb7] sm:$0x1] }
 0x4e8   : > { %3766 = vst.msk [vmem:[#allocation3 + $0x150] sm:$0xff] %vm224_vm2, %v3717_v34 }
 0x4e9   : > { %3767 = vst.msk [vmem:[#allocation3 + $0x158] sm:$0xff] %vm224_vm2, %v3718_v8  ;;  %v3786_v28 = vld [vmem:[#allocation3 + $0x122] sm:$0x1]  ;;  %v10364_v8 = vld [vmem:[#allocation3 + $0x50] sm:$0xff] }
 0x4ea   : > { %3768 = vst.msk [vmem:[#allocation3 + $0x160] sm:$0xff] %vm224_vm2, %v3719_v46  ;;  %v3814_v46 = vld [vmem:[#allocation3 + $0xcf] sm:$0x1] }
 0x4eb   : > { %3769 = vst.msk [vmem:[#allocation3 + $0x168] sm:$0xff] %vm224_vm2, %v3720_v3  ;;  %v3815_v3 = vld [vmem:[#allocation3 + $0xe7] sm:$0x1] }
 0x4ec   : > { %3770 = vst.msk [vmem:[#allocation3 + $0x170] sm:$0xff] %vm224_vm2, %v3721_v1  ;;  %v3787_v0 = vld [vmem:[#allocation3 + $0x13a] sm:$0x1]  ;;  %v3816_v1 = vld [vmem:[#allocation3 + $0xff] sm:$0x1] }
 0x4ed   : > { %3771 = vst.msk [vmem:[#allocation3 + $0x178] sm:$0xff] %vm224_vm2, %v3722_v30  ;;  %v3918_v30 = vrot.slane %v10364_v8, 7 }
 0x4ee   : > { %3772 = vst.msk [vmem:[#allocation3 + $0x180] sm:$0xff] %vm224_vm2, %v3723_v43  ;;  %v3817_v43 = vld [vmem:[#allocation3 + $0x117] sm:$0x1] }
 0x4ef   : > { %3824 = vst.msk [vmem:[#allocation3 + $0x41] sm:$0x1] %vm273_vm3, %v3808_v13  ;;  %v3788_v21 = vld [vmem:[#allocation3 + $0x152] sm:$0x1]  ;;  %v7705_v13 = vld [vmem:[%s13197_s2 + $0x8] sm:$0x3] }
 0x4f0   : > { %3843 = vst.msk [vmem:[#allocation3] sm:$0xff] %vm224_vm2, %v10201_v60 }
 0x4f1   : > { %3844 = vst.msk [vmem:[#allocation3 + $0x8] sm:$0xff] %vm224_vm2, %v10194_v26 }
 0x4f2   : > { %3791 = vst.msk [vmem:[#allocation3 + $0x18] sm:$0x1] %vm273_vm3, %v3775_v19  ;;  %v3789_v59 = vld [vmem:[#allocation3 + $0x16a] sm:$0x1]  ;;  %v3818_v19 = vld [vmem:[#allocation3 + $0x12f] sm:$0x1] }
 0x4f3   : > { %3793 = vst.msk [vmem:[#allocation3 + $0x48] sm:$0x1] %vm273_vm3, %v3777_v54  ;;  %v5364_v54 = vsel %vm762_vm0, %v7705_v13, 0 }
 0x4f4   : > { %3794 = vst.msk [vmem:[#allocation3 + $0x60] sm:$0x1] %vm273_vm3, %v3778_v56  ;;  %5373 = vmatpush.bf16.msrb.mxu1 %v5364_v54 }
 0x4f5   : > { %3795 = vst.msk [vmem:[#allocation3 + $0x78] sm:$0x1] %vm273_vm3, %v3779_v24  ;;  %v3790_v7 = vld [vmem:[#allocation3 + $0x182] sm:$0x1]  ;;  %v3819_v24 = vld [vmem:[#allocation3 + $0x147] sm:$0x1] }
 0x4f6   : > { %3796 = vst.msk [vmem:[#allocation3 + $0x90] sm:$0x1] %vm273_vm3, %v3780_v44  ;;  %v10300_v63 = vld [vmem:[#allocation3 + $0x40] sm:$0xff] }
 0x4f7   : > { %13527 = vst [vmem:[#allocation18_spill] sm:$0xff] %v10300_v63  ;;  %v10303_v55 = vld [vmem:[#allocation3] sm:$0xff]  ;;  %v3916_v29 = vrot.slane %v10300_v63, 7 }
 0x4f8   : > { %13528 = vst [vmem:[#allocation19_spill] sm:$0xff] %v10303_v55  ;;  %v10307_v9 = vld [vmem:[#allocation3 + $0x8] sm:$0xff]  ;;  %v4831_v49 = vpack.c.bf16 %v10303_v55, %v10303_v55 }
 0x4f9   : > { %3797 = vst.msk [vmem:[#allocation3 + $0xa8] sm:$0x1] %vm273_vm3, %v3781_v23  ;;  %v4832_v42 = vpack.c.bf16 %v10307_v9, %v10307_v9  ;;  %v10323_v12 = vld [vmem:[#allocation3 + $0x18] sm:$0xff]  ;;  %v4007_v62 = vsel %vm458_vm4, %v3915_v14, %v3916_v29 }
 0x4fa   : > { %3798 = vst.msk [vmem:[#allocation3 + $0xc0] sm:$0x1] %vm273_vm3, %v3782_v39  ;;  %v4935_v22 = vunpack.c.l.b16 %v4831_v49  ;;  %v10330_v48 = vld [vmem:[#allocation3 + $0x48] sm:$0xff]  ;;  %v4024_v27 = vpack.c.bf16 %v4007_v62, %v4007_v62  ;;  %v4834_v36 = vpack.c.bf16 %v10323_v12, %v10323_v12  ;;  %v3820_v23 = vld [vmem:[#allocation3 + $0x15f] sm:$0x1]  ;;  %v3911_v62 = vrot.slane %v10323_v12, 7 }
 0x4fb   : > { %3799 = vst.msk [vmem:[#allocation3 + $0xd8] sm:$0x1] %vm273_vm3, %v3783_v20  ;;  %v4936_v4 = vunpack.c.l.b16 %v4832_v42  ;;  %v3917_v51 = vrot.slane %v10330_v48, 7  ;;  %v3821_v20 = vld [vmem:[#allocation3 + $0x177] sm:$0x1]  ;;  %v10399_v42 = vld [vmem:[#allocation3 + $0x60] sm:$0xff] }
 0x4fc   : > { %3800 = vst.msk [vmem:[#allocation3 + $0xf0] sm:$0x1] %vm273_vm3, %v3784_v38  ;;  %v10337_v14 = vunpack.c.l.b16 %v4834_v36  ;;  %v10347_v40 = vunpack.c.l.b16 %v4024_v27  ;;  %v3920_v27 = vrot.slane %v10399_v42, 7  ;;  %v4011_v12 = vsel %vm458_vm4, %v3911_v62, %v3912_v11 }
 0x4fd   : > { %3801 = vst.msk [vmem:[#allocation3 + $0x108] sm:$0x1] %vm273_vm3, %v3785_v5  ;;  %v4983_v15 = vpack.c.b16 %v4936_v4, %v4935_v22  ;;  %v4006_v45 = vsel %vm458_vm4, %v3916_v29, %v3917_v51  ;;  %v4005_v56 = vsel %vm458_vm4, %v3917_v51, %v3918_v30  ;;  %v3848_v29 = vld [vmem:[#allocation3 + $0x170] sm:$0xff]  ;;  %v10406_v22 = vld [vmem:[#allocation3 + $0x68] sm:$0xff]  ;;  %v3909_v51 = vrot.slane %v10307_v9, 7 }
 0x4fe   : > { %3802 = vst.msk [vmem:[#allocation3 + $0x120] sm:$0x1] %vm273_vm3, %v3786_v28  ;;  %v4025_v32 = vpack.c.bf16 %v4006_v45, %v4006_v45  ;;  %v4026_v38 = vpack.c.bf16 %v4005_v56, %v4005_v56  ;;  %v3921_v4 = vrot.slane %v10406_v22, 7  ;;  %v4020_v45 = vpack.c.bf16 %v4011_v12, %v4011_v12 }
 0x4ff   : > { %13529 = vst [vmem:[#allocation21_spill] sm:$0xff] %v10337_v14  ;;  %7681 = vmatmul.msk.bf16.vlgmr.msrb.gmra.mxu0 %vm224_vm2, %v4983_v15 }
 0x500   : > { %13530 = vst [vmem:[#allocation10_spill] sm:$0xff] %v10339_v25  ;;  %v10356_v61 = vunpack.c.l.b16 %v4025_v32  ;;  %v10392_v35 = vunpack.c.l.b16 %v4026_v38  ;;  %v4002_v15 = vsel %vm458_vm4, %v3920_v27, %v3921_v4 }
 0x501   : > { %3803 = vst.msk [vmem:[#allocation3 + $0x138] sm:$0x1] %vm273_vm3, %v3787_v0 }
 0x502   : > { %3804 = vst.msk [vmem:[#allocation3 + $0x150] sm:$0x1] %vm273_vm3, %v3788_v21  ;;  %v10362_v34 = vpack.c.b16 %v10356_v61, %v10347_v40  ;;  %v3908_v21 = vrot.slane %v10303_v55, 7 }
 0x503   : > { %3805 = vst.msk [vmem:[#allocation3 + $0x168] sm:$0x1] %vm273_vm3, %v3789_v59 }
 0x504   : > { %3806 = vst.msk [vmem:[#allocation3 + $0x180] sm:$0x1] %vm273_vm3, %v3790_v7  ;;  %7657 = vmatmul.msk.bf16.gmra.mxu3 %vm224_vm2, %v10362_v34 }
 0x505   : > { %3825 = vst.msk [vmem:[#allocation3 + $0x59] sm:$0x1] %vm273_vm3, %v3809_v47  ;;  %v4014_v47 = vsel %vm458_vm4, %v3908_v21, %v3909_v51 }
 0x506   : > { %3826 = vst.msk [vmem:[#allocation3 + $0x71] sm:$0x1] %vm273_vm3, %v3810_v2 }
 0x507   : > { %3827 = vst.msk [vmem:[#allocation3 + $0x89] sm:$0x1] %vm273_vm3, %v3811_v31 }
 0x508   : > { %3828 = vst.msk [vmem:[#allocation3 + $0xa1] sm:$0x1] %vm273_vm3, %v3812_v18  ;;  %v4029_v18 = vpack.c.bf16 %v4002_v15, %v4002_v15 }
 0x509   : > { %3829 = vst.msk [vmem:[#allocation3 + $0xb9] sm:$0x1] %vm273_vm3, %v3813_v58 }
 0x50a   : > { %3830 = vst.msk [vmem:[#allocation3 + $0xd1] sm:$0x1] %vm273_vm3, %v3814_v46  ;;  %v3847_v37 = vld [vmem:[#allocation3 + $0x168] sm:$0xff]  ;;  %v10442_v54 = vunpack.c.l.b16 %v4029_v18 }
 0x50b   : > { %3831 = vst.msk [vmem:[#allocation3 + $0xe9] sm:$0x1] %vm273_vm3, %v3815_v3  ;;  %v10433_v3 = vunpack.c.l.b16 %v4020_v45 }
 0x50c   : > { %3832 = vst.msk [vmem:[#allocation3 + $0x101] sm:$0x1] %vm273_vm3, %v3816_v1  ;;  %v10381_v44 = vld [vmem:[#allocation3 + $0x58] sm:$0xff] }
 0x50d   : > { %3833 = vst.msk [vmem:[#allocation3 + $0x119] sm:$0x1] %vm273_vm3, %v3817_v43  ;;  %v3919_v39 = vrot.slane %v10381_v44, 7 }
 0x50e   : > { %3834 = vst.msk [vmem:[#allocation3 + $0x131] sm:$0x1] %vm273_vm3, %v3818_v19 }
 0x50f   : > { %3835 = vst.msk [vmem:[#allocation3 + $0x149] sm:$0x1] %vm273_vm3, %v3819_v24  ;;  %v4004_v5 = vsel %vm458_vm4, %v3918_v30, %v3919_v39  ;;  %v4003_v16 = vsel %vm458_vm4, %v3919_v39, %v3920_v27  ;;  %v4017_v30 = vpack.c.bf16 %v4014_v47, %v4014_v47  ;;  %v10449_v39 = vld [vmem:[#allocation3 + $0x70] sm:$0xff]  ;;  %v10483_v47 = vld [vmem:[#allocation3 + $0x88] sm:$0xff] }
 0x510   : > { %3836 = vst.msk [vmem:[#allocation3 + $0x161] sm:$0x1] %vm273_vm3, %v3820_v23  ;;  %v4027_v49 = vpack.c.bf16 %v4004_v5, %v4004_v5  ;;  %v4028_v31 = vpack.c.bf16 %v4003_v16, %v4003_v16  ;;  %v4836_v5 = vpack.c.bf16 %v10192_v10, %v10192_v10 }
 0x511   : > { %3837 = vst.msk [vmem:[#allocation3 + $0x179] sm:$0x1] %vm273_vm3, %v3821_v20  ;;  %v4401_v23 = vunpack.c.l.b16 %v4017_v30  ;;  %v10451_v20 = vld [vmem:[#allocation3 + $0x78] sm:$0xff] }
 0x512   : > { %3852 = vst.msk [vmem:[#allocation3 + $0x1a0] sm:$0xff] %vm224_vm2, %v3848_v29  ;;  %v10394_v28 = vunpack.c.l.b16 %v4027_v49  ;;  %v10440_v19 = vunpack.c.l.b16 %v4028_v31  ;;  %v3922_v49 = vrot.slane %v10449_v39, 7  ;;  %v10464_v27 = vunpack.c.l.b16 %v4836_v5 }
 0x513   : > { %3845 = vst.msk [vmem:[#allocation3 + $0x10] sm:$0xff] %vm224_vm2, %v10300_v63 }
 0x514   : > { %3851 = vst.msk [vmem:[#allocation3 + $0x198] sm:$0xff] %vm224_vm2, %v3847_v37  ;;  %v10404_v0 = vpack.c.b16 %v10394_v28, %v10392_v35  ;;  %v10455_v29 = vpack.c.b16 %v10442_v54, %v10440_v19  ;;  %v3923_v37 = vrot.slane %v10451_v20, 7  ;;  %v4985_v15 = vpack.c.b16 %v10464_v27, %v10339_v25 }
 0x515   : > { %13532 = vst [vmem:[#allocation53_spill] sm:$0xff] %v10464_v27 }
 0x516   : > { %7658 = vmatmul.msk.bf16.gmra.mxu3 %vm224_vm2, %v10404_v0 }
 0x518   : > { %v3849_v36 = vld [vmem:[#allocation3 + $0x178] sm:$0xff] }
 0x519   : > { %3853 = vst.msk [vmem:[#allocation3 + $0x1a8] sm:$0xff] %vm224_vm2, %v3849_v36  ;;  %v4000_v36 = vsel %vm458_vm4, %v3922_v49, %v3923_v37 }
 0x51a   : > { %v10419_v50 = vld [vmem:[#allocation3 + $0x10] sm:$0xff] }
 0x51b   : > { %13531 = vst [vmem:[#allocation50_spill] sm:$0xff] %v10419_v50  ;;  %v3910_v59 = vrot.slane %v10419_v50, 7  ;;  %v4833_v7 = vpack.c.bf16 %v10419_v50, %v10419_v50 }
 0x51d   : > { %v4012_v11 = vsel %vm458_vm4, %v3910_v59, %v3911_v62  ;;  %v4937_v32 = vunpack.c.l.b16 %v4833_v7  ;;  %v4013_v10 = vsel %vm458_vm4, %v3909_v51, %v3910_v59  ;;  %v4031_v7 = vpack.c.bf16 %v4000_v36, %v4000_v36  ;;  %v10489_v59 = vld [vmem:[#allocation3 + $0x80] sm:$0xff] }
 0x51e   : > { %v4019_v2 = vpack.c.bf16 %v4012_v11, %v4012_v11  ;;  %v4018_v16 = vpack.c.bf16 %v4013_v10, %v4013_v10  ;;  %v4839_v36 = vpack.c.bf16 %v10300_v63, %v10300_v63 }
 0x51f   : > { %v4984_v58 = vpack.c.b16 %v10337_v14, %v4937_v32  ;;  %v10477_v11 = vunpack.c.l.b16 %v4031_v7  ;;  %v4837_v32 = vpack.c.bf16 %v10201_v60, %v10201_v60 }
 0x520   : > { %v4121_v46 = vunpack.c.l.b16 %v4019_v2  ;;  %v10435_v1 = vld [vmem:[#allocation3 + $0x1a8] sm:$0xff]  ;;  %v3925_v2 = vrot.slane %v10483_v47, 7 }
 0x521   : > { %v13253_v43 = vrot.slane %v10435_v1, 7  ;;  %7682 = vmatmul.msk.bf16.gmra.mxu0 %vm224_vm2, %v4984_v58  ;;  %v10500_v18 = vunpack.c.l.b16 %v4837_v32  ;;  %v5744_v32 = vrot.slane %v10307_v9, 1  ;;  %v10568_v9 = vld [vmem:[#allocation3 + $0xa0] sm:$0xff] }
 0x522   : > { %v4169_v13 = vpack.c.b16 %v10433_v3, %v4121_v46 }
 0x523   : > { %v4015_v56 = vsel %vm458_vm4, %v13253_v43, %v3908_v21  ;;  %v4001_v21 = vsel %vm458_vm4, %v3921_v4, %v3922_v49  ;;  %v4402_v4 = vunpack.c.l.b16 %v4018_v16  ;;  %13533 = vst [vmem:[#allocation14_spill] sm:$0xff] %v10500_v18  ;;  %v10521_v49 = vld [vmem:[#allocation3 + $0x90] sm:$0xff]  ;;  %v10705_v43 = vld [vmem:[#allocation3 + $0x168] sm:$0xff] }
 0x524   : > { %7607 = vmatmul.msk.bf16.vlgmr.msra.gmra.mxu1 %vm224_vm2, %v4169_v13  ;;  %v4016_v24 = vpack.c.bf16 %v4015_v56, %v4015_v56  ;;  %v4030_v12 = vpack.c.bf16 %v4001_v21, %v4001_v21  ;;  %v10506_v13 = vunpack.c.l.b16 %v4838_v52  ;;  %v4405_v21 = vpack.c.b16 %v10344_v57, %v10433_v3 }
 0x525   : > { %v4404_v31 = vpack.c.b16 %v4121_v46, %v4402_v4  ;;  %v13251_v57 = vrot.slane %v10303_v55, 1  ;;  %v10717_v55 = vld [vmem:[#allocation3 + $0x170] sm:$0xff] }
 0x526   : > { %v4400_v38 = vunpack.c.l.b16 %v4016_v24  ;;  %7659 = vmatmul.msk.bf16.gmra.mxu3 %vm224_vm2, %v10455_v29  ;;  %v10475_v45 = vunpack.c.l.b16 %v4030_v12  ;;  %13534 = vst [vmem:[#allocation22_spill] sm:$0xff] %v10506_v13  ;;  %v10510_v24 = vpack.c.b16 %v10506_v13, %v10500_v18  ;;  %v10540_v12 = vunpack.c.l.b16 %v4839_v36 }
 0x527   : > { %v3928_v36 = vrot.slane %v10568_v9, 7 }
 0x528   : > { %v4403_v62 = vpack.c.b16 %v4401_v23, %v4400_v38  ;;  %v10487_v51 = vpack.c.b16 %v10477_v11, %v10475_v45  ;;  %13535 = vst [vmem:[#allocation51_spill] sm:$0xff] %v10510_v24  ;;  %v4171_v23 = vpack.c.b16 %v10347_v40, %v10231_v53  ;;  %v4840_v53 = vpack.c.bf16 %v10330_v48, %v10330_v48 }
 0x529   : > { %v3926_v40 = vrot.slane %v10521_v49, 7  ;;  %13536 = vst [vmem:[#allocation23_spill] sm:$0xff] %v10540_v12 }
 0x52a   : > { %7631 = vmatmul.msk.bf16.vlgmr.msrb.gmra.mxu2 %vm224_vm2, %v4403_v62  ;;  %v10527_v62 = vld [vmem:[#allocation3 + $0x98] sm:$0xff]  ;;  %v10542_v7 = vunpack.c.l.b16 %v4840_v53 }
 0x52b   : > { %v3927_v10 = vrot.slane %v10527_v62, 7  ;;  %v3997_v48 = vsel %vm458_vm4, %v3925_v2, %v3926_v40  ;;  %v4850_v27 = vpack.c.bf16 %v10527_v62, %v10527_v62 }
 0x52c   : > { %13537 = vst [vmem:[#allocation52_spill] sm:$0xff] %v10542_v7  ;;  %v4034_v16 = vpack.c.bf16 %v3997_v48, %v3997_v48  ;;  %v10551_v3 = vpack.c.b16 %v10542_v7, %v10540_v12 }
 0x52e   : > { %13538 = vst [vmem:[#allocation9_spill] sm:$0xff] %v10551_v3  ;;  %v10558_v52 = vunpack.c.l.b16 %v4034_v16 }
 0x531   : > { %7683 = vmatmul.msk.bf16.gmra.mxu0 %vm224_vm2, %v4985_v15  ;;  %v3996_v15 = vsel %vm458_vm4, %v3926_v40, %v3927_v10 }
 0x532   : > { %v4035_v4 = vpack.c.bf16 %v3996_v15, %v3996_v15  ;;  %v4841_v15 = vpack.c.bf16 %v10364_v8, %v10364_v8 }
 0x534   : > { %7608 = vmatmul.msk.bf16.gmra.mxu1 %vm224_vm2, %v4170_v17  ;;  %v3924_v17 = vrot.slane %v10489_v59, 7 }
 0x536   : > { %7660 = vmatmul.msk.bf16.gmra.mxu3 %vm224_vm2, %v10487_v51  ;;  %v3998_v58 = vsel %vm458_vm4, %v3924_v17, %v3925_v2  ;;  %v3999_v30 = vsel %vm458_vm4, %v3923_v37, %v3924_v17  ;;  %v10560_v17 = vunpack.c.l.b16 %v4035_v4  ;;  %v13252_v2 = vrot.slane %v10419_v50, 1 }
 0x537   : > { %v4032_v46 = vpack.c.bf16 %v3999_v30, %v3999_v30  ;;  %v4033_v56 = vpack.c.bf16 %v3998_v58, %v3998_v58  ;;  %v5849_v58 = vsel %vm2295_vm5, %v13251_v57, %v5744_v32  ;;  %v10570_v30 = vld [vmem:[#allocation3 + $0xa8] sm:$0xff]  ;;  %v3995_v4 = vsel %vm458_vm4, %v3927_v10, %v3928_v36  ;;  %v10617_v10 = vld [vmem:[#allocation3 + $0xb8] sm:$0xff] }
 0x538   : > { %v3929_v53 = vrot.slane %v10570_v30, 7 }
 0x539   : > { %v10516_v38 = vunpack.c.l.b16 %v4032_v46  ;;  %v10518_v5 = vunpack.c.l.b16 %v4033_v56  ;;  %v10578_v46 = vpack.c.b16 %v10560_v17, %v10558_v52 }
 0x53a   : > { %7632 = vmatmul.msk.bf16.gmra.mxu2 %vm224_vm2, %v4404_v31  ;;  %v4172_v31 = vpack.c.b16 %v10392_v35, %v10356_v61  ;;  %v5848_v61 = vsel %vm2295_vm5, %v5744_v32, %v13252_v2  ;;  %v5851_v35 = vpack.c.bf16 %v5849_v58, %v5849_v58  ;;  %v3994_v16 = vsel %vm458_vm4, %v3928_v36, %v3929_v53 }
 0x53b   : > { %v10525_v37 = vpack.c.b16 %v10518_v5, %v10516_v38  ;;  %v5852_v56 = vpack.c.bf16 %v5848_v61, %v5848_v61  ;;  %v10602_v32 = vunpack.c.l.b16 %v4841_v15  ;;  %v4037_v58 = vpack.c.bf16 %v3994_v16, %v3994_v16 }
 0x53c   : > { %v10584_v40 = vunpack.c.l.b16 %v5851_v35  ;;  %v4843_v36 = vpack.c.bf16 %v10399_v42, %v10399_v42  ;;  %v3931_v15 = vrot.slane %v10617_v10, 7 }
 0x53d   : > { %13542 = vst [vmem:[#allocation26_spill] sm:$0xff] %v10602_v32  ;;  %v10614_v35 = vunpack.c.l.b16 %v4037_v58 }
 0x53e   : > { %13539 = vst [vmem:[#allocation24_spill] sm:$0xff] %v10584_v40  ;;  %v10635_v16 = vunpack.c.l.b16 %v4843_v36 }
 0x540   : > { %13544 = vst [vmem:[#allocation28_spill] sm:$0xff] %v10635_v16 }
 0x541   : > { %7684 = vmatmul.msk.bf16.gmra.mxu0 %vm224_vm2, %v10510_v24  ;;  %v10804_v24 = vld [vmem:[#allocation3 + $0x1a0] sm:$0xff] }
 0x542   : > { %13558 = vst [vmem:[#allocation42_spill] sm:$0xff] %v10804_v24 }
 0x544   : > { %7609 = vmatmul.msk.bf16.gmra.mxu1 %vm224_vm2, %v4171_v23  ;;  %v4842_v23 = vpack.c.bf16 %v10381_v44, %v10381_v44  ;;  %v10694_v44 = vld [vmem:[#allocation3 + $0x160] sm:$0xff] }
 0x546   : > { %7661 = vmatmul.msk.bf16.gmra.mxu3 %vm224_vm2, %v10525_v37  ;;  %v10596_v48 = vunpack.c.l.b16 %v4842_v23  ;;  %v10623_v23 = vld [vmem:[#allocation3 + $0xb0] sm:$0xff] }
 0x548   : > { %13541 = vst [vmem:[#allocation25_spill] sm:$0xff] %v10596_v48  ;;  %v10606_v8 = vpack.c.b16 %v10596_v48, %v10602_v32 }
 0x54a   : > { %7633 = vmatmul.msk.bf16.gmra.mxu2 %vm224_vm2, %v4405_v21  ;;  %v10588_v21 = vunpack.c.l.b16 %v5852_v56  ;;  %13543 = vst [vmem:[#allocation27_spill] sm:$0xff] %v10606_v8 }
 0x54c   : > { %13540 = vst [vmem:[#allocation17_spill] sm:$0xff] %v10588_v21 }
 0x551   : > { %7685 = vmatmul.msk.bf16.gmra.mxu0 %vm224_vm2, %v10551_v3 }
 0x554   : > { %7610 = vmatmul.msk.bf16.gmra.mxu1 %vm224_vm2, %v4172_v31  ;;  %v4036_v31 = vpack.c.bf16 %v3995_v4, %v3995_v4 }
 0x556   : > { %7662 = vmatmul.msk.bf16.gmra.mxu3 %vm224_vm2, %v10578_v46  ;;  %v10612_v61 = vunpack.c.l.b16 %v4036_v31 }
 0x558   : > { %v10621_v56 = vpack.c.b16 %v10614_v35, %v10612_v61 }
 0x55a   : > { %7634 = vmatmul.msk.bf16.gmra.mxu2 %vm224_vm2, %v10239_v41  ;;  %v4173_v41 = vpack.c.b16 %v10440_v19, %v10394_v28  ;;  %v4844_v28 = vpack.c.bf16 %v10406_v22, %v10406_v22  ;;  %v3930_v19 = vrot.slane %v10623_v23, 7 }
 0x55c   : > { %v3992_v4 = vsel %vm458_vm4, %v3930_v19, %v3931_v15  ;;  %v3993_v42 = vsel %vm458_vm4, %v3929_v53, %v3930_v19  ;;  %v10641_v31 = vunpack.c.l.b16 %v4844_v28  ;;  %v10656_v53 = vld [vmem:[#allocation3 + $0xc0] sm:$0xff]  ;;  %v10662_v19 = vld [vmem:[#allocation3 + $0xc8] sm:$0xff] }
 0x55d   : > { %v4038_v58 = vpack.c.bf16 %v3993_v42, %v3993_v42  ;;  %v3933_v42 = vrot.slane %v10662_v19, 7 }
 0x55e   : > { %13545 = vst [vmem:[#allocation29_spill] sm:$0xff] %v10641_v31  ;;  %v10645_v22 = vpack.c.b16 %v10641_v31, %v10635_v16  ;;  %v4847_v31 = vpack.c.bf16 %v10489_v59, %v10489_v59  ;;  %v4877_v16 = vpack.c.bf16 %v10717_v55, %v10717_v55 }
 0x55f   : > { %v10651_v36 = vunpack.c.l.b16 %v4038_v58 }
 0x560   : > { %13546 = vst [vmem:[#allocation30_spill] sm:$0xff] %v10645_v22  ;;  %v10751_v12 = vunpack.c.l.b16 %v4877_v16 }
 0x561   : > { %7686 = vmatmul.msk.bf16.gmra.mxu0 %vm224_vm2, %v10606_v8 }
 0x562   : > { %13554 = vst [vmem:[#allocation38_spill] sm:$0xff] %v10751_v12 }
 0x564   : > { %7611 = vmatmul.msk.bf16.gmra.mxu1 %vm224_vm2, %v4173_v41  ;;  %v4039_v41 = vpack.c.bf16 %v3992_v4, %v3992_v4  ;;  %v4845_v4 = vpack.c.bf16 %v10449_v39, %v10449_v39 }
 0x566   : > { %7663 = vmatmul.msk.bf16.gmra.mxu3 %vm224_vm2, %v10621_v56  ;;  %v10653_v57 = vunpack.c.l.b16 %v4039_v41  ;;  %v10674_v58 = vunpack.c.l.b16 %v4845_v4 }
 0x568   : > { %v10660_v28 = vpack.c.b16 %v10653_v57, %v10651_v36  ;;  %13547 = vst [vmem:[#allocation31_spill] sm:$0xff] %v10674_v58 }
 0x56a   : > { %7635 = vmatmul.msk.bf16.gmra.mxu2 %vm224_vm2, %v10362_v34  ;;  %v4174_v34 = vpack.c.b16 %v10475_v45, %v10442_v54  ;;  %v4846_v54 = vpack.c.bf16 %v10451_v20, %v10451_v20  ;;  %v3932_v45 = vrot.slane %v10656_v53, 7 }
 0x56c   : > { %v10676_v41 = vunpack.c.l.b16 %v4846_v54  ;;  %v3990_v39 = vsel %vm458_vm4, %v3932_v45, %v3933_v42  ;;  %v3991_v20 = vsel %vm458_vm4, %v3931_v15, %v3932_v45  ;;  %v10697_v15 = vpop.f32.mrf.mxu3  ;;  %v10699_v45 = vld [vmem:[#allocation3 + $0xd0] sm:$0xff] }
 0x56d   : > { %v4041_v33 = vpack.c.bf16 %v3990_v39, %v3990_v39  ;;  %v10701_v39 = vld [vmem:[#allocation3 + $0xd8] sm:$0xff] }
 0x56e   : > { %13548 = vst [vmem:[#allocation32_spill] sm:$0xff] %v10676_v41  ;;  %v10684_v2 = vpack.c.b16 %v10676_v41, %v10674_v58  ;;  %v4876_v58 = vpack.c.bf16 %v10705_v43, %v10705_v43 }
 0x56f   : > { %v10692_v54 = vunpack.c.l.b16 %v4041_v33 }
 0x570   : > { %13549 = vst [vmem:[#allocation33_spill] sm:$0xff] %v10684_v2  ;;  %v10743_v59 = vunpack.c.l.b16 %v4876_v58 }
 0x571   : > { %7687 = vmatmul.msk.bf16.gmra.mxu0 %vm224_vm2, %v10645_v22 }
 0x572   : > { %13552 = vst [vmem:[#allocation36_spill] sm:$0xff] %v10743_v59 }
 0x574   : > { %7612 = vmatmul.msk.bf16.gmra.mxu1 %vm224_vm2, %v4174_v34  ;;  %v4040_v34 = vpack.c.bf16 %v3991_v20, %v3991_v20  ;;  %v10703_v20 = vld [vmem:[#allocation3 + $0x158] sm:$0xff] }
 0x575   : > { %v4874_v41 = vpack.c.bf16 %v10703_v20, %v10703_v20 }
 0x576   : > { %7664 = vmatmul.msk.bf16.gmra.mxu3 %vm224_vm2, %v10660_v28  ;;  %v10690_v4 = vunpack.c.l.b16 %v4040_v34  ;;  %v3934_v34 = vrot.slane %v10699_v45, 7 }
 0x577   : > { %v10741_v7 = vunpack.c.l.b16 %v4874_v41 }
 0x578   : > { %v10711_v33 = vpack.c.b16 %v10692_v54, %v10690_v4  ;;  %v3989_v32 = vsel %vm458_vm4, %v3933_v42, %v3934_v34  ;;  %v10757_v42 = vld [vmem:[#allocation3 + $0x180] sm:$0xff] }
 0x579   : > { %v4042_v8 = vpack.c.bf16 %v3989_v32, %v3989_v32  ;;  %13556 = vst [vmem:[#allocation40_spill] sm:$0xff] %v10757_v42  ;;  %v4176_v32 = vpack.c.b16 %v10558_v52, %v10518_v5  ;;  %v13274_v41 = vrot.slane %v10757_v42, 1  ;;  %v4849_v52 = vpack.c.bf16 %v10521_v49, %v10521_v49 }
 0x57a   : > { %7636 = vmatmul.msk.bf16.gmra.mxu2 %vm224_vm2, %v10404_v0  ;;  %v4175_v0 = vpack.c.b16 %v10516_v38, %v10477_v11  ;;  %v4875_v11 = vpack.c.bf16 %v10694_v44, %v10694_v44  ;;  %v4848_v38 = vpack.c.bf16 %v10483_v47, %v10483_v47 }
 0x57c   : > { %v10731_v47 = vpop.f32.mrf.mxu0  ;;  %v10735_v48 = vunpack.c.l.b16 %v4848_v38 }
 0x57d   : > { %13550 = vst [vmem:[#allocation34_spill] sm:$0xff] %v10731_v47  ;;  %v10749_v47 = vpop.f32.mrf.mxu3 }
 0x57e   : > { %13551 = vst [vmem:[#allocation35_spill] sm:$0xff] %v10735_v48 }
 0x581   : > { %7688 = vmatmul.msk.bf16.gmra.mxu0 %vm224_vm2, %v10684_v2  ;;  %v10727_v2 = vunpack.c.l.b16 %v4875_v11  ;;  %v10745_v11 = vunpack.c.l.b16 %v4847_v31  ;;  %v10763_v31 = vld [vmem:[#allocation3 + $0x188] sm:$0xff] }
 0x582   : > { %v5792_v58 = vrot.slane %v10763_v31, 1 }
 0x583   : > { %13553 = vst [vmem:[#allocation37_spill] sm:$0xff] %v10745_v11  ;;  %v10755_v13 = vpack.c.b16 %v10735_v48, %v10745_v11  ;;  %v10778_v48 = vld [vmem:[#allocation3 + $0xe0] sm:$0xff]  ;;  %v10780_v11 = vld [vmem:[#allocation3 + $0x190] sm:$0xff] }
 0x584   : > { %7613 = vmatmul.msk.bf16.gmra.mxu1 %vm224_vm2, %v4175_v0  ;;  %v3935_v0 = vrot.slane %v10701_v39, 7  ;;  %v3936_v3 = vrot.slane %v10778_v48, 7  ;;  %v5793_v18 = vrot.slane %v10780_v11, 1 }
 0x585   : > { %13555 = vst [vmem:[#allocation39_spill] sm:$0xff] %v10755_v13 }
 0x586   : > { %7665 = vmatmul.msk.bf16.gmra.mxu3 %vm224_vm2, %v10711_v33  ;;  %v3988_v22 = vsel %vm458_vm4, %v3934_v34, %v3935_v0  ;;  %v10773_v34 = vpop.f32.mrf.mxu0  ;;  %v5800_v25 = vsel %vm2295_vm5, %v5792_v58, %v5793_v18 }
 0x587   : > { %v4043_v38 = vpack.c.bf16 %v3988_v22, %v3988_v22  ;;  %v10767_v22 = vunpack.c.l.b16 %v4042_v8  ;;  %13557 = vst [vmem:[#allocation41_spill] sm:$0xff] %v10773_v34  ;;  %v10784_v5 = vpop.f32.mrf.mxu3  ;;  %v5900_v26 = vpack.c.bf16 %v5800_v25, %v5800_v25 }
 0x589   : > { %v10769_v16 = vunpack.c.l.b16 %v4043_v38  ;;  %v5801_v38 = vsel %vm2295_vm5, %v13274_v41, %v5792_v58  ;;  %v10808_v41 = vunpack.c.l.b16 %v4849_v52  ;;  %v10821_v52 = vunpack.c.l.b16 %v4850_v27 }
 0x58a   : > { %7637 = vmatmul.msk.bf16.gmra.mxu2 %vm224_vm2, %v10455_v29  ;;  %v10775_v29 = vld [vmem:[#allocation3 + $0xe8] sm:$0xff]  ;;  %v5899_v34 = vpack.c.bf16 %v5801_v38, %v5801_v38  ;;  %v3987_v38 = vsel %vm458_vm4, %v3935_v0, %v3936_v3  ;;  %v10823_v50 = vunpack.c.l.b16 %v5900_v26  ;;  %v4177_v58 = vpack.c.b16 %v10612_v61, %v10560_v17 }
 0x58b   : > { %v10790_v8 = vpack.c.b16 %v10769_v16, %v10767_v22  ;;  %13559 = vst [vmem:[#allocation43_spill] sm:$0xff] %v10808_v41  ;;  %v4044_v21 = vpack.c.bf16 %v3987_v38, %v3987_v38  ;;  %v10854_v38 = vld [vmem:[#allocation3 + $0xf0] sm:$0xff]  ;;  %v4851_v17 = vpack.c.bf16 %v10568_v9, %v10568_v9 }
 0x58c   : > { %v10818_v62 = vunpack.c.l.b16 %v5899_v34  ;;  %13561 = vst [vmem:[#allocation45_spill] sm:$0xff] %v10821_v52 }
 0x58d   : > { %13562 = vst [vmem:[#allocation46_spill] sm:$0xff] %v10823_v50  ;;  %v10847_v34 = vunpack.c.l.b16 %v4044_v21  ;;  %v3938_v21 = vrot.slane %v10854_v38, 7  ;;  %v10876_v26 = vunpack.c.l.b16 %v4851_v17 }
 0x58e   : > { %13560 = vst [vmem:[#allocation44_spill] sm:$0xff] %v10818_v62 }
 0x58f   : > { %v10827_v40 = vpop.f32.mrf.mxu3  ;;  %13567 = vst [vmem:[#allocation11_spill] sm:$0xff] %v10876_v26 }
 0x591   : > { %7689 = vmatmul.msk.bf16.gmra.mxu0 %vm224_vm2, %v10755_v13  ;;  %v10782_v13 = vld [vmem:[#allocation3 + $0x198] sm:$0xff] }
 0x592   : > { %v5794_v49 = vrot.slane %v10782_v13, 1 }
 0x594   : > { %7614 = vmatmul.msk.bf16.gmra.mxu1 %vm224_vm2, %v4176_v32  ;;  %v3937_v32 = vrot.slane %v10775_v29, 7  ;;  %v5799_v14 = vsel %vm2295_vm5, %v5793_v18, %v5794_v49 }
 0x595   : > { %v5901_v60 = vpack.c.bf16 %v5799_v14, %v5799_v14  ;;  %v10835_v14 = vpack.c.b16 %v10821_v52, %v10808_v41 }
 0x596   : > { %7666 = vmatmul.msk.bf16.gmra.mxu3 %vm224_vm2, %v10790_v8  ;;  %v3986_v63 = vsel %vm458_vm4, %v3936_v3, %v3937_v32 }
 0x597   : > { %v4045_v12 = vpack.c.bf16 %v3986_v63, %v3986_v63  ;;  %v10837_v25 = vunpack.c.l.b16 %v5901_v60 }
 0x599   : > { %13564 = vst [vmem:[#allocation48_spill] sm:$0xff] %v10837_v25  ;;  %v10869_v61 = vpop.f32.mrf.mxu3 }
 0x59a   : > { %7638 = vmatmul.msk.bf16.gmra.mxu2 %vm224_vm2, %v10487_v51  ;;  %v13285_v51 = vrot.slane %v10804_v24, 1 }
 0x59c   : > { %v5798_v18 = vsel %vm2295_vm5, %v5794_v49, %v13285_v51  ;;  %v10849_v49 = vunpack.c.l.b16 %v4045_v12  ;;  %v10862_v51 = vld [vmem:[#allocation3 + $0xf8] sm:$0xff]  ;;  %v4852_v12 = vpack.c.bf16 %v10570_v30, %v10570_v30  ;;  %v3985_v30 = vsel %vm458_vm4, %v3937_v32, %v3938_v21 }
 0x59d   : > { %v5902_v27 = vpack.c.bf16 %v5798_v18, %v5798_v18  ;;  %v3939_v60 = vrot.slane %v10862_v51, 7  ;;  %v4178_v32 = vpack.c.b16 %v10651_v36, %v10614_v35  ;;  %v4854_v35 = vpack.c.bf16 %v10617_v10, %v10617_v10 }
 0x59e   : > { %v10825_v0 = vpop.f32.mrf.mxu0 }
 0x59f   : > { %13563 = vst [vmem:[#allocation47_spill] sm:$0xff] %v10825_v0  ;;  %v10843_v63 = vunpack.c.l.b16 %v5902_v27  ;;  %v10860_v27 = vpack.c.b16 %v10849_v49, %v10847_v34  ;;  %v3984_v9 = vsel %vm458_vm4, %v3938_v21, %v3939_v60  ;;  %v10904_v21 = vld [vmem:[#allocation3 + $0x100] sm:$0xff]  ;;  %v10929_v10 = vunpack.c.l.b16 %v4854_v35 }
 0x5a0   : > { %v4047_v0 = vpack.c.bf16 %v3984_v9, %v3984_v9  ;;  %v10906_v9 = vld [vmem:[#allocation3 + $0x108] sm:$0xff]  ;;  %v3940_v36 = vrot.slane %v10904_v21, 7 }
 0x5a1   : > { %v4277_v3 = vpop.f32.mrf.mxu1  ;;  %7690 = vmatmul.msk.bf16.gmra.mxu0 %vm224_vm2, %v10835_v14  ;;  %13565 = vst [vmem:[#allocation49_spill] sm:$0xff] %v10843_v63  ;;  %v10878_v63 = vunpack.c.l.b16 %v4852_v12  ;;  %v10893_v17 = vpop.f32.mrf.mxu3 }
 0x5a2   : > { %13574 = vst [vmem:[#allocation59_spill] sm:$0xff] %v10929_v10 }
 0x5a3   : > { %13568 = vst [vmem:[#allocation13_spill] sm:$0xff] %v10878_v63  ;;  %v10888_v52 = vpack.c.b16 %v10878_v63, %v10876_v26 }
 0x5a4   : > { %7615 = vmatmul.msk.bf16.gmra.mxu1 %vm224_vm2, %v4177_v58 }
 0x5a5   : > { %13570 = vst [vmem:[#allocation55_spill] sm:$0xff] %v10888_v52 }
 0x5a6   : > { %v10856_v18 = vpop.f32.mrf.mxu0  ;;  %7667 = vmatmul.msk.bf16.gmra.mxu3 %vm224_vm2, %v10860_v27 }
 0x5a7   : > { %13566 = vst [vmem:[#allocation12_spill] sm:$0xff] %v10856_v18  ;;  %v4046_v18 = vpack.c.bf16 %v3985_v30, %v3985_v30 }
 0x5a9   : > { %v4279_v58 = vpop.f32.mrf.mxu1 }
 0x5aa   : > { %7639 = vmatmul.msk.bf16.gmra.mxu2 %vm224_vm2, %v10525_v37 }
 0x5ad   : > { %v4511_v25 = vpop.f32.mrf.mxu2 }
 0x5ae   : > { %v4512_v50 = vadd.f32 %v4511_v25, %v4277_v3  ;;  %v10884_v62 = vpop.f32.mrf.mxu0  ;;  %v10899_v25 = vunpack.c.l.b16 %v4046_v18  ;;  %v10901_v3 = vunpack.c.l.b16 %v4047_v0  ;;  %v3941_v0 = vrot.slane %v10906_v9, 7 }
 0x5af   : > { %13569 = vst [vmem:[#allocation54_spill] sm:$0xff] %v10884_v62 }
 0x5b0   : > { %v10891_v37 = vadd.f32 %v10697_v15, %v4512_v50  ;;  %v10912_v62 = vpack.c.b16 %v10901_v3, %v10899_v25 }
 0x5b1   : > { %v4282_v12 = vpop.f32.mrf.mxu1  ;;  %7691 = vmatmul.msk.bf16.gmra.mxu0 %vm224_vm2, %v10888_v52 }
 0x5b2   : > { %13571 = vst [vmem:[#allocation56_spill] sm:$0xff] %v10891_v37 }
 0x5b4   : > { %7616 = vmatmul.msk.bf16.gmra.mxu1 %vm224_vm2, %v4178_v32  ;;  %v10921_v32 = vpop.f32.mrf.mxu3 }
 0x5b5   : > { %v4513_v50 = vpop.f32.mrf.mxu2 }
 0x5b6   : > { %v4514_v15 = vadd.f32 %v4513_v50, %v4279_v58  ;;  %v10908_v30 = vpop.f32.mrf.mxu0  ;;  %7668 = vmatmul.msk.bf16.gmra.mxu3 %vm224_vm2, %v10912_v62  ;;  %v4853_v50 = vpack.c.bf16 %v10623_v23, %v10623_v23 }
 0x5b7   : > { %13572 = vst [vmem:[#allocation57_spill] sm:$0xff] %v10908_v30  ;;  %v3982_v30 = vsel %vm458_vm4, %v3940_v36, %v3941_v0 }
 0x5b8   : > { %v10919_v18 = vadd.f32 %v10749_v47, %v4514_v15  ;;  %v3983_v47 = vsel %vm458_vm4, %v3939_v60, %v3940_v36  ;;  %v10935_v63 = vunpack.c.l.b16 %v4853_v50  ;;  %v4049_v52 = vpack.c.bf16 %v3982_v30, %v3982_v30  ;;  %v10957_v30 = vld [vmem:[#allocation3 + $0x118] sm:$0xff] }
 0x5b9   : > { %v4284_v58 = vpop.f32.mrf.mxu1  ;;  %v4048_v37 = vpack.c.bf16 %v3983_v47, %v3983_v47  ;;  %v4179_v60 = vpack.c.b16 %v10690_v4, %v10653_v57  ;;  %v4855_v57 = vpack.c.bf16 %v10656_v53, %v10656_v53  ;;  %v3943_v4 = vrot.slane %v10957_v30, 7 }
 0x5ba   : > { %13573 = vst [vmem:[#allocation58_spill] sm:$0xff] %v10919_v18  ;;  %7640 = vmatmul.msk.bf16.gmra.mxu2 %vm224_vm2, %v10578_v46  ;;  %v10941_v23 = vpack.c.b16 %v10929_v10, %v10935_v63  ;;  %v10954_v36 = vunpack.c.l.b16 %v4049_v52 }
 0x5bb   : > { %13575 = vst [vmem:[#allocation60_spill] sm:$0xff] %v10935_v63  ;;  %v10982_v53 = vunpack.c.l.b16 %v4855_v57 }
 0x5bc   : > { %13577 = vst [vmem:[#allocation62_spill] sm:$0xff] %v10941_v23  ;;  %v10946_v35 = vpop.f32.mrf.mxu3 }
 0x5bd   : > { %v4516_v15 = vpop.f32.mrf.mxu2  ;;  %13581 = vst [vmem:[#allocation66_spill] sm:$0xff] %v10982_v53 }
 0x5be   : > { %v4517_v18 = vadd.f32 %v4516_v15, %v4282_v12  ;;  %v10937_v26 = vpop.f32.mrf.mxu0  ;;  %v10952_v12 = vunpack.c.l.b16 %v4048_v37  ;;  %v10965_v15 = vld [vmem:[#allocation3 + $0x110] sm:$0xff] }
 0x5bf   : > { %13576 = vst [vmem:[#allocation61_spill] sm:$0xff] %v10937_v26 }
 0x5c0   : > { %v10944_v46 = vadd.f32 %v10784_v5, %v4517_v18  ;;  %v10963_v47 = vpack.c.b16 %v10954_v36, %v10952_v12 }
 0x5c1   : > { %v4287_v41 = vpop.f32.mrf.mxu1  ;;  %7692 = vmatmul.msk.bf16.gmra.mxu0 %vm224_vm2, %v10941_v23 }
 0x5c2   : > { %13578 = vst [vmem:[#allocation63_spill] sm:$0xff] %v10944_v46 }
 0x5c4   : > { %7617 = vmatmul.msk.bf16.gmra.mxu1 %vm224_vm2, %v4179_v60  ;;  %v10973_v37 = vpop.f32.mrf.mxu3  ;;  %v4856_v60 = vpack.c.bf16 %v10662_v19, %v10662_v19 }
 0x5c5   : > { %v4518_v50 = vpop.f32.mrf.mxu2 }
 0x5c6   : > { %v4519_v5 = vadd.f32 %v4518_v50, %v4284_v58  ;;  %v10959_v18 = vpop.f32.mrf.mxu0  ;;  %7669 = vmatmul.msk.bf16.gmra.mxu3 %vm224_vm2, %v10963_v47  ;;  %v3942_v50 = vrot.slane %v10965_v15, 7  ;;  %v10988_v26 = vunpack.c.l.b16 %v4856_v60  ;;  %v11010_v60 = vld [vmem:[#allocation3 + $0x120] sm:$0xff] }
 0x5c7   : > { %13579 = vst [vmem:[#allocation64_spill] sm:$0xff] %v10959_v18 }
 0x5c8   : > { %v10971_v52 = vadd.f32 %v10827_v40, %v4519_v5  ;;  %v3980_v40 = vsel %vm458_vm4, %v3942_v50, %v3943_v4  ;;  %v3981_v5 = vsel %vm458_vm4, %v3941_v0, %v3942_v50  ;;  %13582 = vst [vmem:[#allocation67_spill] sm:$0xff] %v10988_v26  ;;  %v10994_v46 = vpack.c.b16 %v10988_v26, %v10982_v53 }
 0x5c9   : > { %v4289_v58 = vpop.f32.mrf.mxu1  ;;  %v4050_v19 = vpack.c.bf16 %v3981_v5, %v3981_v5  ;;  %v4051_v63 = vpack.c.bf16 %v3980_v40, %v3980_v40  ;;  %v11018_v5 = vld [vmem:[#allocation3 + $0x128] sm:$0xff] }
 0x5ca   : > { %13580 = vst [vmem:[#allocation65_spill] sm:$0xff] %v10971_v52  ;;  %7641 = vmatmul.msk.bf16.gmra.mxu2 %vm224_vm2, %v10621_v56 }
 0x5cb   : > { %13584 = vst [vmem:[#allocation69_spill] sm:$0xff] %v10994_v46  ;;  %v11005_v0 = vunpack.c.l.b16 %v4050_v19 }
 0x5cc   : > { %v10999_v57 = vpop.f32.mrf.mxu3 }
 0x5cd   : > { %v4521_v18 = vpop.f32.mrf.mxu2 }
 0x5ce   : > { %v4522_v10 = vadd.f32 %v4521_v18, %v4287_v41  ;;  %v10990_v52 = vpop.f32.mrf.mxu0  ;;  %v4180_v41 = vpack.c.b16 %v10767_v22, %v10692_v54  ;;  %v11007_v18 = vunpack.c.l.b16 %v4051_v63  ;;  %v4857_v54 = vpack.c.bf16 %v10699_v45, %v10699_v45 }
 0x5cf   : > { %13583 = vst [vmem:[#allocation68_spill] sm:$0xff] %v10990_v52  ;;  %v4858_v22 = vpack.c.bf16 %v10701_v39, %v10701_v39  ;;  %v3944_v63 = vrot.slane %v11010_v60, 7 }
 0x5d0   : > { %v10997_v56 = vadd.f32 %v10869_v61, %v4522_v10  ;;  %v11016_v40 = vpack.c.b16 %v11007_v18, %v11005_v0  ;;  %v11035_v45 = vunpack.c.l.b16 %v4857_v54 }
 0x5d1   : > { %v4292_v23 = vpop.f32.mrf.mxu1  ;;  %7693 = vmatmul.msk.bf16.gmra.mxu0 %vm224_vm2, %v10994_v46 }
 0x5d2   : > { %13585 = vst [vmem:[#allocation70_spill] sm:$0xff] %v10997_v56 }
 0x5d3   : > { %13588 = vst [vmem:[#allocation73_spill] sm:$0xff] %v11035_v45 }
 0x5d4   : > { %7618 = vmatmul.msk.bf16.gmra.mxu1 %vm224_vm2, %v4180_v41 }
 0x5d5   : > { %v4523_v50 = vpop.f32.mrf.mxu2 }
 0x5d6   : > { %v4524_v61 = vadd.f32 %v4523_v50, %v4289_v58  ;;  %v11012_v10 = vpop.f32.mrf.mxu0  ;;  %v11028_v58 = vpop.f32.mrf.mxu3  ;;  %7670 = vmatmul.msk.bf16.gmra.mxu3 %vm224_vm2, %v11016_v40  ;;  %v3945_v50 = vrot.slane %v11018_v5, 7 }
 0x5d7   : > { %13586 = vst [vmem:[#allocation71_spill] sm:$0xff] %v11012_v10  ;;  %v11037_v10 = vunpack.c.l.b16 %v4858_v22 }
 0x5d8   : > { %v11026_v19 = vadd.f32 %v10893_v17, %v4524_v61  ;;  %v3978_v39 = vsel %vm458_vm4, %v3944_v63, %v3945_v50  ;;  %v3979_v17 = vsel %vm458_vm4, %v3943_v4, %v3944_v63 }
 0x5d9   : > { %v4294_v41 = vpop.f32.mrf.mxu1  ;;  %13589 = vst [vmem:[#allocation74_spill] sm:$0xff] %v11037_v10  ;;  %v4053_v53 = vpack.c.bf16 %v3978_v39, %v3978_v39  ;;  %v11047_v56 = vpack.c.b16 %v11037_v10, %v11035_v45  ;;  %v11063_v39 = vld [vmem:[#allocation3 + $0x130] sm:$0xff] }
 0x5da   : > { %13587 = vst [vmem:[#allocation72_spill] sm:$0xff] %v11026_v19  ;;  %7642 = vmatmul.msk.bf16.gmra.mxu2 %vm224_vm2, %v10660_v28  ;;  %v4052_v19 = vpack.c.bf16 %v3979_v17, %v3979_v17  ;;  %v11065_v17 = vld [vmem:[#allocation3 + $0x138] sm:$0xff] }
 0x5db   : > { %13591 = vst [vmem:[#allocation76_spill] sm:$0xff] %v11047_v56  ;;  %v11060_v63 = vunpack.c.l.b16 %v4053_v53  ;;  %v3947_v53 = vrot.slane %v11065_v17, 7 }
 0x5dc   : > { %v11058_v4 = vunpack.c.l.b16 %v4052_v19 }
 0x5dd   : > { %v4526_v61 = vpop.f32.mrf.mxu2 }
 0x5de   : > { %v4527_v52 = vadd.f32 %v4526_v61, %v4292_v23  ;;  %v11043_v26 = vpop.f32.mrf.mxu0  ;;  %v11052_v54 = vpop.f32.mrf.mxu3  ;;  %v4181_v23 = vpack.c.b16 %v10847_v34, %v10769_v16  ;;  %v4860_v16 = vpack.c.bf16 %v10775_v29, %v10775_v29  ;;  %v3946_v34 = vrot.slane %v11063_v39, 7 }
 0x5df   : > { %13590 = vst [vmem:[#allocation75_spill] sm:$0xff] %v11043_v26  ;;  %v11071_v26 = vpack.c.b16 %v11060_v63, %v11058_v4 }
 0x5e0   : > { %v11050_v28 = vadd.f32 %v10921_v32, %v4527_v52  ;;  %v11088_v29 = vunpack.c.l.b16 %v4860_v16 }
 0x5e1   : > { %v4297_v22 = vpop.f32.mrf.mxu1  ;;  %7694 = vmatmul.msk.bf16.gmra.mxu0 %vm224_vm2, %v11047_v56 }
 0x5e2   : > { %13592 = vst [vmem:[#allocation77_spill] sm:$0xff] %v11050_v28 }
 0x5e3   : > { %13595 = vst [vmem:[#allocation80_spill] sm:$0xff] %v11088_v29 }
 0x5e4   : > { %7619 = vmatmul.msk.bf16.gmra.mxu1 %vm224_vm2, %v4181_v23 }
 0x5e5   : > { %v4528_v32 = vpop.f32.mrf.mxu2 }
 0x5e6   : > { %v4529_v52 = vadd.f32 %v4528_v32, %v4294_v41  ;;  %v11067_v61 = vpop.f32.mrf.mxu0  ;;  %v11080_v23 = vpop.f32.mrf.mxu3  ;;  %7671 = vmatmul.msk.bf16.gmra.mxu3 %vm224_vm2, %v11071_v26  ;;  %v4859_v32 = vpack.c.bf16 %v10778_v48, %v10778_v48 }
 0x5e7   : > { %13593 = vst [vmem:[#allocation78_spill] sm:$0xff] %v11067_v61  ;;  %v3976_v61 = vsel %vm458_vm4, %v3946_v34, %v3947_v53 }
 0x5e8   : > { %v11078_v19 = vadd.f32 %v10946_v35, %v4529_v52  ;;  %v3977_v35 = vsel %vm458_vm4, %v3945_v50, %v3946_v34  ;;  %v11094_v10 = vunpack.c.l.b16 %v4859_v32  ;;  %v4055_v56 = vpack.c.bf16 %v3976_v61, %v3976_v61  ;;  %v11116_v61 = vld [vmem:[#allocation3 + $0x148] sm:$0xff] }
 0x5e9   : > { %v4299_v41 = vpop.f32.mrf.mxu1  ;;  %v4054_v28 = vpack.c.bf16 %v3977_v35, %v3977_v35  ;;  %v4182_v50 = vpack.c.b16 %v10899_v25, %v10849_v49  ;;  %v4861_v49 = vpack.c.bf16 %v10854_v38, %v10854_v38  ;;  %v3949_v25 = vrot.slane %v11116_v61, 7 }
 0x5ea   : > { %13594 = vst [vmem:[#allocation79_spill] sm:$0xff] %v11078_v19  ;;  %7643 = vmatmul.msk.bf16.gmra.mxu2 %vm224_vm2, %v10711_v33  ;;  %v11100_v48 = vpack.c.b16 %v11088_v29, %v11094_v10  ;;  %v11113_v34 = vunpack.c.l.b16 %v4055_v56 }
 0x5eb   : > { %13596 = vst [vmem:[#allocation81_spill] sm:$0xff] %v11094_v10  ;;  %v11141_v38 = vunpack.c.l.b16 %v4861_v49 }
 0x5ec   : > { %13598 = vst [vmem:[#allocation83_spill] sm:$0xff] %v11100_v48 }
 0x5ed   : > { %v4531_v52 = vpop.f32.mrf.mxu2 }
 0x5ee   : > { %v4532_v19 = vadd.f32 %v4531_v52, %v4297_v22  ;;  %v11096_v45 = vpop.f32.mrf.mxu0  ;;  %v11105_v16 = vpop.f32.mrf.mxu3  ;;  %v11111_v22 = vunpack.c.l.b16 %v4054_v28  ;;  %v11124_v52 = vld [vmem:[#allocation3 + $0x140] sm:$0xff] }
 0x5ef   : > { %13597 = vst [vmem:[#allocation82_spill] sm:$0xff] %v11096_v45 }
 0x5f0   : > { %v11103_v33 = vadd.f32 %v10973_v37, %v4532_v19  ;;  %v11122_v35 = vpack.c.b16 %v11113_v34, %v11111_v22 }
 0x5f1   : > { %v4302_v46 = vpop.f32.mrf.mxu1  ;;  %7695 = vmatmul.msk.bf16.gmra.mxu0 %vm224_vm2, %v11100_v48 }
 0x5f2   : > { %13599 = vst [vmem:[#allocation84_spill] sm:$0xff] %v11103_v33 }
 0x5f4   : > { %7620 = vmatmul.msk.bf16.gmra.mxu1 %vm224_vm2, %v4182_v50  ;;  %v4862_v50 = vpack.c.bf16 %v10862_v51, %v10862_v51 }
 0x5f5   : > { %v4533_v32 = vpop.f32.mrf.mxu2 }
 0x5f6   : > { %v4534_v37 = vadd.f32 %v4533_v32, %v4299_v41  ;;  %v11118_v19 = vpop.f32.mrf.mxu0  ;;  %v11132_v28 = vpop.f32.mrf.mxu3  ;;  %7672 = vmatmul.msk.bf16.gmra.mxu3 %vm224_vm2, %v11122_v35  ;;  %v3948_v32 = vrot.slane %v11124_v52, 7  ;;  %v11147_v45 = vunpack.c.l.b16 %v4862_v50  ;;  %v11169_v50 = vld [vmem:[#allocation3 + $0x150] sm:$0xff] }
 0x5f7   : > { %13600 = vst [vmem:[#allocation85_spill] sm:$0xff] %v11118_v19 }
 0x5f8   : > { %v11130_v56 = vadd.f32 %v10999_v57, %v4534_v37  ;;  %v3974_v57 = vsel %vm458_vm4, %v3948_v32, %v3949_v25  ;;  %v3975_v37 = vsel %vm458_vm4, %v3947_v53, %v3948_v32  ;;  %13602 = vst [vmem:[#allocation87_spill] sm:$0xff] %v11147_v45  ;;  %v11153_v33 = vpack.c.b16 %v11147_v45, %v11141_v38 }
 0x5f9   : > { %v4304_v41 = vpop.f32.mrf.mxu1  ;;  %v4056_v51 = vpack.c.bf16 %v3975_v37, %v3975_v37  ;;  %v4057_v10 = vpack.c.bf16 %v3974_v57, %v3974_v57  ;;  %v4863_v37 = vpack.c.bf16 %v10904_v21, %v10904_v21 }
 0x5fa   : > { %13601 = vst [vmem:[#allocation86_spill] sm:$0xff] %v11130_v56  ;;  %7644 = vmatmul.msk.bf16.gmra.mxu2 %vm224_vm2, %v10790_v8 }
 0x5fb   : > { %v11164_v53 = vunpack.c.l.b16 %v4056_v51  ;;  %v11192_v21 = vunpack.c.l.b16 %v4863_v37 }
 0x5fd   : > { %v4536_v19 = vpop.f32.mrf.mxu2 }
 0x5fe   : > { %v4537_v29 = vadd.f32 %v4536_v19, %v4302_v46  ;;  %v11149_v56 = vpop.f32.mrf.mxu0  ;;  %v11158_v49 = vpop.f32.mrf.mxu3  ;;  %v4183_v46 = vpack.c.b16 %v10952_v12, %v10901_v3  ;;  %v11166_v19 = vunpack.c.l.b16 %v4057_v10  ;;  %v4864_v3 = vpack.c.bf16 %v10906_v9, %v10906_v9 }
 0x5ff   : > { %13603 = vst [vmem:[#allocation88_spill] sm:$0xff] %v11149_v56  ;;  %v3950_v12 = vrot.slane %v11169_v50, 7 }
 0x600   : > { %v11156_v8 = vadd.f32 %v11028_v58, %v4537_v29  ;;  %v11175_v57 = vpack.c.b16 %v11166_v19, %v11164_v53 }
 0x601   : > { %v4307_v48 = vpop.f32.mrf.mxu1  ;;  %7696 = vmatmul.msk.bf16.gmra.mxu0 %vm224_vm2, %v11153_v33 }
 0x604   : > { %7621 = vmatmul.msk.bf16.gmra.mxu1 %vm224_vm2, %v4183_v46  ;;  %v3951_v46 = vrot.slane %v10703_v20, 7 }
 0x605   : > { %v4538_v32 = vpop.f32.mrf.mxu2 }
 0x606   : > { %v4539_v58 = vadd.f32 %v4538_v32, %v4304_v41  ;;  %v11171_v29 = vpop.f32.mrf.mxu0  ;;  %v11185_v51 = vpop.f32.mrf.mxu3  ;;  %7673 = vmatmul.msk.bf16.gmra.mxu3 %vm224_vm2, %v11175_v57  ;;  %v11194_v32 = vunpack.c.l.b16 %v4864_v3  ;;  %v3972_v9 = vsel %vm458_vm4, %v3950_v12, %v3951_v46 }
 0x607   : > { %13604 = vst [vmem:[#allocation89_spill] sm:$0xff] %v11171_v29 }
 0x608   : > { %v11183_v10 = vadd.f32 %v11052_v54, %v4539_v58  ;;  %13606 = vst [vmem:[#allocation91_spill] sm:$0xff] %v11194_v32  ;;  %v3973_v54 = vsel %vm458_vm4, %v3949_v25, %v3950_v12  ;;  %v11204_v20 = vpack.c.b16 %v11194_v32, %v11192_v21 }
 0x609   : > { %v4309_v41 = vpop.f32.mrf.mxu1  ;;  %v4058_v45 = vpack.c.bf16 %v3973_v54, %v3973_v54 }
 0x60a   : > { %13605 = vst [vmem:[#allocation90_spill] sm:$0xff] %v11183_v10  ;;  %7645 = vmatmul.msk.bf16.gmra.mxu2 %vm224_vm2, %v10860_v27  ;;  %v4059_v10 = vpack.c.bf16 %v3972_v9, %v3972_v9 }
 0x60b   : > { %v11215_v25 = vunpack.c.l.b16 %v4058_v45 }
 0x60c   : > { %v11217_v12 = vunpack.c.l.b16 %v4059_v10 }
 0x60d   : > { %v4541_v58 = vpop.f32.mrf.mxu2 }
 0x60e   : > { %v4542_v29 = vadd.f32 %v4541_v58, %v4307_v48  ;;  %v11200_v56 = vpop.f32.mrf.mxu0  ;;  %v11209_v37 = vpop.f32.mrf.mxu3  ;;  %v4184_v48 = vpack.c.b16 %v11005_v0, %v10954_v36  ;;  %v3953_v36 = vrot.slane %v10705_v43, 7 }
 0x60f   : > { %13607 = vst [vmem:[#allocation92_spill] sm:$0xff] %v11200_v56  ;;  %v3952_v56 = vrot.slane %v10694_v44, 7 }
 0x610   : > { %v11207_v27 = vadd.f32 %v11080_v23, %v4542_v29  ;;  %v11224_v23 = vpack.c.b16 %v11217_v12, %v11215_v25  ;;  %v4866_v29 = vpack.c.bf16 %v10957_v30, %v10957_v30 }
 0x611   : > { %v4312_v3 = vpop.f32.mrf.mxu1  ;;  %7697 = vmatmul.msk.bf16.gmra.mxu0 %vm224_vm2, %v11204_v20  ;;  %v3970_v43 = vsel %vm458_vm4, %v3952_v56, %v3953_v36  ;;  %v3971_v44 = vsel %vm458_vm4, %v3951_v46, %v3952_v56  ;;  %v4185_v56 = vpack.c.b16 %v11058_v4, %v11007_v18 }
 0x612   : > { %v11241_v30 = vunpack.c.l.b16 %v4866_v29  ;;  %v4061_v32 = vpack.c.bf16 %v3970_v43, %v3970_v43 }
 0x614   : > { %7622 = vmatmul.msk.bf16.gmra.mxu1 %vm224_vm2, %v4184_v48  ;;  %13610 = vst [vmem:[#allocation95_spill] sm:$0xff] %v11241_v30 }
 0x615   : > { %v4543_v9 = vpop.f32.mrf.mxu2 }
 0x616   : > { %v4544_v54 = vadd.f32 %v4543_v9, %v4309_v41  ;;  %v11220_v58 = vpop.f32.mrf.mxu0  ;;  %v11233_v45 = vpop.f32.mrf.mxu3  ;;  %7674 = vmatmul.msk.bf16.gmra.mxu3 %vm224_vm2, %v11224_v23  ;;  %v4865_v41 = vpack.c.bf16 %v10965_v15, %v10965_v15 }
 0x617   : > { %13608 = vst [vmem:[#allocation93_spill] sm:$0xff] %v11220_v58  ;;  %v4060_v58 = vpack.c.bf16 %v3971_v44, %v3971_v44 }
 0x618   : > { %v11231_v0 = vadd.f32 %v11105_v16, %v4544_v54  ;;  %v11247_v48 = vunpack.c.l.b16 %v4865_v41  ;;  %v11269_v41 = vld [vmem:[#allocation3 + $0x178] sm:$0xff] }
 0x619   : > { %v4314_v10 = vpop.f32.mrf.mxu1  ;;  %v11264_v46 = vunpack.c.l.b16 %v4060_v58  ;;  %v3955_v18 = vrot.slane %v11269_v41, 7 }
 0x61a   : > { %13609 = vst [vmem:[#allocation94_spill] sm:$0xff] %v11231_v0  ;;  %7646 = vmatmul.msk.bf16.gmra.mxu2 %vm224_vm2, %v10912_v62  ;;  %v11253_v15 = vpack.c.b16 %v11241_v30, %v11247_v48 }
 0x61b   : > { %13611 = vst [vmem:[#allocation96_spill] sm:$0xff] %v11247_v48 }
 0x61d   : > { %v4546_v16 = vpop.f32.mrf.mxu2 }
 0x61e   : > { %v4547_v9 = vadd.f32 %v4546_v16, %v4312_v3  ;;  %v11249_v54 = vpop.f32.mrf.mxu0  ;;  %v11258_v29 = vpop.f32.mrf.mxu3  ;;  %v11266_v3 = vunpack.c.l.b16 %v4061_v32 }
 0x61f   : > { %13612 = vst [vmem:[#allocation97_spill] sm:$0xff] %v11249_v54 }
 0x620   : > { %v11256_v62 = vadd.f32 %v11132_v28, %v4547_v9  ;;  %v11275_v16 = vpack.c.b16 %v11266_v3, %v11264_v46  ;;  %v4867_v9 = vpack.c.bf16 %v11010_v60, %v11010_v60 }
 0x621   : > { %v4317_v0 = vpop.f32.mrf.mxu1  ;;  %7698 = vmatmul.msk.bf16.gmra.mxu0 %vm224_vm2, %v11253_v15 }
 0x622   : > { %v11292_v60 = vunpack.c.l.b16 %v4867_v9 }
 0x624   : > { %7623 = vmatmul.msk.bf16.gmra.mxu1 %vm224_vm2, %v4185_v56  ;;  %v3954_v56 = vrot.slane %v10717_v55, 7 }
 0x625   : > { %v4548_v43 = vpop.f32.mrf.mxu2 }
 0x626   : > { %v4549_v28 = vadd.f32 %v4548_v43, %v4314_v10  ;;  %v11271_v44 = vpop.f32.mrf.mxu0  ;;  %v11283_v32 = vpop.f32.mrf.mxu3  ;;  %7675 = vmatmul.msk.bf16.gmra.mxu3 %vm224_vm2, %v11275_v16  ;;  %v4868_v10 = vpack.c.bf16 %v11018_v5, %v11018_v5  ;;  %v3969_v43 = vsel %vm458_vm4, %v3953_v36, %v3954_v56  ;;  %v4186_v36 = vpack.c.b16 %v11111_v22, %v11060_v63 }
 0x627   : > { %13613 = vst [vmem:[#allocation98_spill] sm:$0xff] %v11271_v44  ;;  %v4062_v5 = vpack.c.bf16 %v3969_v43, %v3969_v43  ;;  %v4870_v63 = vpack.c.bf16 %v11065_v17, %v11065_v17  ;;  %v3956_v22 = vrot.slane %v10757_v42, 7 }
 0x628   : > { %v11281_v4 = vadd.f32 %v11158_v49, %v4549_v28  ;;  %v3968_v49 = vsel %vm458_vm4, %v3954_v56, %v3955_v18  ;;  %v11298_v44 = vunpack.c.l.b16 %v4868_v10 }
 0x629   : > { %v4319_v58 = vpop.f32.mrf.mxu1 }
 0x62a   : > { %13614 = vst [vmem:[#allocation99_spill] sm:$0xff] %v11281_v4  ;;  %7647 = vmatmul.msk.bf16.gmra.mxu2 %vm224_vm2, %v10963_v47  ;;  %v4063_v4 = vpack.c.bf16 %v3968_v49, %v3968_v49  ;;  %v11304_v55 = vpack.c.b16 %v11298_v44, %v11292_v60 }
 0x62c   : > { %v11317_v10 = vunpack.c.l.b16 %v4063_v4 }
 0x62d   : > { %v4551_v28 = vpop.f32.mrf.mxu2 }
 0x62e   : > { %v4552_v54 = vadd.f32 %v4551_v28, %v4317_v0  ;;  %v11300_v30 = vpop.f32.mrf.mxu0  ;;  %v11309_v9 = vpop.f32.mrf.mxu3  ;;  %v11315_v0 = vunpack.c.l.b16 %v4062_v5  ;;  %v3957_v5 = vrot.slane %v10763_v31, 7 }
 0x62f   : > { %13615 = vst [vmem:[#allocation100_spill] sm:$0xff] %v11300_v30 }
 0x630   : > { %v11307_v47 = vadd.f32 %v11185_v51, %v4552_v54  ;;  %v11324_v51 = vpack.c.b16 %v11317_v10, %v11315_v0  ;;  %v4869_v54 = vpack.c.bf16 %v11063_v39, %v11063_v39  ;;  %v3966_v17 = vsel %vm458_vm4, %v3956_v22, %v3957_v5 }
 0x631   : > { %v4322_v48 = vpop.f32.mrf.mxu1  ;;  %7699 = vmatmul.msk.bf16.gmra.mxu0 %vm224_vm2, %v11304_v55  ;;  %v4065_v30 = vpack.c.bf16 %v3966_v17, %v3966_v17 }
 0x632   : > { %v11341_v39 = vunpack.c.l.b16 %v4869_v54 }
 0x634   : > { %7624 = vmatmul.msk.bf16.gmra.mxu1 %vm224_vm2, %v4186_v36  ;;  %v11343_v36 = vunpack.c.l.b16 %v4870_v63 }
 0x635   : > { %v4553_v56 = vpop.f32.mrf.mxu2 }
 0x636   : > { %v4554_v49 = vadd.f32 %v4553_v56, %v4319_v58  ;;  %v11320_v43 = vpop.f32.mrf.mxu0  ;;  %v11334_v28 = vpop.f32.mrf.mxu3  ;;  %7676 = vmatmul.msk.bf16.gmra.mxu3 %vm224_vm2, %v11324_v51  ;;  %13617 = vst [vmem:[#allocation102_spill] sm:$0xff] %v11343_v36  ;;  %v11353_v31 = vpack.c.b16 %v11343_v36, %v11341_v39 }
 0x637   : > { %13616 = vst [vmem:[#allocation101_spill] sm:$0xff] %v11320_v43 }
 0x638   : > { %v11332_v4 = vadd.f32 %v11209_v37, %v4554_v49  ;;  %v3967_v37 = vsel %vm458_vm4, %v3955_v18, %v3956_v22  ;;  %v11366_v22 = vunpack.c.l.b16 %v4065_v30 }
 0x639   : > { %v4324_v58 = vpop.f32.mrf.mxu1  ;;  %v4064_v43 = vpack.c.bf16 %v3967_v37, %v3967_v37 }
 0x63a   : > { %7648 = vmatmul.msk.bf16.gmra.mxu2 %vm224_vm2, %v11016_v40 }
 0x63b   : > { %v11364_v18 = vunpack.c.l.b16 %v4064_v43  ;;  %v4871_v43 = vpack.c.bf16 %v11124_v52, %v11124_v52 }
 0x63d   : > { %v4556_v56 = vpop.f32.mrf.mxu2 }
 0x63e   : > { %v4557_v49 = vadd.f32 %v4556_v56, %v4322_v48  ;;  %v11349_v42 = vpop.f32.mrf.mxu0  ;;  %v11358_v54 = vpop.f32.mrf.mxu3  ;;  %v4187_v48 = vpack.c.b16 %v11164_v53, %v11113_v34 }
 0x63f   : > { %13618 = vst [vmem:[#allocation103_spill] sm:$0xff] %v11349_v42  ;;  %v3959_v42 = vrot.slane %v10782_v13, 7 }
 0x640   : > { %v11356_v40 = vadd.f32 %v11233_v45, %v4557_v49  ;;  %v4639_v45 = vpack.c.b16 %v11366_v22, %v11364_v18  ;;  %v4872_v49 = vpack.c.bf16 %v11116_v61, %v11116_v61 }
 0x641   : > { %v4327_v63 = vpop.f32.mrf.mxu1  ;;  %7700 = vmatmul.msk.bf16.gmra.mxu0 %vm224_vm2, %v11353_v31 }
 0x644   : > { %7625 = vmatmul.msk.bf16.gmra.mxu1 %vm224_vm2, %v4187_v48  ;;  %v11387_v48 = vunpack.c.l.b16 %v4872_v49 }
 0x645   : > { %v4558_v17 = vpop.f32.mrf.mxu2 }
 0x646   : > { %v4559_v37 = vadd.f32 %v4558_v17, %v4324_v58  ;;  %v11369_v56 = vpop.f32.mrf.mxu0  ;;  %v11379_v53 = vpop.f32.mrf.mxu3  ;;  %7677 = vmatmul.msk.bf16.gmra.mxu3 %vm224_vm2, %v4639_v45  ;;  %v3958_v58 = vrot.slane %v10780_v11, 7 }
 0x647   : > { %13619 = vst [vmem:[#allocation104_spill] sm:$0xff] %v11369_v56 }
 0x648   : > { %v11377_v34 = vadd.f32 %v11258_v29, %v4559_v37  ;;  %v3964_v13 = vsel %vm458_vm4, %v3958_v58, %v3959_v42  ;;  %v11391_v29 = vunpack.c.l.b16 %v4871_v43  ;;  %v3965_v17 = vsel %vm458_vm4, %v3957_v5, %v3958_v58 }
 0x649   : > { %v4329_v30 = vpop.f32.mrf.mxu1  ;;  %v4067_v52 = vpack.c.bf16 %v3964_v13, %v3964_v13  ;;  %v4066_v56 = vpack.c.bf16 %v3965_v17, %v3965_v17  ;;  %v4188_v5 = vpack.c.b16 %v11215_v25, %v11166_v19  ;;  %v4873_v17 = vpack.c.bf16 %v11169_v50, %v11169_v50 }
 0x64a   : > { %7649 = vmatmul.msk.bf16.gmra.mxu2 %vm224_vm2, %v11071_v26  ;;  %v11399_v11 = vpack.c.b16 %v11387_v48, %v11391_v29  ;;  %v3960_v25 = vrot.slane %v10804_v24, 7 }
 0x64b   : > { %v11409_v43 = vunpack.c.l.b16 %v4066_v56  ;;  %v11423_v56 = vunpack.c.l.b16 %v4873_v17 }
 0x64c   : > { %v3963_v50 = vsel %vm458_vm4, %v3959_v42, %v3960_v25  ;;  %v4189_v42 = vpack.c.b16 %v11264_v46, %v11217_v12 }
 0x64d   : > { %v4561_v61 = vpop.f32.mrf.mxu2 }
 0x64e   : > { %v4562_v37 = vadd.f32 %v4561_v61, %v4327_v63  ;;  %v11395_v45 = vpop.f32.mrf.mxu0  ;;  %v4725_v49 = vpop.f32.mrf.mxu3  ;;  %v4636_v63 = vunpack.c.l.b16 %v4067_v52 }
 0x64f   : > { %13620 = vst [vmem:[#allocation105_spill] sm:$0xff] %v11395_v45 }
 0x650   : > { %v11402_v26 = vadd.f32 %v11283_v32, %v4562_v37  ;;  %v4640_v32 = vpack.c.b16 %v4636_v63, %v11409_v43 }
 0x651   : > { %v4332_v36 = vpop.f32.mrf.mxu1  ;;  %7701 = vmatmul.msk.bf16.gmra.mxu0 %vm224_vm2, %v11399_v11 }
 0x654   : > { %7626 = vmatmul.msk.bf16.gmra.mxu1 %vm224_vm2, %v4188_v5 }
 0x655   : > { %v4563_v58 = vpop.f32.mrf.mxu2 }
 0x656   : > { %v4564_v13 = vadd.f32 %v4563_v58, %v4329_v30  ;;  %v11411_v61 = vpop.f32.mrf.mxu0  ;;  %v4728_v45 = vpop.f32.mrf.mxu3  ;;  %7678 = vmatmul.msk.bf16.gmra.mxu3 %vm224_vm2, %v4640_v32  ;;  %v13621_v30 = vrot.slane %v10435_v1, 7  ;;  %v4068_v58 = vpack.c.bf16 %v3963_v50, %v3963_v50  ;;  %v11435_v32 = vpack.c.b16 %v10741_v7, %v11423_v56 }
 0x658   : > { %v11417_v37 = vadd.f32 %v11309_v9, %v4564_v13  ;;  %v3962_v52 = vsel %vm458_vm4, %v3960_v25, %v13621_v30 }
 0x659   : > { %v4334_v19 = vpop.f32.mrf.mxu1  ;;  %v4069_v13 = vpack.c.bf16 %v3962_v52, %v3962_v52 }
 0x65a   : > { %7650 = vmatmul.msk.bf16.gmra.mxu2 %vm224_vm2, %v11122_v35 }
 0x65b   : > { %v4638_v25 = vunpack.c.l.b16 %v4069_v13 }
 0x65d   : > { %v4566_v9 = vpop.f32.mrf.mxu2 }
 0x65e   : > { %v4567_v5 = vadd.f32 %v4566_v9, %v4332_v36  ;;  %v11431_v63 = vpop.f32.mrf.mxu0  ;;  %v11440_v1 = vpop.f32.mrf.mxu3  ;;  %v4637_v36 = vunpack.c.l.b16 %v4068_v58 }
 0x65f   : > { %13622 = vst [vmem:[#allocation106_spill] sm:$0xff] %v11431_v63 }
 0x660   : > { %v11438_v35 = vadd.f32 %v11334_v28, %v4567_v5  ;;  %v4641_v9 = vpack.c.b16 %v4638_v25, %v4637_v36 }
 0x661   : > { %v4337_v17 = vpop.f32.mrf.mxu1  ;;  %7702 = vmatmul.msk.bf16.gmra.mxu0 %vm224_vm2, %v11435_v32 }
 0x664   : > { %7627 = vmatmul.msk.bf16.gmra.mxu1 %vm224_vm2, %v4189_v42 }
 0x665   : > { %v4568_v30 = vpop.f32.mrf.mxu2 }
 0x666   : > { %v4569_v52 = vadd.f32 %v4568_v30, %v4334_v19  ;;  %v11447_v50 = vpop.f32.mrf.mxu0  ;;  %v11452_v5 = vpop.f32.mrf.mxu3  ;;  %7679 = vmatmul.msk.bf16.gmra.mxu3 %vm224_vm2, %v4641_v9  ;;  %v11461_v19 = vpack.c.b16 %v10743_v59, %v10727_v2  ;;  %v4878_v30 = vpack.c.bf16 %v11269_v41, %v11269_v41 }
 0x667   : > { %13623 = vst [vmem:[#allocation107_spill] sm:$0xff] %v11447_v50 }
 0x668   : > { %v11450_v28 = vadd.f32 %v11358_v54, %v4569_v52 }
 0x669   : > { %v4339_v24 = vpop.f32.mrf.mxu1 }
 0x66a   : > { %7651 = vmatmul.msk.bf16.gmra.mxu2 %vm224_vm2, %v11175_v57  ;;  %v4190_v57 = vpack.c.b16 %v11315_v0, %v11266_v3 }
 0x66d   : > { %v4571_v12 = vpop.f32.mrf.mxu2 }
 0x66e   : > { %v4572_v46 = vadd.f32 %v4571_v12, %v4337_v17  ;;  %v11457_v58 = vpop.f32.mrf.mxu0  ;;  %v11466_v54 = vpop.f32.mrf.mxu3  ;;  %v11483_v12 = vunpack.c.l.b16 %v4878_v30  ;;  %v7780_v30 = vld [vmem:[%s13197_s2 + $0xa] sm:$0x3] }
 0x66f   : > { %13624 = vst [vmem:[#allocation108_spill] sm:$0xff] %v11457_v58 }
 0x670   : > { %v11464_v13 = vadd.f32 %v11379_v53, %v4572_v46  ;;  %13626 = vst [vmem:[#allocation110_spill] sm:$0xff] %v11483_v12 }
 0x671   : > { %v4342_v42 = vpop.f32.mrf.mxu1  ;;  %7703 = vmatmul.msk.bf16.gmra.mxu0 %vm224_vm2, %v11461_v19 }
 0x674   : > { %7628 = vmatmul.msk.bf16.gmra.mxu1 %vm224_vm2, %v4190_v57 }
 0x675   : > { %v4573_v17 = vpop.f32.mrf.mxu2 }
 0x676   : > { %v4574_v36 = vadd.f32 %v4573_v17, %v4339_v24  ;;  %v11473_v25 = vpop.f32.mrf.mxu0  ;;  %v11479_v52 = vpop.f32.mrf.mxu3  ;;  %v13628_v24 = vld [vmem:[#allocation38_spill] sm:$0xff]  ;;  %v7927_v17 = vld [vmem:[#allocation3 + $0x18] sm:$0xff] }
 0x677   : > { %13625 = vst [vmem:[#allocation109_spill] sm:$0xff] %v11473_v25  ;;  %v11489_v57 = vpack.c.b16 %v11483_v12, %v13628_v24  ;;  %v5746_v41 = vrot.slane %v7927_v17, 1  ;;  %v6384_v17 = vsel %vm762_vm0, %v7780_v30, 0  ;;  %v13631_v24 = vld [vmem:[#allocation24_spill] sm:$0xff] }
 0x678   : > { %v11477_v53 = vadd.f32 %v4725_v49, %v4574_v36  ;;  %v7928_v49 = vld [vmem:[#allocation3 + $0x28] sm:$0xff]  ;;  %6393 = vmatpush.bf16.msra.mxu0 %v6384_v17 }
 0x679   : > { %v4344_v9 = vpop.f32.mrf.mxu1  ;;  %v5748_v36 = vrot.slane %v7928_v49, 1  ;;  %v4191_v49 = vpack.c.b16 %v11364_v18, %v11317_v10 }
 0x67a   : > { %7652 = vmatmul.msk.bf16.gmra.mxu2 %vm224_vm2, %v11224_v23  ;;  %v7730_v23 = vld [vmem:[%s13197_s2 + $0xe] sm:$0x3] }
 0x67d   : > { %v4576_v3 = vpop.f32.mrf.mxu2 }
 0x67e   : > { %v4577_v0 = vadd.f32 %v4576_v3, %v4342_v42  ;;  %v11485_v46 = vpop.f32.mrf.mxu0  ;;  %v11493_v58 = vpop.f32.mrf.mxu3  ;;  %v7755_v42 = vld [vmem:[%s13197_s2 + $0x4] sm:$0x3] }
 0x67f   : > { %13627 = vst [vmem:[#allocation111_spill] sm:$0xff] %v11485_v46  ;;  %v7929_v46 = vld [vmem:[#allocation3 + $0x20] sm:$0xff] }
 0x680   : > { %v11491_v25 = vadd.f32 %v4728_v45, %v4577_v0  ;;  %v5564_v45 = vsel %vm762_vm0, %v7730_v23, 0  ;;  %v6100_v0 = vsel %vm762_vm0, %v7755_v42, 0  ;;  %v5747_v12 = vrot.slane %v7929_v46, 1  ;;  %v13630_v42 = vld [vmem:[#allocation17_spill] sm:$0xff] }
 0x681   : > { %v4347_v3 = vpop.f32.mrf.mxu1  ;;  %7704 = vmatmul.msk.bf16.gmra.mxu0 %vm224_vm2, %v11489_v57  ;;  %5573 = vmatpush.bf16.msra.mxu2 %v5564_v45  ;;  %v13632_v30 = vpack.c.b16 %v13630_v42, %v13631_v24 }
 0x682   : > { %13629 = vst [vmem:[#allocation112_spill] sm:$0xff] %v11491_v25  ;;  %6109 = vmatpush.bf16.msra.mxu3 %v6100_v0  ;;  %v5845_v50 = vsel %vm2295_vm5, %v5747_v12, %v5748_v36  ;;  %v5846_v23 = vsel %vm2295_vm5, %v5746_v41, %v5747_v12 }
 0x683   : > { %v5854_v45 = vpack.c.bf16 %v5846_v23, %v5846_v23  ;;  %v5855_v46 = vpack.c.bf16 %v5845_v50, %v5845_v50 }
 0x684   : > { %7629 = vmatmul.msk.bf16.gmra.mxu1 %vm224_vm2, %v4191_v49  ;;  %v13635_v49 = vld [vmem:[#allocation50_spill] sm:$0xff] }
 0x685   : > { %v4578_v59 = vpop.f32.mrf.mxu2  ;;  %7756 = vmatmul.msk.bf16.vlgmr.msra.gmra.mxu3 %vm224_vm2, %v13632_v30  ;;  %v13636_v63 = vrot.slane %v13635_v49, 1  ;;  %v5959_v50 = vunpack.c.l.b16 %v5855_v46  ;;  %v13638_v49 = vld [vmem:[#allocation16_spill] sm:$0xff]  ;;  %v13639_v46 = vld [vmem:[#allocation15_spill] sm:$0xff] }
 0x686   : > { %v4579_v10 = vadd.f32 %v4578_v59, %v4344_v9  ;;  %v11520_v18 = vpop.f32.mrf.mxu0  ;;  %v11525_v17 = vpop.f32.mrf.mxu3  ;;  %v7805_v59 = vld [vmem:[%s13197_s2 + $0x10] sm:$0x3]  ;;  %v5958_v9 = vunpack.c.l.b16 %v5854_v45  ;;  %v4192_v45 = vpack.c.b16 %v11409_v43, %v11366_v22 }
 0x687   : > { %13633 = vst [vmem:[#allocation17_spill] sm:$0xff] %v11520_v18  ;;  %v5847_v12 = vsel %vm2295_vm5, %v13636_v63, %v5746_v41  ;;  %v5749_v18 = vrot.slane %v13638_v49, 1 }
 0x688   : > { %v11523_v0 = vadd.f32 %v11440_v1, %v4579_v10  ;;  %v6584_v1 = vsel %vm762_vm0, %v7805_v59, 0  ;;  %v5853_v24 = vpack.c.bf16 %v5847_v12, %v5847_v12  ;;  %v6287_v10 = vpack.c.b16 %v5959_v50, %v5958_v9 }
 0x689   : > { %v4349_v25 = vpop.f32.mrf.mxu1  ;;  %6593 = vmatpush.bf16.msra.mxu1 %v6584_v1  ;;  %v5750_v12 = vrot.slane %v13639_v46, 1 }
 0x68a   : > { %13634 = vst [vmem:[#allocation24_spill] sm:$0xff] %v11523_v0  ;;  %7653 = vmatmul.msk.bf16.gmra.mxu2 %vm224_vm2, %v11275_v16  ;;  %v5957_v63 = vunpack.c.l.b16 %v5853_v24 }
 0x68b   : > { %v5843_v59 = vsel %vm2295_vm5, %v5749_v18, %v5750_v12 }
 0x68d   : > { %v4581_v23 = vpop.f32.mrf.mxu2 }
 0x68e   : > { %v4582_v42 = vadd.f32 %v4581_v23, %v4347_v3  ;;  %v11537_v30 = vpop.f32.mrf.mxu0  ;;  %v11542_v16 = vpop.f32.mrf.mxu3  ;;  %v6004_v3 = vpack.c.b16 %v5958_v9, %v5957_v63 }
 0x68f   : > { %13637 = vst [vmem:[#allocation50_spill] sm:$0xff] %v11537_v30 }
 0x690   : > { %v11540_v41 = vadd.f32 %v11452_v5, %v4582_v42  ;;  %v5844_v5 = vsel %vm2295_vm5, %v5748_v36, %v5749_v18 }
 0x691   : > { %v4352_v0 = vpop.f32.mrf.mxu1  ;;  %7781 = vmatmul.msk.bf16.vlgmr.msra.gmra.mxu0 %vm224_vm2, %v6287_v10  ;;  %v5856_v42 = vpack.c.bf16 %v5844_v5, %v5844_v5  ;;  %v5857_v10 = vpack.c.bf16 %v5843_v59, %v5843_v59  ;;  %v7930_v5 = vld [vmem:[#allocation3 + $0x48] sm:$0xff] }
 0x693   : > { %v5960_v63 = vunpack.c.l.b16 %v5856_v42  ;;  %v5961_v49 = vunpack.c.l.b16 %v5857_v10  ;;  %v13645_v42 = vld [vmem:[#allocation10_spill] sm:$0xff]  ;;  %v13646_v10 = vld [vmem:[#allocation21_spill] sm:$0xff] }
 0x694   : > { %7630 = vmatmul.msk.bf16.gmra.mxu1 %vm224_vm2, %v4192_v45 }
 0x695   : > { %v4583_v1 = vpop.f32.mrf.mxu2  ;;  %7757 = vmatmul.msk.bf16.gmra.mxu3 %vm224_vm2, %v6004_v3 }
 0x696   : > { %v4584_v24 = vadd.f32 %v4583_v1, %v4349_v25  ;;  %v11555_v23 = vpop.f32.mrf.mxu0  ;;  %v11560_v43 = vpop.f32.mrf.mxu3  ;;  %v6288_v25 = vpack.c.b16 %v5961_v49, %v5960_v63  ;;  %v5752_v1 = vrot.slane %v7930_v5, 1 }
 0x697   : > { %13640 = vst [vmem:[#allocation16_spill] sm:$0xff] %v11555_v23  ;;  %v13647_v23 = vpack.c.b16 %v13645_v42, %v13646_v10  ;;  %v13650_v42 = vld [vmem:[#allocation51_spill] sm:$0xff] }
 0x698   : > { %v11558_v22 = vadd.f32 %v11466_v54, %v4584_v24  ;;  %v13644_v54 = vld [vmem:[#allocation18_spill] sm:$0xff] }
 0x699   : > { %v4354_v9 = vpop.f32.mrf.mxu1  ;;  %v5751_v59 = vrot.slane %v13644_v54, 1 }
 0x69a   : > { %13641 = vst [vmem:[#allocation15_spill] sm:$0xff] %v11558_v22  ;;  %7654 = vmatmul.msk.bf16.gmra.mxu2 %vm224_vm2, %v11324_v51  ;;  %v6005_v51 = vpack.c.b16 %v5960_v63, %v5959_v50 }
 0x69d   : > { %v4586_v36 = vpop.f32.mrf.mxu2 }
 0x69e   : > { %v4587_v18 = vadd.f32 %v4586_v36, %v4352_v0  ;;  %v11564_v45 = vpop.f32.mrf.mxu0  ;;  %v11569_v3 = vpop.f32.mrf.mxu3  ;;  %v5841_v0 = vsel %vm2295_vm5, %v5751_v59, %v5752_v1 }
 0x69f   : > { %13642 = vst [vmem:[#allocation113_spill] sm:$0xff] %v11564_v45 }
 0x6a0   : > { %v11567_v46 = vadd.f32 %v11479_v52, %v4587_v18  ;;  %v5842_v52 = vsel %vm2295_vm5, %v5750_v12, %v5751_v59 }
 0x6a1   : > { %v4357_v24 = vpop.f32.mrf.mxu1  ;;  %7782 = vmatmul.msk.bf16.gmra.mxu0 %vm224_vm2, %v6288_v25  ;;  %v5858_v5 = vpack.c.bf16 %v5842_v52, %v5842_v52  ;;  %v5859_v25 = vpack.c.bf16 %v5841_v0, %v5841_v0 }
 0x6a2   : > { %13643 = vst [vmem:[#allocation114_spill] sm:$0xff] %v11567_v46  ;;  %v7948_v46 = vld [vmem:[#allocation3 + $0xd8] sm:$0xff] }
 0x6a3   : > { %v5962_v10 = vunpack.c.l.b16 %v5858_v5  ;;  %v5963_v45 = vunpack.c.l.b16 %v5859_v25  ;;  %v7932_v5 = vld [vmem:[#allocation3 + $0x50] sm:$0xff] }
 0x6a4   : > { %7706 = vmatmul.msk.bf16.vlgmr.msrb.gmra.mxu1 %vm224_vm2, %v13647_v23  ;;  %v5753_v25 = vrot.slane %v7932_v5, 1 }
 0x6a5   : > { %v4588_v36 = vpop.f32.mrf.mxu2  ;;  %7758 = vmatmul.msk.bf16.gmra.mxu3 %vm224_vm2, %v6005_v51 }
 0x6a6   : > { %v4589_v18 = vadd.f32 %v4588_v36, %v4354_v9  ;;  %v11582_v54 = vpop.f32.mrf.mxu0  ;;  %v11587_v63 = vpop.f32.mrf.mxu3  ;;  %v6289_v9 = vpack.c.b16 %v5963_v45, %v5962_v10 }
 0x6a7   : > { %13648 = vst [vmem:[#allocation18_spill] sm:$0xff] %v11582_v54  ;;  %v13654_v54 = vld [vmem:[#allocation14_spill] sm:$0xff] }
 0x6a8   : > { %v11585_v50 = vadd.f32 %v11493_v58, %v4589_v18  ;;  %v7931_v58 = vld [vmem:[#allocation3 + $0x58] sm:$0xff] }
 0x6a9   : > { %v4359_v23 = vpop.f32.mrf.mxu1  ;;  %v5754_v52 = vrot.slane %v7931_v58, 1  ;;  %v13653_v18 = vld [vmem:[#allocation53_spill] sm:$0xff] }
 0x6aa   : > { %13649 = vst [vmem:[#allocation10_spill] sm:$0xff] %v11585_v50  ;;  %7731 = vmatmul.msk.bf16.vlgmr.msra.gmra.mxu2 %vm224_vm2, %v13650_v42  ;;  %v5268_v42 = vpack.c.b16 %v13654_v54, %v13653_v18  ;;  %v11601_v50 = vpack.c.b16 %v5962_v10, %v5961_v49 }
 0x6ac   : > { %13655 = vst [vmem:[#allocation53_spill] sm:$0xff] %v11601_v50 }
 0x6ad   : > { %v4591_v12 = vpop.f32.mrf.mxu2 }
 0x6ae   : > { %v4592_v59 = vadd.f32 %v4591_v12, %v4357_v24  ;;  %v11591_v30 = vpop.f32.mrf.mxu0  ;;  %v11596_v0 = vpop.f32.mrf.mxu3  ;;  %v5840_v24 = vsel %vm2295_vm5, %v5752_v1, %v5753_v25 }
 0x6af   : > { %13651 = vst [vmem:[#allocation21_spill] sm:$0xff] %v11591_v30  ;;  %v5860_v54 = vpack.c.bf16 %v5840_v24, %v5840_v24 }
 0x6b0   : > { %v11594_v51 = vadd.f32 %v11525_v17, %v4592_v59  ;;  %v5839_v17 = vsel %vm2295_vm5, %v5753_v25, %v5754_v52 }
 0x6b1   : > { %v4362_v36 = vpop.f32.mrf.mxu1  ;;  %7783 = vmatmul.msk.bf16.gmra.mxu0 %vm224_vm2, %v6289_v9  ;;  %v5861_v58 = vpack.c.bf16 %v5839_v17, %v5839_v17  ;;  %v5964_v5 = vunpack.c.l.b16 %v5860_v54  ;;  %v7934_v54 = vld [vmem:[#allocation3 + $0x68] sm:$0xff] }
 0x6b2   : > { %13652 = vst [vmem:[#allocation51_spill] sm:$0xff] %v11594_v51 }
 0x6b3   : > { %v5965_v1 = vunpack.c.l.b16 %v5861_v58  ;;  %v5756_v58 = vrot.slane %v7934_v54, 1 }
 0x6b4   : > { %7707 = vmatmul.msk.bf16.gmra.mxu1 %vm224_vm2, %v5268_v42  ;;  %v13658_v42 = vld [vmem:[#allocation9_spill] sm:$0xff] }
 0x6b5   : > { %v4593_v12 = vpop.f32.mrf.mxu2  ;;  %7759 = vmatmul.msk.bf16.gmra.mxu3 %vm224_vm2, %v11601_v50  ;;  %v11629_v50 = vpack.c.b16 %v5964_v5, %v5963_v45 }
 0x6b6   : > { %v4594_v59 = vadd.f32 %v4593_v12, %v4359_v23  ;;  %v11610_v9 = vpop.f32.mrf.mxu0  ;;  %v11615_v10 = vpop.f32.mrf.mxu3  ;;  %v6290_v23 = vpack.c.b16 %v5965_v1, %v5964_v5 }
 0x6b7   : > { %13656 = vst [vmem:[#allocation14_spill] sm:$0xff] %v11610_v9  ;;  %v13661_v9 = vld [vmem:[#allocation22_spill] sm:$0xff] }
 0x6b8   : > { %v11613_v49 = vadd.f32 %v11542_v16, %v4594_v59  ;;  %v7933_v16 = vld [vmem:[#allocation3 + $0x60] sm:$0xff]  ;;  %13663 = vst [vmem:[#allocation22_spill] sm:$0xff] %v11629_v50 }
 0x6b9   : > { %v4364_v18 = vpop.f32.mrf.mxu1  ;;  %v5755_v24 = vrot.slane %v7933_v16, 1 }
 0x6ba   : > { %13657 = vst [vmem:[#allocation115_spill] sm:$0xff] %v11613_v49  ;;  %7732 = vmatmul.msk.bf16.gmra.mxu2 %vm224_vm2, %v13658_v42  ;;  %v13662_v49 = vld [vmem:[#allocation23_spill] sm:$0xff] }
 0x6bb   : > { %v5269_v42 = vpack.c.b16 %v13662_v49, %v13661_v9 }
 0x6bd   : > { %v4596_v25 = vpop.f32.mrf.mxu2 }
 0x6be   : > { %v4597_v30 = vadd.f32 %v4596_v25, %v4362_v36  ;;  %v11619_v51 = vpop.f32.mrf.mxu0  ;;  %v11624_v17 = vpop.f32.mrf.mxu3 }
 0x6bf   : > { %13659 = vst [vmem:[#allocation9_spill] sm:$0xff] %v11619_v51 }
 0x6c0   : > { %v11622_v12 = vadd.f32 %v11560_v43, %v4597_v30  ;;  %v5837_v30 = vsel %vm2295_vm5, %v5755_v24, %v5756_v58  ;;  %v5838_v43 = vsel %vm2295_vm5, %v5754_v52, %v5755_v24 }
 0x6c1   : > { %v4367_v59 = vpop.f32.mrf.mxu1  ;;  %7784 = vmatmul.msk.bf16.gmra.mxu0 %vm224_vm2, %v6290_v23  ;;  %v5862_v9 = vpack.c.bf16 %v5838_v43, %v5838_v43  ;;  %v5863_v49 = vpack.c.bf16 %v5837_v30, %v5837_v30 }
 0x6c2   : > { %13660 = vst [vmem:[#allocation116_spill] sm:$0xff] %v11622_v12 }
 0x6c3   : > { %v5966_v54 = vunpack.c.l.b16 %v5862_v9  ;;  %v5967_v52 = vunpack.c.l.b16 %v5863_v49  ;;  %v13670_v9 = vld [vmem:[#allocation26_spill] sm:$0xff] }
 0x6c4   : > { %7708 = vmatmul.msk.bf16.gmra.mxu1 %vm224_vm2, %v5269_v42  ;;  %v13666_v42 = vld [vmem:[#allocation27_spill] sm:$0xff] }
 0x6c5   : > { %v4598_v36 = vpop.f32.mrf.mxu2  ;;  %7760 = vmatmul.msk.bf16.gmra.mxu3 %vm224_vm2, %v11629_v50  ;;  %v11657_v50 = vpack.c.b16 %v5966_v54, %v5965_v1 }
 0x6c6   : > { %v4599_v25 = vadd.f32 %v4598_v36, %v4364_v18  ;;  %v11638_v23 = vpop.f32.mrf.mxu0  ;;  %v11643_v5 = vpop.f32.mrf.mxu3  ;;  %v6291_v18 = vpack.c.b16 %v5967_v52, %v5966_v54 }
 0x6c7   : > { %13664 = vst [vmem:[#allocation23_spill] sm:$0xff] %v11638_v23 }
 0x6c8   : > { %v11641_v45 = vadd.f32 %v11569_v3, %v4599_v25  ;;  %v7935_v3 = vld [vmem:[#allocation3 + $0x70] sm:$0xff]  ;;  %v7936_v25 = vld [vmem:[#allocation3 + $0x78] sm:$0xff] }
 0x6c9   : > { %v4369_v16 = vpop.f32.mrf.mxu1  ;;  %v5757_v43 = vrot.slane %v7935_v3, 1  ;;  %v5758_v23 = vrot.slane %v7936_v25, 1 }
 0x6ca   : > { %13665 = vst [vmem:[#allocation117_spill] sm:$0xff] %v11641_v45  ;;  %7733 = vmatmul.msk.bf16.gmra.mxu2 %vm224_vm2, %v13666_v42  ;;  %v13669_v42 = vld [vmem:[#allocation52_spill] sm:$0xff] }
 0x6cb   : > { %v5270_v49 = vpack.c.b16 %v13670_v9, %v13669_v42  ;;  %13671 = vst [vmem:[#allocation52_spill] sm:$0xff] %v11657_v50  ;;  %v13674_v9 = vld [vmem:[#allocation30_spill] sm:$0xff] }
 0x6cd   : > { %v4601_v24 = vpop.f32.mrf.mxu2 }
 0x6ce   : > { %v4602_v51 = vadd.f32 %v4601_v24, %v4367_v59  ;;  %v11647_v12 = vpop.f32.mrf.mxu0  ;;  %v11652_v30 = vpop.f32.mrf.mxu3 }
 0x6cf   : > { %13667 = vst [vmem:[#allocation27_spill] sm:$0xff] %v11647_v12 }
 0x6d0   : > { %v11650_v36 = vadd.f32 %v11587_v63, %v4602_v51  ;;  %v5835_v63 = vsel %vm2295_vm5, %v5757_v43, %v5758_v23  ;;  %v5836_v51 = vsel %vm2295_vm5, %v5756_v58, %v5757_v43 }
 0x6d1   : > { %v4372_v45 = vpop.f32.mrf.mxu1  ;;  %7785 = vmatmul.msk.bf16.gmra.mxu0 %vm224_vm2, %v6291_v18  ;;  %v5864_v18 = vpack.c.bf16 %v5836_v51, %v5836_v51  ;;  %v5865_v25 = vpack.c.bf16 %v5835_v63, %v5835_v63 }
 0x6d2   : > { %13668 = vst [vmem:[#allocation118_spill] sm:$0xff] %v11650_v36 }
 0x6d3   : > { %v5969_v58 = vunpack.c.l.b16 %v5865_v25 }
 0x6d4   : > { %7709 = vmatmul.msk.bf16.gmra.mxu1 %vm224_vm2, %v5270_v49  ;;  %v5968_v49 = vunpack.c.l.b16 %v5864_v18  ;;  %v7938_v18 = vld [vmem:[#allocation3 + $0x80] sm:$0xff] }
 0x6d5   : > { %v4603_v59 = vpop.f32.mrf.mxu2  ;;  %7761 = vmatmul.msk.bf16.gmra.mxu3 %vm224_vm2, %v11657_v50  ;;  %v5759_v25 = vrot.slane %v7938_v18, 1 }
 0x6d6   : > { %v4604_v24 = vadd.f32 %v4603_v59, %v4369_v16  ;;  %v11666_v3 = vpop.f32.mrf.mxu0  ;;  %v11671_v54 = vpop.f32.mrf.mxu3  ;;  %v6292_v16 = vpack.c.b16 %v5969_v58, %v5968_v49  ;;  %v11685_v50 = vpack.c.b16 %v5968_v49, %v5967_v52 }
 0x6d7   : > { %13672 = vst [vmem:[#allocation26_spill] sm:$0xff] %v11666_v3  ;;  %v13677_v3 = vld [vmem:[#allocation25_spill] sm:$0xff] }
 0x6d8   : > { %v11669_v1 = vadd.f32 %v11596_v0, %v4604_v24  ;;  %v7937_v0 = vld [vmem:[#allocation3 + $0x88] sm:$0xff]  ;;  %13679 = vst [vmem:[#allocation25_spill] sm:$0xff] %v11685_v50 }
 0x6d9   : > { %v4374_v42 = vpop.f32.mrf.mxu1  ;;  %v5760_v51 = vrot.slane %v7937_v0, 1 }
 0x6da   : > { %13673 = vst [vmem:[#allocation119_spill] sm:$0xff] %v11669_v1  ;;  %7734 = vmatmul.msk.bf16.gmra.mxu2 %vm224_vm2, %v13674_v9  ;;  %v13678_v1 = vld [vmem:[#allocation28_spill] sm:$0xff] }
 0x6db   : > { %v5271_v9 = vpack.c.b16 %v13678_v1, %v13677_v3 }
 0x6dd   : > { %v4606_v43 = vpop.f32.mrf.mxu2 }
 0x6de   : > { %v4607_v12 = vadd.f32 %v4606_v43, %v4372_v45  ;;  %v11675_v36 = vpop.f32.mrf.mxu0  ;;  %v11680_v63 = vpop.f32.mrf.mxu3 }
 0x6df   : > { %13675 = vst [vmem:[#allocation30_spill] sm:$0xff] %v11675_v36 }
 0x6e0   : > { %v11678_v59 = vadd.f32 %v11615_v10, %v4607_v12  ;;  %v5833_v10 = vsel %vm2295_vm5, %v5759_v25, %v5760_v51  ;;  %v5834_v12 = vsel %vm2295_vm5, %v5758_v23, %v5759_v25 }
 0x6e1   : > { %v4377_v24 = vpop.f32.mrf.mxu1  ;;  %7786 = vmatmul.msk.bf16.gmra.mxu0 %vm224_vm2, %v6292_v16  ;;  %v5866_v16 = vpack.c.bf16 %v5834_v12, %v5834_v12  ;;  %v5867_v0 = vpack.c.bf16 %v5833_v10, %v5833_v10 }
 0x6e2   : > { %13676 = vst [vmem:[#allocation120_spill] sm:$0xff] %v11678_v59 }
 0x6e3   : > { %v5970_v18 = vunpack.c.l.b16 %v5866_v16  ;;  %v5971_v23 = vunpack.c.l.b16 %v5867_v0 }
 0x6e4   : > { %7710 = vmatmul.msk.bf16.gmra.mxu1 %vm224_vm2, %v5271_v9  ;;  %v13682_v9 = vld [vmem:[#allocation33_spill] sm:$0xff] }
 0x6e5   : > { %v4608_v45 = vpop.f32.mrf.mxu2  ;;  %7762 = vmatmul.msk.bf16.gmra.mxu3 %vm224_vm2, %v11685_v50  ;;  %v6293_v59 = vpack.c.b16 %v5971_v23, %v5970_v18  ;;  %v7940_v50 = vld [vmem:[#allocation3 + $0x98] sm:$0xff]  ;;  %v11713_v0 = vpack.c.b16 %v5970_v18, %v5969_v58 }
 0x6e6   : > { %v4609_v43 = vadd.f32 %v4608_v45, %v4374_v42  ;;  %v11697_v52 = vpop.f32.mrf.mxu3  ;;  %v11699_v49 = vpop.f32.mrf.mxu0 }
 0x6e7   : > { %13681 = vst [vmem:[#allocation121_spill] sm:$0xff] %v11699_v49  ;;  %v13685_v49 = vld [vmem:[#allocation31_spill] sm:$0xff] }
 0x6e8   : > { %v11695_v3 = vadd.f32 %v11624_v17, %v4609_v43  ;;  %v7939_v17 = vld [vmem:[#allocation3 + $0x90] sm:$0xff]  ;;  %v13684_v43 = vld [vmem:[#allocation29_spill] sm:$0xff]  ;;  %13687 = vst [vmem:[#allocation31_spill] sm:$0xff] %v11713_v0 }
 0x6e9   : > { %v4379_v1 = vpop.f32.mrf.mxu1  ;;  %v5761_v12 = vrot.slane %v7939_v17, 1 }
 0x6ea   : > { %13680 = vst [vmem:[#allocation28_spill] sm:$0xff] %v11695_v3  ;;  %7735 = vmatmul.msk.bf16.gmra.mxu2 %vm224_vm2, %v13682_v9  ;;  %v5272_v3 = vpack.c.b16 %v13685_v49, %v13684_v43  ;;  %v5762_v9 = vrot.slane %v7940_v50, 1 }
 0x6ed   : > { %v4611_v25 = vpop.f32.mrf.mxu2 }
 0x6ee   : > { %v4612_v36 = vadd.f32 %v4611_v25, %v4377_v24  ;;  %v11706_v10 = vpop.f32.mrf.mxu3  ;;  %v11711_v16 = vpop.f32.mrf.mxu0 }
 0x6ef   : > { %13686 = vst [vmem:[#allocation29_spill] sm:$0xff] %v11711_v16 }
 0x6f0   : > { %v11704_v42 = vadd.f32 %v11643_v5, %v4612_v36  ;;  %v5831_v5 = vsel %vm2295_vm5, %v5761_v12, %v5762_v9  ;;  %v5832_v36 = vsel %vm2295_vm5, %v5760_v51, %v5761_v12 }
 0x6f1   : > { %v4382_v45 = vpop.f32.mrf.mxu1  ;;  %7787 = vmatmul.msk.bf16.gmra.mxu0 %vm224_vm2, %v6293_v59  ;;  %v5868_v49 = vpack.c.bf16 %v5832_v36, %v5832_v36  ;;  %v5869_v25 = vpack.c.bf16 %v5831_v5, %v5831_v5 }
 0x6f2   : > { %13683 = vst [vmem:[#allocation33_spill] sm:$0xff] %v11704_v42 }
 0x6f3   : > { %v5972_v17 = vunpack.c.l.b16 %v5868_v49  ;;  %v5973_v43 = vunpack.c.l.b16 %v5869_v25  ;;  %v13693_v49 = vld [vmem:[#allocation37_spill] sm:$0xff] }
 0x6f4   : > { %7711 = vmatmul.msk.bf16.gmra.mxu1 %vm224_vm2, %v5272_v3  ;;  %v13689_v3 = vld [vmem:[#allocation39_spill] sm:$0xff] }
 0x6f5   : > { %v4613_v24 = vpop.f32.mrf.mxu2  ;;  %7763 = vmatmul.msk.bf16.gmra.mxu3 %vm224_vm2, %v11713_v0  ;;  %v6294_v42 = vpack.c.b16 %v5973_v43, %v5972_v17  ;;  %v11739_v0 = vpack.c.b16 %v5972_v17, %v5971_v23 }
 0x6f6   : > { %v4614_v59 = vadd.f32 %v4613_v24, %v4379_v1  ;;  %v11725_v58 = vpop.f32.mrf.mxu3  ;;  %v11729_v51 = vpop.f32.mrf.mxu0  ;;  %v7942_v24 = vld [vmem:[#allocation3 + $0xa8] sm:$0xff] }
 0x6f7   : > { %13690 = vst [vmem:[#allocation39_spill] sm:$0xff] %v11729_v51 }
 0x6f8   : > { %v11723_v50 = vadd.f32 %v11652_v30, %v4614_v59  ;;  %v7941_v30 = vld [vmem:[#allocation3 + $0xa0] sm:$0xff]  ;;  %v5764_v59 = vrot.slane %v7942_v24, 1 }
 0x6f9   : > { %v4384_v18 = vpop.f32.mrf.mxu1  ;;  %v5763_v36 = vrot.slane %v7941_v30, 1 }
 0x6fa   : > { %13688 = vst [vmem:[#allocation122_spill] sm:$0xff] %v11723_v50  ;;  %7736 = vmatmul.msk.bf16.gmra.mxu2 %vm224_vm2, %v13689_v3  ;;  %v13692_v3 = vld [vmem:[#allocation32_spill] sm:$0xff] }
 0x6fb   : > { %v5273_v25 = vpack.c.b16 %v13693_v49, %v13692_v3  ;;  %13694 = vst [vmem:[#allocation32_spill] sm:$0xff] %v11739_v0 }
 0x6fd   : > { %v4616_v16 = vpop.f32.mrf.mxu2 }
 0x6fe   : > { %v4617_v12 = vadd.f32 %v4616_v16, %v4382_v45  ;;  %v11734_v5 = vpop.f32.mrf.mxu3  ;;  %v5830_v45 = vsel %vm2295_vm5, %v5762_v9, %v5763_v36  ;;  %v11748_v30 = vpop.f32.mrf.mxu0 }
 0x6ff   : > { %13695 = vst [vmem:[#allocation37_spill] sm:$0xff] %v11748_v30  ;;  %v13699_v30 = vld [vmem:[#allocation35_spill] sm:$0xff] }
 0x700   : > { %v11732_v1 = vadd.f32 %v11671_v54, %v4617_v12  ;;  %v5829_v54 = vsel %vm2295_vm5, %v5763_v36, %v5764_v59 }
 0x701   : > { %v4387_v50 = vpop.f32.mrf.mxu1  ;;  %7788 = vmatmul.msk.bf16.gmra.mxu0 %vm224_vm2, %v6294_v42  ;;  %v5870_v42 = vpack.c.bf16 %v5830_v45, %v5830_v45  ;;  %v5871_v24 = vpack.c.bf16 %v5829_v54, %v5829_v54  ;;  %v7943_v54 = vld [vmem:[#allocation3 + $0xb8] sm:$0xff] }
 0x702   : > { %13691 = vst [vmem:[#allocation123_spill] sm:$0xff] %v11732_v1  ;;  %v5766_v45 = vrot.slane %v7943_v54, 1  ;;  %v7946_v1 = vld [vmem:[#allocation3 + $0xc8] sm:$0xff] }
 0x703   : > { %v5974_v49 = vunpack.c.l.b16 %v5870_v42  ;;  %v5975_v9 = vunpack.c.l.b16 %v5871_v24  ;;  %v7944_v42 = vld [vmem:[#allocation3 + $0xb0] sm:$0xff] }
 0x704   : > { %7712 = vmatmul.msk.bf16.gmra.mxu1 %vm224_vm2, %v5273_v25  ;;  %v5765_v24 = vrot.slane %v7944_v42, 1 }
 0x705   : > { %v4618_v16 = vpop.f32.mrf.mxu2  ;;  %7764 = vmatmul.msk.bf16.gmra.mxu3 %vm224_vm2, %v11739_v0  ;;  %v6295_v51 = vpack.c.b16 %v5975_v9, %v5974_v49  ;;  %v11767_v0 = vpack.c.b16 %v5974_v49, %v5973_v43  ;;  %v13703_v49 = vld [vmem:[#allocation55_spill] sm:$0xff] }
 0x706   : > { %v4619_v12 = vadd.f32 %v4618_v16, %v4384_v18 }
 0x707   : > { %13701 = vst [vmem:[#allocation35_spill] sm:$0xff] %v11767_v0 }
 0x708   : > { %v11751_v23 = vadd.f32 %v11680_v63, %v4619_v12  ;;  %v11753_v17 = vpop.f32.mrf.mxu3  ;;  %v11762_v12 = vpop.f32.mrf.mxu0 }
 0x709   : > { %v4389_v3 = vpop.f32.mrf.mxu1  ;;  %13698 = vst [vmem:[#allocation126_spill] sm:$0xff] %v11762_v12 }
 0x70a   : > { %13696 = vst [vmem:[#allocation124_spill] sm:$0xff] %v11751_v23  ;;  %7737 = vmatmul.msk.bf16.gmra.mxu2 %vm224_vm2, %v10835_v14  ;;  %v13700_v23 = vld [vmem:[#allocation43_spill] sm:$0xff] }
 0x70b   : > { %v5274_v14 = vpack.c.b16 %v13700_v23, %v13699_v30 }
 0x70d   : > { %v4621_v36 = vpop.f32.mrf.mxu2 }
 0x70e   : > { %v4622_v25 = vadd.f32 %v4621_v36, %v4387_v50  ;;  %v5828_v50 = vsel %vm2295_vm5, %v5764_v59, %v5765_v24 }
 0x710   : > { %v11758_v18 = vadd.f32 %v11697_v52, %v4622_v25  ;;  %v11760_v16 = vpop.f32.mrf.mxu3  ;;  %v5827_v52 = vsel %vm2295_vm5, %v5765_v24, %v5766_v45  ;;  %v5872_v25 = vpack.c.bf16 %v5828_v50, %v5828_v50  ;;  %v13707_v50 = vld [vmem:[#allocation34_spill] sm:$0xff] }
 0x711   : > { %v4392_v63 = vpop.f32.mrf.mxu1  ;;  %7789 = vmatmul.msk.bf16.gmra.mxu0 %vm224_vm2, %v6295_v51  ;;  %v5873_v54 = vpack.c.bf16 %v5827_v52, %v5827_v52  ;;  %v13706_v52 = vld [vmem:[#allocation56_spill] sm:$0xff] }
 0x712   : > { %13697 = vst [vmem:[#allocation125_spill] sm:$0xff] %v11758_v18  ;;  %v5976_v42 = vunpack.c.l.b16 %v5872_v25  ;;  %v13709_v25 = vld [vmem:[#allocation11_spill] sm:$0xff] }
 0x713   : > { %v5977_v59 = vunpack.c.l.b16 %v5873_v54 }
 0x714   : > { %7713 = vmatmul.msk.bf16.gmra.mxu1 %vm224_vm2, %v5274_v14  ;;  %v11783_v14 = vpop.f32.mrf.mxu0 }
 0x715   : > { %v4623_v36 = vpop.f32.mrf.mxu2  ;;  %7765 = vmatmul.msk.bf16.gmra.mxu3 %vm224_vm2, %v11767_v0  ;;  %13704 = vst [vmem:[#allocation55_spill] sm:$0xff] %v11783_v14  ;;  %v6296_v18 = vpack.c.b16 %v5977_v59, %v5976_v42  ;;  %v13708_v14 = vld [vmem:[#allocation45_spill] sm:$0xff] }
 0x716   : > { %v4624_v51 = vadd.f32 %v4623_v36, %v4389_v3  ;;  %v5275_v54 = vpack.c.b16 %v13709_v25, %v13708_v14 }
 0x718   : > { %v11777_v30 = vadd.f32 %v11706_v10, %v4624_v51  ;;  %v11779_v43 = vpop.f32.mrf.mxu3  ;;  %v5211_v10 = vadd.f32 %v13707_v50, %v13706_v52  ;;  %v7945_v51 = vld [vmem:[#allocation3 + $0xc0] sm:$0xff] }
 0x719   : > { %v4394_v23 = vpop.f32.mrf.mxu1 }
 0x71a   : > { %13702 = vst [vmem:[#allocation43_spill] sm:$0xff] %v11777_v30  ;;  %7738 = vmatmul.msk.bf16.gmra.mxu2 %vm224_vm2, %v13703_v49  ;;  %v5767_v30 = vrot.slane %v7945_v51, 1 }
 0x71c   : > { %v11802_v50 = vpop.f32.mrf.mxu0 }
 0x71d   : > { %v4626_v24 = vpop.f32.mrf.mxu2  ;;  %13711 = vst [vmem:[#allocation34_spill] sm:$0xff] %v11802_v50 }
 0x71e   : > { %v4627_v12 = vadd.f32 %v4626_v24, %v4392_v63  ;;  %v5768_v63 = vrot.slane %v7946_v1, 1  ;;  %v11795_v24 = vpack.c.b16 %v5976_v42, %v5975_v9  ;;  %v13713_v9 = vld [vmem:[#allocation58_spill] sm:$0xff]  ;;  %v13714_v42 = vld [vmem:[#allocation41_spill] sm:$0xff] }
 0x720   : > { %v11786_v3 = vadd.f32 %v11725_v58, %v4627_v12  ;;  %v11790_v36 = vpop.f32.mrf.mxu3  ;;  %13710 = vst [vmem:[#allocation56_spill] sm:$0xff] %v11795_v24  ;;  %v5825_v58 = vsel %vm2295_vm5, %v5767_v30, %v5768_v63  ;;  %v5826_v12 = vsel %vm2295_vm5, %v5766_v45, %v5767_v30 }
 0x721   : > { %v5375_v0 = vpop.f32.mrf.mxu1  ;;  %7790 = vmatmul.msk.bf16.gmra.mxu0 %vm224_vm2, %v6296_v18  ;;  %v5874_v18 = vpack.c.bf16 %v5826_v12, %v5826_v12  ;;  %v5875_v14 = vpack.c.bf16 %v5825_v58, %v5825_v58  ;;  %v13718_v12 = vld [vmem:[#allocation63_spill] sm:$0xff] }
 0x722   : > { %13705 = vst [vmem:[#allocation127_spill] sm:$0xff] %v11786_v3  ;;  %v5495_v49 = vadd.f32 %v5375_v0, %v5211_v10  ;;  %v5212_v10 = vadd.f32 %v13714_v42, %v13713_v9  ;;  %v7947_v42 = vld [vmem:[#allocation3 + $0xd0] sm:$0xff] }
 0x723   : > { %v5978_v30 = vunpack.c.l.b16 %v5874_v18  ;;  %v5979_v50 = vunpack.c.l.b16 %v5875_v14 }
 0x724   : > { %7714 = vmatmul.msk.bf16.gmra.mxu1 %vm224_vm2, %v5275_v54  ;;  %v13715_v54 = vld [vmem:[#allocation62_spill] sm:$0xff] }
 0x725   : > { %v4628_v52 = vpop.f32.mrf.mxu2  ;;  %7766 = vmatmul.msk.bf16.gmra.mxu3 %vm224_vm2, %v11795_v24  ;;  %v6297_v58 = vpack.c.b16 %v5979_v50, %v5978_v30 }
 0x726   : > { %v4629_v0 = vadd.f32 %v4628_v52, %v4394_v23  ;;  %v11815_v23 = vpop.f32.mrf.mxu0  ;;  %v13719_v52 = vld [vmem:[#allocation47_spill] sm:$0xff] }
 0x727   : > { %13716 = vst [vmem:[#allocation11_spill] sm:$0xff] %v11815_v23 }
 0x728   : > { %v11807_v1 = vadd.f32 %v11734_v5, %v4629_v0  ;;  %v11811_v51 = vpop.f32.mrf.mxu3  ;;  %v5213_v0 = vadd.f32 %v13719_v52, %v13718_v12 }
 0x729   : > { %v5377_v25 = vpop.f32.mrf.mxu1 }
 0x72a   : > { %13712 = vst [vmem:[#allocation45_spill] sm:$0xff] %v11807_v1  ;;  %7739 = vmatmul.msk.bf16.gmra.mxu2 %vm224_vm2, %v13715_v54  ;;  %v5496_v45 = vadd.f32 %v5377_v25, %v5212_v10  ;;  %v5769_v1 = vrot.slane %v7947_v42, 1  ;;  %v5770_v54 = vrot.slane %v7948_v46, 1  ;;  %v11827_v25 = vpack.c.b16 %v5978_v30, %v5977_v59  ;;  %v13724_v59 = vld [vmem:[#allocation65_spill] sm:$0xff]  ;;  %v13725_v30 = vld [vmem:[#allocation12_spill] sm:$0xff] }
 0x72b   : > { %v5214_v42 = vadd.f32 %v13725_v30, %v13724_v59 }
 0x72c   : > { %13722 = vst [vmem:[#allocation41_spill] sm:$0xff] %v11827_v25 }
 0x72d   : > { %v5575_v3 = vpop.f32.mrf.mxu2 }
 0x72e   : > { %v5695_v24 = vadd.f32 %v5575_v3, %v5495_v49  ;;  %v13720_v3 = vld [vmem:[#allocation13_spill] sm:$0xff]  ;;  %v13721_v49 = vld [vmem:[#allocation60_spill] sm:$0xff] }
 0x72f   : > { %v5276_v14 = vpack.c.b16 %v13721_v49, %v13720_v3  ;;  %v11843_v3 = vpop.f32.mrf.mxu0 }
 0x730   : > { %v11818_v5 = vadd.f32 %v11753_v17, %v5695_v24  ;;  %v11822_v9 = vpop.f32.mrf.mxu3  ;;  %v5823_v17 = vsel %vm2295_vm5, %v5769_v1, %v5770_v54  ;;  %v5824_v24 = vsel %vm2295_vm5, %v5768_v63, %v5769_v1  ;;  %13726 = vst [vmem:[#allocation63_spill] sm:$0xff] %v11843_v3 }
 0x731   : > { %v5380_v10 = vpop.f32.mrf.mxu1  ;;  %7791 = vmatmul.msk.bf16.gmra.mxu0 %vm224_vm2, %v6297_v58  ;;  %v5876_v58 = vpack.c.bf16 %v5824_v24, %v5824_v24  ;;  %v5877_v52 = vpack.c.bf16 %v5823_v17, %v5823_v17 }
 0x732   : > { %13717 = vst [vmem:[#allocation58_spill] sm:$0xff] %v11818_v5  ;;  %v5497_v18 = vadd.f32 %v5380_v10, %v5213_v0 }
 0x733   : > { %v5980_v1 = vunpack.c.l.b16 %v5876_v58  ;;  %v5981_v23 = vunpack.c.l.b16 %v5877_v52  ;;  %v13732_v58 = vld [vmem:[#allocation66_spill] sm:$0xff] }
 0x734   : > { %7715 = vmatmul.msk.bf16.gmra.mxu1 %vm224_vm2, %v5276_v14  ;;  %v13727_v14 = vld [vmem:[#allocation69_spill] sm:$0xff] }
 0x735   : > { %v5577_v12 = vpop.f32.mrf.mxu2  ;;  %7767 = vmatmul.msk.bf16.gmra.mxu3 %vm224_vm2, %v11827_v25  ;;  %v6298_v17 = vpack.c.b16 %v5981_v23, %v5980_v1 }
 0x736   : > { %v5696_v46 = vadd.f32 %v5577_v12, %v5496_v45  ;;  %v13729_v12 = vld [vmem:[#allocation70_spill] sm:$0xff] }
 0x738   : > { %v11837_v0 = vadd.f32 %v11760_v16, %v5696_v46  ;;  %v11841_v10 = vpop.f32.mrf.mxu3  ;;  %v13730_v46 = vld [vmem:[#allocation54_spill] sm:$0xff] }
 0x739   : > { %v5382_v49 = vpop.f32.mrf.mxu1  ;;  %v5215_v59 = vadd.f32 %v13730_v46, %v13729_v12 }
 0x73a   : > { %13723 = vst [vmem:[#allocation62_spill] sm:$0xff] %v11837_v0  ;;  %7740 = vmatmul.msk.bf16.gmra.mxu2 %vm224_vm2, %v13727_v14  ;;  %v5498_v63 = vadd.f32 %v5382_v49, %v5214_v42  ;;  %v7949_v0 = vld [vmem:[#allocation3 + $0xe8] sm:$0xff]  ;;  %v7950_v49 = vld [vmem:[#allocation3 + $0xe0] sm:$0xff] }
 0x73b   : > { %v5772_v3 = vrot.slane %v7949_v0, 1  ;;  %v13731_v42 = vld [vmem:[#allocation59_spill] sm:$0xff] }
 0x73c   : > { %v5277_v52 = vpack.c.b16 %v13732_v58, %v13731_v42 }
 0x73d   : > { %v5580_v45 = vpop.f32.mrf.mxu2 }
 0x73e   : > { %v5697_v24 = vadd.f32 %v5580_v45, %v5497_v18  ;;  %v5771_v18 = vrot.slane %v7950_v49, 1  ;;  %v11857_v45 = vpop.f32.mrf.mxu0  ;;  %v13738_v49 = vld [vmem:[#allocation76_spill] sm:$0xff] }
 0x73f   : > { %13733 = vst [vmem:[#allocation13_spill] sm:$0xff] %v11857_v45 }
 0x740   : > { %v11848_v16 = vadd.f32 %v11779_v43, %v5697_v24  ;;  %v11852_v30 = vpop.f32.mrf.mxu3  ;;  %v11859_v43 = vpack.c.b16 %v5980_v1, %v5979_v50  ;;  %v5821_v24 = vsel %vm2295_vm5, %v5771_v18, %v5772_v3  ;;  %v5822_v0 = vsel %vm2295_vm5, %v5770_v54, %v5771_v18  ;;  %v13736_v50 = vld [vmem:[#allocation72_spill] sm:$0xff]  ;;  %v13737_v1 = vld [vmem:[#allocation57_spill] sm:$0xff] }
 0x741   : > { %v5385_v25 = vpop.f32.mrf.mxu1  ;;  %7792 = vmatmul.msk.bf16.gmra.mxu0 %vm224_vm2, %v6298_v17  ;;  %v5878_v17 = vpack.c.bf16 %v5822_v0, %v5822_v0  ;;  %v5879_v46 = vpack.c.bf16 %v5821_v24, %v5821_v24  ;;  %v5216_v42 = vadd.f32 %v13737_v1, %v13736_v50 }
 0x742   : > { %13728 = vst [vmem:[#allocation47_spill] sm:$0xff] %v11848_v16  ;;  %v5499_v14 = vadd.f32 %v5385_v25, %v5215_v59 }
 0x743   : > { %13734 = vst [vmem:[#allocation60_spill] sm:$0xff] %v11859_v43  ;;  %v5982_v18 = vunpack.c.l.b16 %v5878_v17  ;;  %v5983_v45 = vunpack.c.l.b16 %v5879_v46  ;;  %v13743_v46 = vld [vmem:[#allocation67_spill] sm:$0xff] }
 0x744   : > { %7716 = vmatmul.msk.bf16.gmra.mxu1 %vm224_vm2, %v5277_v52 }
 0x745   : > { %v5582_v12 = vpop.f32.mrf.mxu2  ;;  %7768 = vmatmul.msk.bf16.gmra.mxu3 %vm224_vm2, %v11859_v43  ;;  %v6299_v24 = vpack.c.b16 %v5983_v45, %v5982_v18 }
 0x746   : > { %v5698_v25 = vadd.f32 %v5582_v12, %v5498_v63  ;;  %v11877_v16 = vpop.f32.mrf.mxu0  ;;  %v13741_v12 = vld [vmem:[#allocation77_spill] sm:$0xff] }
 0x747   : > { %13739 = vst [vmem:[#allocation12_spill] sm:$0xff] %v11877_v16 }
 0x748   : > { %v11869_v59 = vadd.f32 %v11790_v36, %v5698_v25  ;;  %v11873_v58 = vpop.f32.mrf.mxu3  ;;  %v13742_v25 = vld [vmem:[#allocation61_spill] sm:$0xff] }
 0x749   : > { %v5387_v52 = vpop.f32.mrf.mxu1  ;;  %v5217_v50 = vadd.f32 %v13742_v25, %v13741_v12 }
 0x74a   : > { %13735 = vst [vmem:[#allocation65_spill] sm:$0xff] %v11869_v59  ;;  %7741 = vmatmul.msk.bf16.gmra.mxu2 %vm224_vm2, %v13738_v49  ;;  %v5500_v54 = vadd.f32 %v5387_v52, %v5216_v42  ;;  %v7951_v59 = vld [vmem:[#allocation3 + $0xf0] sm:$0xff]  ;;  %v13744_v42 = vld [vmem:[#allocation73_spill] sm:$0xff] }
 0x74b   : > { %v5773_v43 = vrot.slane %v7951_v59, 1  ;;  %v5278_v52 = vpack.c.b16 %v13744_v42, %v13743_v46  ;;  %v7952_v49 = vld [vmem:[#allocation3 + $0xf8] sm:$0xff] }
 0x74d   : > { %v5585_v63 = vpop.f32.mrf.mxu2 }
 0x74e   : > { %v5699_v0 = vadd.f32 %v5585_v63, %v5499_v14  ;;  %v5774_v14 = vrot.slane %v7952_v49, 1  ;;  %v11889_v63 = vpack.c.b16 %v5982_v18, %v5981_v23  ;;  %v13748_v18 = vld [vmem:[#allocation79_spill] sm:$0xff] }
 0x74f   : > { %v13750_v49 = vld [vmem:[#allocation83_spill] sm:$0xff] }
 0x750   : > { %v11880_v36 = vadd.f32 %v11811_v51, %v5699_v0  ;;  %v11884_v1 = vpop.f32.mrf.mxu3  ;;  %13745 = vst [vmem:[#allocation70_spill] sm:$0xff] %v11889_v63  ;;  %v5819_v51 = vsel %vm2295_vm5, %v5773_v43, %v5774_v14  ;;  %v5820_v0 = vsel %vm2295_vm5, %v5772_v3, %v5773_v43 }
 0x751   : > { %v5390_v5 = vpop.f32.mrf.mxu1  ;;  %7793 = vmatmul.msk.bf16.gmra.mxu0 %vm224_vm2, %v6299_v24  ;;  %v11898_v24 = vpop.f32.mrf.mxu0  ;;  %v5880_v12 = vpack.c.bf16 %v5820_v0, %v5820_v0  ;;  %v5881_v25 = vpack.c.bf16 %v5819_v51, %v5819_v51  ;;  %v13752_v0 = vld [vmem:[#allocation68_spill] sm:$0xff] }
 0x752   : > { %13740 = vst [vmem:[#allocation69_spill] sm:$0xff] %v11880_v36  ;;  %v5501_v17 = vadd.f32 %v5390_v5, %v5217_v50  ;;  %v13749_v50 = vld [vmem:[#allocation64_spill] sm:$0xff] }
 0x753   : > { %13746 = vst [vmem:[#allocation54_spill] sm:$0xff] %v11898_v24  ;;  %v5218_v46 = vadd.f32 %v13749_v50, %v13748_v18  ;;  %v5984_v43 = vunpack.c.l.b16 %v5880_v12  ;;  %v5985_v16 = vunpack.c.l.b16 %v5881_v25  ;;  %v7953_v18 = vld [vmem:[#allocation3 + $0x100] sm:$0xff]  ;;  %v13755_v25 = vld [vmem:[#allocation81_spill] sm:$0xff] }
 0x754   : > { %7717 = vmatmul.msk.bf16.gmra.mxu1 %vm224_vm2, %v5278_v52  ;;  %v5775_v50 = vrot.slane %v7953_v18, 1 }
 0x755   : > { %v5587_v59 = vpop.f32.mrf.mxu2  ;;  %7769 = vmatmul.msk.bf16.gmra.mxu3 %vm224_vm2, %v11889_v63  ;;  %v6300_v24 = vpack.c.b16 %v5985_v16, %v5984_v43  ;;  %v7954_v63 = vld [vmem:[#allocation3 + $0x108] sm:$0xff] }
 0x756   : > { %v5700_v5 = vadd.f32 %v5587_v59, %v5500_v54  ;;  %v5776_v36 = vrot.slane %v7954_v63, 1 }
 0x758   : > { %v11901_v23 = vadd.f32 %v11822_v9, %v5700_v5  ;;  %v11905_v42 = vpop.f32.mrf.mxu3  ;;  %v13751_v9 = vld [vmem:[#allocation84_spill] sm:$0xff] }
 0x759   : > { %v5392_v52 = vpop.f32.mrf.mxu1  ;;  %v5219_v5 = vadd.f32 %v13752_v0, %v13751_v9  ;;  %v11916_v22 = vpop.f32.mrf.mxu0 }
 0x75a   : > { %13747 = vst [vmem:[#allocation59_spill] sm:$0xff] %v11901_v23  ;;  %7742 = vmatmul.msk.bf16.gmra.mxu2 %vm224_vm2, %v13750_v49  ;;  %v5502_v3 = vadd.f32 %v5392_v52, %v5218_v46  ;;  %v5817_v49 = vsel %vm2295_vm5, %v5775_v50, %v5776_v36 }
 0x75b   : > { %13753 = vst [vmem:[#allocation66_spill] sm:$0xff] %v11916_v22  ;;  %v5883_v9 = vpack.c.bf16 %v5817_v49, %v5817_v49 }
 0x75d   : > { %v5590_v54 = vpop.f32.mrf.mxu2 }
 0x75e   : > { %v5701_v59 = vadd.f32 %v5590_v54, %v5501_v17  ;;  %v13754_v17 = vld [vmem:[#allocation74_spill] sm:$0xff]  ;;  %v5818_v54 = vsel %vm2295_vm5, %v5774_v14, %v5775_v50 }
 0x75f   : > { %v5279_v52 = vpack.c.b16 %v13755_v25, %v13754_v17  ;;  %v5987_v25 = vunpack.c.l.b16 %v5883_v9  ;;  %v7956_v9 = vld [vmem:[#allocation3 + $0x110] sm:$0xff] }
 0x760   : > { %v11910_v51 = vadd.f32 %v11841_v10, %v5701_v59  ;;  %v11914_v23 = vpop.f32.mrf.mxu3  ;;  %v11921_v10 = vpack.c.b16 %v5984_v43, %v5983_v45  ;;  %v13756_v45 = vld [vmem:[#allocation86_spill] sm:$0xff]  ;;  %v13757_v43 = vld [vmem:[#allocation71_spill] sm:$0xff] }
 0x761   : > { %v5395_v46 = vpop.f32.mrf.mxu1  ;;  %7794 = vmatmul.msk.bf16.gmra.mxu0 %vm224_vm2, %v6300_v24  ;;  %v5882_v24 = vpack.c.bf16 %v5818_v54, %v5818_v54  ;;  %v11939_v50 = vpop.f32.mrf.mxu0  ;;  %v13758_v54 = vld [vmem:[#allocation75_spill] sm:$0xff] }
 0x762   : > { %v5503_v12 = vadd.f32 %v5395_v46, %v5219_v5  ;;  %v5220_v5 = vadd.f32 %v13757_v43, %v13756_v45  ;;  %v7955_v45 = vld [vmem:[#allocation3 + $0x118] sm:$0xff] }
 0x763   : > { %v5986_v17 = vunpack.c.l.b16 %v5882_v24  ;;  %v5778_v43 = vrot.slane %v7955_v45, 1 }
 0x764   : > { %7718 = vmatmul.msk.bf16.gmra.mxu1 %vm224_vm2, %v5279_v52 }
 0x765   : > { %v5592_v63 = vpop.f32.mrf.mxu2  ;;  %7770 = vmatmul.msk.bf16.gmra.mxu3 %vm224_vm2, %v11921_v10  ;;  %v6301_v49 = vpack.c.b16 %v5987_v25, %v5986_v17 }
 0x766   : > { %v5702_v59 = vadd.f32 %v5592_v63, %v5502_v3  ;;  %v5221_v63 = vadd.f32 %v13758_v54, %v11156_v8  ;;  %v13763_v54 = vld [vmem:[#allocation78_spill] sm:$0xff] }
 0x768   : > { %v11931_v0 = vadd.f32 %v11852_v30, %v5702_v59  ;;  %v11935_v18 = vpop.f32.mrf.mxu3 }
 0x769   : > { %v5397_v46 = vpop.f32.mrf.mxu1 }
 0x76a   : > { %7743 = vmatmul.msk.bf16.gmra.mxu2 %vm224_vm2, %v11153_v33  ;;  %v5504_v14 = vadd.f32 %v5397_v46, %v5220_v5  ;;  %v13759_v5 = vld [vmem:[#allocation80_spill] sm:$0xff]  ;;  %v11951_v46 = vpack.c.b16 %v5986_v17, %v5985_v16  ;;  %v13762_v17 = vld [vmem:[#allocation90_spill] sm:$0xff] }
 0x76b   : > { %v5280_v24 = vpack.c.b16 %v11141_v38, %v13759_v5 }
 0x76d   : > { %v5595_v3 = vpop.f32.mrf.mxu2 }
 0x76e   : > { %v5703_v52 = vadd.f32 %v5595_v3, %v5503_v12  ;;  %v5777_v12 = vrot.slane %v7956_v9, 1  ;;  %v11958_v3 = vpop.f32.mrf.mxu0 }
 0x76f   : > { %13760 = vst [vmem:[#allocation72_spill] sm:$0xff] %v11958_v3 }
 0x770   : > { %v11942_v30 = vadd.f32 %v11873_v58, %v5703_v52  ;;  %v11946_v59 = vpop.f32.mrf.mxu3  ;;  %v5815_v8 = vsel %vm2295_vm5, %v5777_v12, %v5778_v43  ;;  %v5816_v58 = vsel %vm2295_vm5, %v5776_v36, %v5777_v12 }
 0x771   : > { %v5400_v22 = vpop.f32.mrf.mxu1  ;;  %7795 = vmatmul.msk.bf16.gmra.mxu0 %vm224_vm2, %v6301_v49  ;;  %v5884_v38 = vpack.c.bf16 %v5816_v58, %v5816_v58  ;;  %v5885_v49 = vpack.c.bf16 %v5815_v8, %v5815_v8  ;;  %v13764_v58 = vld [vmem:[#allocation82_spill] sm:$0xff] }
 0x772   : > { %v5505_v33 = vadd.f32 %v5400_v22, %v5221_v63  ;;  %v5222_v63 = vadd.f32 %v13763_v54, %v13762_v17  ;;  %v7957_v17 = vld [vmem:[#allocation3 + $0x120] sm:$0xff] }
 0x773   : > { %v5989_v9 = vunpack.c.l.b16 %v5885_v49  ;;  %v5779_v54 = vrot.slane %v7957_v17, 1  ;;  %v7958_v49 = vld [vmem:[#allocation3 + $0x128] sm:$0xff] }
 0x774   : > { %7719 = vmatmul.msk.bf16.gmra.mxu1 %vm224_vm2, %v5280_v24  ;;  %v5988_v24 = vunpack.c.l.b16 %v5884_v38  ;;  %v13765_v38 = vld [vmem:[#allocation87_spill] sm:$0xff] }
 0x775   : > { %v5597_v52 = vpop.f32.mrf.mxu2  ;;  %7771 = vmatmul.msk.bf16.gmra.mxu3 %vm224_vm2, %v11951_v46 }
 0x776   : > { %v5704_v22 = vadd.f32 %v5597_v52, %v5504_v14  ;;  %v11971_v14 = vpop.f32.mrf.mxu0  ;;  %v6302_v8 = vpack.c.b16 %v5989_v9, %v5988_v24  ;;  %v5223_v52 = vadd.f32 %v13764_v58, %v11207_v27 }
 0x778   : > { %v11963_v16 = vadd.f32 %v11884_v1, %v5704_v22  ;;  %v11967_v45 = vpop.f32.mrf.mxu3 }
 0x779   : > { %v5402_v5 = vpop.f32.mrf.mxu1 }
 0x77a   : > { %13761 = vst [vmem:[#allocation57_spill] sm:$0xff] %v11963_v16  ;;  %7744 = vmatmul.msk.bf16.gmra.mxu2 %vm224_vm2, %v11204_v20  ;;  %v5506_v36 = vadd.f32 %v5402_v5, %v5222_v63  ;;  %v5780_v63 = vrot.slane %v7958_v49, 1  ;;  %v11983_v5 = vpack.c.b16 %v5988_v24, %v5987_v25  ;;  %v13767_v25 = vld [vmem:[#allocation94_spill] sm:$0xff]  ;;  %v13768_v24 = vld [vmem:[#allocation85_spill] sm:$0xff] }
 0x77b   : > { %v5224_v58 = vadd.f32 %v13768_v24, %v13767_v25  ;;  %v7960_v24 = vld [vmem:[#allocation3 + $0x138] sm:$0xff] }
 0x77c   : > { %v5813_v27 = vsel %vm2295_vm5, %v5779_v54, %v5780_v63 }
 0x77d   : > { %v5600_v12 = vpop.f32.mrf.mxu2 }
 0x77e   : > { %v5705_v3 = vadd.f32 %v5600_v12, %v5505_v33  ;;  %v5281_v33 = vpack.c.b16 %v11192_v21, %v13765_v38  ;;  %v11999_v17 = vpop.f32.mrf.mxu0 }
 0x77f   : > { %13769 = vst [vmem:[#allocation77_spill] sm:$0xff] %v11999_v17  ;;  %v5782_v17 = vrot.slane %v7960_v24, 1 }
 0x780   : > { %v11974_v1 = vadd.f32 %v11905_v42, %v5705_v3  ;;  %v11978_v22 = vpop.f32.mrf.mxu3  ;;  %v5814_v42 = vsel %vm2295_vm5, %v5778_v43, %v5779_v54 }
 0x781   : > { %v5405_v16 = vpop.f32.mrf.mxu1  ;;  %7796 = vmatmul.msk.bf16.gmra.mxu0 %vm224_vm2, %v6302_v8  ;;  %v5886_v12 = vpack.c.bf16 %v5814_v42, %v5814_v42  ;;  %v5887_v8 = vpack.c.bf16 %v5813_v27, %v5813_v27  ;;  %v13770_v42 = vld [vmem:[#allocation88_spill] sm:$0xff] }
 0x782   : > { %v5507_v20 = vadd.f32 %v5405_v16, %v5223_v52 }
 0x783   : > { %v5990_v54 = vunpack.c.l.b16 %v5886_v12 }
 0x784   : > { %7720 = vmatmul.msk.bf16.gmra.mxu1 %vm224_vm2, %v5281_v33  ;;  %v5991_v33 = vunpack.c.l.b16 %v5887_v8  ;;  %v13771_v8 = vld [vmem:[#allocation91_spill] sm:$0xff] }
 0x785   : > { %v5602_v3 = vpop.f32.mrf.mxu2  ;;  %7772 = vmatmul.msk.bf16.gmra.mxu3 %vm224_vm2, %v11983_v5 }
 0x786   : > { %v5706_v16 = vadd.f32 %v5602_v3, %v5506_v36  ;;  %v6303_v27 = vpack.c.b16 %v5991_v33, %v5990_v54  ;;  %v5225_v3 = vadd.f32 %v13770_v42, %v11256_v62 }
 0x788   : > { %v11993_v21 = vadd.f32 %v11914_v23, %v5706_v16  ;;  %v11997_v52 = vpop.f32.mrf.mxu3  ;;  %v7959_v16 = vld [vmem:[#allocation3 + $0x130] sm:$0xff] }
 0x789   : > { %v5407_v38 = vpop.f32.mrf.mxu1  ;;  %v5781_v25 = vrot.slane %v7959_v16, 1 }
 0x78a   : > { %13766 = vst [vmem:[#allocation76_spill] sm:$0xff] %v11993_v21  ;;  %7745 = vmatmul.msk.bf16.gmra.mxu2 %vm224_vm2, %v11253_v15  ;;  %v5508_v43 = vadd.f32 %v5407_v38, %v5224_v58  ;;  %v13772_v58 = vld [vmem:[#allocation96_spill] sm:$0xff]  ;;  %v12013_v38 = vpop.f32.mrf.mxu0 }
 0x78b   : > { %v5811_v62 = vsel %vm2295_vm5, %v5781_v25, %v5782_v17 }
 0x78c   : > { %v5889_v42 = vpack.c.bf16 %v5811_v62, %v5811_v62 }
 0x78d   : > { %v5605_v36 = vpop.f32.mrf.mxu2 }
 0x78e   : > { %v5707_v49 = vadd.f32 %v5605_v36, %v5507_v20  ;;  %v5282_v20 = vpack.c.b16 %v13772_v58, %v13771_v8  ;;  %v5812_v36 = vsel %vm2295_vm5, %v5780_v63, %v5781_v25  ;;  %v5993_v25 = vunpack.c.l.b16 %v5889_v42  ;;  %v7962_v42 = vld [vmem:[#allocation3 + $0x140] sm:$0xff] }
 0x790   : > { %v12004_v23 = vadd.f32 %v11935_v18, %v5707_v49  ;;  %v12009_v15 = vpop.f32.mrf.mxu3  ;;  %v12015_v18 = vpack.c.b16 %v5990_v54, %v5989_v9  ;;  %v13774_v9 = vld [vmem:[#allocation99_spill] sm:$0xff]  ;;  %v13775_v54 = vld [vmem:[#allocation89_spill] sm:$0xff] }
 0x791   : > { %v5410_v21 = vpop.f32.mrf.mxu1  ;;  %7797 = vmatmul.msk.bf16.gmra.mxu0 %vm224_vm2, %v6303_v27  ;;  %v5888_v27 = vpack.c.bf16 %v5812_v36, %v5812_v36  ;;  %v5226_v16 = vadd.f32 %v13775_v54, %v13774_v9  ;;  %v7961_v9 = vld [vmem:[#allocation3 + $0x148] sm:$0xff] }
 0x792   : > { %v5509_v12 = vadd.f32 %v5410_v21, %v5225_v3  ;;  %v5784_v54 = vrot.slane %v7961_v9, 1 }
 0x793   : > { %v5992_v63 = vunpack.c.l.b16 %v5888_v27 }
 0x794   : > { %7721 = vmatmul.msk.bf16.gmra.mxu1 %vm224_vm2, %v5282_v20  ;;  %v12033_v20 = vpop.f32.mrf.mxu0 }
 0x795   : > { %v5607_v49 = vpop.f32.mrf.mxu2  ;;  %7773 = vmatmul.msk.bf16.gmra.mxu3 %vm224_vm2, %v12015_v18  ;;  %13776 = vst [vmem:[#allocation67_spill] sm:$0xff] %v12033_v20  ;;  %v6304_v62 = vpack.c.b16 %v5993_v25, %v5992_v63  ;;  %v12043_v20 = vpack.c.b16 %v5992_v63, %v5991_v33 }
 0x796   : > { %v5708_v21 = vadd.f32 %v5607_v49, %v5508_v43  ;;  %v13777_v49 = vld [vmem:[#allocation92_spill] sm:$0xff] }
 0x798   : > { %v12025_v3 = vadd.f32 %v11946_v59, %v5708_v21  ;;  %v12031_v58 = vpop.f32.mrf.mxu3  ;;  %v5227_v21 = vadd.f32 %v13777_v49, %v11307_v47 }
 0x799   : > { %v5412_v24 = vpop.f32.mrf.mxu1 }
 0x79a   : > { %13773 = vst [vmem:[#allocation61_spill] sm:$0xff] %v12025_v3  ;;  %7746 = vmatmul.msk.bf16.gmra.mxu2 %vm224_vm2, %v11304_v55  ;;  %v5510_v8 = vadd.f32 %v5412_v24, %v5226_v16  ;;  %v13778_v16 = vld [vmem:[#allocation95_spill] sm:$0xff]  ;;  %v5783_v24 = vrot.slane %v7962_v42, 1 }
 0x79b   : > { %v5283_v27 = vpack.c.b16 %v11292_v60, %v13778_v16 }
 0x79c   : > { %v5810_v47 = vsel %vm2295_vm5, %v5782_v17, %v5783_v24  ;;  %v12054_v60 = vpop.f32.mrf.mxu0 }
 0x79d   : > { %v5610_v43 = vpop.f32.mrf.mxu2 }
 0x79e   : > { %v5709_v36 = vadd.f32 %v5610_v43, %v5509_v12 }
 0x7a0   : > { %v12036_v59 = vadd.f32 %v11967_v45, %v5709_v36  ;;  %v5809_v45 = vsel %vm2295_vm5, %v5783_v24, %v5784_v54  ;;  %v12050_v43 = vpop.f32.mrf.mxu3  ;;  %v5890_v36 = vpack.c.bf16 %v5810_v47, %v5810_v47 }
 0x7a1   : > { %v5415_v3 = vpop.f32.mrf.mxu1  ;;  %7798 = vmatmul.msk.bf16.gmra.mxu0 %vm224_vm2, %v6304_v62  ;;  %v5891_v33 = vpack.c.bf16 %v5809_v45, %v5809_v45  ;;  %v13779_v62 = vld [vmem:[#allocation93_spill] sm:$0xff] }
 0x7a2   : > { %v5511_v55 = vadd.f32 %v5415_v3, %v5227_v21  ;;  %v5228_v49 = vadd.f32 %v13779_v62, %v11332_v4  ;;  %v5994_v9 = vunpack.c.l.b16 %v5890_v36  ;;  %v7964_v36 = vld [vmem:[#allocation3 + $0x158] sm:$0xff] }
 0x7a3   : > { %v5995_v16 = vunpack.c.l.b16 %v5891_v33  ;;  %v5786_v33 = vrot.slane %v7964_v36, 1 }
 0x7a4   : > { %7722 = vmatmul.msk.bf16.gmra.mxu1 %vm224_vm2, %v5283_v27 }
 0x7a5   : > { %v5612_v12 = vpop.f32.mrf.mxu2  ;;  %7774 = vmatmul.msk.bf16.gmra.mxu3 %vm224_vm2, %v12043_v20  ;;  %v6305_v24 = vpack.c.b16 %v5995_v16, %v5994_v9 }
 0x7a6   : > { %v5710_v3 = vadd.f32 %v5612_v12, %v5510_v8  ;;  %v7963_v12 = vld [vmem:[#allocation3 + $0x150] sm:$0xff] }
 0x7a7   : > { %v5785_v4 = vrot.slane %v7963_v12, 1 }
 0x7a8   : > { %v12057_v63 = vadd.f32 %v11978_v22, %v5710_v3  ;;  %v12063_v8 = vpop.f32.mrf.mxu3  ;;  %v13780_v22 = vld [vmem:[#allocation97_spill] sm:$0xff]  ;;  %v12070_v3 = vpop.f32.mrf.mxu0 }
 0x7a9   : > { %v5417_v21 = vpop.f32.mrf.mxu1  ;;  %v5229_v47 = vadd.f32 %v13780_v22, %v11356_v40  ;;  %v5807_v40 = vsel %vm2295_vm5, %v5785_v4, %v5786_v33 }
 0x7aa   : > { %7747 = vmatmul.msk.bf16.gmra.mxu2 %vm224_vm2, %v11353_v31  ;;  %v5512_v17 = vadd.f32 %v5417_v21, %v5228_v49  ;;  %v12075_v49 = vpack.c.b16 %v5994_v9, %v5993_v25 }
 0x7ad   : > { %v5615_v27 = vpop.f32.mrf.mxu2 }
 0x7ae   : > { %v5711_v42 = vadd.f32 %v5615_v27, %v5511_v55  ;;  %v5284_v55 = vpack.c.b16 %v11341_v39, %v11298_v44  ;;  %v13781_v39 = vld [vmem:[#allocation98_spill] sm:$0xff] }
 0x7af   : > { %v5230_v25 = vadd.f32 %v13781_v39, %v11377_v34  ;;  %v7965_v34 = vld [vmem:[#allocation3 + $0x160] sm:$0xff] }
 0x7b0   : > { %v12066_v45 = vadd.f32 %v11997_v52, %v5711_v42  ;;  %v5808_v52 = vsel %vm2295_vm5, %v5784_v54, %v5785_v4  ;;  %v6163_v22 = vpop.f32.mrf.mxu3  ;;  %v12091_v54 = vpop.f32.mrf.mxu0 }
 0x7b1   : > { %v5420_v62 = vpop.f32.mrf.mxu1  ;;  %7799 = vmatmul.msk.bf16.gmra.mxu0 %vm224_vm2, %v6305_v24  ;;  %v5892_v42 = vpack.c.bf16 %v5808_v52, %v5808_v52  ;;  %v5893_v24 = vpack.c.bf16 %v5807_v40, %v5807_v40  ;;  %v5787_v52 = vrot.slane %v7965_v34, 1 }
 0x7b2   : > { %v5513_v31 = vadd.f32 %v5420_v62, %v5229_v47 }
 0x7b3   : > { %v5996_v12 = vunpack.c.l.b16 %v5892_v42  ;;  %v5997_v4 = vunpack.c.l.b16 %v5893_v24 }
 0x7b4   : > { %7723 = vmatmul.msk.bf16.gmra.mxu1 %vm224_vm2, %v5284_v55 }
 0x7b5   : > { %v5617_v21 = vpop.f32.mrf.mxu2  ;;  %7775 = vmatmul.msk.bf16.gmra.mxu3 %vm224_vm2, %v12075_v49  ;;  %v6306_v55 = vpack.c.b16 %v5997_v4, %v5996_v12 }
 0x7b6   : > { %v5712_v27 = vadd.f32 %v5617_v21, %v5512_v17  ;;  %v7966_v21 = vld [vmem:[#allocation3 + $0x168] sm:$0xff] }
 0x7b8   : > { %v12085_v44 = vadd.f32 %v12009_v15, %v5712_v27  ;;  %v13782_v15 = vld [vmem:[#allocation100_spill] sm:$0xff]  ;;  %v5788_v27 = vrot.slane %v7966_v21, 1  ;;  %v6166_v24 = vpop.f32.mrf.mxu3 }
 0x7b9   : > { %v5422_v9 = vpop.f32.mrf.mxu1  ;;  %v5231_v40 = vadd.f32 %v13782_v15, %v11402_v26  ;;  %v5806_v26 = vsel %vm2295_vm5, %v5786_v33, %v5787_v52 }
 0x7ba   : > { %7748 = vmatmul.msk.bf16.gmra.mxu2 %vm224_vm2, %v11399_v11  ;;  %v5514_v47 = vadd.f32 %v5422_v9, %v5230_v25  ;;  %v13783_v25 = vld [vmem:[#allocation102_spill] sm:$0xff]  ;;  %v12108_v9 = vpop.f32.mrf.mxu0 }
 0x7bb   : > { %v5285_v42 = vpack.c.b16 %v11391_v29, %v13783_v25 }
 0x7bd   : > { %v5620_v62 = vpop.f32.mrf.mxu2 }
 0x7be   : > { %v5713_v17 = vadd.f32 %v5620_v62, %v5513_v31  ;;  %v12101_v31 = vpack.c.b16 %v5996_v12, %v5995_v16  ;;  %v13784_v12 = vld [vmem:[#allocation101_spill] sm:$0xff] }
 0x7bf   : > { %v5232_v15 = vadd.f32 %v13784_v12, %v11417_v37  ;;  %v7967_v37 = vld [vmem:[#allocation3 + $0x178] sm:$0xff] }
 0x7c0   : > { %v12094_v36 = vadd.f32 %v12031_v58, %v5713_v17  ;;  %v5805_v58 = vsel %vm2295_vm5, %v5787_v52, %v5788_v27 }
 0x7c1   : > { %v5425_v39 = vpop.f32.mrf.mxu1  ;;  %7800 = vmatmul.msk.bf16.gmra.mxu0 %vm224_vm2, %v6306_v55  ;;  %v5894_v55 = vpack.c.bf16 %v5806_v26, %v5806_v26  ;;  %v5895_v29 = vpack.c.bf16 %v5805_v58, %v5805_v58 }
 0x7c2   : > { %v5515_v11 = vadd.f32 %v5425_v39, %v5231_v40  ;;  %v6168_v39 = vpop.f32.mrf.mxu3 }
 0x7c3   : > { %v5998_v34 = vunpack.c.l.b16 %v5894_v55  ;;  %v5999_v52 = vunpack.c.l.b16 %v5895_v29  ;;  %v5286_v55 = vpack.c.b16 %v11423_v56, %v11387_v48  ;;  %v7968_v29 = vld [vmem:[#allocation3 + $0x170] sm:$0xff] }
 0x7c4   : > { %7724 = vmatmul.msk.bf16.gmra.mxu1 %vm224_vm2, %v5285_v42  ;;  %v12119_v42 = vpop.f32.mrf.mxu0 }
 0x7c5   : > { %v5622_v62 = vpop.f32.mrf.mxu2  ;;  %7776 = vmatmul.msk.bf16.gmra.mxu3 %vm224_vm2, %v12101_v31  ;;  %v12129_v12 = vpack.c.b16 %v5998_v34, %v5997_v4  ;;  %v13786_v4 = vld [vmem:[#allocation104_spill] sm:$0xff] }
 0x7c6   : > { %v5714_v17 = vadd.f32 %v5622_v62, %v5514_v47  ;;  %v6307_v47 = vpack.c.b16 %v5999_v52, %v5998_v34  ;;  %v5790_v62 = vrot.slane %v7967_v37, 1  ;;  %v5234_v34 = vadd.f32 %v13786_v4, %v11450_v28 }
 0x7c8   : > { %v12113_v16 = vadd.f32 %v12050_v43, %v5714_v17  ;;  %v13785_v43 = vld [vmem:[#allocation103_spill] sm:$0xff] }
 0x7c9   : > { %v5427_v40 = vpop.f32.mrf.mxu1  ;;  %v5233_v26 = vadd.f32 %v13785_v43, %v11438_v35 }
 0x7ca   : > { %7749 = vmatmul.msk.bf16.gmra.mxu2 %vm224_vm2, %v11435_v32  ;;  %v5516_v33 = vadd.f32 %v5427_v40, %v5232_v15 }
 0x7cd   : > { %v5625_v21 = vpop.f32.mrf.mxu2 }
 0x7ce   : > { %v5715_v25 = vadd.f32 %v5625_v21, %v5515_v11  ;;  %v5789_v11 = vrot.slane %v7968_v29, 1  ;;  %v6171_v21 = vpop.f32.mrf.mxu3 }
 0x7d0   : > { %v12122_v58 = vadd.f32 %v12063_v8, %v5715_v25  ;;  %v5803_v8 = vsel %vm2295_vm5, %v5789_v11, %v5790_v62  ;;  %v5804_v35 = vsel %vm2295_vm5, %v5788_v27, %v5789_v11 }
 0x7d1   : > { %v5430_v17 = vpop.f32.mrf.mxu1  ;;  %7801 = vmatmul.msk.bf16.gmra.mxu0 %vm224_vm2, %v6307_v47  ;;  %v5896_v25 = vpack.c.bf16 %v5804_v35, %v5804_v35  ;;  %v5897_v48 = vpack.c.bf16 %v5803_v8, %v5803_v8  ;;  %v12142_v47 = vpop.f32.mrf.mxu0 }
 0x7d2   : > { %v5517_v32 = vadd.f32 %v5430_v17, %v5233_v26 }
 0x7d3   : > { %v6000_v26 = vunpack.c.l.b16 %v5896_v25  ;;  %v6001_v37 = vunpack.c.l.b16 %v5897_v48 }
 0x7d4   : > { %7725 = vmatmul.msk.bf16.gmra.mxu1 %vm224_vm2, %v5286_v55 }
 0x7d5   : > { %v5627_v15 = vpop.f32.mrf.mxu2  ;;  %7777 = vmatmul.msk.bf16.gmra.mxu3 %vm224_vm2, %v12129_v12 }
 0x7d6   : > { %v5716_v40 = vadd.f32 %v5627_v15, %v5516_v33  ;;  %v6308_v33 = vpack.c.b16 %v6001_v37, %v6000_v26  ;;  %v6173_v35 = vpop.f32.mrf.mxu3 }
 0x7d8   : > { %v12138_v56 = vadd.f32 %v6163_v22, %v5716_v40  ;;  %v13787_v22 = vld [vmem:[#allocation105_spill] sm:$0xff]  ;;  %v12153_v40 = vpack.c.b16 %v6000_v26, %v5999_v52  ;;  %v5236_v52 = vadd.f32 %v11411_v61, %v11477_v53 }
 0x7d9   : > { %v5432_v43 = vpop.f32.mrf.mxu1  ;;  %v5235_v11 = vadd.f32 %v13787_v22, %v11464_v13  ;;  %v12151_v15 = vpop.f32.mrf.mxu0 }
 0x7da   : > { %7750 = vmatmul.msk.bf16.gmra.mxu2 %vm224_vm2, %v11461_v19  ;;  %v5518_v27 = vadd.f32 %v5432_v43, %v5234_v34  ;;  %v13788_v19 = vpack.c.b16 %v10727_v2, %v10741_v7 }
 0x7dd   : > { %v5630_v17 = vpop.f32.mrf.mxu2 }
 0x7de   : > { %v5717_v55 = vadd.f32 %v5630_v17, %v5517_v32  ;;  %v13789_v32 = vld [vmem:[#allocation40_spill] sm:$0xff]  ;;  %v6176_v2 = vpop.f32.mrf.mxu3 }
 0x7e0   : > { %v12146_v29 = vadd.f32 %v6166_v24, %v5717_v55  ;;  %v13790_v24 = vrot.slane %v13789_v32, 1  ;;  %v7970_v32 = vld [vmem:[#allocation3 + $0x188] sm:$0xff] }
 0x7e1   : > { %v5435_v8 = vpop.f32.mrf.mxu1  ;;  %7802 = vmatmul.msk.bf16.gmra.mxu0 %vm224_vm2, %v6308_v33  ;;  %v12171_v17 = vpop.f32.mrf.mxu0  ;;  %v13791_v33 = vld [vmem:[#allocation44_spill] sm:$0xff] }
 0x7e2   : > { %v5519_v28 = vadd.f32 %v5435_v8, %v5235_v11  ;;  %v5802_v25 = vsel %vm2295_vm5, %v5790_v62, %v13790_v24  ;;  %v13793_v11 = vld [vmem:[#allocation106_spill] sm:$0xff]  ;;  %v4880_v24 = vpack.c.bf16 %v7970_v32, %v7970_v32 }
 0x7e3   : > { %v5898_v4 = vpack.c.bf16 %v5802_v25, %v5802_v25 }
 0x7e4   : > { %7726 = vmatmul.msk.bf16.gmra.mxu1 %vm224_vm2, %v13788_v19  ;;  %v7969_v19 = vld [vmem:[#allocation3 + $0x180] sm:$0xff] }
 0x7e5   : > { %v5632_v13 = vpop.f32.mrf.mxu2  ;;  %7778 = vmatmul.msk.bf16.gmra.mxu3 %vm224_vm2, %v12153_v40  ;;  %v6002_v26 = vunpack.c.l.b16 %v5898_v4  ;;  %v4879_v61 = vpack.c.bf16 %v7969_v19, %v7969_v19 }
 0x7e6   : > { %v5718_v48 = vadd.f32 %v5632_v13, %v5518_v27  ;;  %v13794_v13 = vld [vmem:[#allocation38_spill] sm:$0xff] }
 0x7e7   : > { %v6309_v22 = vpack.c.b16 %v13791_v33, %v6002_v26  ;;  %v12179_v25 = vpack.c.b16 %v6002_v26, %v6001_v37  ;;  %v13798_v37 = vld [vmem:[#allocation24_spill] sm:$0xff]  ;;  %v13799_v26 = vld [vmem:[#allocation107_spill] sm:$0xff] }
 0x7e8   : > { %v12165_v34 = vadd.f32 %v6168_v39, %v5718_v48  ;;  %v13792_v39 = vld [vmem:[#allocation112_spill] sm:$0xff] }
 0x7e9   : > { %v5437_v43 = vpop.f32.mrf.mxu1  ;;  %v5237_v8 = vadd.f32 %v13793_v11, %v13792_v39  ;;  %v13795_v48 = vld [vmem:[#allocation36_spill] sm:$0xff]  ;;  %v5238_v11 = vadd.f32 %v13799_v26, %v13798_v37  ;;  %v13804_v26 = vld [vmem:[#allocation110_spill] sm:$0xff] }
 0x7ea   : > { %7751 = vmatmul.msk.bf16.gmra.mxu2 %vm224_vm2, %v11489_v57  ;;  %v5520_v7 = vadd.f32 %v5437_v43, %v5236_v52  ;;  %v6178_v52 = vpop.f32.mrf.mxu3 }
 0x7ed   : > { %v5635_v62 = vpop.f32.mrf.mxu2 }
 0x7ee   : > { %v5719_v55 = vadd.f32 %v5635_v62, %v5519_v28  ;;  %v13796_v28 = vpack.c.b16 %v13794_v13, %v13795_v48  ;;  %v5265_v62 = vunpack.c.l.b16 %v4880_v24  ;;  %v13800_v13 = vld [vmem:[#allocation46_spill] sm:$0xff]  ;;  %v13801_v48 = vld [vmem:[#allocation48_spill] sm:$0xff] }
 0x7ef   : > { %v13803_v24 = vld [vmem:[#allocation108_spill] sm:$0xff] }
 0x7f0   : > { %v12174_v27 = vadd.f32 %v6171_v21, %v5719_v55  ;;  %v5264_v21 = vunpack.c.l.b16 %v4879_v61  ;;  %v12187_v55 = vpop.f32.mrf.mxu0 }
 0x7f1   : > { %v5440_v53 = vpop.f32.mrf.mxu1  ;;  %7803 = vmatmul.msk.bf16.gmra.mxu0 %vm224_vm2, %v6309_v22 }
 0x7f2   : > { %v5521_v57 = vadd.f32 %v5440_v53, %v5237_v8  ;;  %v5551_v39 = vpack.c.b16 %v5265_v62, %v5264_v21  ;;  %v6181_v32 = vpop.f32.mrf.mxu3 }
 0x7f4   : > { %7727 = vmatmul.msk.bf16.gmra.mxu1 %vm224_vm2, %v13796_v28  ;;  %v6310_v28 = vpack.c.b16 %v13801_v48, %v13800_v13 }
 0x7f5   : > { %v5637_v4 = vpop.f32.mrf.mxu2  ;;  %7779 = vmatmul.msk.bf16.gmra.mxu3 %vm224_vm2, %v12179_v25 }
 0x7f6   : > { %v5720_v43 = vadd.f32 %v5637_v4, %v5520_v7  ;;  %v7971_v4 = vld [vmem:[#allocation3 + $0x198] sm:$0xff] }
 0x7f8   : > { %v12189_v22 = vadd.f32 %v6173_v35, %v5720_v43  ;;  %v5239_v35 = vadd.f32 %v13803_v24, %v11540_v41  ;;  %v4882_v43 = vpack.c.bf16 %v7971_v4, %v7971_v4  ;;  %v12200_v6 = vpop.f32.mrf.mxu0  ;;  %v13805_v24 = vld [vmem:[#allocation15_spill] sm:$0xff]  ;;  %v13806_v4 = vld [vmem:[#allocation109_spill] sm:$0xff] }
 0x7f9   : > { %v5442_v8 = vpop.f32.mrf.mxu1  ;;  %v5240_v13 = vadd.f32 %v13806_v4, %v13805_v24 }
 0x7fa   : > { %13797 = vst [vmem:[#allocation73_spill] sm:$0xff] %v12189_v22  ;;  %7752 = vmatmul.msk.bf16.gmra.mxu2 %vm224_vm2, %v5551_v39  ;;  %v5522_v19 = vadd.f32 %v5442_v8, %v5238_v11  ;;  %v5289_v11 = vpack.c.b16 %v5264_v21, %v13804_v26  ;;  %v13807_v26 = vld [vmem:[#allocation114_spill] sm:$0xff] }
 0x7fd   : > { %v5640_v61 = vpop.f32.mrf.mxu2 }
 0x7fe   : > { %v5721_v53 = vadd.f32 %v5640_v61, %v5521_v57  ;;  %v7972_v57 = vld [vmem:[#allocation3 + $0x190] sm:$0xff]  ;;  %v5548_v61 = vunpack.c.l.b16 %v4882_v43  ;;  %v13808_v43 = vld [vmem:[#allocation111_spill] sm:$0xff] }
 0x7ff   : > { %v4881_v8 = vpack.c.bf16 %v7972_v57, %v7972_v57 }
 0x800   : > { %v12196_v7 = vadd.f32 %v6176_v2, %v5721_v53 }
 0x801   : > { %v5445_v37 = vpop.f32.mrf.mxu1  ;;  %7804 = vmatmul.msk.bf16.gmra.mxu0 %vm224_vm2, %v6310_v28  ;;  %v5266_v48 = vunpack.c.l.b16 %v4881_v8 }
 0x802   : > { %13802 = vst [vmem:[#allocation79_spill] sm:$0xff] %v12196_v7  ;;  %v5523_v39 = vadd.f32 %v5445_v37, %v5239_v35  ;;  %v6183_v7 = vpop.f32.mrf.mxu3 }
 0x803   : > { %v5552_v41 = vpack.c.b16 %v5548_v61, %v5266_v48  ;;  %v5290_v61 = vpack.c.b16 %v5266_v48, %v5265_v62 }
 0x804   : > { %7728 = vmatmul.msk.bf16.gmra.mxu1 %vm224_vm2, %v5289_v11  ;;  %v5241_v11 = vadd.f32 %v13808_v43, %v13807_v26 }
 0x805   : > { %v5642_v2 = vpop.f32.mrf.mxu2 }
 0x806   : > { %v5722_v53 = vadd.f32 %v5642_v2, %v5522_v19  ;;  %v12214_v19 = vld [vmem:[#allocation3 + $0x1a8] sm:$0xff]  ;;  %v7974_v2 = vld [vmem:[#allocation3 + $0x1a0] sm:$0xff] }
 0x807   : > { %13809 = vst [vmem:[#allocation64_spill] sm:$0xff] %v12214_v19 }
 0x808   : > { %v12205_v33 = vadd.f32 %v6178_v52, %v5722_v53  ;;  %v4884_v52 = vpack.c.bf16 %v12214_v19, %v12214_v19  ;;  %v4883_v53 = vpack.c.bf16 %v7974_v2, %v7974_v2 }
 0x809   : > { %v5447_v22 = vpop.f32.mrf.mxu1 }
 0x80a   : > { %7753 = vmatmul.msk.bf16.gmra.mxu2 %vm224_vm2, %v5552_v41  ;;  %v5524_v28 = vadd.f32 %v5447_v22, %v5240_v13  ;;  %v6186_v24 = vpop.f32.mrf.mxu3  ;;  %v5550_v22 = vunpack.c.l.b16 %v4884_v52  ;;  %v13815_v52 = vld [vmem:[#allocation50_spill] sm:$0xff] }
 0x80d   : > { %v5645_v21 = vpop.f32.mrf.mxu2 }
 0x80e   : > { %v5723_v35 = vadd.f32 %v5645_v21, %v5523_v39  ;;  %v5549_v39 = vunpack.c.l.b16 %v4883_v53  ;;  %v13811_v21 = vld [vmem:[#allocation10_spill] sm:$0xff] }
 0x810   : > { %v12210_v37 = vadd.f32 %v6181_v32, %v5723_v35  ;;  %v5553_v4 = vpack.c.b16 %v5550_v22, %v5549_v39  ;;  %v13812_v35 = vld [vmem:[#allocation17_spill] sm:$0xff] }
 0x811   : > { %v5450_v57 = vpop.f32.mrf.mxu1  ;;  %v5242_v26 = vadd.f32 %v13812_v35, %v13811_v21  ;;  %v13819_v21 = vld [vmem:[#allocation16_spill] sm:$0xff] }
 0x812   : > { %v5525_v8 = vadd.f32 %v5450_v57, %v5241_v11  ;;  %v6188_v48 = vpop.f32.mrf.mxu3 }
 0x814   : > { %7729 = vmatmul.msk.bf16.gmra.mxu1 %vm224_vm2, %v5290_v61  ;;  %v13814_v61 = vld [vmem:[#allocation51_spill] sm:$0xff] }
 0x815   : > { %v5647_v13 = vpop.f32.mrf.mxu2  ;;  %v5243_v19 = vadd.f32 %v13815_v52, %v13814_v61  ;;  %v13822_v61 = vld [vmem:[#allocation113_spill] sm:$0xff] }
 0x816   : > { %v5724_v32 = vadd.f32 %v5647_v13, %v5524_v28 }
 0x818   : > { %v12219_v41 = vadd.f32 %v6183_v7, %v5724_v32  ;;  %v13816_v7 = vld [vmem:[#allocation53_spill] sm:$0xff] }
 0x819   : > { %v5452_v43 = vpop.f32.mrf.mxu1 }
 0x81a   : > { %13810 = vst [vmem:[#allocation83_spill] sm:$0xff] %v12219_v41  ;;  %7754 = vmatmul.msk.bf16.gmra.mxu2 %vm224_vm2, %v5553_v4  ;;  %v5526_v11 = vadd.f32 %v5452_v43, %v5242_v26  ;;  %v6191_v32 = vpop.f32.mrf.mxu3  ;;  %v13818_v4 = vld [vmem:[#allocation115_spill] sm:$0xff] }
 0x81b   : > { %v5244_v35 = vadd.f32 %v13819_v21, %v13818_v4  ;;  %v13826_v4 = vld [vmem:[#allocation18_spill] sm:$0xff] }
 0x81d   : > { %v5650_v62 = vpop.f32.mrf.mxu2 }
 0x81e   : > { %v5725_v57 = vadd.f32 %v5650_v62, %v5525_v8 }
 0x820   : > { %v12224_v2 = vadd.f32 %v6186_v24, %v5725_v57  ;;  %v13821_v57 = vld [vmem:[#allocation116_spill] sm:$0xff] }
 0x821   : > { %v5455_v28 = vpop.f32.mrf.mxu1 }
 0x822   : > { %13813 = vst [vmem:[#allocation84_spill] sm:$0xff] %v12224_v2  ;;  %v5527_v53 = vadd.f32 %v5455_v28, %v5243_v19  ;;  %v5245_v19 = vadd.f32 %v13822_v61, %v13821_v57  ;;  %v6193_v52 = vpop.f32.mrf.mxu3  ;;  %v13823_v2 = vld [vmem:[#allocation22_spill] sm:$0xff] }
 0x823   : > { %v13828_v61 = vld [vmem:[#allocation118_spill] sm:$0xff] }
 0x824   : > { %7806 = vmatmul.msk.bf16.vlgmr.msra.gmra.mxu1 %vm224_vm2, %v13816_v7 }
 0x825   : > { %v5652_v22 = vpop.f32.mrf.mxu2 }
 0x826   : > { %v5726_v13 = vadd.f32 %v5652_v22, %v5526_v11 }
 0x828   : > { %v12230_v39 = vadd.f32 %v6188_v48, %v5726_v13  ;;  %v13825_v13 = vld [vmem:[#allocation117_spill] sm:$0xff] }
 0x829   : > { %v5457_v26 = vpop.f32.mrf.mxu1  ;;  %v5246_v21 = vadd.f32 %v13826_v4, %v13825_v13 }
 0x82a   : > { %13817 = vst [vmem:[#allocation68_spill] sm:$0xff] %v12230_v39  ;;  %v5528_v8 = vadd.f32 %v5457_v26, %v5244_v35  ;;  %v12244_v26 = vpop.f32.mrf.mxu0 }
 0x82d   : > { %v5655_v24 = vpop.f32.mrf.mxu2 }
 0x82e   : > { %v5727_v43 = vadd.f32 %v5655_v24, %v5527_v53 }
 0x830   : > { %v12234_v62 = vadd.f32 %v6191_v32, %v5727_v43  ;;  %v6196_v32 = vpop.f32.mrf.mxu3 }
 0x831   : > { %v5460_v28 = vpop.f32.mrf.mxu1 }
 0x832   : > { %13820 = vst [vmem:[#allocation74_spill] sm:$0xff] %v12234_v62  ;;  %v5529_v7 = vadd.f32 %v5460_v28, %v5245_v19  ;;  %v13829_v19 = vld [vmem:[#allocation21_spill] sm:$0xff] }
 0x833   : > { %v5247_v28 = vadd.f32 %v13829_v19, %v13828_v61 }
 0x834   : > { %7807 = vmatmul.msk.bf16.gmra.mxu1 %vm224_vm2, %v13823_v2 }
 0x835   : > { %v5657_v11 = vpop.f32.mrf.mxu2 }
 0x836   : > { %v5728_v48 = vadd.f32 %v5657_v11, %v5528_v8  ;;  %v13830_v8 = vld [vmem:[#allocation52_spill] sm:$0xff] }
 0x838   : > { %v12240_v22 = vadd.f32 %v6193_v52, %v5728_v48  ;;  %v6198_v52 = vpop.f32.mrf.mxu3  ;;  %v12252_v48 = vpop.f32.mrf.mxu0 }
 0x839   : > { %v5462_v35 = vpop.f32.mrf.mxu1 }
 0x83a   : > { %13824 = vst [vmem:[#allocation81_spill] sm:$0xff] %v12240_v22  ;;  %v5530_v53 = vadd.f32 %v5462_v35, %v5246_v21  ;;  %v13832_v21 = vld [vmem:[#allocation119_spill] sm:$0xff]  ;;  %v13833_v35 = vld [vmem:[#allocation14_spill] sm:$0xff] }
 0x83d   : > { %v5660_v24 = vpop.f32.mrf.mxu2 }
 0x83e   : > { %v5729_v43 = vadd.f32 %v5660_v24, %v5529_v7  ;;  %v5248_v7 = vadd.f32 %v13833_v35, %v13832_v21 }
 0x840   : > { %v12246_v57 = vadd.f32 %v6196_v32, %v5729_v43  ;;  %v6201_v19 = vpop.f32.mrf.mxu3 }
 0x841   : > { %v5465_v2 = vpop.f32.mrf.mxu1 }
 0x842   : > { %13827 = vst [vmem:[#allocation86_spill] sm:$0xff] %v12246_v57  ;;  %v5531_v62 = vadd.f32 %v5465_v2, %v5247_v28  ;;  %v12260_v28 = vpop.f32.mrf.mxu0  ;;  %v13836_v57 = vld [vmem:[#allocation9_spill] sm:$0xff] }
 0x844   : > { %7808 = vmatmul.msk.bf16.gmra.mxu1 %vm224_vm2, %v13830_v8  ;;  %v13835_v8 = vld [vmem:[#allocation120_spill] sm:$0xff] }
 0x845   : > { %v5662_v11 = vpop.f32.mrf.mxu2  ;;  %v5249_v22 = vadd.f32 %v13836_v57, %v13835_v8  ;;  %v13847_v8 = vld [vmem:[#allocation26_spill] sm:$0xff] }
 0x846   : > { %v5730_v13 = vadd.f32 %v5662_v11, %v5530_v53  ;;  %v13838_v53 = vld [vmem:[#allocation25_spill] sm:$0xff]  ;;  %v13840_v11 = vld [vmem:[#allocation23_spill] sm:$0xff] }
 0x848   : > { %v12254_v4 = vadd.f32 %v6198_v52, %v5730_v13  ;;  %v13839_v52 = vld [vmem:[#allocation28_spill] sm:$0xff] }
 0x849   : > { %v5467_v32 = vpop.f32.mrf.mxu1  ;;  %v5250_v13 = vadd.f32 %v13840_v11, %v13839_v52 }
 0x84a   : > { %13831 = vst [vmem:[#allocation71_spill] sm:$0xff] %v12254_v4  ;;  %v12258_v24 = vadd.f32 %v5467_v32, %v5248_v7  ;;  %v12270_v35 = vpop.f32.mrf.mxu0  ;;  %v13842_v7 = vld [vmem:[#allocation33_spill] sm:$0xff]  ;;  %v13843_v32 = vld [vmem:[#allocation27_spill] sm:$0xff] }
 0x84c   : > { %13834 = vst [vmem:[#allocation75_spill] sm:$0xff] %v12258_v24 }
 0x84d   : > { %v5665_v43 = vpop.f32.mrf.mxu2 }
 0x84e   : > { %v5731_v61 = vadd.f32 %v5665_v43, %v5531_v62  ;;  %v5251_v43 = vadd.f32 %v13843_v32, %v13842_v7 }
 0x850   : > { %v6267_v2 = vadd.f32 %v6201_v19, %v5731_v61 }
 0x851   : > { %v5470_v39 = vpop.f32.mrf.mxu1 }
 0x852   : > { %v12264_v41 = vadd.f32 %v5470_v39, %v5249_v22  ;;  %v12278_v57 = vpop.f32.mrf.mxu0  ;;  %v13845_v39 = vld [vmem:[#allocation31_spill] sm:$0xff]  ;;  %v13846_v22 = vld [vmem:[#allocation122_spill] sm:$0xff] }
 0x854   : > { %13837 = vst [vmem:[#allocation80_spill] sm:$0xff] %v12264_v41  ;;  %7809 = vmatmul.msk.bf16.gmra.mxu1 %vm224_vm2, %v13838_v53  ;;  %v5252_v53 = vadd.f32 %v13847_v8, %v13846_v22 }
 0x859   : > { %v5472_v21 = vpop.f32.mrf.mxu1 }
 0x85a   : > { %v12272_v62 = vadd.f32 %v5472_v21, %v5250_v13  ;;  %v12286_v41 = vpop.f32.mrf.mxu0  ;;  %v13850_v13 = vld [vmem:[#allocation123_spill] sm:$0xff]  ;;  %v13851_v21 = vld [vmem:[#allocation30_spill] sm:$0xff] }
 0x85b   : > { %13849 = vst [vmem:[#allocation87_spill] sm:$0xff] %v12286_v41 }
 0x85c   : > { %13841 = vst [vmem:[#allocation90_spill] sm:$0xff] %v12272_v62  ;;  %v5253_v62 = vadd.f32 %v13851_v21, %v13850_v13  ;;  %v13863_v21 = vld [vmem:[#allocation43_spill] sm:$0xff] }
 0x861   : > { %v5475_v61 = vpop.f32.mrf.mxu1 }
 0x862   : > { %v12276_v19 = vadd.f32 %v5475_v61, %v5251_v43  ;;  %v13853_v43 = vld [vmem:[#allocation32_spill] sm:$0xff]  ;;  %v12294_v61 = vpop.f32.mrf.mxu0 }
 0x863   : > { %13854 = vst [vmem:[#allocation85_spill] sm:$0xff] %v12294_v61 }
 0x864   : > { %13844 = vst [vmem:[#allocation78_spill] sm:$0xff] %v12276_v19  ;;  %7810 = vmatmul.msk.bf16.gmra.mxu1 %vm224_vm2, %v13845_v39  ;;  %v13855_v39 = vld [vmem:[#allocation124_spill] sm:$0xff]  ;;  %v13856_v19 = vld [vmem:[#allocation121_spill] sm:$0xff] }
 0x865   : > { %v5254_v24 = vadd.f32 %v13856_v19, %v13855_v39  ;;  %v13868_v39 = vld [vmem:[#allocation37_spill] sm:$0xff] }
 0x869   : > { %v5477_v52 = vpop.f32.mrf.mxu1 }
 0x86a   : > { %v12284_v11 = vadd.f32 %v5477_v52, %v5252_v53  ;;  %v13858_v53 = vld [vmem:[#allocation125_spill] sm:$0xff]  ;;  %v12302_v41 = vpop.f32.mrf.mxu0 }
 0x86b   : > { %v13859_v52 = vld [vmem:[#allocation29_spill] sm:$0xff]  ;;  %13860 = vst [vmem:[#allocation91_spill] sm:$0xff] %v12302_v41 }
 0x86c   : > { %13848 = vst [vmem:[#allocation82_spill] sm:$0xff] %v12284_v11  ;;  %v5255_v11 = vadd.f32 %v13859_v52, %v13858_v53 }
 0x871   : > { %v5480_v7 = vpop.f32.mrf.mxu1 }
 0x872   : > { %v12290_v32 = vadd.f32 %v5480_v7, %v5253_v62  ;;  %v13862_v62 = vld [vmem:[#allocation35_spill] sm:$0xff]  ;;  %v12312_v19 = vpop.f32.mrf.mxu0 }
 0x873   : > { %v13864_v7 = vld [vmem:[#allocation39_spill] sm:$0xff]  ;;  %13866 = vst [vmem:[#allocation89_spill] sm:$0xff] %v12312_v19 }
 0x874   : > { %13852 = vst [vmem:[#allocation94_spill] sm:$0xff] %v12290_v32  ;;  %7811 = vmatmul.msk.bf16.gmra.mxu1 %vm224_vm2, %v13853_v43  ;;  %v5256_v43 = vadd.f32 %v13864_v7, %v13863_v21 }
 0x879   : > { %v5482_v22 = vpop.f32.mrf.mxu1 }
 0x87a   : > { %v12298_v8 = vadd.f32 %v5482_v22, %v5254_v24  ;;  %v13867_v24 = vld [vmem:[#allocation127_spill] sm:$0xff] }
 0x87b   : > { %v5257_v22 = vadd.f32 %v13868_v39, %v13867_v24 }
 0x87c   : > { %13857 = vst [vmem:[#allocation88_spill] sm:$0xff] %v12298_v8  ;;  %v13870_v8 = vld [vmem:[#allocation56_spill] sm:$0xff] }
 0x881   : > { %v5485_v4 = vpop.f32.mrf.mxu1 }
 0x882   : > { %v12304_v13 = vadd.f32 %v5485_v4, %v5255_v11  ;;  %v12320_v4 = vpop.f32.mrf.mxu0  ;;  %v13872_v11 = vld [vmem:[#allocation45_spill] sm:$0xff] }
 0x883   : > { %13871 = vst [vmem:[#allocation95_spill] sm:$0xff] %v12320_v4 }
 0x884   : > { %13861 = vst [vmem:[#allocation96_spill] sm:$0xff] %v12304_v13  ;;  %7812 = vmatmul.msk.bf16.gmra.mxu1 %vm224_vm2, %v13862_v62  ;;  %v13873_v62 = vld [vmem:[#allocation126_spill] sm:$0xff] }
 0x885   : > { %v5258_v13 = vadd.f32 %v13873_v62, %v13872_v11  ;;  %v13885_v62 = vld [vmem:[#allocation11_spill] sm:$0xff] }
 0x889   : > { %v5487_v32 = vpop.f32.mrf.mxu1 }
 0x88a   : > { %v12310_v61 = vadd.f32 %v5487_v32, %v5256_v43  ;;  %v12326_v32 = vpop.f32.mrf.mxu0  ;;  %v13876_v43 = vld [vmem:[#allocation58_spill] sm:$0xff] }
 0x88b   : > { %13875 = vst [vmem:[#allocation97_spill] sm:$0xff] %v12326_v32 }
 0x88c   : > { %13865 = vst [vmem:[#allocation99_spill] sm:$0xff] %v12310_v61  ;;  %v13877_v61 = vld [vmem:[#allocation55_spill] sm:$0xff] }
 0x88d   : > { %v6515_v19 = vadd.f32 %v13877_v61, %v13876_v43 }
 0x891   : > { %v5490_v53 = vpop.f32.mrf.mxu1 }
 0x892   : > { %v12316_v52 = vadd.f32 %v5490_v53, %v5257_v22  ;;  %v13879_v22 = vld [vmem:[#allocation41_spill] sm:$0xff]  ;;  %v13881_v53 = vld [vmem:[#allocation34_spill] sm:$0xff]  ;;  %v12336_v41 = vpop.f32.mrf.mxu0 }
 0x893   : > { %13882 = vst [vmem:[#allocation100_spill] sm:$0xff] %v12336_v41 }
 0x894   : > { %13869 = vst [vmem:[#allocation92_spill] sm:$0xff] %v12316_v52  ;;  %7813 = vmatmul.msk.bf16.gmra.mxu1 %vm224_vm2, %v13870_v8  ;;  %v13880_v8 = vld [vmem:[#allocation62_spill] sm:$0xff] }
 0x895   : > { %v6516_v52 = vadd.f32 %v13881_v53, %v13880_v8 }
 0x899   : > { %v5492_v21 = vpop.f32.mrf.mxu1 }
 0x89a   : > { %v12324_v7 = vadd.f32 %v5492_v21, %v5258_v13  ;;  %v13884_v13 = vld [vmem:[#allocation47_spill] sm:$0xff]  ;;  %v6485_v61 = vpop.f32.mrf.mxu0 }
 0x89b   : > { %v6517_v21 = vadd.f32 %v13885_v62, %v13884_v13  ;;  %v12346_v43 = vadd.f32 %v6485_v61, %v6267_v2  ;;  %v13892_v62 = vld [vmem:[#allocation59_spill] sm:$0xff] }
 0x89c   : > { %13874 = vst [vmem:[#allocation93_spill] sm:$0xff] %v12324_v7 }
 0x8a1   : > { %v6595_v24 = vpop.f32.mrf.mxu1 }
 0x8a2   : > { %v12330_v39 = vadd.f32 %v6595_v24, %v6515_v19  ;;  %v13886_v19 = vld [vmem:[#allocation60_spill] sm:$0xff]  ;;  %v13887_v24 = vld [vmem:[#allocation65_spill] sm:$0xff] }
 0x8a4   : > { %13878 = vst [vmem:[#allocation98_spill] sm:$0xff] %v12330_v39  ;;  %7814 = vmatmul.msk.bf16.gmra.mxu1 %vm224_vm2, %v13879_v22  ;;  %v13888_v22 = vld [vmem:[#allocation63_spill] sm:$0xff] }
 0x8a5   : > { %v6518_v8 = vadd.f32 %v13888_v22, %v13887_v24  ;;  %v13894_v24 = vld [vmem:[#allocation54_spill] sm:$0xff] }
 0x8a6   : > { %v6521_v22 = vadd.f32 %v13894_v24, %v11910_v51  ;;  %v13897_v51 = vld [vmem:[#allocation57_spill] sm:$0xff] }
 0x8a9   : > { %v6597_v4 = vpop.f32.mrf.mxu1 }
 0x8aa   : > { %v12338_v11 = vadd.f32 %v6597_v4, %v6516_v52  ;;  %v13889_v52 = vld [vmem:[#allocation69_spill] sm:$0xff] }
 0x8ab   : > { %v13890_v4 = vld [vmem:[#allocation13_spill] sm:$0xff] }
 0x8ac   : > { %13883 = vst [vmem:[#allocation102_spill] sm:$0xff] %v12338_v11  ;;  %v6519_v41 = vadd.f32 %v13890_v4, %v13889_v52 }
 0x8b1   : > { %v6600_v7 = vpop.f32.mrf.mxu1 }
 0x8b2   : > { %v12342_v32 = vadd.f32 %v6600_v7, %v6517_v21  ;;  %v13891_v7 = vld [vmem:[#allocation70_spill] sm:$0xff]  ;;  %v13893_v21 = vld [vmem:[#allocation12_spill] sm:$0xff] }
 0x8b4   : > { %7815 = vmatmul.msk.bf16.gmra.mxu1 %vm224_vm2, %v13886_v19  ;;  %v6520_v19 = vadd.f32 %v13893_v21, %v13892_v62 }
 0x8b9   : > { %v6602_v53 = vpop.f32.mrf.mxu1 }
 0x8ba   : > { %v12350_v39 = vadd.f32 %v6602_v53, %v6518_v8 }
 0x8c1   : > { %v6605_v11 = vpop.f32.mrf.mxu1 }
 0x8c2   : > { %v12354_v13 = vadd.f32 %v6605_v11, %v6519_v41  ;;  %v13895_v41 = vld [vmem:[#allocation66_spill] sm:$0xff] }
 0x8c3   : > { %v6522_v11 = vadd.f32 %v13895_v41, %v11931_v0  ;;  %v6525_v0 = vadd.f32 %v11971_v14, %v11974_v1  ;;  %v13903_v14 = vld [vmem:[#allocation61_spill] sm:$0xff]  ;;  %v13904_v1 = vld [vmem:[#allocation67_spill] sm:$0xff] }
 0x8c4   : > { %7816 = vmatmul.msk.bf16.gmra.mxu1 %vm224_vm2, %v13891_v7  ;;  %v6523_v7 = vadd.f32 %v11939_v50, %v11942_v30  ;;  %v13900_v50 = vld [vmem:[#allocation76_spill] sm:$0xff]  ;;  %v13901_v30 = vld [vmem:[#allocation77_spill] sm:$0xff] }
 0x8c5   : > { %v6526_v41 = vadd.f32 %v13901_v30, %v13900_v50 }
 0x8c9   : > { %v6607_v2 = vpop.f32.mrf.mxu1 }
 0x8ca   : > { %v12360_v61 = vadd.f32 %v6607_v2, %v6520_v19  ;;  %v13898_v19 = vld [vmem:[#allocation72_spill] sm:$0xff] }
 0x8cb   : > { %v6524_v2 = vadd.f32 %v13898_v19, %v13897_v51  ;;  %v6528_v51 = vadd.f32 %v13904_v1, %v13903_v14  ;;  %v13919_v1 = vld [vmem:[#allocation79_spill] sm:$0xff] }
 0x8d1   : > { %v6610_v8 = vpop.f32.mrf.mxu1 }
 0x8d2   : > { %v12364_v53 = vadd.f32 %v6610_v8, %v6521_v22 }
 0x8d4   : > { %7817 = vmatmul.msk.bf16.gmra.mxu1 %vm224_vm2, %v11921_v10 }
 0x8d9   : > { %v6612_v52 = vpop.f32.mrf.mxu1 }
 0x8da   : > { %v12370_v4 = vadd.f32 %v6612_v52, %v6522_v11  ;;  %v6527_v52 = vadd.f32 %v12013_v38, %v12004_v23  ;;  %v6530_v23 = vadd.f32 %v12070_v3, %v12057_v63  ;;  %v6533_v63 = vadd.f32 %v12119_v42, %v12094_v36 }
 0x8db   : > { %v6536_v36 = vadd.f32 %v12171_v17, %v12138_v56  ;;  %v6539_v56 = vadd.f32 %v12244_v26, %v12174_v27  ;;  %v13922_v27 = vld [vmem:[#allocation44_spill] sm:$0xff] }
 0x8e1   : > { %v6615_v62 = vpop.f32.mrf.mxu1 }
 0x8e2   : > { %v12374_v21 = vadd.f32 %v6615_v62, %v6523_v7 }
 0x8e4   : > { %13896 = vst [vmem:[#allocation101_spill] sm:$0xff] %v12374_v21  ;;  %7818 = vmatmul.msk.bf16.gmra.mxu1 %vm224_vm2, %v11951_v46 }
 0x8e9   : > { %v6617_v24 = vpop.f32.mrf.mxu1 }
 0x8ea   : > { %v12380_v10 = vadd.f32 %v6617_v24, %v6524_v2  ;;  %v6529_v2 = vadd.f32 %v12054_v60, %v12036_v59  ;;  %v6532_v59 = vadd.f32 %v12108_v9, %v12085_v44  ;;  %v6535_v44 = vadd.f32 %v12151_v15, %v12122_v58 }
 0x8eb   : > { %v6538_v58 = vadd.f32 %v12200_v6, %v12165_v34  ;;  %v6541_v6 = vadd.f32 %v12260_v28, %v13919_v1  ;;  %v13925_v28 = vld [vmem:[#allocation64_spill] sm:$0xff] }
 0x8ec   : > { %13899 = vst [vmem:[#allocation103_spill] sm:$0xff] %v12380_v10 }
 0x8f1   : > { %v6620_v22 = vpop.f32.mrf.mxu1 }
 0x8f2   : > { %v12384_v8 = vadd.f32 %v6620_v22, %v6525_v0  ;;  %v6531_v22 = vadd.f32 %v12091_v54, %v12066_v45  ;;  %v6534_v45 = vadd.f32 %v12142_v47, %v12113_v16  ;;  %v6537_v16 = vadd.f32 %v12187_v55, %v12146_v29  ;;  %v13917_v29 = vld [vmem:[#allocation73_spill] sm:$0xff] }
 0x8f3   : > { %v6540_v55 = vadd.f32 %v12252_v48, %v13917_v29  ;;  %v6543_v48 = vadd.f32 %v12278_v57, %v12210_v37  ;;  %v13934_v57 = vld [vmem:[#allocation83_spill] sm:$0xff] }
 0x8f4   : > { %7819 = vmatmul.msk.bf16.gmra.mxu1 %vm224_vm2, %v11983_v5 }
 0x8f9   : > { %v6622_v11 = vpop.f32.mrf.mxu1 }
 0x8fa   : > { %v12390_v46 = vadd.f32 %v6622_v11, %v6526_v41 }
 0x8fc   : > { %13902 = vst [vmem:[#allocation104_spill] sm:$0xff] %v12390_v46 }
 0x901   : > { %v6625_v7 = vpop.f32.mrf.mxu1 }
 0x902   : > { %v12394_v62 = vadd.f32 %v6625_v7, %v6527_v52 }
 0x904   : > { %7820 = vmatmul.msk.bf16.gmra.mxu1 %vm224_vm2, %v12015_v18 }
 0x909   : > { %v6627_v19 = vpop.f32.mrf.mxu1 }
 0x90a   : > { %v12400_v5 = vadd.f32 %v6627_v19, %v6528_v51  ;;  %v13921_v19 = vld [vmem:[#allocation46_spill] sm:$0xff] }
 0x90b   : > { %v13923_v26 = vpack.c.b16 %v13921_v19, %v13922_v27 }
 0x90c   : > { %13905 = vst [vmem:[#allocation105_spill] sm:$0xff] %v12400_v5 }
 0x911   : > { %v6630_v24 = vpop.f32.mrf.mxu1 }
 0x912   : > { %v12404_v0 = vadd.f32 %v6630_v24, %v6529_v2 }
 0x914   : > { %13906 = vst [vmem:[#allocation40_spill] sm:$0xff] %v12404_v0  ;;  %7821 = vmatmul.msk.bf16.gmra.mxu1 %vm224_vm2, %v12043_v20 }
 0x919   : > { %v6632_v38 = vpop.f32.mrf.mxu1 }
 0x91a   : > { %v12410_v18 = vadd.f32 %v6632_v38, %v6530_v23 }
 0x91c   : > { %13907 = vst [vmem:[#allocation112_spill] sm:$0xff] %v12410_v18 }
 0x921   : > { %v6635_v50 = vpop.f32.mrf.mxu1 }
 0x922   : > { %v12414_v30 = vadd.f32 %v6635_v50, %v6531_v22  ;;  %v5796_v22 = vrot.slane %v13925_v28, 1  ;;  %v13926_v50 = vld [vmem:[#allocation49_spill] sm:$0xff] }
 0x924   : > { %13908 = vst [vmem:[#allocation106_spill] sm:$0xff] %v12414_v30  ;;  %7822 = vmatmul.msk.bf16.gmra.mxu1 %vm224_vm2, %v12075_v49 }
 0x929   : > { %v6637_v60 = vpop.f32.mrf.mxu1 }
 0x92a   : > { %v12420_v20 = vadd.f32 %v6637_v60, %v6532_v59  ;;  %v13927_v59 = vld [vmem:[#allocation48_spill] sm:$0xff] }
 0x92b   : > { %v13928_v60 = vpack.c.b16 %v13926_v50, %v13927_v59  ;;  %v13945_v50 = vld [vmem:[#allocation95_spill] sm:$0xff] }
 0x92c   : > { %13909 = vst [vmem:[#allocation38_spill] sm:$0xff] %v12420_v20 }
 0x931   : > { %v6640_v3 = vpop.f32.mrf.mxu1 }
 0x932   : > { %v12424_v41 = vadd.f32 %v6640_v3, %v6533_v63  ;;  %v13929_v63 = vld [vmem:[#allocation42_spill] sm:$0xff] }
 0x933   : > { %v13930_v3 = vrot.slane %v13929_v63, 1 }
 0x934   : > { %13910 = vst [vmem:[#allocation36_spill] sm:$0xff] %v12424_v41  ;;  %7823 = vmatmul.msk.bf16.gmra.mxu1 %vm224_vm2, %v12101_v31 }
 0x939   : > { %v6642_v54 = vpop.f32.mrf.mxu1 }
 0x93a   : > { %v12430_v49 = vadd.f32 %v6642_v54, %v6534_v45 }
 0x93c   : > { %13911 = vst [vmem:[#allocation24_spill] sm:$0xff] %v12430_v49 }
 0x941   : > { %v6645_v9 = vpop.f32.mrf.mxu1 }
 0x942   : > { %v12434_v11 = vadd.f32 %v6645_v9, %v6535_v44  ;;  %v13935_v44 = vld [vmem:[#allocation87_spill] sm:$0xff] }
 0x943   : > { %v6544_v9 = vadd.f32 %v13935_v44, %v13934_v57  ;;  %v13948_v57 = vld [vmem:[#allocation102_spill] sm:$0xff] }
 0x944   : > { %13912 = vst [vmem:[#allocation107_spill] sm:$0xff] %v12434_v11  ;;  %7824 = vmatmul.msk.bf16.gmra.mxu1 %vm224_vm2, %v12129_v12  ;;  %v6913_v44 = vmul.f32 %v13948_v57, %v13948_v57 }
 0x949   : > { %v6647_v42 = vpop.f32.mrf.mxu1 }
 0x94a   : > { %v12440_v31 = vadd.f32 %v6647_v42, %v6536_v36 }
 0x94c   : > { %13913 = vst [vmem:[#allocation108_spill] sm:$0xff] %v12440_v31 }
 0x951   : > { %v6650_v47 = vpop.f32.mrf.mxu1 }
 0x952   : > { %v12444_v52 = vadd.f32 %v6650_v47, %v6537_v16 }
 0x954   : > { %13914 = vst [vmem:[#allocation110_spill] sm:$0xff] %v12444_v52  ;;  %7825 = vmatmul.msk.bf16.gmra.mxu1 %vm224_vm2, %v12153_v40 }
 0x959   : > { %v6652_v15 = vpop.f32.mrf.mxu1 }
 0x95a   : > { %v12450_v12 = vadd.f32 %v6652_v15, %v6538_v58 }
 0x95c   : > { %13915 = vst [vmem:[#allocation15_spill] sm:$0xff] %v12450_v12 }
 0x961   : > { %v6655_v17 = vpop.f32.mrf.mxu1 }
 0x962   : > { %v12454_v7 = vadd.f32 %v6655_v17, %v6539_v56  ;;  %v13937_v56 = vld [vmem:[#allocation84_spill] sm:$0xff]  ;;  %v13938_v17 = vld [vmem:[#allocation85_spill] sm:$0xff] }
 0x963   : > { %v6545_v29 = vadd.f32 %v13938_v17, %v13937_v56  ;;  %v6961_v56 = vsel %vm224_vm2, %v6913_v44, 0.0 }
 0x964   : > { %13916 = vst [vmem:[#allocation109_spill] sm:$0xff] %v12454_v7  ;;  %7826 = vmatmul.msk.bf16.gmra.mxu1 %vm224_vm2, %v12179_v25  ;;  %v6542_v25 = vadd.f32 %v12270_v35, %v12205_v33  ;;  %v5797_v33 = vsel %vm2295_vm5, %v13930_v3, %v5796_v22  ;;  %v13932_v35 = vld [vmem:[#allocation19_spill] sm:$0xff]  ;;  %v13946_v3 = vld [vmem:[#allocation98_spill] sm:$0xff] }
 0x965   : > { %v13933_v54 = vrot.slane %v13932_v35, 1  ;;  %v5903_v16 = vpack.c.bf16 %v5797_v33, %v5797_v33  ;;  %v6763_v33 = vsel %vm341_vm6, %v13946_v3, 0.0 }
 0x967   : > { %v5850_v37 = vsel %vm2295_vm5, %v5796_v22, %v13933_v54  ;;  %v6569_v58 = vunpack.c.l.b16 %v5903_v16  ;;  %v13944_v22 = vld [vmem:[#allocation81_spill] sm:$0xff]  ;;  %v6765_v54 = vsel %vm346_vm7, %v12342_v32, 0.0  ;;  %v6812_v16 = vsel %vm224_vm2, %v13948_v57, 0.0 }
 0x968   : > { %v5904_v47 = vpack.c.bf16 %v5850_v37, %v5850_v37  ;;  %v6548_v59 = vadd.f32 %v13945_v50, %v13944_v22  ;;  %v6814_v17 = vsel %vm224_vm2, %v6765_v54, 0.0  ;;  %v12542_v22 = vpop.f32.mrf.mxu0 }
 0x969   : > { %v6657_v14 = vpop.f32.mrf.mxu1 }
 0x96a   : > { %v12460_v40 = vadd.f32 %v6657_v14, %v6540_v55  ;;  %v6570_v15 = vunpack.c.l.b16 %v5904_v47  ;;  %v6914_v47 = vmul.f32 %v6765_v54, %v6765_v54 }
 0x96c   : > { %13918 = vst [vmem:[#allocation114_spill] sm:$0xff] %v12460_v40  ;;  %v6573_v1 = vpack.c.b16 %v6570_v15, %v6569_v58  ;;  %v12527_v58 = vpop.f32.mrf.mxu3  ;;  %v6811_v15 = vsel %vm224_vm2, %v6763_v33, 0.0 }
 0x971   : > { %v6660_v34 = vpop.f32.mrf.mxu1 }
 0x972   : > { %v12464_v51 = vadd.f32 %v6660_v34, %v6541_v6  ;;  %v13940_v6 = vld [vmem:[#allocation68_spill] sm:$0xff]  ;;  %v13941_v34 = vld [vmem:[#allocation91_spill] sm:$0xff] }
 0x973   : > { %v6546_v19 = vadd.f32 %v13941_v34, %v13940_v6  ;;  %v13949_v6 = vld [vmem:[#allocation86_spill] sm:$0xff]  ;;  %v13950_v34 = vld [vmem:[#allocation97_spill] sm:$0xff] }
 0x974   : > { %13920 = vst [vmem:[#allocation111_spill] sm:$0xff] %v12464_v51  ;;  %7827 = vmatmul.msk.bf16.gmra.mxu1 %vm224_vm2, %v13923_v26 }
 0x979   : > { %v6662_v2 = vpop.f32.mrf.mxu1 }
 0x97a   : > { %v12472_v24 = vadd.f32 %v6662_v2, %v6542_v25  ;;  %v13942_v25 = vld [vmem:[#allocation74_spill] sm:$0xff]  ;;  %v13943_v2 = vld [vmem:[#allocation89_spill] sm:$0xff] }
 0x97c   : > { %13924 = vst [vmem:[#allocation10_spill] sm:$0xff] %v12472_v24 }
 0x981   : > { %v6665_v23 = vpop.f32.mrf.mxu1 }
 0x982   : > { %v12476_v38 = vadd.f32 %v6665_v23, %v6543_v48  ;;  %v6547_v48 = vadd.f32 %v13943_v2, %v13942_v25  ;;  %v6963_v25 = vsel %vm224_vm2, %v6914_v47, 0.0 }
 0x984   : > { %7828 = vmatmul.msk.bf16.gmra.mxu1 %vm224_vm2, %v13928_v60  ;;  %v12510_v60 = vpop.f32.mrf.mxu2 }
 0x989   : > { %v6667_v36 = vpop.f32.mrf.mxu1 }
 0x98a   : > { %v12493_v42 = vadd.f32 %v6667_v36, %v6544_v9  ;;  %v6766_v9 = vsel %vm341_vm6, %v12350_v39, 0.0  ;;  %v6912_v36 = vmul.f32 %v6763_v33, %v6763_v33 }
 0x98b   : > { %v6816_v2 = vsel %vm224_vm2, %v6766_v9, 0.0 }
 0x98c   : > { %13936 = vst [vmem:[#allocation17_spill] sm:$0xff] %v12493_v42  ;;  %v12549_v54 = vpop.f32.mrf.mxu2 }
 0x991   : > { %v6670_v55 = vpop.f32.mrf.mxu1 }
 0x992   : > { %v12497_v14 = vadd.f32 %v6670_v55, %v6545_v29  ;;  %v6915_v29 = vmul.f32 %v6766_v9, %v6766_v9  ;;  %v6813_v55 = vadd.f32 %v6812_v16, %v6811_v15  ;;  %v6818_v9 = vsel %vm224_vm2, %v12354_v13, 0.0 }
 0x994   : > { %13939 = vst [vmem:[#allocation51_spill] sm:$0xff] %v12497_v14  ;;  %7829 = vmatmul.msk.bf16.gmra.mxu1 %vm224_vm2, %v6573_v1  ;;  %v6768_v1 = vsel %vm346_vm7, %v12360_v61, 0.0  ;;  %v6815_v50 = vadd.f32 %v6814_v17, %v6813_v55  ;;  %v6965_v44 = vsel %vm224_vm2, %v6915_v29, 0.0 }
 0x996   : > { %v6817_v47 = vadd.f32 %v6816_v2, %v6815_v50 }
 0x999   : > { %v6672_v27 = vpop.f32.mrf.mxu1 }
 0x99a   : > { %v12502_v26 = vadd.f32 %v6672_v27, %v6546_v19  ;;  %v6549_v19 = vadd.f32 %v13950_v34, %v13949_v6  ;;  %v6960_v27 = vsel %vm224_vm2, %v6912_v36, 0.0  ;;  %v6917_v36 = vmul.f32 %v6768_v1, %v6768_v1 }
 0x99b   : > { %v6819_v6 = vadd.f32 %v6818_v9, %v6817_v47  ;;  %v6771_v34 = vsel %vm346_vm7, %v12374_v21, 0.0  ;;  %v6824_v9 = vsel %vm224_vm2, %v12370_v4, 0.0  ;;  %v12582_v21 = vpop.f32.mrf.mxu2 }
 0x9a1   : > { %v6675_v23 = vpop.f32.mrf.mxu1 }
 0x9a2   : > { %v12506_v28 = vadd.f32 %v6675_v23, %v6547_v48  ;;  %v6916_v48 = vmul.f32 %v12354_v13, %v12354_v13 }
 0x9a4   : > { %v6967_v15 = vsel %vm224_vm2, %v6916_v48, 0.0  ;;  %v13951_v48 = vld [vmem:[#allocation71_spill] sm:$0xff] }
 0x9a9   : > { %v6677_v63 = vpop.f32.mrf.mxu1 }
 0x9aa   : > { %v12518_v37 = vadd.f32 %v6677_v63, %v6548_v59  ;;  %v6962_v59 = vadd.f32 %v6961_v56, %v6960_v27  ;;  %v6769_v63 = vsel %vm341_vm6, %v12364_v53, 0.0  ;;  %v6820_v56 = vsel %vm224_vm2, %v6768_v1, 0.0 }
 0x9ab   : > { %v6918_v17 = vmul.f32 %v6769_v63, %v6769_v63  ;;  %v6822_v29 = vsel %vm224_vm2, %v6769_v63, 0.0  ;;  %v6919_v27 = vmul.f32 %v12370_v4, %v12370_v4  ;;  %v6821_v2 = vadd.f32 %v6820_v56, %v6819_v6 }
 0x9ac   : > { %v6964_v16 = vadd.f32 %v6963_v25, %v6962_v59  ;;  %v6772_v1 = vsel %vm341_vm6, %v12380_v10, 0.0  ;;  %v12568_v59 = vpop.f32.mrf.mxu3  ;;  %v6920_v63 = vmul.f32 %v6771_v34, %v6771_v34  ;;  %v12577_v10 = vpop.f32.mrf.mxu0 }
 0x9ad   : > { %v6823_v47 = vadd.f32 %v6822_v29, %v6821_v2  ;;  %v6973_v56 = vsel %vm224_vm2, %v6919_v27, 0.0  ;;  %v6921_v6 = vmul.f32 %v6772_v1, %v6772_v1  ;;  %v6828_v29 = vsel %vm224_vm2, %v6772_v1, 0.0 }
 0x9ae   : > { %v6966_v55 = vadd.f32 %v6965_v44, %v6964_v16  ;;  %v6971_v44 = vsel %vm224_vm2, %v6918_v17, 0.0  ;;  %v6774_v17 = vsel %vm346_vm7, %v12390_v46, 0.0  ;;  %v6922_v27 = vmul.f32 %v12384_v8, %v12384_v8 }
 0x9af   : > { %v6775_v2 = vsel %vm341_vm6, %v12394_v62, 0.0  ;;  %v6832_v1 = vsel %vm224_vm2, %v6774_v17, 0.0 }
 0x9b0   : > { %v6968_v25 = vadd.f32 %v6967_v15, %v6966_v55  ;;  %v6826_v55 = vsel %vm224_vm2, %v6771_v34, 0.0 }
 0x9b1   : > { %v6680_v23 = vpop.f32.mrf.mxu1 }
 0x9b2   : > { %v12547_v33 = vadd.f32 %v6680_v23, %v6549_v19  ;;  %v6969_v19 = vsel %vm224_vm2, %v6917_v36, 0.0  ;;  %v13952_v23 = vld [vmem:[#allocation100_spill] sm:$0xff] }
 0x9b3   : > { %v6550_v50 = vadd.f32 %v13952_v23, %v13951_v48  ;;  %v6970_v16 = vadd.f32 %v6969_v19, %v6968_v25  ;;  %v6825_v23 = vadd.f32 %v6824_v9, %v6823_v47  ;;  %v6975_v19 = vsel %vm224_vm2, %v6920_v63, 0.0 }
 0x9b4   : > { %v6923_v9 = vmul.f32 %v6774_v17, %v6774_v17  ;;  %v6979_v63 = vsel %vm224_vm2, %v6922_v27, 0.0  ;;  %v6924_v47 = vmul.f32 %v6775_v2, %v6775_v2  ;;  %v6925_v17 = vmul.f32 %v12400_v5, %v12400_v5 }
 0x9b5   : > { %v6972_v48 = vadd.f32 %v6971_v44, %v6970_v16  ;;  %v6827_v25 = vadd.f32 %v6826_v55, %v6825_v23  ;;  %v6830_v44 = vsel %vm224_vm2, %v12384_v8, 0.0  ;;  %v12602_v23 = vpop.f32.mrf.mxu3 }
 0x9b7   : > { %v6974_v34 = vadd.f32 %v6973_v56, %v6972_v48  ;;  %v6829_v16 = vadd.f32 %v6828_v29, %v6827_v25  ;;  %v6777_v48 = vsel %vm346_vm7, %v12404_v0, 0.0  ;;  %v6834_v29 = vsel %vm224_vm2, %v6775_v2, 0.0  ;;  %v12616_v2 = vpop.f32.mrf.mxu2 }
 0x9b9   : > { %v6682_v36 = vpop.f32.mrf.mxu1  ;;  %v6831_v56 = vadd.f32 %v6830_v44, %v6829_v16  ;;  %v12614_v44 = vpop.f32.mrf.mxu0  ;;  %v6985_v16 = vsel %vm224_vm2, %v6925_v17, 0.0 }
 0x9ba   : > { %v12573_v15 = vadd.f32 %v6682_v36, %v6550_v50  ;;  %v6977_v50 = vsel %vm224_vm2, %v6921_v6, 0.0  ;;  %v6976_v36 = vadd.f32 %v6975_v19, %v6974_v34  ;;  %v6981_v19 = vsel %vm224_vm2, %v6923_v9, 0.0 }
 0x9bb   : > { %v6833_v25 = vadd.f32 %v6832_v1, %v6831_v56  ;;  %v6778_v34 = vsel %vm341_vm6, %v12410_v18, 0.0 }
 0x9bc   : > { %v6978_v55 = vadd.f32 %v6977_v50, %v6976_v36  ;;  %v6983_v50 = vsel %vm224_vm2, %v6924_v47, 0.0  ;;  %v6927_v1 = vmul.f32 %v6778_v34, %v6778_v34  ;;  %v6780_v47 = vsel %vm346_vm7, %v12420_v20, 0.0 }
 0x9bd   : > { %v6835_v36 = vadd.f32 %v6834_v29, %v6833_v25  ;;  %v6840_v0 = vsel %vm224_vm2, %v6778_v34, 0.0  ;;  %v12635_v34 = vpop.f32.mrf.mxu3  ;;  %v6844_v20 = vsel %vm224_vm2, %v6780_v47, 0.0 }
 0x9be   : > { %v6980_v27 = vadd.f32 %v6979_v63, %v6978_v55  ;;  %v6838_v63 = vsel %vm224_vm2, %v6777_v48, 0.0  ;;  %v6989_v25 = vsel %vm224_vm2, %v6927_v1, 0.0 }
 0x9c0   : > { %v6982_v9 = vadd.f32 %v6981_v19, %v6980_v27  ;;  %v6928_v19 = vmul.f32 %v12414_v30, %v12414_v30 }
 0x9c1   : > { %v6685_v46 = vpop.f32.mrf.mxu1 }
 0x9c2   : > { %v12600_v6 = vadd.f32 %v6685_v46, %v12346_v43  ;;  %v6836_v43 = vsel %vm224_vm2, %v12400_v5, 0.0  ;;  %v6926_v46 = vmul.f32 %v6777_v48, %v6777_v48  ;;  %v6984_v55 = vadd.f32 %v6983_v50, %v6982_v9 }
 0x9c3   : > { %v6837_v56 = vadd.f32 %v6836_v43, %v6835_v36  ;;  %v6781_v48 = vsel %vm341_vm6, %v12424_v41, 0.0  ;;  %v6842_v50 = vsel %vm224_vm2, %v12414_v30, 0.0  ;;  %v6929_v43 = vmul.f32 %v6780_v47, %v6780_v47 }
 0x9c4   : > { %v6987_v18 = vsel %vm224_vm2, %v6926_v46, 0.0  ;;  %v6986_v17 = vadd.f32 %v6985_v16, %v6984_v55  ;;  %v6991_v36 = vsel %vm224_vm2, %v6928_v19, 0.0  ;;  %v6846_v41 = vsel %vm224_vm2, %v6781_v48, 0.0 }
 0x9c5   : > { %v6839_v27 = vadd.f32 %v6838_v63, %v6837_v56  ;;  %v6930_v63 = vmul.f32 %v6781_v48, %v6781_v48  ;;  %v6783_v56 = vsel %vm346_vm7, %v12434_v11, 0.0  ;;  %v6993_v1 = vsel %vm224_vm2, %v6929_v43, 0.0 }
 0x9c6   : > { %v6988_v46 = vadd.f32 %v6987_v18, %v6986_v17  ;;  %v12646_v18 = vpop.f32.mrf.mxu0  ;;  %v6784_v47 = vsel %vm341_vm6, %v12440_v31, 0.0  ;;  %v12651_v17 = vpop.f32.mrf.mxu2  ;;  %v6932_v43 = vmul.f32 %v6783_v56, %v6783_v56  ;;  %v6786_v31 = vsel %vm346_vm7, %v12450_v12, 0.0 }
 0x9c7   : > { %v6841_v9 = vadd.f32 %v6840_v0, %v6839_v27  ;;  %v6931_v0 = vmul.f32 %v12430_v49, %v12430_v49  ;;  %v6934_v30 = vmul.f32 %v12444_v52, %v12444_v52 }
 0x9c8   : > { %v6990_v16 = vadd.f32 %v6989_v25, %v6988_v46  ;;  %v6995_v25 = vsel %vm224_vm2, %v6930_v63, 0.0  ;;  %v6999_v63 = vsel %vm224_vm2, %v6932_v43, 0.0 }
 0x9c9   : > { %v12627_v29 = vpop.f32.mrf.mxu1  ;;  %v6843_v55 = vadd.f32 %v6842_v50, %v6841_v9  ;;  %v6848_v50 = vsel %vm224_vm2, %v12430_v49, 0.0  ;;  %v6997_v11 = vsel %vm224_vm2, %v6931_v0, 0.0  ;;  %v6852_v49 = vsel %vm224_vm2, %v6784_v47, 0.0  ;;  %v12670_v0 = vpop.f32.mrf.mxu3 }
 0x9ca   : > { %v6992_v27 = vadd.f32 %v6991_v36, %v6990_v16  ;;  %v6933_v36 = vmul.f32 %v6784_v47, %v6784_v47  ;;  %v7003_v47 = vsel %vm224_vm2, %v6934_v30, 0.0  ;;  %v6937_v30 = vmul.f32 %v12460_v40, %v12460_v40 }
 0x9cb   : > { %v6845_v19 = vadd.f32 %v6844_v20, %v6843_v55  ;;  %v6850_v20 = vsel %vm224_vm2, %v6783_v56, 0.0  ;;  %v6787_v56 = vsel %vm341_vm6, %v12454_v7, 0.0 }
 0x9cc   : > { %v6994_v46 = vadd.f32 %v6993_v1, %v6992_v27  ;;  %v7001_v27 = vsel %vm224_vm2, %v6933_v36, 0.0  ;;  %v6789_v36 = vsel %vm346_vm7, %v12464_v51, 0.0  ;;  %v7009_v51 = vsel %vm224_vm2, %v6937_v30, 0.0 }
 0x9cd   : > { %v6847_v9 = vadd.f32 %v6846_v41, %v6845_v19  ;;  %v6854_v19 = vsel %vm224_vm2, %v12444_v52, 0.0 }
 0x9ce   : > { %v6996_v16 = vadd.f32 %v6995_v25, %v6994_v46  ;;  %v6935_v25 = vmul.f32 %v6786_v31, %v6786_v31  ;;  %v6856_v46 = vsel %vm224_vm2, %v6786_v31, 0.0  ;;  %v5680_v7 = vpop.f32.mrf.mxu2 }
 0x9cf   : > { %v6849_v55 = vadd.f32 %v6848_v50, %v6847_v9  ;;  %v6936_v9 = vmul.f32 %v6787_v56, %v6787_v56 }
 0x9d0   : > { %v6998_v41 = vadd.f32 %v6997_v11, %v6996_v16  ;;  %v7005_v12 = vsel %vm224_vm2, %v6935_v25, 0.0 }
 0x9d1   : > { %v12656_v48 = vpop.f32.mrf.mxu1  ;;  %v6851_v1 = vadd.f32 %v6850_v20, %v6849_v55  ;;  %v12679_v20 = vpop.f32.mrf.mxu0 }
 0x9d2   : > { %v7000_v50 = vadd.f32 %v6999_v63, %v6998_v41  ;;  %v7007_v41 = vsel %vm224_vm2, %v6936_v9, 0.0  ;;  %v6792_v9 = vsel %vm346_vm7, %v12493_v42, 0.0 }
 0x9d3   : > { %v6853_v43 = vadd.f32 %v6852_v49, %v6851_v1  ;;  %v6858_v49 = vsel %vm224_vm2, %v6787_v56, 0.0  ;;  %v6790_v1 = vsel %vm341_vm6, %v12472_v24, 0.0 }
 0x9d4   : > { %v7002_v16 = vadd.f32 %v7001_v27, %v7000_v50  ;;  %v6860_v27 = vsel %vm224_vm2, %v12460_v40, 0.0  ;;  %v13953_v50 = vld [vmem:[#allocation75_spill] sm:$0xff]  ;;  %v6216_v40 = vpop.f32.mrf.mxu3 }
 0x9d5   : > { %v6855_v55 = vadd.f32 %v6854_v19, %v6853_v43  ;;  %v6938_v19 = vmul.f32 %v6789_v36, %v6789_v36  ;;  %v5732_v25 = vadd.f32 %v12510_v60, %v13953_v50  ;;  %v6940_v60 = vmul.f32 %v12476_v38, %v12476_v38 }
 0x9d6   : > { %v7004_v31 = vadd.f32 %v7003_v47, %v7002_v16  ;;  %v6862_v47 = vsel %vm224_vm2, %v6789_v36, 0.0  ;;  %v13954_v16 = vld [vmem:[#allocation80_spill] sm:$0xff] }
 0x9d7   : > { %v6857_v63 = vadd.f32 %v6856_v46, %v6855_v55  ;;  %v6939_v46 = vmul.f32 %v6790_v1, %v6790_v1  ;;  %v5733_v55 = vadd.f32 %v12549_v54, %v13954_v16  ;;  %v7011_v5 = vsel %vm224_vm2, %v6938_v19, 0.0 }
 0x9d8   : > { %v7006_v43 = vadd.f32 %v7005_v12, %v7004_v31  ;;  %v6864_v12 = vsel %vm224_vm2, %v6790_v1, 0.0  ;;  %v6268_v36 = vadd.f32 %v12527_v58, %v5732_v25  ;;  %v6793_v31 = vsel %vm341_vm6, %v12497_v14, 0.0  ;;  %v13957_v25 = vld [vmem:[#allocation82_spill] sm:$0xff] }
 0x9d9   : > { %v12677_v11 = vpop.f32.mrf.mxu1  ;;  %v6859_v56 = vadd.f32 %v6858_v49, %v6857_v63  ;;  %v13955_v63 = vld [vmem:[#allocation90_spill] sm:$0xff]  ;;  %v6866_v1 = vsel %vm224_vm2, %v12476_v38, 0.0  ;;  %v6941_v19 = vmul.f32 %v6792_v9, %v6792_v9  ;;  %v6269_v50 = vadd.f32 %v12568_v59, %v5733_v55 }
 0x9da   : > { %v7008_v24 = vadd.f32 %v7007_v41, %v7006_v43  ;;  %v5734_v41 = vadd.f32 %v12582_v21, %v13955_v63  ;;  %v13956_v43 = vld [vmem:[#allocation78_spill] sm:$0xff]  ;;  %v7015_v21 = vsel %vm224_vm2, %v6940_v60, 0.0  ;;  %v6942_v16 = vmul.f32 %v6793_v31, %v6793_v31 }
 0x9db   : > { %v6861_v52 = vadd.f32 %v6860_v27, %v6859_v56  ;;  %v7013_v27 = vsel %vm224_vm2, %v6939_v46, 0.0  ;;  %v5735_v58 = vadd.f32 %v12616_v2, %v13956_v43  ;;  %v5736_v56 = vadd.f32 %v12651_v17, %v13957_v25  ;;  %v13958_v63 = vld [vmem:[#allocation94_spill] sm:$0xff] }
 0x9dc   : > { %v7010_v30 = vadd.f32 %v7009_v51, %v7008_v24  ;;  %v12721_v51 = vpop.f32.mrf.mxu0  ;;  %v6868_v46 = vsel %vm224_vm2, %v6792_v9, 0.0  ;;  %v5737_v14 = vadd.f32 %v5680_v7, %v13958_v63  ;;  %v6795_v2 = vsel %vm346_vm7, %v12506_v28, 0.0 }
 0x9dd   : > { %v6863_v54 = vadd.f32 %v6862_v47, %v6861_v52  ;;  %v5682_v47 = vpop.f32.mrf.mxu2  ;;  %v7017_v55 = vsel %vm224_vm2, %v6941_v19, 0.0  ;;  %v6870_v17 = vsel %vm224_vm2, %v6793_v31, 0.0  ;;  %v6271_v9 = vadd.f32 %v12635_v34, %v5735_v58  ;;  %v13959_v19 = vld [vmem:[#allocation88_spill] sm:$0xff] }
 0x9de   : > { %v7012_v52 = vadd.f32 %v7011_v5, %v7010_v30  ;;  %v6270_v5 = vadd.f32 %v12602_v23, %v5734_v41  ;;  %v6796_v7 = vsel %vm341_vm6, %v12518_v37, 0.0  ;;  %v6872_v23 = vsel %vm224_vm2, %v12502_v26, 0.0 }
 0x9df   : > { %v6865_v24 = vadd.f32 %v6864_v12, %v6863_v54  ;;  %v6943_v12 = vmul.f32 %v12502_v26, %v12502_v26  ;;  %v6272_v54 = vadd.f32 %v12670_v0, %v5736_v56  ;;  %v6944_v41 = vmul.f32 %v6795_v2, %v6795_v2 }
 0x9e0   : > { %v7014_v42 = vadd.f32 %v7013_v27, %v7012_v52  ;;  %v7019_v27 = vsel %vm224_vm2, %v6942_v16, 0.0  ;;  %v5738_v43 = vadd.f32 %v5682_v47, %v13959_v19  ;;  %v6945_v25 = vmul.f32 %v6796_v7, %v6796_v7 }
 0x9e1   : > { %v12707_v49 = vpop.f32.mrf.mxu1  ;;  %v6867_v59 = vadd.f32 %v6866_v1, %v6865_v24  ;;  %v6273_v1 = vadd.f32 %v6216_v40, %v5737_v14  ;;  %v7021_v58 = vsel %vm224_vm2, %v6943_v12, 0.0  ;;  %v6874_v24 = vsel %vm224_vm2, %v6795_v2, 0.0 }
 0x9e2   : > { %v7016_v60 = vadd.f32 %v7015_v21, %v7014_v42  ;;  %v6218_v42 = vpop.f32.mrf.mxu3  ;;  %v6552_v0 = vadd.f32 %v12542_v22, %v6268_v36  ;;  %v6553_v40 = vadd.f32 %v12577_v10, %v6269_v50  ;;  %v7023_v14 = vsel %vm224_vm2, %v6944_v41, 0.0 }
 0x9e3   : > { %v6869_v30 = vadd.f32 %v6868_v46, %v6867_v59  ;;  %v6798_v46 = vsel %vm346_vm7, %v12573_v15, 0.0  ;;  %v6876_v47 = vsel %vm224_vm2, %v6796_v7, 0.0  ;;  %v6946_v16 = vmul.f32 %v12547_v33, %v12547_v33 }
 0x9e4   : > { %v7018_v52 = vadd.f32 %v7017_v55, %v7016_v60  ;;  %v6554_v63 = vadd.f32 %v12614_v44, %v6270_v5  ;;  %v6502_v59 = vpop.f32.mrf.mxu0  ;;  %v6799_v36 = vsel %vm341_vm6, %v12600_v6, 0.0  ;;  %v12761_v55 = vadd.f32 %v12656_v48, %v6553_v40 }
 0x9e5   : > { %v6871_v34 = vadd.f32 %v6870_v17, %v6869_v30  ;;  %v5685_v10 = vpop.f32.mrf.mxu2  ;;  %v7025_v50 = vsel %vm224_vm2, %v6945_v25, 0.0  ;;  %v6878_v17 = vsel %vm224_vm2, %v12547_v33, 0.0  ;;  %v6947_v12 = vmul.f32 %v6798_v46, %v6798_v46 }
 0x9e6   : > { %v7020_v56 = vadd.f32 %v7019_v27, %v7018_v52  ;;  %v12767_v60 = vadd.f32 %v12627_v29, %v6552_v0  ;;  %v6274_v44 = vadd.f32 %v6218_v42, %v5738_v43  ;;  %v12770_v7 = vadd.f32 %v12677_v11, %v6554_v63  ;;  %v13960_v63 = vld [vmem:[#allocation96_spill] sm:$0xff] }
 0x9e7   : > { %v6873_v21 = vadd.f32 %v6872_v23, %v6871_v34  ;;  %v7027_v27 = vsel %vm224_vm2, %v6946_v16, 0.0  ;;  %v6880_v48 = vsel %vm224_vm2, %v6798_v46, 0.0  ;;  %v6948_v23 = vmul.f32 %v6799_v36, %v6799_v36 }
 0x9e8   : > { %v7022_v2 = vadd.f32 %v7021_v58, %v7020_v56  ;;  %v6555_v41 = vadd.f32 %v12646_v18, %v6271_v9  ;;  %v6801_v29 = vsel %vm346_vm7, %v12761_v55, 0.0  ;;  %v6556_v43 = vadd.f32 %v12679_v20, %v6272_v54 }
 0x9e9   : > { %v6697_v31 = vpop.f32.mrf.mxu1  ;;  %v6875_v22 = vadd.f32 %v6874_v24, %v6873_v21  ;;  %v7029_v42 = vsel %vm224_vm2, %v6947_v12, 0.0  ;;  %v6882_v11 = vsel %vm224_vm2, %v6799_v36, 0.0  ;;  %v6949_v58 = vmul.f32 %v12767_v60, %v12767_v60 }
 0x9ea   : > { %v7024_v5 = vadd.f32 %v7023_v14, %v7022_v2  ;;  %v6557_v24 = vadd.f32 %v12721_v51, %v6273_v1  ;;  %v6802_v9 = vsel %vm341_vm6, %v12770_v7, 0.0  ;;  %v12787_v0 = vadd.f32 %v6697_v31, %v6556_v43  ;;  %v6221_v56 = vpop.f32.mrf.mxu3 }
 0x9eb   : > { %v6877_v30 = vadd.f32 %v6876_v47, %v6875_v22  ;;  %v7031_v20 = vsel %vm224_vm2, %v6948_v23, 0.0  ;;  %v6884_v54 = vsel %vm224_vm2, %v12767_v60, 0.0  ;;  %v6950_v21 = vmul.f32 %v6801_v29, %v6801_v29 }
 0x9ec   : > { %v7026_v52 = vadd.f32 %v7025_v50, %v7024_v5  ;;  %v12793_v46 = vadd.f32 %v12707_v49, %v6555_v41  ;;  %v7033_v14 = vsel %vm224_vm2, %v6949_v58, 0.0  ;;  %v6886_v47 = vsel %vm224_vm2, %v6801_v29, 0.0  ;;  %v6505_v16 = vpop.f32.mrf.mxu0 }
 0x9ed   : > { %v6879_v34 = vadd.f32 %v6878_v17, %v6877_v30  ;;  %v6951_v31 = vmul.f32 %v6802_v9, %v6802_v9  ;;  %v5739_v2 = vadd.f32 %v5685_v10, %v13960_v63  ;;  %v6804_v50 = vsel %vm346_vm7, %v12787_v0, 0.0  ;;  %v5687_v49 = vpop.f32.mrf.mxu2 }
 0x9ee   : > { %v7028_v25 = vadd.f32 %v7027_v27, %v7026_v52  ;;  %v7035_v17 = vsel %vm224_vm2, %v6950_v21, 0.0  ;;  %v6888_v12 = vsel %vm224_vm2, %v6802_v9, 0.0  ;;  %v6952_v5 = vmul.f32 %v12793_v46, %v12793_v46 }
 0x9ef   : > { %v6881_v18 = vadd.f32 %v6880_v48, %v6879_v34  ;;  %v6558_v30 = vadd.f32 %v6502_v59, %v6274_v44  ;;  %v7037_v41 = vsel %vm224_vm2, %v6951_v31, 0.0  ;;  %v6953_v52 = vmul.f32 %v6804_v50, %v6804_v50 }
 0x9f0   : > { %v7030_v40 = vadd.f32 %v7029_v42, %v7028_v25  ;;  %v6275_v29 = vadd.f32 %v6221_v56, %v5739_v2  ;;  %v7039_v59 = vsel %vm224_vm2, %v6952_v5, 0.0  ;;  %v6892_v44 = vsel %vm224_vm2, %v6804_v50, 0.0 }
 0x9f1   : > { %v6700_v19 = vpop.f32.mrf.mxu1  ;;  %v6883_v51 = vadd.f32 %v6882_v11, %v6881_v18  ;;  %v7041_v18 = vsel %vm224_vm2, %v6953_v52, 0.0 }
 0x9f2   : > { %v12795_v1 = vadd.f32 %v6700_v19, %v6557_v24  ;;  %v7032_v22 = vadd.f32 %v7031_v20, %v7030_v40  ;;  %v6890_v19 = vsel %vm224_vm2, %v12793_v46, 0.0  ;;  %v6223_v25 = vpop.f32.mrf.mxu3 }
 0x9f3   : > { %v6885_v36 = vadd.f32 %v6884_v54, %v6883_v51  ;;  %v13961_v54 = vld [vmem:[#allocation99_spill] sm:$0xff]  ;;  %v6559_v51 = vadd.f32 %v6505_v16, %v6275_v29 }
 0x9f4   : > { %v7034_v48 = vadd.f32 %v7033_v14, %v7032_v22  ;;  %v6805_v10 = vsel %vm341_vm6, %v12795_v1, 0.0  ;;  %v5740_v21 = vadd.f32 %v5687_v49, %v13961_v54  ;;  %v13964_v54 = vld [vmem:[#allocation93_spill] sm:$0xff] }
 0x9f5   : > { %v6887_v23 = vadd.f32 %v6886_v47, %v6885_v36  ;;  %v6954_v11 = vmul.f32 %v6805_v10, %v6805_v10  ;;  %v6894_v9 = vsel %vm224_vm2, %v6805_v10, 0.0  ;;  %v6507_v36 = vpop.f32.mrf.mxu0  ;;  %v5690_v50 = vpop.f32.mrf.mxu2 }
 0x9f6   : > { %v7036_v43 = vadd.f32 %v7035_v17, %v7034_v48 }
 0x9f7   : > { %v6889_v42 = vadd.f32 %v6888_v12, %v6887_v23  ;;  %v7043_v14 = vsel %vm224_vm2, %v6954_v11, 0.0  ;;  %v6276_v12 = vadd.f32 %v6223_v25, %v5740_v21 }
 0x9f8   : > { %v7038_v58 = vadd.f32 %v7037_v41, %v7036_v43  ;;  %v13962_v41 = vld [vmem:[#allocation92_spill] sm:$0xff] }
 0x9f9   : > { %v6702_v27 = vpop.f32.mrf.mxu1  ;;  %v6891_v24 = vadd.f32 %v6890_v19, %v6889_v42  ;;  %v5741_v19 = vadd.f32 %v5690_v50, %v13962_v41  ;;  %v6560_v29 = vadd.f32 %v6507_v36, %v6276_v12 }
 0x9fa   : > { %v12813_v34 = vadd.f32 %v6702_v27, %v6558_v30  ;;  %v7040_v56 = vadd.f32 %v7039_v59, %v7038_v58  ;;  %v6226_v43 = vpop.f32.mrf.mxu3 }
 0x9fb   : > { %v6893_v40 = vadd.f32 %v6892_v44, %v6891_v24  ;;  %v6277_v44 = vadd.f32 %v6226_v43, %v5741_v19 }
 0x9fc   : > { %v6955_v20 = vmul.f32 %v12813_v34, %v12813_v34  ;;  %v6896_v47 = vsel %vm224_vm2, %v12813_v34, 0.0  ;;  %v7042_v63 = vadd.f32 %v7041_v18, %v7040_v56 }
 0x9fd   : > { %v6895_v2 = vadd.f32 %v6894_v9, %v6893_v40  ;;  %v6510_v58 = vpop.f32.mrf.mxu0  ;;  %v5692_v24 = vpop.f32.mrf.mxu2 }
 0x9fe   : > { %v7045_v17 = vsel %vm224_vm2, %v6955_v20, 0.0  ;;  %v7044_v5 = vadd.f32 %v7043_v14, %v7042_v63  ;;  %v5742_v21 = vadd.f32 %v5692_v24, %v13964_v54  ;;  %v6561_v40 = vadd.f32 %v6510_v58, %v6277_v44 }
 0x9ff   : > { %v6897_v49 = vadd.f32 %v6896_v47, %v6895_v2 }
 0xa00   : > { %v7046_v48 = vadd.f32 %v7045_v17, %v7044_v5 }
 0xa01   : > { %v6705_v31 = vpop.f32.mrf.mxu1 }
 0xa02   : > { %v12825_v22 = vadd.f32 %v6705_v31, %v6559_v51  ;;  %v6228_v47 = vpop.f32.mrf.mxu3 }
 0xa03   : > { %v6278_v31 = vadd.f32 %v6228_v47, %v5742_v21 }
 0xa04   : > { %v6807_v16 = vsel %vm346_vm7, %v12825_v22, 0.0 }
 0xa05   : > { %v6898_v30 = vsel %vm224_vm2, %v6807_v16, 0.0  ;;  %v6956_v27 = vmul.f32 %v6807_v16, %v6807_v16  ;;  %v6512_v50 = vpop.f32.mrf.mxu0 }
 0xa06   : > { %v6899_v23 = vadd.f32 %v6898_v30, %v6897_v49  ;;  %v6562_v12 = vadd.f32 %v6512_v50, %v6278_v31 }
 0xa07   : > { %v7047_v10 = vsel %vm224_vm2, %v6956_v27, 0.0 }
 0xa08   : > { %v7048_v52 = vadd.f32 %v7047_v10, %v7046_v48 }
 0xa09   : > { %v6707_v42 = vpop.f32.mrf.mxu1 }
 0xa0a   : > { %v12834_v59 = vadd.f32 %v6707_v42, %v6560_v29 }
 0xa0c   : > { %13963 = vst [vmem:[#allocation50_spill] sm:$0xff] %v12834_v59  ;;  %v6808_v11 = vsel %vm341_vm6, %v12834_v59, 0.0 }
 0xa0d   : > { %v6900_v25 = vsel %vm224_vm2, %v6808_v11, 0.0  ;;  %v6957_v18 = vmul.f32 %v6808_v11, %v6808_v11 }
 0xa0e   : > { %v6901_v9 = vadd.f32 %v6900_v25, %v6899_v23 }
 0xa0f   : > { %v7049_v20 = vsel %vm224_vm2, %v6957_v18, 0.0 }
 0xa10   : > { %v7050_v56 = vadd.f32 %v7049_v20, %v7048_v52 }
 0xa11   : > { %v6710_v51 = vpop.f32.mrf.mxu1 }
 0xa12   : > { %v12842_v14 = vadd.f32 %v6710_v51, %v6561_v40 }
 0xa14   : > { %13965 = vst [vmem:[#allocation53_spill] sm:$0xff] %v12842_v14  ;;  %v6902_v45 = vsel %vm224_vm2, %v12842_v14, 0.0  ;;  %v6958_v63 = vmul.f32 %v12842_v14, %v12842_v14 }
 0xa15   : > { %v6903_v2 = vadd.f32 %v6902_v45, %v6901_v9 }
 0xa16   : > { %v7051_v36 = vsel %vm224_vm2, %v6958_v63, 0.0 }
 0xa17   : > { %v7052_v17 = vadd.f32 %v7051_v36, %v7050_v56 }
 0xa19   : > { %v6712_v5 = vpop.f32.mrf.mxu1 }
 0xa1a   : > { %v12849_v49 = vadd.f32 %v6712_v5, %v6562_v12 }
 0xa1c   : > { %13966 = vst [vmem:[#allocation115_spill] sm:$0xff] %v12849_v49  ;;  %v6810_v16 = vsel %vm346_vm7, %v12849_v49, 0.0 }
 0xa1d   : > { %v6904_v30 = vsel %vm224_vm2, %v6810_v16, 0.0  ;;  %v6959_v27 = vmul.f32 %v6810_v16, %v6810_v16 }
 0xa1e   : > { %v6905_v48 = vadd.f32 %v6904_v30, %v6903_v2 }
 0xa1f   : > { %v7053_v23 = vsel %vm224_vm2, %v6959_v27, 0.0 }
 0xa20   : > { %v6906_v10 = vrot.slane %v6905_v48, 4  ;;  %v7054_v41 = vadd.f32 %v7053_v23, %v7052_v17 }
 0xa22   : > { %v6907_v19 = vadd.f32 %v6906_v10, %v6905_v48  ;;  %v7055_v52 = vrot.slane %v7054_v41, 4 }
 0xa24   : > { %v6908_v29 = vrot.slane %v6907_v19, 2  ;;  %v7056_v43 = vadd.f32 %v7055_v52, %v7054_v41 }
 0xa26   : > { %v6909_v42 = vadd.f32 %v6908_v29, %v6907_v19  ;;  %v7057_v44 = vrot.slane %v7056_v43, 2  ;;  %v13972_v19 = vld [vmem:[#allocation112_spill] sm:$0xff]  ;;  %v13973_v29 = vld [vmem:[#allocation106_spill] sm:$0xff] }
 0xa28   : > { %v6910_v11 = vrot.slane %v6909_v42, 1  ;;  %v7058_v58 = vadd.f32 %v7057_v44, %v7056_v43 }
 0xa2a   : > { %v6911_v24 = vadd.f32 %v6910_v11, %v6909_v42  ;;  %v7059_v25 = vrot.slane %v7058_v58, 1  ;;  %v13975_v11 = vld [vmem:[#allocation36_spill] sm:$0xff] }
 0xa2c   : > { %v7060_v35 = vadd.f32 %v7059_v25, %v7058_v58  ;;  %v12856_v18 = vmul.f32 0.00390625, %v6911_v24  ;;  %v13977_v25 = vld [vmem:[#allocation107_spill] sm:$0xff] }
 0xa2e   : > { %v7062_v9 = vmul.f32 0.00390625, %v7060_v35  ;;  %v7063_v20 = vmul.f32 %v12856_v18, %v12856_v18  ;;  %v7066_v63 = vsub.f32 %v13946_v3, %v12856_v18  ;;  %v7067_v2 = vsub.f32 %v13948_v57, %v12856_v18  ;;  %v13967_v57 = vld [vmem:[#allocation101_spill] sm:$0xff] }
 0xa2f   : > { %v7068_v36 = vsub.f32 %v12342_v32, %v12856_v18  ;;  %v7069_v17 = vsub.f32 %v12350_v39, %v12856_v18  ;;  %v7070_v12 = vsub.f32 %v12354_v13, %v12856_v18  ;;  %v7071_v5 = vsub.f32 %v12360_v61, %v12856_v18  ;;  %v13968_v32 = vld [vmem:[#allocation103_spill] sm:$0xff]  ;;  %v13969_v13 = vld [vmem:[#allocation104_spill] sm:$0xff] }
 0xa30   : > { %v7064_v54 = vsub.f32 %v7062_v9, %v7063_v20  ;;  %v7072_v16 = vsub.f32 %v12364_v53, %v12856_v18  ;;  %v7073_v3 = vsub.f32 %v12370_v4, %v12856_v18  ;;  %v7074_v30 = vsub.f32 %v13967_v57, %v12856_v18  ;;  %v13970_v53 = vld [vmem:[#allocation105_spill] sm:$0xff]  ;;  %v13971_v4 = vld [vmem:[#allocation40_spill] sm:$0xff]  ;;  %v13980_v57 = vld [vmem:[#allocation15_spill] sm:$0xff] }
 0xa31   : > { %v7075_v27 = vsub.f32 %v13968_v32, %v12856_v18  ;;  %v7076_v39 = vsub.f32 %v12384_v8, %v12856_v18  ;;  %v7077_v23 = vsub.f32 %v13969_v13, %v12856_v18  ;;  %v7078_v61 = vsub.f32 %v12394_v62, %v12856_v18  ;;  %v13974_v8 = vld [vmem:[#allocation38_spill] sm:$0xff]  ;;  %v13976_v62 = vld [vmem:[#allocation24_spill] sm:$0xff]  ;;  %v13981_v13 = vld [vmem:[#allocation109_spill] sm:$0xff] }
 0xa32   : > { %v7065_v21 = vmax.f32 %v7064_v54, 0.0  ;;  %v7079_v10 = vsub.f32 %v13970_v53, %v12856_v18  ;;  %v7080_v41 = vsub.f32 %v13971_v4, %v12856_v18  ;;  %v7081_v52 = vsub.f32 %v13972_v19, %v12856_v18  ;;  %v13978_v9 = vld [vmem:[#allocation108_spill] sm:$0xff]  ;;  %v13979_v54 = vld [vmem:[#allocation110_spill] sm:$0xff] }
 0xa33   : > { %v7082_v43 = vsub.f32 %v13973_v29, %v12856_v18  ;;  %v7083_v44 = vsub.f32 %v13974_v8, %v12856_v18  ;;  %v7084_v58 = vsub.f32 %v13975_v11, %v12856_v18  ;;  %v7085_v24 = vsub.f32 %v13976_v62, %v12856_v18  ;;  %v13982_v4 = vld [vmem:[#allocation114_spill] sm:$0xff]  ;;  %v13983_v29 = vld [vmem:[#allocation111_spill] sm:$0xff] }
 0xa34   : > { %v7114_v45 = vadd.f32 1e-05, %v7065_v21  ;;  %v7086_v35 = vsub.f32 %v13977_v25, %v12856_v18  ;;  %v7087_v20 = vsub.f32 %v13978_v9, %v12856_v18  ;;  %v7088_v21 = vsub.f32 %v13979_v54, %v12856_v18  ;;  %v13984_v11 = vld [vmem:[#allocation10_spill] sm:$0xff]  ;;  %v13985_v9 = vld [vmem:[#allocation17_spill] sm:$0xff] }
 0xa35   : > { %v7089_v32 = vsub.f32 %v13980_v57, %v12856_v18  ;;  %v7090_v53 = vsub.f32 %v13981_v13, %v12856_v18  ;;  %v7091_v19 = vsub.f32 %v13982_v4, %v12856_v18  ;;  %v7092_v8 = vsub.f32 %v13983_v29, %v12856_v18 }
 0xa36   : > { %7847 = vrsqrt.f32 %v7114_v45  ;;  %v7093_v62 = vsub.f32 %v13984_v11, %v12856_v18  ;;  %v7094_v25 = vsub.f32 %v12476_v38, %v12856_v18  ;;  %v7095_v54 = vsub.f32 %v13985_v9, %v12856_v18 }
 0xa37   : > { %v7097_v4 = vsub.f32 %v12502_v26, %v12856_v18  ;;  %v7098_v29 = vsub.f32 %v12506_v28, %v12856_v18  ;;  %v7099_v11 = vsub.f32 %v12518_v37, %v12856_v18  ;;  %v7100_v38 = vsub.f32 %v12547_v33, %v12856_v18 }
 0xa38   : > { %v7101_v9 = vsub.f32 %v12573_v15, %v12856_v18  ;;  %vm7121_vm12 = vweird.f32 %v7114_v45  ;;  %v7103_v26 = vsub.f32 %v12767_v60, %v12856_v18  ;;  %v7104_v28 = vsub.f32 %v12761_v55, %v12856_v18 }
 0xa39   : > { %v7105_v37 = vsub.f32 %v12770_v7, %v12856_v18  ;;  %v7106_v33 = vsub.f32 %v12793_v46, %v12856_v18  ;;  %v7107_v15 = vsub.f32 %v12787_v0, %v12856_v18 }
 0xa3c   : > { %v7848_v50 = vpop.eup %7847 }
 0xa3d   : > { %v7116_v48 = vmul.f32 %v7848_v50, %v7114_v45  ;;  %vm7122_vm11 = vweird.f32 %v7848_v50  ;;  %v7108_v45 = vsub.f32 %v12795_v1, %v12856_v18 }
 0xa3e   : > { %vm7123_vm13 = vmor %vm7121_vm12, %vm7122_vm11 }
 0xa3f   : > { %v7117_v42 = vmul.f32 %v7848_v50, %v7116_v48 }
 0xa41   : > { %v7118_v48 = vmul.f32 0.5, %v7117_v42  ;;  %v13986_v42 = vld [vmem:[#allocation51_spill] sm:$0xff] }
 0xa42   : > { %v7096_v13 = vsub.f32 %v13986_v42, %v12856_v18  ;;  %v7102_v42 = vsub.f32 %v12600_v6, %v12856_v18 }
 0xa43   : > { %v7119_v57 = vsub.f32 1.5, %v7118_v48 }
 0xa45   : > { %v7120_v48 = vmul.f32 %v7848_v50, %v7119_v57 }
 0xa47   : > { %v7124_v6 = vsel %vm7123_vm13, %v7848_v50, %v7120_v48  ;;  %v13993_v48 = vld [vmem:[#allocation115_spill] sm:$0xff] }
 0xa48   : > { %v7125_v57 = vmul.f32 %v7124_v6, %v7066_v63  ;;  %v7126_v31 = vmul.f32 %v7124_v6, %v7067_v2  ;;  %v7127_v60 = vmul.f32 %v7124_v6, %v7068_v36  ;;  %v7128_v47 = vmul.f32 %v7124_v6, %v7069_v17 }
 0xa49   : > { %v7129_v51 = vmul.f32 %v7124_v6, %v7070_v12  ;;  %v7130_v55 = vmul.f32 %v7124_v6, %v7071_v5  ;;  %v7131_v40 = vmul.f32 %v7124_v6, %v7072_v16  ;;  %v7132_v56 = vmul.f32 %v7124_v6, %v7073_v3 }
 0xa4a   : > { %v7133_v7 = vmul.f32 %v7124_v6, %v7074_v30  ;;  %v7134_v49 = vmul.f32 %v7124_v6, %v7075_v27  ;;  %v12956_v14 = vmul.f32 %v7124_v6, %v7076_v39  ;;  %v12958_v46 = vmul.f32 %v7124_v6, %v7077_v23 }
 0xa4b   : > { %v12960_v59 = vmul.f32 %v7124_v6, %v7078_v61  ;;  %v12962_v0 = vmul.f32 %v7124_v6, %v7079_v10  ;;  %v12964_v1 = vmul.f32 %v7124_v6, %v7080_v41  ;;  %v12966_v63 = vmul.f32 %v7124_v6, %v7081_v52 }
 0xa4c   : > { %v12968_v2 = vmul.f32 %v7124_v6, %v7082_v43  ;;  %v12970_v36 = vmul.f32 %v7124_v6, %v7083_v44  ;;  %v12972_v50 = vmul.f32 %v7124_v6, %v7084_v58  ;;  %v12974_v17 = vmul.f32 %v7124_v6, %v7085_v24 }
 0xa4d   : > { %v12976_v12 = vmul.f32 %v7124_v6, %v7086_v35  ;;  %v12978_v5 = vmul.f32 %v7124_v6, %v7087_v20  ;;  %v12980_v16 = vmul.f32 %v7124_v6, %v7088_v21  ;;  %v12982_v3 = vmul.f32 %v7124_v6, %v7089_v32 }
 0xa4e   : > { %v12984_v30 = vmul.f32 %v7124_v6, %v7090_v53  ;;  %v12986_v27 = vmul.f32 %v7124_v6, %v7091_v19  ;;  %v12988_v39 = vmul.f32 %v7124_v6, %v7092_v8  ;;  %v12990_v23 = vmul.f32 %v7124_v6, %v7093_v62 }
 0xa4f   : > { %v12992_v61 = vmul.f32 %v7124_v6, %v7094_v25  ;;  %v12994_v10 = vmul.f32 %v7124_v6, %v7095_v54  ;;  %v12996_v41 = vmul.f32 %v7124_v6, %v7096_v13  ;;  %v12998_v52 = vmul.f32 %v7124_v6, %v7097_v4  ;;  %v13989_v4 = vld [vmem:[#allocation50_spill] sm:$0xff] }
 0xa50   : > { %v13000_v43 = vmul.f32 %v7124_v6, %v7098_v29  ;;  %v13002_v44 = vmul.f32 %v7124_v6, %v7099_v11  ;;  %v13004_v58 = vmul.f32 %v7124_v6, %v7100_v38  ;;  %v13006_v24 = vmul.f32 %v7124_v6, %v7101_v9 }
 0xa51   : > { %v13008_v35 = vmul.f32 %v7124_v6, %v7102_v42  ;;  %v13010_v20 = vmul.f32 %v7124_v6, %v7103_v26  ;;  %v13012_v21 = vmul.f32 %v7124_v6, %v7104_v28  ;;  %v13014_v32 = vmul.f32 %v7124_v6, %v7105_v37  ;;  %v7976_v37 = vld [vmem:[#allocation2 + $0x20] sm:$0xff] }
 0xa52   : > { %v13016_v53 = vmul.f32 %v7124_v6, %v7106_v33  ;;  %v13018_v19 = vmul.f32 %v7124_v6, %v7107_v15  ;;  %v13020_v8 = vmul.f32 %v7124_v6, %v7108_v45  ;;  %v13987_v62 = vsub.f32 %v12813_v34, %v12856_v18  ;;  %v13991_v34 = vld [vmem:[#allocation53_spill] sm:$0xff] }
 0xa53   : > { %v13988_v54 = vsub.f32 %v12825_v22, %v12856_v18  ;;  %v13990_v29 = vsub.f32 %v13989_v4, %v12856_v18  ;;  %v13992_v38 = vsub.f32 %v13991_v34, %v12856_v18  ;;  %v13994_v42 = vsub.f32 %v13993_v48, %v12856_v18  ;;  %v7975_v22 = vld [vmem:[#allocation2 + $0x18] sm:$0xff]  ;;  %v7977_v15 = vld [vmem:[#allocation2 + $0x28] sm:$0xff]  ;;  %v13997_v34 = vld [vmem:[#allocation6_spill] sm:$0xff] }
 0xa54   : > { %v13025_v25 = vmul.f32 %v7124_v6, %v13987_v62  ;;  %v7221_v28 = vadd.f32 %v7975_v22, %v7125_v57  ;;  %v7222_v33 = vadd.f32 %v7976_v37, %v7126_v31  ;;  %v7223_v45 = vadd.f32 %v7977_v15, %v7127_v60  ;;  %v13995_v62 = vld [vmem:[#allocation7_spill] sm:$0xff]  ;;  %v13996_v4 = vld [vmem:[#allocation5_spill] sm:$0xff]  ;;  %v7979_v31 = vld [vmem:[#allocation2 + $0x50] sm:$0xff] }
 0xa55   : > { %v13037_v13 = vmul.f32 %v7124_v6, %v13988_v54  ;;  %v13042_v11 = vmul.f32 %v7124_v6, %v13990_v29  ;;  %v13047_v9 = vmul.f32 %v7124_v6, %v13992_v38  ;;  %v13052_v26 = vmul.f32 %v7124_v6, %v13994_v42  ;;  %v7978_v18 = vld [vmem:[#allocation2 + $0x48] sm:$0xff] }
 0xa56   : > { %v7224_v54 = vadd.f32 %v7128_v47, %v13995_v62  ;;  %v7225_v29 = vadd.f32 %v7129_v51, %v13996_v4  ;;  %7270 = vst.msk [vmem:[%s13032_s5 - $0x1] sm:$0xfe] %vm7269_vm14, %v7221_v28  ;;  %v7226_v38 = vadd.f32 %v7130_v55, %v13997_v34  ;;  %v7227_v6 = vadd.f32 %v7978_v18, %v7131_v40  ;;  %v7980_v47 = vld [vmem:[#allocation2 + $0x58] sm:$0xff]  ;;  %v7981_v51 = vld [vmem:[#allocation2 + $0x60] sm:$0xff]  ;;  %v7982_v48 = vld [vmem:[#allocation2 + $0x68] sm:$0xff] }
 0xa57   : > { %7271 = vst.msk [vmem:[%s13032_s5 + $0x7] sm:$0xff] %vm224_vm2, %v7222_v33  ;;  %v7228_v57 = vadd.f32 %v7979_v31, %v7132_v56  ;;  %v7229_v60 = vadd.f32 %v7980_v47, %v7133_v7  ;;  %v7230_v55 = vadd.f32 %v7981_v51, %v7134_v49  ;;  %v7231_v40 = vadd.f32 %v7982_v48, %v12956_v14  ;;  %v7983_v56 = vld [vmem:[#allocation2 + $0x70] sm:$0xff]  ;;  %v7984_v7 = vld [vmem:[#allocation2 + $0x78] sm:$0xff]  ;;  %v7985_v49 = vld [vmem:[#allocation2 + $0x80] sm:$0xff] }
 0xa58   : > { %7272 = vst.msk [vmem:[%s13032_s5 + $0xf] sm:$0x1] %vm273_vm3, %v7223_v45  ;;  %v7232_v42 = vadd.f32 %v7983_v56, %v12958_v46  ;;  %v7233_v22 = vadd.f32 %v7984_v7, %v12960_v59  ;;  %v7234_v28 = vadd.f32 %v7985_v49, %v12962_v0  ;;  %v7986_v14 = vld [vmem:[#allocation2 + $0x88] sm:$0xff]  ;;  %v7987_v46 = vld [vmem:[#allocation2 + $0x90] sm:$0xff]  ;;  %v7988_v59 = vld [vmem:[#allocation2 + $0x98] sm:$0xff] }
 0xa59   : > { %7273 = vst.msk [vmem:[%s13032_s5 + $0xf] sm:$0xfe] %vm7269_vm14, %v7224_v54  ;;  %v7235_v37 = vadd.f32 %v7986_v14, %v12964_v1  ;;  %v7236_v33 = vadd.f32 %v7987_v46, %v12966_v63  ;;  %v7237_v15 = vadd.f32 %v7988_v59, %v12968_v2  ;;  %v7989_v0 = vld [vmem:[#allocation2 + $0xa0] sm:$0xff]  ;;  %v7990_v1 = vld [vmem:[#allocation2 + $0xa8] sm:$0xff]  ;;  %v7991_v63 = vld [vmem:[#allocation2 + $0xb0] sm:$0xff] }
 0xa5a   : > { %7274 = vst.msk [vmem:[%s13032_s5 + $0x17] sm:$0xff] %vm224_vm2, %v7225_v29  ;;  %v7238_v45 = vadd.f32 %v7989_v0, %v12970_v36  ;;  %v7239_v62 = vadd.f32 %v7990_v1, %v12972_v50  ;;  %v7240_v54 = vadd.f32 %v7991_v63, %v12974_v17  ;;  %v7992_v2 = vld [vmem:[#allocation2 + $0xb8] sm:$0xff]  ;;  %v7993_v36 = vld [vmem:[#allocation2 + $0xc0] sm:$0xff]  ;;  %v7994_v50 = vld [vmem:[#allocation2 + $0xc8] sm:$0xff] }
 0xa5b   : > { %7275 = vst.msk [vmem:[%s13032_s5 + $0x1f] sm:$0x1] %vm273_vm3, %v7226_v38  ;;  %v7241_v4 = vadd.f32 %v7992_v2, %v12976_v12  ;;  %v7242_v29 = vadd.f32 %v7993_v36, %v12978_v5  ;;  %v7243_v34 = vadd.f32 %v7994_v50, %v12980_v16  ;;  %v7995_v17 = vld [vmem:[#allocation2 + $0xd0] sm:$0xff]  ;;  %v7996_v12 = vld [vmem:[#allocation2 + $0xd8] sm:$0xff]  ;;  %v7997_v5 = vld [vmem:[#allocation2 + $0xe0] sm:$0xff] }
 0xa5c   : > { %7276 = vst.msk [vmem:[%s13032_s5 + $0x1f] sm:$0xfe] %vm7269_vm14, %v7227_v6  ;;  %v7244_v38 = vadd.f32 %v7995_v17, %v12982_v3  ;;  %v7245_v18 = vadd.f32 %v7996_v12, %v12984_v30  ;;  %v7246_v6 = vadd.f32 %v7997_v5, %v12986_v27  ;;  %v7998_v16 = vld [vmem:[#allocation2 + $0xe8] sm:$0xff]  ;;  %v7999_v3 = vld [vmem:[#allocation2 + $0xf0] sm:$0xff]  ;;  %v8000_v30 = vld [vmem:[#allocation2 + $0xf8] sm:$0xff] }
 0xa5d   : > { %7277 = vst.msk [vmem:[%s13032_s5 + $0x27] sm:$0xff] %vm224_vm2, %v7228_v57  ;;  %v7247_v31 = vadd.f32 %v7998_v16, %v12988_v39  ;;  %v7248_v57 = vadd.f32 %v7999_v3, %v12990_v23  ;;  %v7249_v47 = vadd.f32 %v8000_v30, %v12992_v61  ;;  %v8001_v27 = vld [vmem:[#allocation2 + $0x100] sm:$0xff]  ;;  %v8002_v39 = vld [vmem:[#allocation2 + $0x108] sm:$0xff]  ;;  %v8003_v23 = vld [vmem:[#allocation2 + $0x110] sm:$0xff] }
 0xa5e   : > { %7278 = vst.msk [vmem:[%s13032_s5 + $0x2f] sm:$0x1] %vm273_vm3, %v7229_v60  ;;  %v7250_v60 = vadd.f32 %v8001_v27, %v12994_v10  ;;  %v7251_v51 = vadd.f32 %v8002_v39, %v12996_v41  ;;  %v8004_v61 = vld [vmem:[#allocation2 + $0x118] sm:$0xff]  ;;  %v8005_v10 = vld [vmem:[#allocation2 + $0x120] sm:$0xff]  ;;  %v8006_v41 = vld [vmem:[#allocation2 + $0x128] sm:$0xff] }
 0xa5f   : > { %7279 = vst.msk [vmem:[%s13032_s5 + $0x2f] sm:$0xfe] %vm7269_vm14, %v7230_v55  ;;  %v7252_v55 = vadd.f32 %v8003_v23, %v12998_v52  ;;  %v7253_v48 = vadd.f32 %v8004_v61, %v13000_v43  ;;  %v7255_v56 = vadd.f32 %v8006_v41, %v13004_v58  ;;  %v8007_v52 = vld [vmem:[#allocation2 + $0x130] sm:$0xff]  ;;  %v8008_v43 = vld [vmem:[#allocation2 + $0x138] sm:$0xff]  ;;  %v8010_v58 = vld [vmem:[#allocation2 + $0x148] sm:$0xff] }
 0xa60   : > { %7280 = vst.msk [vmem:[%s13032_s5 + $0x37] sm:$0xff] %vm224_vm2, %v7231_v40  ;;  %v7254_v40 = vadd.f32 %v8005_v10, %v13002_v44  ;;  %v7257_v7 = vadd.f32 %v8008_v43, %v13008_v35  ;;  %v8009_v44 = vld [vmem:[#allocation2 + $0x140] sm:$0xff]  ;;  %v7259_v49 = vadd.f32 %v8010_v58, %v13012_v21  ;;  %v8012_v35 = vld [vmem:[#allocation2 + $0x158] sm:$0xff]  ;;  %v8014_v21 = vld [vmem:[#allocation2 + $0x168] sm:$0xff] }
 0xa61   : > { %7281 = vst.msk [vmem:[%s13032_s5 + $0x3f] sm:$0x1] %vm273_vm3, %v7232_v42  ;;  %v7256_v42 = vadd.f32 %v8007_v52, %v13006_v24  ;;  %v8011_v24 = vld [vmem:[#allocation2 + $0x150] sm:$0xff]  ;;  %v7261_v14 = vadd.f32 %v8012_v35, %v13016_v53  ;;  %v7263_v46 = vadd.f32 %v8014_v21, %v13020_v8  ;;  %v8017_v0 = vld [vmem:[#allocation2 + $0x188] sm:$0xff] }
 0xa62   : > { %7282 = vst.msk [vmem:[%s13032_s5 + $0x3f] sm:$0xfe] %vm7269_vm14, %v7233_v22  ;;  %v7258_v22 = vadd.f32 %v8009_v44, %v13010_v20  ;;  %v8013_v20 = vld [vmem:[#allocation2 + $0x160] sm:$0xff] }
 0xa63   : > { %7283 = vst.msk [vmem:[%s13032_s5 + $0x47] sm:$0xff] %vm224_vm2, %v7234_v28  ;;  %v7260_v28 = vadd.f32 %v8011_v24, %v13014_v32  ;;  %v8015_v32 = vld [vmem:[#allocation2 + $0x170] sm:$0xff] }
 0xa64   : > { %7284 = vst.msk [vmem:[%s13032_s5 + $0x4f] sm:$0x1] %vm273_vm3, %v7235_v37  ;;  %v7262_v37 = vadd.f32 %v8013_v20, %v13018_v19  ;;  %v7264_v53 = vadd.f32 %v8015_v32, %v13025_v25  ;;  %v13998_v19 = vld [vmem:[#allocation8_spill] sm:$0xff] }
 0xa65   : > { %7285 = vst.msk [vmem:[%s13032_s5 + $0x4f] sm:$0xfe] %vm7269_vm14, %v7236_v33  ;;  %v7220_v33 = vld [vmem:[#allocation2 + $0x190] sm:$0xff]  ;;  %v7265_v59 = vadd.f32 %v13037_v13, %v13998_v19 }
 0xa66   : > { %7286 = vst.msk [vmem:[%s13032_s5 + $0x57] sm:$0xff] %vm224_vm2, %v7237_v15  ;;  %v8016_v15 = vld [vmem:[#allocation2 + $0x180] sm:$0xff]  ;;  %v7268_v25 = vadd.f32 %v7220_v33, %v13052_v26 }
 0xa67   : > { %7287 = vst.msk [vmem:[%s13032_s5 + $0x5f] sm:$0x1] %vm273_vm3, %v7238_v45  ;;  %v7266_v8 = vadd.f32 %v8016_v15, %v13042_v11  ;;  %v7267_v45 = vadd.f32 %v8017_v0, %v13047_v9 }
 0xa68   : > { %7288 = vst.msk [vmem:[%s13032_s5 + $0x5f] sm:$0xfe] %vm7269_vm14, %v7239_v62 }
 0xa69   : > { %7289 = vst.msk [vmem:[%s13032_s5 + $0x67] sm:$0xff] %vm224_vm2, %v7240_v54 }
 0xa6a   : > { %7290 = vst.msk [vmem:[%s13032_s5 + $0x6f] sm:$0x1] %vm273_vm3, %v7241_v4 }
 0xa6b   : > { %7291 = vst.msk [vmem:[%s13032_s5 + $0x6f] sm:$0xfe] %vm7269_vm14, %v7242_v29 }
 0xa6c   : > { %7292 = vst.msk [vmem:[%s13032_s5 + $0x77] sm:$0xff] %vm224_vm2, %v7243_v34 }
 0xa6d   : > { %7293 = vst.msk [vmem:[%s13032_s5 + $0x7f] sm:$0x1] %vm273_vm3, %v7244_v38 }
 0xa6e   : > { %7294 = vst.msk [vmem:[%s13032_s5 + $0x7f] sm:$0xfe] %vm7269_vm14, %v7245_v18 }
 0xa6f   : > { %7295 = vst.msk [vmem:[%s13032_s5 + $0x87] sm:$0xff] %vm224_vm2, %v7246_v6 }
 0xa70   : > { %7296 = vst.msk [vmem:[%s13032_s5 + $0x8f] sm:$0x1] %vm273_vm3, %v7247_v31 }
 0xa71   : > { %7297 = vst.msk [vmem:[%s13032_s5 + $0x8f] sm:$0xfe] %vm7269_vm14, %v7248_v57 }
 0xa72   : > { %7298 = vst.msk [vmem:[%s13032_s5 + $0x97] sm:$0xff] %vm224_vm2, %v7249_v47 }
 0xa73   : > { %7299 = vst.msk [vmem:[%s13032_s5 + $0x9f] sm:$0x1] %vm273_vm3, %v7250_v60 }
 0xa74   : > { %7300 = vst.msk [vmem:[%s13032_s5 + $0x9f] sm:$0xfe] %vm7269_vm14, %v7251_v51 }
 0xa75   : > { %7301 = vst.msk [vmem:[%s13032_s5 + $0xa7] sm:$0xff] %vm224_vm2, %v7252_v55 }
 0xa76   : > { %7302 = vst.msk [vmem:[%s13032_s5 + $0xaf] sm:$0x1] %vm273_vm3, %v7253_v48 }
 0xa77   : > { %7303 = vst.msk [vmem:[%s13032_s5 + $0xaf] sm:$0xfe] %vm7269_vm14, %v7254_v40 }
 0xa78   : > { %7304 = vst.msk [vmem:[%s13032_s5 + $0xb7] sm:$0xff] %vm224_vm2, %v7255_v56 }
 0xa79   : > { %7305 = vst.msk [vmem:[%s13032_s5 + $0xbf] sm:$0x1] %vm273_vm3, %v7256_v42 }
 0xa7a   : > { %7306 = vst.msk [vmem:[%s13032_s5 + $0xbf] sm:$0xfe] %vm7269_vm14, %v7257_v7 }
 0xa7b   : > { %7307 = vst.msk [vmem:[%s13032_s5 + $0xc7] sm:$0xff] %vm224_vm2, %v7258_v22 }
 0xa7c   : > { %7308 = vst.msk [vmem:[%s13032_s5 + $0xcf] sm:$0x1] %vm273_vm3, %v7259_v49 }
 0xa7d   : > { %7309 = vst.msk [vmem:[%s13032_s5 + $0xcf] sm:$0xfe] %vm7269_vm14, %v7260_v28 }
 0xa7e   : > { %7310 = vst.msk [vmem:[%s13032_s5 + $0xd7] sm:$0xff] %vm224_vm2, %v7261_v14 }
 0xa7f   : > { %7311 = vst.msk [vmem:[%s13032_s5 + $0xdf] sm:$0x1] %vm273_vm3, %v7262_v37 }
 0xa80   : > { %7312 = vst.msk [vmem:[%s13032_s5 + $0xdf] sm:$0xfe] %vm7269_vm14, %v7263_v46 }
 0xa81   : > { %7313 = vst.msk [vmem:[%s13032_s5 + $0xe7] sm:$0xff] %vm224_vm2, %v7264_v53 }
 0xa82   : > { %7314 = vst.msk [vmem:[%s13032_s5 + $0xef] sm:$0x1] %vm273_vm3, %v7265_v59 }
 0xa83   : > { %7315 = vst.msk [vmem:[%s13032_s5 + $0xef] sm:$0xfe] %vm7269_vm14, %v7266_v8 }
 0xa84   : > { %7316 = vst.msk [vmem:[%s13032_s5 + $0xf7] sm:$0xff] %vm224_vm2, %v7267_v45 }
 0xa85   : > { %7317 = vst.msk [vmem:[%s13032_s5 + $0xff] sm:$0x1] %vm273_vm3, %v7268_v25 }
 0xa86 PF: > { %s13_s12 = sadd.s32 1, %s8024_s12  }
 0xa87   : > { %p10_p4 = scmp.ge.s32.totalorder %s13_s12, 4  }
 0xa89   :  { %12 = sbr.rel (!%p10_p4) target bundleno = 1 (0x1), region = 86 }

</bundles_post_ra>
